<compile_context>
chip_gen: v6e
topology: v6e:2x2x1
jax: 0.10.0
libtpu: 0.0.40
codegen_flags: <defaults>
</compile_context>

<pallas_src>
import functools

import jax
import jax.numpy as jnp
from jax.experimental import pallas as pl
from jax.experimental.pallas import tpu as pltpu

HIGHEST = jax.lax.Precision.HIGHEST  # pure-JAX reference only

# 3x3 tap offsets (oy, ox) in PyTorch kernel order (dy, dx) row-major, pad = 1.
_TAPS = tuple((dy - 1, dx - 1) for dy in range(3) for dx in range(3))


# ------------------------------ in-kernel helpers ------------------------------

def _border_masks(H, W, lanes):
    """Hoisted border predicates (shape (1, lanes)), computed once per step."""
    N = H * W
    idx = jax.lax.broadcasted_iota(jnp.int32, (1, lanes), 1)
    pix = jnp.bitwise_and(idx, N - 1) if N & (N - 1) == 0 else jax.lax.rem(idx, N)
    col = jnp.bitwise_and(pix, W - 1) if W & (W - 1) == 0 else jax.lax.rem(pix, W)
    # TODO(synk): non-power-of-two H*W / W only exercises the rem path above.
    return {(-1, 0): pix >= W,
            (1, 0): pix < (H - 1) * W,
            (0, -1): col >= 1,
            (0, 1): col <= W - 2}


def _shifted_tap(z, oy, ox, masks, W):
    """Zero-padded (oy, ox)-shifted copy of z (C, N) via a lane roll + mask."""
    if oy == 0 and ox == 0:
        return z
    lanes = z.shape[-1]
    off = oy * W + ox
    rolled = pltpu.roll(z, shift=(-off) % lanes, axis=1)
    valid = None
    if oy != 0:
        valid = masks[(oy, 0)]
    if ox != 0:
        m = masks[(0, ox)]
        valid = m if valid is None else jnp.logical_and(valid, m)
    return jnp.where(valid, rolled, jnp.zeros_like(rolled))


def _conv3x3(x, w_ref, b_ref, tap_ref, masks, W):
    """Dense 3x3 conv (stride 1, pad 1, bias) as ONE K=9*Cin MXU matmul.

    Taps are streamed one at a time into the VMEM scratch slab `tap_ref`
    (9*Cin, N) so at most one shifted copy is live in vregs, then a single
    (Cout, 9*Cin) @ (9*Cin, N) bf16 matmul consumes them.
    """
    cin = x.shape[0]
    for t, (oy, ox) in enumerate(_TAPS):
        tap_ref[t * cin:(t + 1) * cin, :] = _shifted_tap(x, oy, ox, masks, W)
    return jnp.dot(w_ref[...], tap_ref[...].astype(jnp.bfloat16),
                   preferred_element_type=jnp.float32) + b_ref[...]


def _dwconv3x3(z, dww_ref, br, masks, W):
    """Depthwise 3x3 over (C, N): per-tap roll -> mask -> scale -> accumulate."""
    acc = dww_ref[br, 4] * z                       # centre tap: no shift / mask
    for t, (oy, ox) in enumerate(_TAPS):
        if oy == 0 and ox == 0:
            continue
        acc = acc + dww_ref[br, t] * _shifted_tap(z, oy, ox, masks, W)
    return acc


def _attention_branch(x, y, br, qkvw_ref, dww_ref, pw_ref, temp_ref, mask,
                      masks, W, S):
    """x + Attention(x, y): fused q/kv 1x1, depthwise 3x3, heads, projection."""
    # fused q / kv 1x1 projection: ONE (3S, 2S) @ (2S, N) bf16 MXU pass
    xin = jnp.concatenate([x.astype(jnp.bfloat16), y.astype(jnp.bfloat16)], axis=0)
    z0 = jnp.dot(qkvw_ref[br], xin, preferred_element_type=jnp.float32)   # (3S, N)
    z = _dwconv3x3(z0, dww_ref, br, masks, W)
    q, k, v = z[:S], z[S:2 * S], z[2 * S:]

    # L2 normalise along the spatial axis (torch F.normalize, eps=1e-12), f32
    qn = q * jax.lax.rsqrt(jnp.maximum(jnp.sum(q * q, -1, keepdims=True), 1e-24))
    kn = k * jax.lax.rsqrt(jnp.maximum(jnp.sum(k * k, -1, keepdims=True), 1e-24))

    # all heads in one (S, S) MXU pass; off-head entries killed by additive mask
    scores = jax.lax.dot_general(qn.astype(jnp.bfloat16), kn.astype(jnp.bfloat16),
                                 (((1,), (1,)), ((), ())),
                                 preferred_element_type=jnp.float32)
    scores = scores * temp_ref[br] + mask
    m = jnp.max(scores, axis=-1, keepdims=True)
    e = jnp.exp(scores - m)
    p = e * pl.reciprocal(jnp.sum(e, axis=-1, keepdims=True), approx=True)

    out = jnp.dot(p.astype(jnp.bfloat16), v.astype(jnp.bfloat16),
                  preferred_element_type=jnp.float32)                     # (S, N)
    proj = jnp.dot(pw_ref[br], out.astype(jnp.bfloat16),
                   preferred_element_type=jnp.float32)                    # (S, N)
    return x + proj                                                       # inner residual


# ------------------------------- fused kernel ----------------------------------

def _fuse_kernel(H, W,
                 scw_ref, scb_ref, fcw_ref, fcb_ref, dr_ref, di_ref,
                 qkvw_ref, dww_ref, pw_ref, temp_ref, mask_ref,
                 xs_ref, xf_ref, o_ref, tap_s_ref, tap_f_ref):
    N = H * W
    S = xs_ref.shape[1]
    masks = _border_masks(H, W, N)

    xs = xs_ref[0]                 # (S, N)  spatial input (also the outer skip)
    xf = xf_ref[0]                 # (Cf, N) frequency input

    # dense 3x3 convs (single K=9*Cin matmul each)
    sc = _conv3x3(xs, scw_ref, scb_ref, tap_s_ref, masks, W)   # (S, N)
    fc = _conv3x3(xf, fcw_ref, fcb_ref, tap_f_ref, masks, W)   # (S, N)

    # forward 2-D DFT as flat (N, N) matmuls (f32: accuracy; not MXU-bound)
    dr = dr_ref[...]
    di = di_ref[...]
    sr = jnp.dot(sc, dr, preferred_element_type=jnp.float32)   # Re(fft2(sc))
    si = jnp.dot(sc, di, preferred_element_type=jnp.float32)   # Im(fft2(sc))
    fr = jnp.dot(fc, dr, preferred_element_type=jnp.float32)
    fi = jnp.dot(fc, di, preferred_element_type=jnp.float32)

    mask = mask_ref[...]
    new_r = _attention_branch(sr, fr, 0, qkvw_ref, dww_ref, pw_ref, temp_ref,
                              mask, masks, W, S)
    new_i = _attention_branch(si, fi, 1, qkvw_ref, dww_ref, pw_ref, temp_ref,
                              mask, masks, W, S)

    # inverse DFT real part: Re((Xr + i*Xi) @ conj(D)) / N = (Xr@Dr + Xi@Di) / N
    inv = (jnp.dot(new_r, dr, preferred_element_type=jnp.float32)
           + jnp.dot(new_i, di, preferred_element_type=jnp.float32)) * (1.0 / N)
    o_ref[0] = inv + xs            # outer skip connection


# --------------------------------- wrapper -------------------------------------

def _dft_mats(H, W):
    """(N, N) real/imag parts of the flattened 2-D DFT matrix kron(F_H, F_W)."""
    yh = jnp.arange(H, dtype=jnp.float32)
    xw = jnp.arange(W, dtype=jnp.float32)
    fh = jnp.exp(-2j * jnp.pi * jnp.outer(yh, yh) / H)
    fw = jnp.exp(-2j * jnp.pi * jnp.outer(xw, xw) / W)
    d = jnp.kron(fh, fw)           # symmetric -> row-vector form X = x @ D
    return jnp.real(d).astype(jnp.float32), jnp.imag(d).astype(jnp.float32)


def _prep_conv_w(w):
    """(Cout, Cin, 3, 3) -> (Cout, 9*Cin) bf16 with taps flattened as t*Cin+ci."""
    cout, cin = w.shape[0], w.shape[1]
    return jnp.transpose(w, (0, 2, 3, 1)).reshape(cout, 9 * cin).astype(jnp.bfloat16)


def _prep_att(p, S, heads):
    c = S // heads
    qkv = jnp.zeros((3 * S, 2 * S), jnp.float32)                 # fused q/kv weight
    qkv = qkv.at[:S, :S].set(p["q_w"].reshape(S, S))
    qkv = qkv.at[S:, S:].set(p["kv_w"].reshape(2 * S, S))
    dw = jnp.concatenate([p["q_dw_w"].reshape(S, 9),
                          p["kv_dw_w"].reshape(2 * S, 9)], axis=0)   # (3S, 9)
    dw = jnp.transpose(dw, (1, 0)).reshape(9, 3 * S, 1)
    temp = jnp.repeat(p["temperature"].reshape(heads), c).reshape(S, 1)
    return (qkv.astype(jnp.bfloat16), dw.astype(jnp.float32),
            p["proj_w"].reshape(S, S).astype(jnp.bfloat16),
            temp.astype(jnp.float32))


def fuse_block_forward(spatial_feature, frequency_feature, params, *, num_heads):
    B, S, H, W = spatial_feature.shape
    _, Cf, Hf, Wf = frequency_feature.shape
    if (Hf, Wf) != (H, W):
        # TODO(synk): F.interpolate(bilinear, align_corners=False) path for
        # mismatched spatial dims is not implemented in the fused kernel.
        raise NotImplementedError("spatial / frequency spatial dims must match")
    N = H * W

    scw = _prep_conv_w(params["spatial_conv_w"])
    scb = params["spatial_conv_b"].reshape(S, 1).astype(jnp.float32)
    fcw = _prep_conv_w(params["frequency_conv_w"])
    fcb = params["frequency_conv_b"].reshape(S, 1).astype(jnp.float32)
    dr, di = _dft_mats(H, W)

    pr = _prep_att(params["real_att"], S, num_heads)
    pi = _prep_att(params["imag_att"], S, num_heads)
    qkvw, dww, pw, temp = (jnp.stack([a, b]) for a, b in zip(pr, pi))

    # additive block-diagonal head mask shared by both branches
    head_id = jnp.arange(S, dtype=jnp.int32) // (S // num_heads)
    mask = jnp.where(head_id[:, None] == head_id[None, :], 0.0, -1e30)
    mask = mask.astype(jnp.float32)

    xs = spatial_feature.reshape(B, S, N).astype(jnp.float32)
    xf = frequency_feature.reshape(B, Cf, N).astype(jnp.float32)

    out = pl.pallas_call(
        functools.partial(_fuse_kernel, H, W),
        out_shape=jax.ShapeDtypeStruct((B, S, N), jnp.float32),
        grid=(B,),
        in_specs=[
            pl.BlockSpec((S, 9 * S), lambda b: (0, 0)),              # spatial conv w
            pl.BlockSpec((S, 1), lambda b: (0, 0)),                  # spatial conv b
            pl.BlockSpec((S, 9 * Cf), lambda b: (0, 0)),             # frequency conv w
            pl.BlockSpec((S, 1), lambda b: (0, 0)),                  # frequency conv b
            pl.BlockSpec((N, N), lambda b: (0, 0)),                  # DFT real
            pl.BlockSpec((N, N), lambda b: (0, 0)),                  # DFT imag
            pl.BlockSpec((2, 3 * S, 2 * S), lambda b: (0, 0, 0)),    # fused q/kv w
            pl.BlockSpec((2, 9, 3 * S, 1), lambda b: (0, 0, 0, 0)),  # depthwise w
            pl.BlockSpec((2, S, S), lambda b: (0, 0, 0)),            # proj w
            pl.BlockSpec((2, S, 1), lambda b: (0, 0, 0)),            # temperature rows
            pl.BlockSpec((S, S), lambda b: (0, 0)),                  # head mask
            pl.BlockSpec((1, S, N), lambda b: (b, 0, 0)),            # spatial input
            pl.BlockSpec((1, Cf, N), lambda b: (b, 0, 0)),           # frequency input
        ],
        out_specs=pl.BlockSpec((1, S, N), lambda b: (b, 0, 0)),
        scratch_shapes=[pltpu.VMEM((9 * S, N), jnp.float32),         # spatial taps
                        pltpu.VMEM((9 * Cf, N), jnp.float32)],       # frequency taps
        compiler_params=pltpu.CompilerParams(
            dimension_semantics=("parallel",),
            vmem_limit_bytes=32 * 1024 * 1024),
    )(scw, scb, fcw, fcb, dr, di, qkvw, dww, pw, temp, mask, xs, xf)
    return out.reshape(B, S, H, W)


# -------------------------------- parameters -----------------------------------

def init_params(key, spatial_channels, frequency_channels, num_heads):
    S, Fc = spatial_channels, frequency_channels

    def w_init(k, shape, fan_in):
        return jax.random.normal(k, shape, jnp.float32) / jnp.sqrt(float(fan_in))

    def att_params(k):
        ks = jax.random.split(k, 5)
        return {
            "temperature": jnp.ones((num_heads, 1, 1), jnp.float32),
            "kv_w": w_init(ks[0], (2 * S, S, 1, 1), S),
            "kv_dw_w": w_init(ks[1], (2 * S, 1, 3, 3), 9),
            "q_w": w_init(ks[2], (S, S, 1, 1), S),
            "q_dw_w": w_init(ks[3], (S, 1, 3, 3), 9),
            "proj_w": w_init(ks[4], (S, S, 1, 1), S),
        }

    ks = jax.random.split(key, 4)
    return {
        "spatial_conv_w": w_init(ks[0], (S, S, 3, 3), S * 9),
        "spatial_conv_b": jnp.zeros((S,), jnp.float32),
        "frequency_conv_w": w_init(ks[1], (S, Fc, 3, 3), Fc * 9),
        "frequency_conv_b": jnp.zeros((S,), jnp.float32),
        "real_att": att_params(ks[2]),
        "imag_att": att_params(ks[3]),
    }


# ----------------------------- pure-JAX reference ------------------------------

def _ref_conv(x, w, b=None, groups=1):
    pad = w.shape[2] // 2
    out = jax.lax.conv_general_dilated(
        x, w, (1, 1), [(pad, pad), (pad, pad)],
        dimension_numbers=("NCHW", "OIHW", "NCHW"),
        feature_group_count=groups, precision=HIGHEST)
    if b is not None:
        out = out + b[None, :, None, None]
    return out


def _ref_attention(x, y, p, heads):
    B, C, H, W = x.shape
    kv = _ref_conv(_ref_conv(y, p["kv_w"]), p["kv_dw_w"], groups=2 * C)
    k, v = kv[:, :C], kv[:, C:]
    q = _ref_conv(_ref_conv(x, p["q_w"]), p["q_dw_w"], groups=C)
    c = C // heads
    N = H * W
    qh = q.reshape(B, heads, c, N)
    kh = k.reshape(B, heads, c, N)
    vh = v.reshape(B, heads, c, N)
    nrm = lambda t: t / jnp.maximum(
        jnp.sqrt(jnp.sum(t * t, axis=-1, keepdims=True)), 1e-12)
    attn = jnp.einsum("bhcn,bhdn->bhcd", nrm(qh), nrm(kh),
                      precision=HIGHEST) * p["temperature"][None]
    attn = jax.nn.softmax(attn, axis=-1)
    out = jnp.einsum("bhcd,bhdn->bhcn", attn, vh,
                     precision=HIGHEST).reshape(B, C, H, W)
    return _ref_conv(out, p["proj_w"])


def _ref_fuse(spatial, freq, params, heads):
    skip = spatial
    sf = _ref_conv(spatial, params["spatial_conv_w"], params["spatial_conv_b"])
    ff = _ref_conv(freq, params["frequency_conv_w"], params["frequency_conv_b"])
    sfft = jnp.fft.fftn(sf, axes=(-2, -1))
    ffft = jnp.fft.fftn(ff, axes=(-2, -1))
    nr = sfft.real + _ref_attention(sfft.real, ffft.real, params["real_att"], heads)
    ni = sfft.imag + _ref_attention(sfft.imag, ffft.imag, params["imag_att"], heads)
    return jnp.fft.ifftn(jax.lax.complex(nr, ni), axes=(-2, -1)).real + skip


# ------------------------------------ main --------------------------------------

if __name__ == "__main__":
    SPATIAL_C, FREQ_C, HEADS = 16, 8, 4
    B, H, W = 2, 16, 16

    key = jax.random.PRNGKey(0)
    kp, kx, ky = jax.random.split(key, 3)
    params = init_params(kp, SPATIAL_C, FREQ_C, HEADS)
    spatial = jax.random.normal(kx, (B, SPATIAL_C, H, W), jnp.float32)
    freq = jax.random.normal(ky, (B, FREQ_C, H, W), jnp.float32)

    fwd = jax.jit(functools.partial(fuse_block_forward, num_heads=HEADS))
    out = jax.block_until_ready(fwd(spatial, freq, params))

    ref = _ref_fuse(spatial, freq, params, HEADS)
    rel_err = float(jnp.max(jnp.abs(out - ref)) / (jnp.max(jnp.abs(ref)) + 1e-8))
    assert out.shape == (B, SPATIAL_C, H, W) and out.dtype == jnp.float32
    assert rel_err < 2e-2, f"mismatch vs reference: rel_err={rel_err}"
    print("KERNEL_OK")
</pallas_src>

<mosaic_0001>
module attributes {stable_mosaic.version = 11 : i64} {
  func.func @_fuse_kernel(%arg0: i32, %arg1: memref<16x144xbf16, #tpu.memory_space<vmem>>, %arg2: memref<16x1xf32, #tpu.memory_space<vmem>>, %arg3: memref<16x72xbf16, #tpu.memory_space<vmem>>, %arg4: memref<16x1xf32, #tpu.memory_space<vmem>>, %arg5: memref<256x256xf32, #tpu.memory_space<vmem>>, %arg6: memref<256x256xf32, #tpu.memory_space<vmem>>, %arg7: memref<2x48x32xbf16, #tpu.memory_space<vmem>>, %arg8: memref<2x9x48x1xf32, #tpu.memory_space<vmem>>, %arg9: memref<2x16x16xbf16, #tpu.memory_space<vmem>>, %arg10: memref<2x16x1xf32, #tpu.memory_space<vmem>>, %arg11: memref<16x16xf32, #tpu.memory_space<vmem>>, %arg12: memref<1x16x256xf32, #tpu.memory_space<vmem>>, %arg13: memref<1x8x256xf32, #tpu.memory_space<vmem>>, %arg14: memref<1x16x256xf32, #tpu.memory_space<vmem>>, %arg15: memref<144x256xf32, #tpu.memory_space<vmem>>, %arg16: memref<72x256xf32, #tpu.memory_space<vmem>>) attributes {dimension_semantics = [#tpu.dimension_semantics<parallel>], iteration_bounds = array<i64: 2>, scalar_prefetch = 0 : i64, scratch_operands = 2 : i64, tpu.core_type = #tpu.core_type<tc>, window_params = [{pipeline_mode = #tpu.pipeline_mode<synchronous>, transform_indices = @transform_0, window_bounds = array<i64: 16, 144>}, {pipeline_mode = #tpu.pipeline_mode<synchronous>, transform_indices = @transform_1, window_bounds = array<i64: 16, 1>}, {pipeline_mode = #tpu.pipeline_mode<synchronous>, transform_indices = @transform_2, window_bounds = array<i64: 16, 72>}, {pipeline_mode = #tpu.pipeline_mode<synchronous>, transform_indices = @transform_3, window_bounds = array<i64: 16, 1>}, {pipeline_mode = #tpu.pipeline_mode<synchronous>, transform_indices = @transform_4, window_bounds = array<i64: 256, 256>}, {pipeline_mode = #tpu.pipeline_mode<synchronous>, transform_indices = @transform_5, window_bounds = array<i64: 256, 256>}, {pipeline_mode = #tpu.pipeline_mode<synchronous>, transform_indices = @transform_6, window_bounds = array<i64: 2, 48, 32>}, {pipeline_mode = #tpu.pipeline_mode<synchronous>, transform_indices = @transform_7, window_bounds = array<i64: 2, 9, 48, 1>}, {pipeline_mode = #tpu.pipeline_mode<synchronous>, transform_indices = @transform_8, window_bounds = array<i64: 2, 16, 16>}, {pipeline_mode = #tpu.pipeline_mode<synchronous>, transform_indices = @transform_9, window_bounds = array<i64: 2, 16, 1>}, {pipeline_mode = #tpu.pipeline_mode<synchronous>, transform_indices = @transform_10, window_bounds = array<i64: 16, 16>}, {transform_indices = @transform_11, window_bounds = array<i64: 1, 16, 256>}, {transform_indices = @transform_12, window_bounds = array<i64: 1, 8, 256>}, {transform_indices = @transform_13, window_bounds = array<i64: 1, 16, 256>}]} {
    %0 = tpu.iota {dimensions = array<i32: 1>} : vector<1x256xi32>
    %c255_i32 = arith.constant 255 : i32
    %1 = vector.broadcast %c255_i32 : i32 to vector<1x256xi32>
    %2 = arith.andi %0, %1 : vector<1x256xi32>
    %c15_i32 = arith.constant 15 : i32
    %3 = vector.broadcast %c15_i32 : i32 to vector<1x256xi32>
    %4 = arith.andi %2, %3 : vector<1x256xi32>
    %c16_i32 = arith.constant 16 : i32
    %5 = vector.broadcast %c16_i32 : i32 to vector<1x256xi32>
    %6 = arith.cmpi sge, %2, %5 : vector<1x256xi32>
    %c240_i32 = arith.constant 240 : i32
    %7 = vector.broadcast %c240_i32 : i32 to vector<1x256xi32>
    %8 = arith.cmpi slt, %2, %7 : vector<1x256xi32>
    %c1_i32 = arith.constant 1 : i32
    %9 = vector.broadcast %c1_i32 : i32 to vector<1x256xi32>
    %10 = arith.cmpi sge, %4, %9 : vector<1x256xi32>
    %c14_i32 = arith.constant 14 : i32
    %11 = vector.broadcast %c14_i32 : i32 to vector<1x256xi32>
    %12 = arith.cmpi sle, %4, %11 : vector<1x256xi32>
    %c0 = arith.constant 0 : index
    %c0_0 = arith.constant 0 : index
    %c0_1 = arith.constant 0 : index
    %13 = vector.load %arg12[%c0, %c0_0, %c0_1] : memref<1x16x256xf32, #tpu.memory_space<vmem>>, vector<1x16x256xf32>
    %14 = vector.shape_cast %13 : vector<1x16x256xf32> to vector<16x256xf32>
    %c0_2 = arith.constant 0 : index
    %c0_3 = arith.constant 0 : index
    %c0_4 = arith.constant 0 : index
    %15 = vector.load %arg13[%c0_2, %c0_3, %c0_4] : memref<1x8x256xf32, #tpu.memory_space<vmem>>, vector<1x8x256xf32>
    %16 = vector.shape_cast %15 : vector<1x8x256xf32> to vector<8x256xf32>
    %c17_i32 = arith.constant 17 : i32
    %17 = tpu.dynamic_rotate %14 by %c17_i32 dim 1 : vector<16x256xf32>, i32 -> vector<16x256xf32>
    %18 = arith.andi %6, %10 : vector<1x256xi1>
    %cst = arith.constant 0.000000e+00 : f32
    %19 = vector.broadcast %cst : f32 to vector<16x256xf32>
    %20 = vector.shape_cast %18 : vector<1x256xi1> to vector<1x256xi1>
    %21 = vector.broadcast %20 : vector<1x256xi1> to vector<16x256xi1>
    %22 = arith.select %21, %17, %19 : vector<16x256xi1>, vector<16x256xf32>
    %c0_5 = arith.constant 0 : index
    %c0_6 = arith.constant 0 : index
    %23 = vector.load %arg15[%c0_5, %c0_6] : memref<144x256xf32, #tpu.memory_space<vmem>>, vector<16x256xf32>
    tpu.vector_store %arg15[%c0_5, %c0_6], %22 {strides = array<i32>} : memref<144x256xf32, #tpu.memory_space<vmem>>, vector<16x256xf32>,
    %c16_i32_7 = arith.constant 16 : i32
    %24 = tpu.dynamic_rotate %14 by %c16_i32_7 dim 1 : vector<16x256xf32>, i32 -> vector<16x256xf32>
    %cst_8 = arith.constant 0.000000e+00 : f32
    %25 = vector.broadcast %cst_8 : f32 to vector<16x256xf32>
    %26 = vector.shape_cast %6 : vector<1x256xi1> to vector<1x256xi1>
    %27 = vector.broadcast %26 : vector<1x256xi1> to vector<16x256xi1>
    %28 = arith.select %27, %24, %25 : vector<16x256xi1>, vector<16x256xf32>
    %c16 = arith.constant 16 : index
    %c0_9 = arith.constant 0 : index
    %29 = vector.load %arg15[%c16, %c0_9] : memref<144x256xf32, #tpu.memory_space<vmem>>, vector<16x256xf32>
    tpu.vector_store %arg15[%c16, %c0_9], %28 {strides = array<i32>} : memref<144x256xf32, #tpu.memory_space<vmem>>, vector<16x256xf32>,
    %c15_i32_10 = arith.constant 15 : i32
    %30 = tpu.dynamic_rotate %14 by %c15_i32_10 dim 1 : vector<16x256xf32>, i32 -> vector<16x256xf32>
    %31 = arith.andi %6, %12 : vector<1x256xi1>
    %cst_11 = arith.constant 0.000000e+00 : f32
    %32 = vector.broadcast %cst_11 : f32 to vector<16x256xf32>
    %33 = vector.shape_cast %31 : vector<1x256xi1> to vector<1x256xi1>
    %34 = vector.broadcast %33 : vector<1x256xi1> to vector<16x256xi1>
    %35 = arith.select %34, %30, %32 : vector<16x256xi1>, vector<16x256xf32>
    %c32 = arith.constant 32 : index
    %c0_12 = arith.constant 0 : index
    %36 = vector.load %arg15[%c32, %c0_12] : memref<144x256xf32, #tpu.memory_space<vmem>>, vector<16x256xf32>
    tpu.vector_store %arg15[%c32, %c0_12], %35 {strides = array<i32>} : memref<144x256xf32, #tpu.memory_space<vmem>>, vector<16x256xf32>,
    %c1_i32_13 = arith.constant 1 : i32
    %37 = tpu.dynamic_rotate %14 by %c1_i32_13 dim 1 : vector<16x256xf32>, i32 -> vector<16x256xf32>
    %cst_14 = arith.constant 0.000000e+00 : f32
    %38 = vector.broadcast %cst_14 : f32 to vector<16x256xf32>
    %39 = vector.shape_cast %10 : vector<1x256xi1> to vector<1x256xi1>
    %40 = vector.broadcast %39 : vector<1x256xi1> to vector<16x256xi1>
    %41 = arith.select %40, %37, %38 : vector<16x256xi1>, vector<16x256xf32>
    %c48 = arith.constant 48 : index
    %c0_15 = arith.constant 0 : index
    %42 = vector.load %arg15[%c48, %c0_15] : memref<144x256xf32, #tpu.memory_space<vmem>>, vector<16x256xf32>
    tpu.vector_store %arg15[%c48, %c0_15], %41 {strides = array<i32>} : memref<144x256xf32, #tpu.memory_space<vmem>>, vector<16x256xf32>,
    %c64 = arith.constant 64 : index
    %c0_16 = arith.constant 0 : index
    %43 = vector.load %arg15[%c64, %c0_16] : memref<144x256xf32, #tpu.memory_space<vmem>>, vector<16x256xf32>
    tpu.vector_store %arg15[%c64, %c0_16], %14 {strides = array<i32>} : memref<144x256xf32, #tpu.memory_space<vmem>>, vector<16x256xf32>,
    %c255_i32_17 = arith.constant 255 : i32
    %44 = tpu.dynamic_rotate %14 by %c255_i32_17 dim 1 : vector<16x256xf32>, i32 -> vector<16x256xf32>
    %cst_18 = arith.constant 0.000000e+00 : f32
    %45 = vector.broadcast %cst_18 : f32 to vector<16x256xf32>
    %46 = vector.shape_cast %12 : vector<1x256xi1> to vector<1x256xi1>
    %47 = vector.broadcast %46 : vector<1x256xi1> to vector<16x256xi1>
    %48 = arith.select %47, %44, %45 : vector<16x256xi1>, vector<16x256xf32>
    %c80 = arith.constant 80 : index
    %c0_19 = arith.constant 0 : index
    %49 = vector.load %arg15[%c80, %c0_19] : memref<144x256xf32, #tpu.memory_space<vmem>>, vector<16x256xf32>
    tpu.vector_store %arg15[%c80, %c0_19], %48 {strides = array<i32>} : memref<144x256xf32, #tpu.memory_space<vmem>>, vector<16x256xf32>,
    %c241_i32 = arith.constant 241 : i32
    %50 = tpu.dynamic_rotate %14 by %c241_i32 dim 1 : vector<16x256xf32>, i32 -> vector<16x256xf32>
    %51 = arith.andi %8, %10 : vector<1x256xi1>
    %cst_20 = arith.constant 0.000000e+00 : f32
    %52 = vector.broadcast %cst_20 : f32 to vector<16x256xf32>
    %53 = vector.shape_cast %51 : vector<1x256xi1> to vector<1x256xi1>
    %54 = vector.broadcast %53 : vector<1x256xi1> to vector<16x256xi1>
    %55 = arith.select %54, %50, %52 : vector<16x256xi1>, vector<16x256xf32>
    %c96 = arith.constant 96 : index
    %c0_21 = arith.constant 0 : index
    %56 = vector.load %arg15[%c96, %c0_21] : memref<144x256xf32, #tpu.memory_space<vmem>>, vector<16x256xf32>
    tpu.vector_store %arg15[%c96, %c0_21], %55 {strides = array<i32>} : memref<144x256xf32, #tpu.memory_space<vmem>>, vector<16x256xf32>,
    %c240_i32_22 = arith.constant 240 : i32
    %57 = tpu.dynamic_rotate %14 by %c240_i32_22 dim 1 : vector<16x256xf32>, i32 -> vector<16x256xf32>
    %cst_23 = arith.constant 0.000000e+00 : f32
    %58 = vector.broadcast %cst_23 : f32 to vector<16x256xf32>
    %59 = vector.shape_cast %8 : vector<1x256xi1> to vector<1x256xi1>
    %60 = vector.broadcast %59 : vector<1x256xi1> to vector<16x256xi1>
    %61 = arith.select %60, %57, %58 : vector<16x256xi1>, vector<16x256xf32>
    %c112 = arith.constant 112 : index
    %c0_24 = arith.constant 0 : index
    %62 = vector.load %arg15[%c112, %c0_24] : memref<144x256xf32, #tpu.memory_space<vmem>>, vector<16x256xf32>
    tpu.vector_store %arg15[%c112, %c0_24], %61 {strides = array<i32>} : memref<144x256xf32, #tpu.memory_space<vmem>>, vector<16x256xf32>,
    %c239_i32 = arith.constant 239 : i32
    %63 = tpu.dynamic_rotate %14 by %c239_i32 dim 1 : vector<16x256xf32>, i32 -> vector<16x256xf32>
    %64 = arith.andi %8, %12 : vector<1x256xi1>
    %cst_25 = arith.constant 0.000000e+00 : f32
    %65 = vector.broadcast %cst_25 : f32 to vector<16x256xf32>
    %66 = vector.shape_cast %64 : vector<1x256xi1> to vector<1x256xi1>
    %67 = vector.broadcast %66 : vector<1x256xi1> to vector<16x256xi1>
    %68 = arith.select %67, %63, %65 : vector<16x256xi1>, vector<16x256xf32>
    %c128 = arith.constant 128 : index
    %c0_26 = arith.constant 0 : index
    %69 = vector.load %arg15[%c128, %c0_26] : memref<144x256xf32, #tpu.memory_space<vmem>>, vector<16x256xf32>
    tpu.vector_store %arg15[%c128, %c0_26], %68 {strides = array<i32>} : memref<144x256xf32, #tpu.memory_space<vmem>>, vector<16x256xf32>,
    %c0_27 = arith.constant 0 : index
    %c0_28 = arith.constant 0 : index
    %70 = vector.load %arg1[%c0_27, %c0_28] : memref<16x144xbf16, #tpu.memory_space<vmem>>, vector<16x144xbf16>
    %c0_29 = arith.constant 0 : index
    %c0_30 = arith.constant 0 : index
    %71 = vector.load %arg15[%c0_29, %c0_30] : memref<144x256xf32, #tpu.memory_space<vmem>>, vector<144x256xf32>
    %72 = arith.truncf %71 : vector<144x256xf32> to vector<144x256xbf16>
    %cst_31 = arith.constant dense<0.000000e+00> : vector<16x256xf32>
    %73 = tpu.matmul %70, %72, %cst_31 {dimension_numbers = #tpu.dot_dimension_numbers<[1], [0], [0], [1], [0, 0, 1, 1], [], []>} : vector<16x144xbf16>, vector<144x256xbf16>, vector<16x256xf32> -> vector<16x256xf32>
    %c0_32 = arith.constant 0 : index
    %c0_33 = arith.constant 0 : index
    %74 = vector.load %arg2[%c0_32, %c0_33] : memref<16x1xf32, #tpu.memory_space<vmem>>, vector<16x1xf32>
    %75 = vector.broadcast %74 : vector<16x1xf32> to vector<16x256xf32>
    %76 = arith.addf %73, %75 : vector<16x256xf32>
    %c17_i32_34 = arith.constant 17 : i32
    %77 = tpu.dynamic_rotate %16 by %c17_i32_34 dim 1 : vector<8x256xf32>, i32 -> vector<8x256xf32>
    %78 = arith.andi %6, %10 : vector<1x256xi1>
    %cst_35 = arith.constant 0.000000e+00 : f32
    %79 = vector.broadcast %cst_35 : f32 to vector<8x256xf32>
    %80 = vector.shape_cast %78 : vector<1x256xi1> to vector<1x256xi1>
    %81 = vector.broadcast %80 : vector<1x256xi1> to vector<8x256xi1>
    %82 = arith.select %81, %77, %79 : vector<8x256xi1>, vector<8x256xf32>
    %c0_36 = arith.constant 0 : index
    %c0_37 = arith.constant 0 : index
    %83 = vector.load %arg16[%c0_36, %c0_37] : memref<72x256xf32, #tpu.memory_space<vmem>>, vector<8x256xf32>
    tpu.vector_store %arg16[%c0_36, %c0_37], %82 {strides = array<i32>} : memref<72x256xf32, #tpu.memory_space<vmem>>, vector<8x256xf32>,
    %c16_i32_38 = arith.constant 16 : i32
    %84 = tpu.dynamic_rotate %16 by %c16_i32_38 dim 1 : vector<8x256xf32>, i32 -> vector<8x256xf32>
    %cst_39 = arith.constant 0.000000e+00 : f32
    %85 = vector.broadcast %cst_39 : f32 to vector<8x256xf32>
    %86 = vector.shape_cast %6 : vector<1x256xi1> to vector<1x256xi1>
    %87 = vector.broadcast %86 : vector<1x256xi1> to vector<8x256xi1>
    %88 = arith.select %87, %84, %85 : vector<8x256xi1>, vector<8x256xf32>
    %c8 = arith.constant 8 : index
    %c0_40 = arith.constant 0 : index
    %89 = vector.load %arg16[%c8, %c0_40] : memref<72x256xf32, #tpu.memory_space<vmem>>, vector<8x256xf32>
    tpu.vector_store %arg16[%c8, %c0_40], %88 {strides = array<i32>} : memref<72x256xf32, #tpu.memory_space<vmem>>, vector<8x256xf32>,
    %c15_i32_41 = arith.constant 15 : i32
    %90 = tpu.dynamic_rotate %16 by %c15_i32_41 dim 1 : vector<8x256xf32>, i32 -> vector<8x256xf32>
    %91 = arith.andi %6, %12 : vector<1x256xi1>
    %cst_42 = arith.constant 0.000000e+00 : f32
    %92 = vector.broadcast %cst_42 : f32 to vector<8x256xf32>
    %93 = vector.shape_cast %91 : vector<1x256xi1> to vector<1x256xi1>
    %94 = vector.broadcast %93 : vector<1x256xi1> to vector<8x256xi1>
    %95 = arith.select %94, %90, %92 : vector<8x256xi1>, vector<8x256xf32>
    %c16_43 = arith.constant 16 : index
    %c0_44 = arith.constant 0 : index
    %96 = vector.load %arg16[%c16_43, %c0_44] : memref<72x256xf32, #tpu.memory_space<vmem>>, vector<8x256xf32>
    tpu.vector_store %arg16[%c16_43, %c0_44], %95 {strides = array<i32>} : memref<72x256xf32, #tpu.memory_space<vmem>>, vector<8x256xf32>,
    %c1_i32_45 = arith.constant 1 : i32
    %97 = tpu.dynamic_rotate %16 by %c1_i32_45 dim 1 : vector<8x256xf32>, i32 -> vector<8x256xf32>
    %cst_46 = arith.constant 0.000000e+00 : f32
    %98 = vector.broadcast %cst_46 : f32 to vector<8x256xf32>
    %99 = vector.shape_cast %10 : vector<1x256xi1> to vector<1x256xi1>
    %100 = vector.broadcast %99 : vector<1x256xi1> to vector<8x256xi1>
    %101 = arith.select %100, %97, %98 : vector<8x256xi1>, vector<8x256xf32>
    %c24 = arith.constant 24 : index
    %c0_47 = arith.constant 0 : index
    %102 = vector.load %arg16[%c24, %c0_47] : memref<72x256xf32, #tpu.memory_space<vmem>>, vector<8x256xf32>
    tpu.vector_store %arg16[%c24, %c0_47], %101 {strides = array<i32>} : memref<72x256xf32, #tpu.memory_space<vmem>>, vector<8x256xf32>,
    %c32_48 = arith.constant 32 : index
    %c0_49 = arith.constant 0 : index
    %103 = vector.load %arg16[%c32_48, %c0_49] : memref<72x256xf32, #tpu.memory_space<vmem>>, vector<8x256xf32>
    tpu.vector_store %arg16[%c32_48, %c0_49], %16 {strides = array<i32>} : memref<72x256xf32, #tpu.memory_space<vmem>>, vector<8x256xf32>,
    %c255_i32_50 = arith.constant 255 : i32
    %104 = tpu.dynamic_rotate %16 by %c255_i32_50 dim 1 : vector<8x256xf32>, i32 -> vector<8x256xf32>
    %cst_51 = arith.constant 0.000000e+00 : f32
    %105 = vector.broadcast %cst_51 : f32 to vector<8x256xf32>
    %106 = vector.shape_cast %12 : vector<1x256xi1> to vector<1x256xi1>
    %107 = vector.broadcast %106 : vector<1x256xi1> to vector<8x256xi1>
    %108 = arith.select %107, %104, %105 : vector<8x256xi1>, vector<8x256xf32>
    %c40 = arith.constant 40 : index
    %c0_52 = arith.constant 0 : index
    %109 = vector.load %arg16[%c40, %c0_52] : memref<72x256xf32, #tpu.memory_space<vmem>>, vector<8x256xf32>
    tpu.vector_store %arg16[%c40, %c0_52], %108 {strides = array<i32>} : memref<72x256xf32, #tpu.memory_space<vmem>>, vector<8x256xf32>,
    %c241_i32_53 = arith.constant 241 : i32
    %110 = tpu.dynamic_rotate %16 by %c241_i32_53 dim 1 : vector<8x256xf32>, i32 -> vector<8x256xf32>
    %111 = arith.andi %8, %10 : vector<1x256xi1>
    %cst_54 = arith.constant 0.000000e+00 : f32
    %112 = vector.broadcast %cst_54 : f32 to vector<8x256xf32>
    %113 = vector.shape_cast %111 : vector<1x256xi1> to vector<1x256xi1>
    %114 = vector.broadcast %113 : vector<1x256xi1> to vector<8x256xi1>
    %115 = arith.select %114, %110, %112 : vector<8x256xi1>, vector<8x256xf32>
    %c48_55 = arith.constant 48 : index
    %c0_56 = arith.constant 0 : index
    %116 = vector.load %arg16[%c48_55, %c0_56] : memref<72x256xf32, #tpu.memory_space<vmem>>, vector<8x256xf32>
    tpu.vector_store %arg16[%c48_55, %c0_56], %115 {strides = array<i32>} : memref<72x256xf32, #tpu.memory_space<vmem>>, vector<8x256xf32>,
    %c240_i32_57 = arith.constant 240 : i32
    %117 = tpu.dynamic_rotate %16 by %c240_i32_57 dim 1 : vector<8x256xf32>, i32 -> vector<8x256xf32>
    %cst_58 = arith.constant 0.000000e+00 : f32
    %118 = vector.broadcast %cst_58 : f32 to vector<8x256xf32>
    %119 = vector.shape_cast %8 : vector<1x256xi1> to vector<1x256xi1>
    %120 = vector.broadcast %119 : vector<1x256xi1> to vector<8x256xi1>
    %121 = arith.select %120, %117, %118 : vector<8x256xi1>, vector<8x256xf32>
    %c56 = arith.constant 56 : index
    %c0_59 = arith.constant 0 : index
    %122 = vector.load %arg16[%c56, %c0_59] : memref<72x256xf32, #tpu.memory_space<vmem>>, vector<8x256xf32>
    tpu.vector_store %arg16[%c56, %c0_59], %121 {strides = array<i32>} : memref<72x256xf32, #tpu.memory_space<vmem>>, vector<8x256xf32>,
    %c239_i32_60 = arith.constant 239 : i32
    %123 = tpu.dynamic_rotate %16 by %c239_i32_60 dim 1 : vector<8x256xf32>, i32 -> vector<8x256xf32>
    %124 = arith.andi %8, %12 : vector<1x256xi1>
    %cst_61 = arith.constant 0.000000e+00 : f32
    %125 = vector.broadcast %cst_61 : f32 to vector<8x256xf32>
    %126 = vector.shape_cast %124 : vector<1x256xi1> to vector<1x256xi1>
    %127 = vector.broadcast %126 : vector<1x256xi1> to vector<8x256xi1>
    %128 = arith.select %127, %123, %125 : vector<8x256xi1>, vector<8x256xf32>
    %c64_62 = arith.constant 64 : index
    %c0_63 = arith.constant 0 : index
    %129 = vector.load %arg16[%c64_62, %c0_63] : memref<72x256xf32, #tpu.memory_space<vmem>>, vector<8x256xf32>
    tpu.vector_store %arg16[%c64_62, %c0_63], %128 {strides = array<i32>} : memref<72x256xf32, #tpu.memory_space<vmem>>, vector<8x256xf32>,
    %c0_64 = arith.constant 0 : index
    %c0_65 = arith.constant 0 : index
    %130 = vector.load %arg3[%c0_64, %c0_65] : memref<16x72xbf16, #tpu.memory_space<vmem>>, vector<16x72xbf16>
    %c0_66 = arith.constant 0 : index
    %c0_67 = arith.constant 0 : index
    %131 = vector.load %arg16[%c0_66, %c0_67] : memref<72x256xf32, #tpu.memory_space<vmem>>, vector<72x256xf32>
    %132 = arith.truncf %131 : vector<72x256xf32> to vector<72x256xbf16>
    %cst_68 = arith.constant dense<0.000000e+00> : vector<16x256xf32>
    %133 = tpu.matmul %130, %132, %cst_68 {dimension_numbers = #tpu.dot_dimension_numbers<[1], [0], [0], [1], [0, 0, 1, 1], [], []>} : vector<16x72xbf16>, vector<72x256xbf16>, vector<16x256xf32> -> vector<16x256xf32>
    %c0_69 = arith.constant 0 : index
    %c0_70 = arith.constant 0 : index
    %134 = vector.load %arg4[%c0_69, %c0_70] : memref<16x1xf32, #tpu.memory_space<vmem>>, vector<16x1xf32>
    %135 = vector.broadcast %134 : vector<16x1xf32> to vector<16x256xf32>
    %136 = arith.addf %133, %135 : vector<16x256xf32>
    %c0_71 = arith.constant 0 : index
    %c0_72 = arith.constant 0 : index
    %137 = vector.load %arg5[%c0_71, %c0_72] : memref<256x256xf32, #tpu.memory_space<vmem>>, vector<256x256xf32>
    %c0_73 = arith.constant 0 : index
    %c0_74 = arith.constant 0 : index
    %138 = vector.load %arg6[%c0_73, %c0_74] : memref<256x256xf32, #tpu.memory_space<vmem>>, vector<256x256xf32>
    %cst_75 = arith.constant dense<0.000000e+00> : vector<16x256xf32>
    %139 = tpu.matmul %76, %137, %cst_75 {dimension_numbers = #tpu.dot_dimension_numbers<[1], [0], [0], [1], [0, 0, 1, 1], [], []>} : vector<16x256xf32>, vector<256x256xf32>, vector<16x256xf32> -> vector<16x256xf32>
    %cst_76 = arith.constant dense<0.000000e+00> : vector<16x256xf32>
    %140 = tpu.matmul %76, %138, %cst_76 {dimension_numbers = #tpu.dot_dimension_numbers<[1], [0], [0], [1], [0, 0, 1, 1], [], []>} : vector<16x256xf32>, vector<256x256xf32>, vector<16x256xf32> -> vector<16x256xf32>
    %cst_77 = arith.constant dense<0.000000e+00> : vector<16x256xf32>
    %141 = tpu.matmul %136, %137, %cst_77 {dimension_numbers = #tpu.dot_dimension_numbers<[1], [0], [0], [1], [0, 0, 1, 1], [], []>} : vector<16x256xf32>, vector<256x256xf32>, vector<16x256xf32> -> vector<16x256xf32>
    %cst_78 = arith.constant dense<0.000000e+00> : vector<16x256xf32>
    %142 = tpu.matmul %136, %138, %cst_78 {dimension_numbers = #tpu.dot_dimension_numbers<[1], [0], [0], [1], [0, 0, 1, 1], [], []>} : vector<16x256xf32>, vector<256x256xf32>, vector<16x256xf32> -> vector<16x256xf32>
    %c0_79 = arith.constant 0 : index
    %c0_80 = arith.constant 0 : index
    %143 = vector.load %arg11[%c0_79, %c0_80] : memref<16x16xf32, #tpu.memory_space<vmem>>, vector<16x16xf32>
    %144 = arith.truncf %139 : vector<16x256xf32> to vector<16x256xbf16>
    %145 = arith.truncf %141 : vector<16x256xf32> to vector<16x256xbf16>
    %146 = tpu.concatenate %144, %145 in 0 : vector<16x256xbf16>, vector<16x256xbf16> -> vector<32x256xbf16>
    %c0_81 = arith.constant 0 : index
    %c0_82 = arith.constant 0 : index
    %c0_83 = arith.constant 0 : index
    %147 = vector.load %arg7[%c0_81, %c0_82, %c0_83] : memref<2x48x32xbf16, #tpu.memory_space<vmem>>, vector<1x48x32xbf16>
    %148 = vector.shape_cast %147 : vector<1x48x32xbf16> to vector<48x32xbf16>
    %cst_84 = arith.constant dense<0.000000e+00> : vector<48x256xf32>
    %149 = tpu.matmul %148, %146, %cst_84 {dimension_numbers = #tpu.dot_dimension_numbers<[1], [0], [0], [1], [0, 0, 1, 1], [], []>} : vector<48x32xbf16>, vector<32x256xbf16>, vector<48x256xf32> -> vector<48x256xf32>
    %c0_85 = arith.constant 0 : index
    %c4 = arith.constant 4 : index
    %c0_86 = arith.constant 0 : index
    %c0_87 = arith.constant 0 : index
    %150 = vector.load %arg8[%c0_85, %c4, %c0_86, %c0_87] : memref<2x9x48x1xf32, #tpu.memory_space<vmem>>, vector<1x1x48x1xf32>
    %151 = vector.shape_cast %150 : vector<1x1x48x1xf32> to vector<48x1xf32>
    %152 = vector.broadcast %151 : vector<48x1xf32> to vector<48x256xf32>
    %153 = arith.mulf %152, %149 : vector<48x256xf32>
    %c0_88 = arith.constant 0 : index
    %c0_89 = arith.constant 0 : index
    %c0_90 = arith.constant 0 : index
    %c0_91 = arith.constant 0 : index
    %154 = vector.load %arg8[%c0_88, %c0_89, %c0_90, %c0_91] : memref<2x9x48x1xf32, #tpu.memory_space<vmem>>, vector<1x1x48x1xf32>
    %155 = vector.shape_cast %154 : vector<1x1x48x1xf32> to vector<48x1xf32>
    %c17_i32_92 = arith.constant 17 : i32
    %156 = tpu.dynamic_rotate %149 by %c17_i32_92 dim 1 : vector<48x256xf32>, i32 -> vector<48x256xf32>
    %157 = arith.andi %6, %10 : vector<1x256xi1>
    %cst_93 = arith.constant 0.000000e+00 : f32
    %158 = vector.broadcast %cst_93 : f32 to vector<48x256xf32>
    %159 = vector.shape_cast %157 : vector<1x256xi1> to vector<1x256xi1>
    %160 = vector.broadcast %159 : vector<1x256xi1> to vector<48x256xi1>
    %161 = arith.select %160, %156, %158 : vector<48x256xi1>, vector<48x256xf32>
    %162 = vector.broadcast %155 : vector<48x1xf32> to vector<48x256xf32>
    %163 = arith.mulf %162, %161 : vector<48x256xf32>
    %164 = arith.addf %153, %163 : vector<48x256xf32>
    %c0_94 = arith.constant 0 : index
    %c1 = arith.constant 1 : index
    %c0_95 = arith.constant 0 : index
    %c0_96 = arith.constant 0 : index
    %165 = vector.load %arg8[%c0_94, %c1, %c0_95, %c0_96] : memref<2x9x48x1xf32, #tpu.memory_space<vmem>>, vector<1x1x48x1xf32>
    %166 = vector.shape_cast %165 : vector<1x1x48x1xf32> to vector<48x1xf32>
    %c16_i32_97 = arith.constant 16 : i32
    %167 = tpu.dynamic_rotate %149 by %c16_i32_97 dim 1 : vector<48x256xf32>, i32 -> vector<48x256xf32>
    %cst_98 = arith.constant 0.000000e+00 : f32
    %168 = vector.broadcast %cst_98 : f32 to vector<48x256xf32>
    %169 = vector.shape_cast %6 : vector<1x256xi1> to vector<1x256xi1>
    %170 = vector.broadcast %169 : vector<1x256xi1> to vector<48x256xi1>
    %171 = arith.select %170, %167, %168 : vector<48x256xi1>, vector<48x256xf32>
    %172 = vector.broadcast %166 : vector<48x1xf32> to vector<48x256xf32>
    %173 = arith.mulf %172, %171 : vector<48x256xf32>
    %174 = arith.addf %164, %173 : vector<48x256xf32>
    %c0_99 = arith.constant 0 : index
    %c2 = arith.constant 2 : index
    %c0_100 = arith.constant 0 : index
    %c0_101 = arith.constant 0 : index
    %175 = vector.load %arg8[%c0_99, %c2, %c0_100, %c0_101] : memref<2x9x48x1xf32, #tpu.memory_space<vmem>>, vector<1x1x48x1xf32>
    %176 = vector.shape_cast %175 : vector<1x1x48x1xf32> to vector<48x1xf32>
    %c15_i32_102 = arith.constant 15 : i32
    %177 = tpu.dynamic_rotate %149 by %c15_i32_102 dim 1 : vector<48x256xf32>, i32 -> vector<48x256xf32>
    %178 = arith.andi %6, %12 : vector<1x256xi1>
    %cst_103 = arith.constant 0.000000e+00 : f32
    %179 = vector.broadcast %cst_103 : f32 to vector<48x256xf32>
    %180 = vector.shape_cast %178 : vector<1x256xi1> to vector<1x256xi1>
    %181 = vector.broadcast %180 : vector<1x256xi1> to vector<48x256xi1>
    %182 = arith.select %181, %177, %179 : vector<48x256xi1>, vector<48x256xf32>
    %183 = vector.broadcast %176 : vector<48x1xf32> to vector<48x256xf32>
    %184 = arith.mulf %183, %182 : vector<48x256xf32>
    %185 = arith.addf %174, %184 : vector<48x256xf32>
    %c0_104 = arith.constant 0 : index
    %c3 = arith.constant 3 : index
    %c0_105 = arith.constant 0 : index
    %c0_106 = arith.constant 0 : index
    %186 = vector.load %arg8[%c0_104, %c3, %c0_105, %c0_106] : memref<2x9x48x1xf32, #tpu.memory_space<vmem>>, vector<1x1x48x1xf32>
    %187 = vector.shape_cast %186 : vector<1x1x48x1xf32> to vector<48x1xf32>
    %c1_i32_107 = arith.constant 1 : i32
    %188 = tpu.dynamic_rotate %149 by %c1_i32_107 dim 1 : vector<48x256xf32>, i32 -> vector<48x256xf32>
    %cst_108 = arith.constant 0.000000e+00 : f32
    %189 = vector.broadcast %cst_108 : f32 to vector<48x256xf32>
    %190 = vector.shape_cast %10 : vector<1x256xi1> to vector<1x256xi1>
    %191 = vector.broadcast %190 : vector<1x256xi1> to vector<48x256xi1>
    %192 = arith.select %191, %188, %189 : vector<48x256xi1>, vector<48x256xf32>
    %193 = vector.broadcast %187 : vector<48x1xf32> to vector<48x256xf32>
    %194 = arith.mulf %193, %192 : vector<48x256xf32>
    %195 = arith.addf %185, %194 : vector<48x256xf32>
    %c0_109 = arith.constant 0 : index
    %c5 = arith.constant 5 : index
    %c0_110 = arith.constant 0 : index
    %c0_111 = arith.constant 0 : index
    %196 = vector.load %arg8[%c0_109, %c5, %c0_110, %c0_111] : memref<2x9x48x1xf32, #tpu.memory_space<vmem>>, vector<1x1x48x1xf32>
    %197 = vector.shape_cast %196 : vector<1x1x48x1xf32> to vector<48x1xf32>
    %c255_i32_112 = arith.constant 255 : i32
    %198 = tpu.dynamic_rotate %149 by %c255_i32_112 dim 1 : vector<48x256xf32>, i32 -> vector<48x256xf32>
    %cst_113 = arith.constant 0.000000e+00 : f32
    %199 = vector.broadcast %cst_113 : f32 to vector<48x256xf32>
    %200 = vector.shape_cast %12 : vector<1x256xi1> to vector<1x256xi1>
    %201 = vector.broadcast %200 : vector<1x256xi1> to vector<48x256xi1>
    %202 = arith.select %201, %198, %199 : vector<48x256xi1>, vector<48x256xf32>
    %203 = vector.broadcast %197 : vector<48x1xf32> to vector<48x256xf32>
    %204 = arith.mulf %203, %202 : vector<48x256xf32>
    %205 = arith.addf %195, %204 : vector<48x256xf32>
    %c0_114 = arith.constant 0 : index
    %c6 = arith.constant 6 : index
    %c0_115 = arith.constant 0 : index
    %c0_116 = arith.constant 0 : index
    %206 = vector.load %arg8[%c0_114, %c6, %c0_115, %c0_116] : memref<2x9x48x1xf32, #tpu.memory_space<vmem>>, vector<1x1x48x1xf32>
    %207 = vector.shape_cast %206 : vector<1x1x48x1xf32> to vector<48x1xf32>
    %c241_i32_117 = arith.constant 241 : i32
    %208 = tpu.dynamic_rotate %149 by %c241_i32_117 dim 1 : vector<48x256xf32>, i32 -> vector<48x256xf32>
    %209 = arith.andi %8, %10 : vector<1x256xi1>
    %cst_118 = arith.constant 0.000000e+00 : f32
    %210 = vector.broadcast %cst_118 : f32 to vector<48x256xf32>
    %211 = vector.shape_cast %209 : vector<1x256xi1> to vector<1x256xi1>
    %212 = vector.broadcast %211 : vector<1x256xi1> to vector<48x256xi1>
    %213 = arith.select %212, %208, %210 : vector<48x256xi1>, vector<48x256xf32>
    %214 = vector.broadcast %207 : vector<48x1xf32> to vector<48x256xf32>
    %215 = arith.mulf %214, %213 : vector<48x256xf32>
    %216 = arith.addf %205, %215 : vector<48x256xf32>
    %c0_119 = arith.constant 0 : index
    %c7 = arith.constant 7 : index
    %c0_120 = arith.constant 0 : index
    %c0_121 = arith.constant 0 : index
    %217 = vector.load %arg8[%c0_119, %c7, %c0_120, %c0_121] : memref<2x9x48x1xf32, #tpu.memory_space<vmem>>, vector<1x1x48x1xf32>
    %218 = vector.shape_cast %217 : vector<1x1x48x1xf32> to vector<48x1xf32>
    %c240_i32_122 = arith.constant 240 : i32
    %219 = tpu.dynamic_rotate %149 by %c240_i32_122 dim 1 : vector<48x256xf32>, i32 -> vector<48x256xf32>
    %cst_123 = arith.constant 0.000000e+00 : f32
    %220 = vector.broadcast %cst_123 : f32 to vector<48x256xf32>
    %221 = vector.shape_cast %8 : vector<1x256xi1> to vector<1x256xi1>
    %222 = vector.broadcast %221 : vector<1x256xi1> to vector<48x256xi1>
    %223 = arith.select %222, %219, %220 : vector<48x256xi1>, vector<48x256xf32>
    %224 = vector.broadcast %218 : vector<48x1xf32> to vector<48x256xf32>
    %225 = arith.mulf %224, %223 : vector<48x256xf32>
    %226 = arith.addf %216, %225 : vector<48x256xf32>
    %c0_124 = arith.constant 0 : index
    %c8_125 = arith.constant 8 : index
    %c0_126 = arith.constant 0 : index
    %c0_127 = arith.constant 0 : index
    %227 = vector.load %arg8[%c0_124, %c8_125, %c0_126, %c0_127] : memref<2x9x48x1xf32, #tpu.memory_space<vmem>>, vector<1x1x48x1xf32>
    %228 = vector.shape_cast %227 : vector<1x1x48x1xf32> to vector<48x1xf32>
    %c239_i32_128 = arith.constant 239 : i32
    %229 = tpu.dynamic_rotate %149 by %c239_i32_128 dim 1 : vector<48x256xf32>, i32 -> vector<48x256xf32>
    %230 = arith.andi %8, %12 : vector<1x256xi1>
    %cst_129 = arith.constant 0.000000e+00 : f32
    %231 = vector.broadcast %cst_129 : f32 to vector<48x256xf32>
    %232 = vector.shape_cast %230 : vector<1x256xi1> to vector<1x256xi1>
    %233 = vector.broadcast %232 : vector<1x256xi1> to vector<48x256xi1>
    %234 = arith.select %233, %229, %231 : vector<48x256xi1>, vector<48x256xf32>
    %235 = vector.broadcast %228 : vector<48x1xf32> to vector<48x256xf32>
    %236 = arith.mulf %235, %234 : vector<48x256xf32>
    %237 = arith.addf %226, %236 : vector<48x256xf32>
    %238 = vector.extract_strided_slice %237 {offsets = [0, 0], sizes = [16, 256], strides = [1, 1]} : vector<48x256xf32> to vector<16x256xf32>
    %239 = vector.extract_strided_slice %237 {offsets = [16, 0], sizes = [16, 256], strides = [1, 1]} : vector<48x256xf32> to vector<16x256xf32>
    %240 = vector.extract_strided_slice %237 {offsets = [32, 0], sizes = [16, 256], strides = [1, 1]} : vector<48x256xf32> to vector<16x256xf32>
    %241 = arith.mulf %238, %238 : vector<16x256xf32>
    %cst_130 = arith.constant dense<0.000000e+00> : vector<16xf32>
    %242 = vector.multi_reduction <add>, %241, %cst_130 [1] : vector<16x256xf32> to vector<16xf32>
    %243 = vector.shape_cast %242 : vector<16xf32> to vector<16x1xf32>
    %cst_131 = arith.constant 1.000000e-24 : f32
    %244 = vector.broadcast %cst_131 : f32 to vector<16x1xf32>
    %245 = arith.maximumf %243, %244 : vector<16x1xf32>
    %246 = math.rsqrt %245 : vector<16x1xf32>
    %247 = vector.broadcast %246 : vector<16x1xf32> to vector<16x256xf32>
    %248 = arith.mulf %238, %247 : vector<16x256xf32>
    %249 = arith.mulf %239, %239 : vector<16x256xf32>
    %cst_132 = arith.constant dense<0.000000e+00> : vector<16xf32>
    %250 = vector.multi_reduction <add>, %249, %cst_132 [1] : vector<16x256xf32> to vector<16xf32>
    %251 = vector.shape_cast %250 : vector<16xf32> to vector<16x1xf32>
    %cst_133 = arith.constant 1.000000e-24 : f32
    %252 = vector.broadcast %cst_133 : f32 to vector<16x1xf32>
    %253 = arith.maximumf %251, %252 : vector<16x1xf32>
    %254 = math.rsqrt %253 : vector<16x1xf32>
    %255 = vector.broadcast %254 : vector<16x1xf32> to vector<16x256xf32>
    %256 = arith.mulf %239, %255 : vector<16x256xf32>
    %257 = arith.truncf %248 : vector<16x256xf32> to vector<16x256xbf16>
    %258 = arith.truncf %256 : vector<16x256xf32> to vector<16x256xbf16>
    %cst_134 = arith.constant dense<0.000000e+00> : vector<16x16xf32>
    %259 = tpu.matmul %257, %258, %cst_134 {dimension_numbers = #tpu.dot_dimension_numbers<[1], [1], [0], [0], [0, 0, 1, 0], [], []>} : vector<16x256xbf16>, vector<16x256xbf16>, vector<16x16xf32> -> vector<16x16xf32>
    %c0_135 = arith.constant 0 : index
    %c0_136 = arith.constant 0 : index
    %c0_137 = arith.constant 0 : index
    %260 = vector.load %arg10[%c0_135, %c0_136, %c0_137] : memref<2x16x1xf32, #tpu.memory_space<vmem>>, vector<1x16x1xf32>
    %261 = vector.shape_cast %260 : vector<1x16x1xf32> to vector<16x1xf32>
    %262 = vector.broadcast %261 : vector<16x1xf32> to vector<16x16xf32>
    %263 = arith.mulf %259, %262 : vector<16x16xf32>
    %264 = arith.addf %263, %143 : vector<16x16xf32>
    %cst_138 = arith.constant dense<0xFF800000> : vector<16xf32>
    %265 = vector.multi_reduction <maximumf>, %264, %cst_138 [1] : vector<16x16xf32> to vector<16xf32>
    %266 = vector.shape_cast %265 : vector<16xf32> to vector<16x1xf32>
    %267 = vector.broadcast %266 : vector<16x1xf32> to vector<16x16xf32>
    %268 = arith.subf %264, %267 : vector<16x16xf32>
    %269 = math.exp %268 : vector<16x16xf32>
    %cst_139 = arith.constant dense<0.000000e+00> : vector<16xf32>
    %270 = vector.multi_reduction <add>, %269, %cst_139 [1] : vector<16x16xf32> to vector<16xf32>
    %271 = vector.shape_cast %270 : vector<16xf32> to vector<16x1xf32>
    %272 = tpu.reciprocal %271 {approx = true} : vector<16x1xf32> -> vector<16x1xf32>
    %273 = vector.broadcast %272 : vector<16x1xf32> to vector<16x16xf32>
    %274 = arith.mulf %269, %273 : vector<16x16xf32>
    %275 = arith.truncf %274 : vector<16x16xf32> to vector<16x16xbf16>
    %276 = arith.truncf %240 : vector<16x256xf32> to vector<16x256xbf16>
    %cst_140 = arith.constant dense<0.000000e+00> : vector<16x256xf32>
    %277 = tpu.matmul %275, %276, %cst_140 {dimension_numbers = #tpu.dot_dimension_numbers<[1], [0], [0], [1], [0, 0, 1, 1], [], []>} : vector<16x16xbf16>, vector<16x256xbf16>, vector<16x256xf32> -> vector<16x256xf32>
    %c0_141 = arith.constant 0 : index
    %c0_142 = arith.constant 0 : index
    %c0_143 = arith.constant 0 : index
    %278 = vector.load %arg9[%c0_141, %c0_142, %c0_143] : memref<2x16x16xbf16, #tpu.memory_space<vmem>>, vector<1x16x16xbf16>
    %279 = vector.shape_cast %278 : vector<1x16x16xbf16> to vector<16x16xbf16>
    %280 = arith.truncf %277 : vector<16x256xf32> to vector<16x256xbf16>
    %cst_144 = arith.constant dense<0.000000e+00> : vector<16x256xf32>
    %281 = tpu.matmul %279, %280, %cst_144 {dimension_numbers = #tpu.dot_dimension_numbers<[1], [0], [0], [1], [0, 0, 1, 1], [], []>} : vector<16x16xbf16>, vector<16x256xbf16>, vector<16x256xf32> -> vector<16x256xf32>
    %282 = arith.addf %139, %281 : vector<16x256xf32>
    %283 = arith.truncf %140 : vector<16x256xf32> to vector<16x256xbf16>
    %284 = arith.truncf %142 : vector<16x256xf32> to vector<16x256xbf16>
    %285 = tpu.concatenate %283, %284 in 0 : vector<16x256xbf16>, vector<16x256xbf16> -> vector<32x256xbf16>
    %c1_145 = arith.constant 1 : index
    %c0_146 = arith.constant 0 : index
    %c0_147 = arith.constant 0 : index
    %286 = vector.load %arg7[%c1_145, %c0_146, %c0_147] : memref<2x48x32xbf16, #tpu.memory_space<vmem>>, vector<1x48x32xbf16>
    %287 = vector.shape_cast %286 : vector<1x48x32xbf16> to vector<48x32xbf16>
    %cst_148 = arith.constant dense<0.000000e+00> : vector<48x256xf32>
    %288 = tpu.matmul %287, %285, %cst_148 {dimension_numbers = #tpu.dot_dimension_numbers<[1], [0], [0], [1], [0, 0, 1, 1], [], []>} : vector<48x32xbf16>, vector<32x256xbf16>, vector<48x256xf32> -> vector<48x256xf32>
    %c1_149 = arith.constant 1 : index
    %c4_150 = arith.constant 4 : index
    %c0_151 = arith.constant 0 : index
    %c0_152 = arith.constant 0 : index
    %289 = vector.load %arg8[%c1_149, %c4_150, %c0_151, %c0_152] : memref<2x9x48x1xf32, #tpu.memory_space<vmem>>, vector<1x1x48x1xf32>
    %290 = vector.shape_cast %289 : vector<1x1x48x1xf32> to vector<48x1xf32>
    %291 = vector.broadcast %290 : vector<48x1xf32> to vector<48x256xf32>
    %292 = arith.mulf %291, %288 : vector<48x256xf32>
    %c1_153 = arith.constant 1 : index
    %c0_154 = arith.constant 0 : index
    %c0_155 = arith.constant 0 : index
    %c0_156 = arith.constant 0 : index
    %293 = vector.load %arg8[%c1_153, %c0_154, %c0_155, %c0_156] : memref<2x9x48x1xf32, #tpu.memory_space<vmem>>, vector<1x1x48x1xf32>
    %294 = vector.shape_cast %293 : vector<1x1x48x1xf32> to vector<48x1xf32>
    %c17_i32_157 = arith.constant 17 : i32
    %295 = tpu.dynamic_rotate %288 by %c17_i32_157 dim 1 : vector<48x256xf32>, i32 -> vector<48x256xf32>
    %296 = arith.andi %6, %10 : vector<1x256xi1>
    %cst_158 = arith.constant 0.000000e+00 : f32
    %297 = vector.broadcast %cst_158 : f32 to vector<48x256xf32>
    %298 = vector.shape_cast %296 : vector<1x256xi1> to vector<1x256xi1>
    %299 = vector.broadcast %298 : vector<1x256xi1> to vector<48x256xi1>
    %300 = arith.select %299, %295, %297 : vector<48x256xi1>, vector<48x256xf32>
    %301 = vector.broadcast %294 : vector<48x1xf32> to vector<48x256xf32>
    %302 = arith.mulf %301, %300 : vector<48x256xf32>
    %303 = arith.addf %292, %302 : vector<48x256xf32>
    %c1_159 = arith.constant 1 : index
    %c1_160 = arith.constant 1 : index
    %c0_161 = arith.constant 0 : index
    %c0_162 = arith.constant 0 : index
    %304 = vector.load %arg8[%c1_159, %c1_160, %c0_161, %c0_162] : memref<2x9x48x1xf32, #tpu.memory_space<vmem>>, vector<1x1x48x1xf32>
    %305 = vector.shape_cast %304 : vector<1x1x48x1xf32> to vector<48x1xf32>
    %c16_i32_163 = arith.constant 16 : i32
    %306 = tpu.dynamic_rotate %288 by %c16_i32_163 dim 1 : vector<48x256xf32>, i32 -> vector<48x256xf32>
    %cst_164 = arith.constant 0.000000e+00 : f32
    %307 = vector.broadcast %cst_164 : f32 to vector<48x256xf32>
    %308 = vector.shape_cast %6 : vector<1x256xi1> to vector<1x256xi1>
    %309 = vector.broadcast %308 : vector<1x256xi1> to vector<48x256xi1>
    %310 = arith.select %309, %306, %307 : vector<48x256xi1>, vector<48x256xf32>
    %311 = vector.broadcast %305 : vector<48x1xf32> to vector<48x256xf32>
    %312 = arith.mulf %311, %310 : vector<48x256xf32>
    %313 = arith.addf %303, %312 : vector<48x256xf32>
    %c1_165 = arith.constant 1 : index
    %c2_166 = arith.constant 2 : index
    %c0_167 = arith.constant 0 : index
    %c0_168 = arith.constant 0 : index
    %314 = vector.load %arg8[%c1_165, %c2_166, %c0_167, %c0_168] : memref<2x9x48x1xf32, #tpu.memory_space<vmem>>, vector<1x1x48x1xf32>
    %315 = vector.shape_cast %314 : vector<1x1x48x1xf32> to vector<48x1xf32>
    %c15_i32_169 = arith.constant 15 : i32
    %316 = tpu.dynamic_rotate %288 by %c15_i32_169 dim 1 : vector<48x256xf32>, i32 -> vector<48x256xf32>
    %317 = arith.andi %6, %12 : vector<1x256xi1>
    %cst_170 = arith.constant 0.000000e+00 : f32
    %318 = vector.broadcast %cst_170 : f32 to vector<48x256xf32>
    %319 = vector.shape_cast %317 : vector<1x256xi1> to vector<1x256xi1>
    %320 = vector.broadcast %319 : vector<1x256xi1> to vector<48x256xi1>
    %321 = arith.select %320, %316, %318 : vector<48x256xi1>, vector<48x256xf32>
    %322 = vector.broadcast %315 : vector<48x1xf32> to vector<48x256xf32>
    %323 = arith.mulf %322, %321 : vector<48x256xf32>
    %324 = arith.addf %313, %323 : vector<48x256xf32>
    %c1_171 = arith.constant 1 : index
    %c3_172 = arith.constant 3 : index
    %c0_173 = arith.constant 0 : index
    %c0_174 = arith.constant 0 : index
    %325 = vector.load %arg8[%c1_171, %c3_172, %c0_173, %c0_174] : memref<2x9x48x1xf32, #tpu.memory_space<vmem>>, vector<1x1x48x1xf32>
    %326 = vector.shape_cast %325 : vector<1x1x48x1xf32> to vector<48x1xf32>
    %c1_i32_175 = arith.constant 1 : i32
    %327 = tpu.dynamic_rotate %288 by %c1_i32_175 dim 1 : vector<48x256xf32>, i32 -> vector<48x256xf32>
    %cst_176 = arith.constant 0.000000e+00 : f32
    %328 = vector.broadcast %cst_176 : f32 to vector<48x256xf32>
    %329 = vector.shape_cast %10 : vector<1x256xi1> to vector<1x256xi1>
    %330 = vector.broadcast %329 : vector<1x256xi1> to vector<48x256xi1>
    %331 = arith.select %330, %327, %328 : vector<48x256xi1>, vector<48x256xf32>
    %332 = vector.broadcast %326 : vector<48x1xf32> to vector<48x256xf32>
    %333 = arith.mulf %332, %331 : vector<48x256xf32>
    %334 = arith.addf %324, %333 : vector<48x256xf32>
    %c1_177 = arith.constant 1 : index
    %c5_178 = arith.constant 5 : index
    %c0_179 = arith.constant 0 : index
    %c0_180 = arith.constant 0 : index
    %335 = vector.load %arg8[%c1_177, %c5_178, %c0_179, %c0_180] : memref<2x9x48x1xf32, #tpu.memory_space<vmem>>, vector<1x1x48x1xf32>
    %336 = vector.shape_cast %335 : vector<1x1x48x1xf32> to vector<48x1xf32>
    %c255_i32_181 = arith.constant 255 : i32
    %337 = tpu.dynamic_rotate %288 by %c255_i32_181 dim 1 : vector<48x256xf32>, i32 -> vector<48x256xf32>
    %cst_182 = arith.constant 0.000000e+00 : f32
    %338 = vector.broadcast %cst_182 : f32 to vector<48x256xf32>
    %339 = vector.shape_cast %12 : vector<1x256xi1> to vector<1x256xi1>
    %340 = vector.broadcast %339 : vector<1x256xi1> to vector<48x256xi1>
    %341 = arith.select %340, %337, %338 : vector<48x256xi1>, vector<48x256xf32>
    %342 = vector.broadcast %336 : vector<48x1xf32> to vector<48x256xf32>
    %343 = arith.mulf %342, %341 : vector<48x256xf32>
    %344 = arith.addf %334, %343 : vector<48x256xf32>
    %c1_183 = arith.constant 1 : index
    %c6_184 = arith.constant 6 : index
    %c0_185 = arith.constant 0 : index
    %c0_186 = arith.constant 0 : index
    %345 = vector.load %arg8[%c1_183, %c6_184, %c0_185, %c0_186] : memref<2x9x48x1xf32, #tpu.memory_space<vmem>>, vector<1x1x48x1xf32>
    %346 = vector.shape_cast %345 : vector<1x1x48x1xf32> to vector<48x1xf32>
    %c241_i32_187 = arith.constant 241 : i32
    %347 = tpu.dynamic_rotate %288 by %c241_i32_187 dim 1 : vector<48x256xf32>, i32 -> vector<48x256xf32>
    %348 = arith.andi %8, %10 : vector<1x256xi1>
    %cst_188 = arith.constant 0.000000e+00 : f32
    %349 = vector.broadcast %cst_188 : f32 to vector<48x256xf32>
    %350 = vector.shape_cast %348 : vector<1x256xi1> to vector<1x256xi1>
    %351 = vector.broadcast %350 : vector<1x256xi1> to vector<48x256xi1>
    %352 = arith.select %351, %347, %349 : vector<48x256xi1>, vector<48x256xf32>
    %353 = vector.broadcast %346 : vector<48x1xf32> to vector<48x256xf32>
    %354 = arith.mulf %353, %352 : vector<48x256xf32>
    %355 = arith.addf %344, %354 : vector<48x256xf32>
    %c1_189 = arith.constant 1 : index
    %c7_190 = arith.constant 7 : index
    %c0_191 = arith.constant 0 : index
    %c0_192 = arith.constant 0 : index
    %356 = vector.load %arg8[%c1_189, %c7_190, %c0_191, %c0_192] : memref<2x9x48x1xf32, #tpu.memory_space<vmem>>, vector<1x1x48x1xf32>
    %357 = vector.shape_cast %356 : vector<1x1x48x1xf32> to vector<48x1xf32>
    %c240_i32_193 = arith.constant 240 : i32
    %358 = tpu.dynamic_rotate %288 by %c240_i32_193 dim 1 : vector<48x256xf32>, i32 -> vector<48x256xf32>
    %cst_194 = arith.constant 0.000000e+00 : f32
    %359 = vector.broadcast %cst_194 : f32 to vector<48x256xf32>
    %360 = vector.shape_cast %8 : vector<1x256xi1> to vector<1x256xi1>
    %361 = vector.broadcast %360 : vector<1x256xi1> to vector<48x256xi1>
    %362 = arith.select %361, %358, %359 : vector<48x256xi1>, vector<48x256xf32>
    %363 = vector.broadcast %357 : vector<48x1xf32> to vector<48x256xf32>
    %364 = arith.mulf %363, %362 : vector<48x256xf32>
    %365 = arith.addf %355, %364 : vector<48x256xf32>
    %c1_195 = arith.constant 1 : index
    %c8_196 = arith.constant 8 : index
    %c0_197 = arith.constant 0 : index
    %c0_198 = arith.constant 0 : index
    %366 = vector.load %arg8[%c1_195, %c8_196, %c0_197, %c0_198] : memref<2x9x48x1xf32, #tpu.memory_space<vmem>>, vector<1x1x48x1xf32>
    %367 = vector.shape_cast %366 : vector<1x1x48x1xf32> to vector<48x1xf32>
    %c239_i32_199 = arith.constant 239 : i32
    %368 = tpu.dynamic_rotate %288 by %c239_i32_199 dim 1 : vector<48x256xf32>, i32 -> vector<48x256xf32>
    %369 = arith.andi %8, %12 : vector<1x256xi1>
    %cst_200 = arith.constant 0.000000e+00 : f32
    %370 = vector.broadcast %cst_200 : f32 to vector<48x256xf32>
    %371 = vector.shape_cast %369 : vector<1x256xi1> to vector<1x256xi1>
    %372 = vector.broadcast %371 : vector<1x256xi1> to vector<48x256xi1>
    %373 = arith.select %372, %368, %370 : vector<48x256xi1>, vector<48x256xf32>
    %374 = vector.broadcast %367 : vector<48x1xf32> to vector<48x256xf32>
    %375 = arith.mulf %374, %373 : vector<48x256xf32>
    %376 = arith.addf %365, %375 : vector<48x256xf32>
    %377 = vector.extract_strided_slice %376 {offsets = [0, 0], sizes = [16, 256], strides = [1, 1]} : vector<48x256xf32> to vector<16x256xf32>
    %378 = vector.extract_strided_slice %376 {offsets = [16, 0], sizes = [16, 256], strides = [1, 1]} : vector<48x256xf32> to vector<16x256xf32>
    %379 = vector.extract_strided_slice %376 {offsets = [32, 0], sizes = [16, 256], strides = [1, 1]} : vector<48x256xf32> to vector<16x256xf32>
    %380 = arith.mulf %377, %377 : vector<16x256xf32>
    %cst_201 = arith.constant dense<0.000000e+00> : vector<16xf32>
    %381 = vector.multi_reduction <add>, %380, %cst_201 [1] : vector<16x256xf32> to vector<16xf32>
    %382 = vector.shape_cast %381 : vector<16xf32> to vector<16x1xf32>
    %cst_202 = arith.constant 1.000000e-24 : f32
    %383 = vector.broadcast %cst_202 : f32 to vector<16x1xf32>
    %384 = arith.maximumf %382, %383 : vector<16x1xf32>
    %385 = math.rsqrt %384 : vector<16x1xf32>
    %386 = vector.broadcast %385 : vector<16x1xf32> to vector<16x256xf32>
    %387 = arith.mulf %377, %386 : vector<16x256xf32>
    %388 = arith.mulf %378, %378 : vector<16x256xf32>
    %cst_203 = arith.constant dense<0.000000e+00> : vector<16xf32>
    %389 = vector.multi_reduction <add>, %388, %cst_203 [1] : vector<16x256xf32> to vector<16xf32>
    %390 = vector.shape_cast %389 : vector<16xf32> to vector<16x1xf32>
    %cst_204 = arith.constant 1.000000e-24 : f32
    %391 = vector.broadcast %cst_204 : f32 to vector<16x1xf32>
    %392 = arith.maximumf %390, %391 : vector<16x1xf32>
    %393 = math.rsqrt %392 : vector<16x1xf32>
    %394 = vector.broadcast %393 : vector<16x1xf32> to vector<16x256xf32>
    %395 = arith.mulf %378, %394 : vector<16x256xf32>
    %396 = arith.truncf %387 : vector<16x256xf32> to vector<16x256xbf16>
    %397 = arith.truncf %395 : vector<16x256xf32> to vector<16x256xbf16>
    %cst_205 = arith.constant dense<0.000000e+00> : vector<16x16xf32>
    %398 = tpu.matmul %396, %397, %cst_205 {dimension_numbers = #tpu.dot_dimension_numbers<[1], [1], [0], [0], [0, 0, 1, 0], [], []>} : vector<16x256xbf16>, vector<16x256xbf16>, vector<16x16xf32> -> vector<16x16xf32>
    %c1_206 = arith.constant 1 : index
    %c0_207 = arith.constant 0 : index
    %c0_208 = arith.constant 0 : index
    %399 = vector.load %arg10[%c1_206, %c0_207, %c0_208] : memref<2x16x1xf32, #tpu.memory_space<vmem>>, vector<1x16x1xf32>
    %400 = vector.shape_cast %399 : vector<1x16x1xf32> to vector<16x1xf32>
    %401 = vector.broadcast %400 : vector<16x1xf32> to vector<16x16xf32>
    %402 = arith.mulf %398, %401 : vector<16x16xf32>
    %403 = arith.addf %402, %143 : vector<16x16xf32>
    %cst_209 = arith.constant dense<0xFF800000> : vector<16xf32>
    %404 = vector.multi_reduction <maximumf>, %403, %cst_209 [1] : vector<16x16xf32> to vector<16xf32>
    %405 = vector.shape_cast %404 : vector<16xf32> to vector<16x1xf32>
    %406 = vector.broadcast %405 : vector<16x1xf32> to vector<16x16xf32>
    %407 = arith.subf %403, %406 : vector<16x16xf32>
    %408 = math.exp %407 : vector<16x16xf32>
    %cst_210 = arith.constant dense<0.000000e+00> : vector<16xf32>
    %409 = vector.multi_reduction <add>, %408, %cst_210 [1] : vector<16x16xf32> to vector<16xf32>
    %410 = vector.shape_cast %409 : vector<16xf32> to vector<16x1xf32>
    %411 = tpu.reciprocal %410 {approx = true} : vector<16x1xf32> -> vector<16x1xf32>
    %412 = vector.broadcast %411 : vector<16x1xf32> to vector<16x16xf32>
    %413 = arith.mulf %408, %412 : vector<16x16xf32>
    %414 = arith.truncf %413 : vector<16x16xf32> to vector<16x16xbf16>
    %415 = arith.truncf %379 : vector<16x256xf32> to vector<16x256xbf16>
    %cst_211 = arith.constant dense<0.000000e+00> : vector<16x256xf32>
    %416 = tpu.matmul %414, %415, %cst_211 {dimension_numbers = #tpu.dot_dimension_numbers<[1], [0], [0], [1], [0, 0, 1, 1], [], []>} : vector<16x16xbf16>, vector<16x256xbf16>, vector<16x256xf32> -> vector<16x256xf32>
    %c1_212 = arith.constant 1 : index
    %c0_213 = arith.constant 0 : index
    %c0_214 = arith.constant 0 : index
    %417 = vector.load %arg9[%c1_212, %c0_213, %c0_214] : memref<2x16x16xbf16, #tpu.memory_space<vmem>>, vector<1x16x16xbf16>
    %418 = vector.shape_cast %417 : vector<1x16x16xbf16> to vector<16x16xbf16>
    %419 = arith.truncf %416 : vector<16x256xf32> to vector<16x256xbf16>
    %cst_215 = arith.constant dense<0.000000e+00> : vector<16x256xf32>
    %420 = tpu.matmul %418, %419, %cst_215 {dimension_numbers = #tpu.dot_dimension_numbers<[1], [0], [0], [1], [0, 0, 1, 1], [], []>} : vector<16x16xbf16>, vector<16x256xbf16>, vector<16x256xf32> -> vector<16x256xf32>
    %421 = arith.addf %140, %420 : vector<16x256xf32>
    %cst_216 = arith.constant dense<0.000000e+00> : vector<16x256xf32>
    %422 = tpu.matmul %282, %137, %cst_216 {dimension_numbers = #tpu.dot_dimension_numbers<[1], [0], [0], [1], [0, 0, 1, 1], [], []>} : vector<16x256xf32>, vector<256x256xf32>, vector<16x256xf32> -> vector<16x256xf32>
    %cst_217 = arith.constant dense<0.000000e+00> : vector<16x256xf32>
    %423 = tpu.matmul %421, %138, %cst_217 {dimension_numbers = #tpu.dot_dimension_numbers<[1], [0], [0], [1], [0, 0, 1, 1], [], []>} : vector<16x256xf32>, vector<256x256xf32>, vector<16x256xf32> -> vector<16x256xf32>
    %424 = arith.addf %422, %423 : vector<16x256xf32>
    %cst_218 = arith.constant 3.906250e-03 : f32
    %425 = vector.broadcast %cst_218 : f32 to vector<16x256xf32>
    %426 = arith.mulf %424, %425 : vector<16x256xf32>
    %427 = arith.addf %426, %14 : vector<16x256xf32>
    %c0_219 = arith.constant 0 : index
    %c0_220 = arith.constant 0 : index
    %c0_221 = arith.constant 0 : index
    %428 = vector.load %arg14[%c0_219, %c0_220, %c0_221] : memref<1x16x256xf32, #tpu.memory_space<vmem>>, vector<1x16x256xf32>
    %429 = vector.shape_cast %428 : vector<1x16x256xf32> to vector<16x256xf32>
    %430 = vector.shape_cast %427 : vector<16x256xf32> to vector<1x16x256xf32>
    tpu.vector_store %arg14[%c0_219, %c0_220, %c0_221], %430 {strides = array<i32>} : memref<1x16x256xf32, #tpu.memory_space<vmem>>, vector<1x16x256xf32>,
    return
  }
  func.func @transform_0(%arg0: i32) -> (i32, i32) {
    %c0_i32 = arith.constant 0 : i32
    %c0_i32_0 = arith.constant 0 : i32
    %c0_i32_1 = arith.constant 0 : i32
    return %c0_i32, %c0_i32_0 : i32, i32
  }
  func.func @transform_1(%arg0: i32) -> (i32, i32) {
    %c0_i32 = arith.constant 0 : i32
    %c0_i32_0 = arith.constant 0 : i32
    %c0_i32_1 = arith.constant 0 : i32
    return %c0_i32, %c0_i32_0 : i32, i32
  }
  func.func @transform_2(%arg0: i32) -> (i32, i32) {
    %c0_i32 = arith.constant 0 : i32
    %c0_i32_0 = arith.constant 0 : i32
    %c0_i32_1 = arith.constant 0 : i32
    return %c0_i32, %c0_i32_0 : i32, i32
  }
  func.func @transform_3(%arg0: i32) -> (i32, i32) {
    %c0_i32 = arith.constant 0 : i32
    %c0_i32_0 = arith.constant 0 : i32
    %c0_i32_1 = arith.constant 0 : i32
    return %c0_i32, %c0_i32_0 : i32, i32
  }
  func.func @transform_4(%arg0: i32) -> (i32, i32) {
    %c0_i32 = arith.constant 0 : i32
    %c0_i32_0 = arith.constant 0 : i32
    %c0_i32_1 = arith.constant 0 : i32
    return %c0_i32, %c0_i32_0 : i32, i32
  }
  func.func @transform_5(%arg0: i32) -> (i32, i32) {
    %c0_i32 = arith.constant 0 : i32
    %c0_i32_0 = arith.constant 0 : i32
    %c0_i32_1 = arith.constant 0 : i32
    return %c0_i32, %c0_i32_0 : i32, i32
  }
  func.func @transform_6(%arg0: i32) -> (i32, i32, i32) {
    %c0_i32 = arith.constant 0 : i32
    %c0_i32_0 = arith.constant 0 : i32
    %c0_i32_1 = arith.constant 0 : i32
    %c0_i32_2 = arith.constant 0 : i32
    return %c0_i32, %c0_i32_0, %c0_i32_1 : i32, i32, i32
  }
  func.func @transform_7(%arg0: i32) -> (i32, i32, i32, i32) {
    %c0_i32 = arith.constant 0 : i32
    %c0_i32_0 = arith.constant 0 : i32
    %c0_i32_1 = arith.constant 0 : i32
    %c0_i32_2 = arith.constant 0 : i32
    %c0_i32_3 = arith.constant 0 : i32
    return %c0_i32, %c0_i32_0, %c0_i32_1, %c0_i32_2 : i32, i32, i32, i32
  }
  func.func @transform_8(%arg0: i32) -> (i32, i32, i32) {
    %c0_i32 = arith.constant 0 : i32
    %c0_i32_0 = arith.constant 0 : i32
    %c0_i32_1 = arith.constant 0 : i32
    %c0_i32_2 = arith.constant 0 : i32
    return %c0_i32, %c0_i32_0, %c0_i32_1 : i32, i32, i32
  }
  func.func @transform_9(%arg0: i32) -> (i32, i32, i32) {
    %c0_i32 = arith.constant 0 : i32
    %c0_i32_0 = arith.constant 0 : i32
    %c0_i32_1 = arith.constant 0 : i32
    %c0_i32_2 = arith.constant 0 : i32
    return %c0_i32, %c0_i32_0, %c0_i32_1 : i32, i32, i32
  }
  func.func @transform_10(%arg0: i32) -> (i32, i32) {
    %c0_i32 = arith.constant 0 : i32
    %c0_i32_0 = arith.constant 0 : i32
    %c0_i32_1 = arith.constant 0 : i32
    return %c0_i32, %c0_i32_0 : i32, i32
  }
  func.func @transform_11(%arg0: i32) -> (i32, i32, i32) {
    %c0_i32 = arith.constant 0 : i32
    %c0_i32_0 = arith.constant 0 : i32
    %c0_i32_1 = arith.constant 0 : i32
    return %arg0, %c0_i32, %c0_i32_0 : i32, i32, i32
  }
  func.func @transform_12(%arg0: i32) -> (i32, i32, i32) {
    %c0_i32 = arith.constant 0 : i32
    %c0_i32_0 = arith.constant 0 : i32
    %c0_i32_1 = arith.constant 0 : i32
    return %arg0, %c0_i32, %c0_i32_0 : i32, i32, i32
  }
  func.func @transform_13(%arg0: i32) -> (i32, i32, i32) {
    %c0_i32 = arith.constant 0 : i32
    %c0_i32_0 = arith.constant 0 : i32
    %c0_i32_1 = arith.constant 0 : i32
    return %arg0, %c0_i32, %c0_i32_0 : i32, i32, i32
  }
}

</mosaic_0001>

<bundles_post_ra>
// kernel: fuse_block_forward.1
= control target key start
LH: loop header
LB: loop body
LE: loop exit
PB: predicated region body
PF: predicated region fallthrough
CT: control target
= control target key end

     0   :  { %s4794_s25 = smov 0   ;;  %s8980_s0 = inlined_call_operand.vmem [shape: bf16[16,144], index: 0, kind: input, shape index: {}]   ;;  %s8981_s1 = inlined_call_operand.vmem [shape: f32[16,1], index: 1, kind: input, shape index: {}]   ;;  %s8982_s2 = inlined_call_operand.vmem [shape: bf16[16,72], index: 2, kind: input, shape index: {}]   ;;  %s8983_s3 = inlined_call_operand.vmem [shape: f32[16,1], index: 3, kind: input, shape index: {}]   ;;  %s8984_s4 = inlined_call_operand.vmem [shape: f32[256,256], index: 4, kind: input, shape index: {}]   ;;  %s8985_s5 = inlined_call_operand.vmem [shape: f32[256,256], index: 5, kind: input, shape index: {}]   ;;  %s8986_s6 = inlined_call_operand.vmem [shape: bf16[2,48,32], index: 6, kind: input, shape index: {}]   ;;  %s8987_s7 = inlined_call_operand.vmem [shape: f32[2,9,48,1], index: 7, kind: input, shape index: {}]   ;;  %s8988_s8 = inlined_call_operand.vmem [shape: bf16[2,16,16], index: 8, kind: input, shape index: {}]   ;;  %s8989_s9 = inlined_call_operand.vmem [shape: f32[2,16,1], index: 9, kind: input, shape index: {}]   ;;  %s8990_s10 = inlined_call_operand.vmem [shape: f32[16,16], index: 10, kind: input, shape index: {}]   ;;  %s8991_s11 = inlined_call_operand.vmem [shape: f32[2,16,256], index: 11, kind: input, shape index: {}]   ;;  %s8992_s12 = inlined_call_operand.vmem [shape: f32[2,8,256], index: 12, kind: input, shape index: {}]   ;;  %s8993_s13 = inlined_call_operand.vmem [shape: f32[2,16,256], index: 13, kind: output, shape index: {}]  }
   0x1   :  { %9188 = sst [smem:[#allocation85_spill]] %s8980_s0 }
   0x2   :  { %9189 = sst [smem:[#allocation86_spill]] %s8981_s1 }
   0x3   :  { %9190 = sst [smem:[#allocation87_spill]] %s8982_s2 }
   0x4   :  { %9191 = sst [smem:[#allocation88_spill]] %s8983_s3 }
   0x5 LB: > { %s4166_s26 = sadd.s32 4294967295, %s4712_s25   ;;  %p4170_p0 = scmp.ge.s32.totalorder %s4712_s25, 1  ;;  %s4712_s25 = sphi %s4794_s25, %s23_s25  }
   0x6   : > { %p397_p1 = scmp.lt.s32.totalorder %s4712_s25, 3 }
   0x8   : > { %p398_p2 = pnand %p4170_p0, %p397_p1 }
   0xa   : > { %401 = sbr.rel (%p398_p2) target bundleno = 3521 (0xdc1), region = 72 }
   0xf   : > { %p446_p3 = scmp.lt.s32.totalorder %s4166_s26, 1  ;;  %s8999_s14 = smov 113   ;;  %v9015_v8 = vmov 0   ;;  %vm9003_vm0 = vcmask 130048   ;;  %v4192_v15 = vld [vmem:[%s8987_s7 + $0xd8] sm:$0xff]  ;;  %v4191_v16 = vld [vmem:[%s8987_s7 + $0xd0] sm:$0xff]  ;;  %v462_v38 = vlaneseq }
  0x10   : > { %s8997_s15 = smov 112   ;;  %s9001_s16 = smov 127   ;;  %4526 = vset.pattern.permute.xlu0 %v9015_v8  ;;  %991 = vmatprep.mubr.bf16.mxu1 %v9015_v8  ;;  %v1590_v17 = vld [vmem:[%s8987_s7 + $0x18] sm:$0xff]  ;;  %v1589_v18 = vld [vmem:[%s8987_s7 + $0x10] sm:$0xff]  ;;  %v4198_v19 = vld [vmem:[%s8987_s7 + $0x48] sm:$0xff]  ;;  %v9197_v60 = vmov 0 }
  0x11   : > { %s9816_s26 = smov (!%p446_p3, %s4166_s26), 1  ;;  %s9145_s17 = smov 1   ;;  %4527 = vset.pattern.permute.xlu1 %v9015_v8  ;;  %v4197_v20 = vld [vmem:[%s8987_s7 + $0x40] sm:$0xff]  ;;  %v4204_v21 = vld [vmem:[%s8987_s7 + $0x78] sm:$0xff]  ;;  %v4203_v22 = vld [vmem:[%s8987_s7 + $0x70] sm:$0xff]  ;;  %v4956_v41 = vand.u32 127, %v462_v38 }
  0x12   : > { %s8994_s27 = sshll.u32 %s9816_s26, 5  ;;  %s9147_s18 = smov 15   ;;  %v4210_v23 = vld [vmem:[%s8987_s7 + $0xa8] sm:$0xff]  ;;  %v4209_v24 = vld [vmem:[%s8987_s7 + $0xa0] sm:$0xff]  ;;  %v4196_v31 = vld [vmem:[%s8987_s7 + $0x38] sm:$0xff] }
  0x13   : > { %s4810_s30 = scalar_lea.vmem %s8991_s11, %s8994_s27  ;;  %s4316_s19 = sshll.u32 %s9816_s26, 4  ;;  %v4190_v25 = vld [vmem:[%s8987_s7 + $0xc8] sm:$0xff]  ;;  %v4189_v26 = vld [vmem:[%s8987_s7 + $0xc0] sm:$0xff]  ;;  %v4195_v32 = vld [vmem:[%s8987_s7 + $0x30] sm:$0xff]  ;;  %9195 = vst [vmem:[#allocation4_spill] sm:$0xff] %v4956_v41  ;;  %v464_v44 = vadd.s32 128, %v4956_v41 }
  0x14   : > { %v4813_v0 = vld [vmem:[%s4810_s30] sm:$0xff]  ;;  %v4816_v1 = vld [vmem:[%s4810_s30 + $0x10] sm:$0xff]  ;;  %v4819_v2 = vld [vmem:[%s4810_s30 + $0x8] sm:$0xff]  ;;  %s9149_s20 = smov 16   ;;  %s455_s23 = scalar_lea.vmem %s8992_s12, %s4316_s19  ;;  %v465_v54 = vand.u32 255, %v4956_v41  ;;  %vm9011_vm1 = vcmp.lt.s32.totalorder %v4956_v41, 113 }
  0x15   : > { %v4416_v3 = vpack.i.bf16 %v4816_v1, %v4813_v0  ;;  %v4824_v4 = vld [vmem:[%s4810_s30 + $0x18] sm:$0xff]  ;;  %s9151_s24 = smov 17   ;;  %v4846_v6 = vld [vmem:[%s455_s23] sm:$0xff]  ;;  %v4848_v7 = vld [vmem:[%s455_s23 + $0x8] sm:$0xff]  ;;  %s8995_s28 = smov 111   ;;  %v466_v47 = vand.u32 255, %v464_v44 }
  0x16   : > { %v4421_v5 = vpack.i.bf16 %v4824_v4, %v4819_v2  ;;  %v4486_v9 = vpack.i.bf16 %v4848_v7, %v4846_v6  ;;  %s9192_s0 = sld [smem:[#allocation85_spill]]  ;;  %v1588_v27 = vld [vmem:[%s8987_s7 + $0x8] sm:$0xff]  ;;  %v1587_v28 = vld [vmem:[%s8987_s7] sm:$0xff]  ;;  %v4222_v33 = vld [vmem:[%s8987_s7 + $0x138] sm:$0xff]  ;;  %vm9013_vm4 = vcmp.lt.s32.totalorder %v4956_v41, 112  ;;  %vm9005_vm5 = vcmp.lt.s32.totalorder %v4956_v41, 127 }
  0x17   : > { %4417 = vrot.lane.b32.xlu1 %v4416_v3, %s8999_s14  ;;  %4407 = vrot.lane.b32.xlu0 %v4416_v3, %s8997_s15  ;;  %s9193_s1 = sld [smem:[#allocation86_spill]]  ;;  %v4216_v29 = vld [vmem:[%s8987_s7 + $0x108] sm:$0xff]  ;;  %v4215_v30 = vld [vmem:[%s8987_s7 + $0x100] sm:$0xff]  ;;  %v4977_v52 = vand.u32 15, %v466_v47  ;;  %vm4987_vm2 = vcmp.lt.s32.totalorder %v466_v47, 240  ;;  %vm9004_vm9 = vcmp.lt.s32.totalorder %v4956_v41, 1 }
  0x18   : > { %s9194_s3 = sld [smem:[#allocation88_spill]]  ;;  %v4221_v34 = vld [vmem:[%s8987_s7 + $0x130] sm:$0xff]  ;;  %v4202_v35 = vld [vmem:[%s8987_s7 + $0x68] sm:$0xff]  ;;  %v4201_v36 = vld [vmem:[%s8987_s7 + $0x60] sm:$0xff]  ;;  %v9198_v60 = vsel %vm4987_vm2, 4294967295, %v9197_v60  ;;  %vm9009_vm15 = vcmp.lt.s32.totalorder %v4956_v41, 15 }
  0x19   : > { %v4228_v37 = vld [vmem:[%s8987_s7 + $0x168] sm:$0xff]  ;;  %v4227_v39 = vld [vmem:[%s8987_s7 + $0x160] sm:$0xff]  ;;  %v4208_v40 = vld [vmem:[%s8987_s7 + $0x98] sm:$0xff]  ;;  %9196 = vst [vmem:[#allocation5_spill] sm:$0xff] %v4977_v52  ;;  %vm9006_vm3 = vcmp.ge.s32.totalorder %v4977_v52, 1  ;;  %vm476_vm11 = vcmp.le.s32.totalorder %v4977_v52, 14 }
  0x1a   : > { %v4207_v42 = vld [vmem:[%s8987_s7 + $0x90] sm:$0xff]  ;;  %v4234_v43 = vld [vmem:[%s8987_s7 + $0x198] sm:$0xff]  ;;  %v4220_v49 = vld [vmem:[%s8987_s7 + $0x128] sm:$0xff]  ;;  %9199 = vst [vmem:[#allocation6_spill] sm:$0xff] %v9198_v60  ;;  %s9237_s2 = sld [smem:[#allocation87_spill]]  ;;  %s9541_s22 = smov 16  }
  0x1b   : > { %4422 = vrot.lane.b32.xlu1 %v4421_v5, %s8999_s14  ;;  %4412 = vrot.lane.b32.xlu0 %v4421_v5, %s8997_s15  ;;  %v4233_v45 = vld [vmem:[%s8987_s7 + $0x190] sm:$0xff]  ;;  %v4214_v46 = vld [vmem:[%s8987_s7 + $0xf8] sm:$0xff]  ;;  %vm5009_vm6 = vmand %vm4987_vm2, %vm9006_vm3  ;;  %s9543_s29 = smov 1   ;;  %s9814_s19 = sshll.u32 %s9816_s26, 5 }
  0x1c   : > { %v4530_v10 = vld [vmem:[%s9192_s0 + $0x4] ss:$8 sps:$4 sm:$0xff]   ;;  %v4213_v48 = vld [vmem:[%s8987_s7 + $0xf0] sm:$0xff]  ;;  %v4226_v57 = vld [vmem:[%s8987_s7 + $0x158] sm:$0xff] }
  0x1d   : > { %4179 = vmatprep.mubr.msk.bf16.mxu0 %vm9003_vm0, %v4530_v10  ;;  %v751_v11 = vld [vmem:[%s9193_s1] sm:$0xff]  ;;  %v752_v12 = vld [vmem:[%s9193_s1 + $0x8] sm:$0xff]  ;;  %v4225_v61 = vld [vmem:[%s8987_s7 + $0x150] sm:$0xff]  ;;  %s460_s1 = scalar_lea.vmem %s8993_s13, %s9814_s19 }
  0x1e   : > { %v932_v13 = vld [vmem:[%s9194_s3 + $0x8] sm:$0xff]  ;;  %v931_v14 = vld [vmem:[%s9194_s3] sm:$0xff]  ;;  %vm4318_vm7 = vmpackc.low %vm4987_vm2, %vm4987_vm2 }
  0x1f   : > { %4427 = vrot.lane.b32.xlu0 %v4416_v3, %s9001_s16  ;;  %4432 = vrot.lane.b32.xlu1 %v4421_v5, %s9001_s16  ;;  %v4219_v53 = vld [vmem:[%s8987_s7 + $0x120] sm:$0xff]  ;;  %vm4321_vm10 = vmpackc.low %vm5009_vm6, %vm5009_vm6  ;;  %v5594_v8 = vld [vmem:[%s8984_s4 + $0x50] sm:$0xff] }
  0x20   : > { %vm5069_vm14 = vmpackc.low %vm476_vm11, %vm476_vm11  ;;  %v5606_v60 = vld [vmem:[%s8984_s4 + $0x48] sm:$0xff] }
  0x21   : > { %vm5107_vm0 = vmpackc.low %vm9006_vm3, %vm9006_vm3 }
  0x23   : > { %4437 = vrot.lane.b32.xlu0 %v4416_v3, %s9145_s17  ;;  %4442 = vrot.lane.b32.xlu1 %v4421_v5, %s9145_s17 }
  0x27   : > { %4447 = vrot.lane.b32.xlu0 %v4416_v3, %s9147_s18  ;;  %4452 = vrot.lane.b32.xlu1 %v4421_v5, %s9147_s18 }
  0x2b   : > { %4457 = vrot.lane.b32.xlu0 %v4416_v3, %s9149_s20  ;;  %4462 = vrot.lane.b32.xlu1 %v4421_v5, %s9149_s20 }
  0x2f   : > { %4467 = vrot.lane.b32.xlu0 %v4416_v3, %s9151_s24  ;;  %4472 = vrot.lane.b32.xlu1 %v4421_v5, %s9151_s24 }
  0x33   : > { %4477 = vrot.lane.b32.xlu0 %v4416_v3, %s8995_s28  ;;  %4482 = vrot.lane.b32.xlu1 %v4421_v5, %s8995_s28 }
  0x37   : > { %4487 = vrot.lane.b32.xlu0 %v4486_v9, %s8995_s28  ;;  %4492 = vrot.lane.b32.xlu1 %v4486_v9, %s8999_s14  ;;  %s9396_s28 = smov 113   ;;  %s9397_s14 = smov 112  }
  0x3b   : > { %4497 = vrot.lane.b32.xlu0 %v4486_v9, %s8997_s15  ;;  %4502 = vrot.lane.b32.xlu1 %v4486_v9, %s9001_s16  ;;  %s9395_s15 = smov 127   ;;  %s9398_s16 = smov 111  }
  0x3f   : > { %4512 = vrot.lane.b32.xlu1 %v4486_v9, %s9145_s17  ;;  %4507 = vrot.lane.b32.xlu0 %v4486_v9, %s9147_s18 }
  0x43   : > { %4522 = vrot.lane.b32.xlu1 %v4486_v9, %s9149_s20  ;;  %4517 = vrot.lane.b32.xlu0 %v4486_v9, %s9151_s24 }
  0x47   : > { %755 = vperm.xlu0 %4526, %v751_v11   ;;  %760 = vperm.xlu1 %4527, %v752_v12   ;;  %v4998_v11 = vand.u32 15, %v465_v54 }
  0x49   : > { %9200 = vst [vmem:[#allocation7_spill] sm:$0xff] %v4998_v11  ;;  %vm9014_vm8 = vcmp.ge.s32.totalorder %v4998_v11, 1  ;;  %vm9012_vm13 = vcmp.le.s32.totalorder %v4998_v11, 14 }
  0x4a   : > { %vm5061_vm12 = vmpackc.low %vm9014_vm8, %vm9014_vm8 }
  0x4b   : > { %940 = vperm.xlu0 %4526, %v932_v13   ;;  %935 = vperm.xlu1 %4527, %v931_v14   ;;  %v9201_v14 = vmov 0 }
  0x4c   : > { %v9202_v14 = vsel %vm5009_vm6, 4294967295, %v9201_v14 }
  0x4d   : > { %9203 = vst [vmem:[#allocation8_spill] sm:$0xff] %v9202_v14  ;;  %v5612_v14 = vld [vmem:[%s8985_s5 + $0x1e8] sm:$0xff] }
  0x4e   : > { %9246 = vst [vmem:[#allocation21_spill] sm:$0xff] %v5612_v14 }
  0x4f   : > { %1562 = vperm.xlu0 %4526, %v4192_v15   ;;  %1557 = vperm.xlu1 %4527, %v4191_v16   ;;  %v4232_v15 = vld [vmem:[%s8987_s7 + $0x188] sm:$0xff] }
  0x53   : > { %1658 = vperm.xlu0 %4526, %v1590_v17   ;;  %1653 = vperm.xlu1 %4527, %v1589_v18  }
  0x57   : > { %1767 = vperm.xlu0 %4526, %v4198_v19   ;;  %1762 = vperm.xlu1 %4527, %v4197_v20  }
  0x5b   : > { %1876 = vperm.xlu0 %4526, %v4204_v21   ;;  %1871 = vperm.xlu1 %4527, %v4203_v22   ;;  %v4231_v22 = vld [vmem:[%s8987_s7 + $0x180] sm:$0xff] }
  0x5f   : > { %1985 = vperm.xlu0 %4526, %v4210_v23   ;;  %1980 = vperm.xlu1 %4527, %v4209_v24  }
  0x63   : > { %1552 = vperm.xlu0 %4526, %v4190_v25   ;;  %1547 = vperm.xlu1 %4527, %v4189_v26  }
  0x67   : > { %1648 = vperm.xlu0 %4526, %v1588_v27   ;;  %1643 = vperm.xlu1 %4527, %v1587_v28  }
  0x6b   : > { %2094 = vperm.xlu0 %4526, %v4216_v29   ;;  %2089 = vperm.xlu1 %4527, %v4215_v30  }
  0x6f   : > { %1757 = vperm.xlu0 %4526, %v4196_v31   ;;  %1752 = vperm.xlu1 %4527, %v4195_v32  }
  0x73   : > { %2203 = vperm.xlu0 %4526, %v4222_v33   ;;  %2198 = vperm.xlu1 %4527, %v4221_v34  }
  0x77   : > { %1866 = vperm.xlu0 %4526, %v4202_v35   ;;  %1861 = vperm.xlu1 %4527, %v4201_v36  }
  0x7b   : > { %2312 = vperm.xlu0 %4526, %v4228_v37   ;;  %2307 = vperm.xlu1 %4527, %v4227_v39  }
  0x7f   : > { %1975 = vperm.xlu0 %4526, %v4208_v40   ;;  %1970 = vperm.xlu1 %4527, %v4207_v42  }
  0x83   : > { %2421 = vperm.xlu0 %4526, %v4234_v43   ;;  %2416 = vperm.xlu1 %4527, %v4233_v45  }
  0x87   : > { %2084 = vperm.xlu0 %4526, %v4214_v46   ;;  %2079 = vperm.xlu1 %4527, %v4213_v48  }
  0x89   : > { %v4418_v50 = vpop.permute.xlu1 %4417  ;;  %v4408_v51 = vpop.permute.xlu0 %4407 }
  0x8a   : > { %v4420_v55 = vunpack.i.h.bf16 %v4418_v50  ;;  %v4419_v56 = vunpack.i.l.bf16 %v4418_v50  ;;  %v4410_v9 = vunpack.i.h.bf16 %v4408_v51  ;;  %v4409_v10 = vunpack.i.l.bf16 %v4408_v51 }
  0x8b   : > { %2193 = vperm.xlu0 %4526, %v4220_v49   ;;  %2188 = vperm.xlu1 %4527, %v4219_v53   ;;  %v742_v53 = vpack.c.bf16 %v4824_v4, %v4819_v2  ;;  %v741_v2 = vpack.c.bf16 %v4816_v1, %v4813_v0 }
  0x8d   : > { %v4423_v58 = vpop.permute.xlu1 %4422  ;;  %v4413_v59 = vpop.permute.xlu0 %4412 }
  0x8e   : > { %v4425_v62 = vunpack.i.h.bf16 %v4423_v58  ;;  %v4424_v63 = vunpack.i.l.bf16 %v4423_v58  ;;  %v4415_v3 = vunpack.i.h.bf16 %v4413_v59  ;;  %v4414_v5 = vunpack.i.l.bf16 %v4413_v59 }
  0x8f   : > { %2302 = vperm.xlu0 %4526, %v4226_v57   ;;  %2297 = vperm.xlu1 %4527, %v4225_v61  }
  0x90   : > { %v627_v12 = vsel %vm9011_vm1, %v4424_v63, %v4419_v56  ;;  %v628_v13 = vsel %vm9011_vm1, %v4425_v62, %v4420_v55  ;;  %v654_v17 = vsel %vm9013_vm4, %v4414_v5, %v4409_v10  ;;  %v655_v18 = vsel %vm9013_vm4, %v4415_v3, %v4410_v9 }
  0x91   : > { %v4428_v16 = vpop.permute.xlu0 %4427  ;;  %v652_v19 = vsel %vm9013_vm4, %v4409_v10, %v4414_v5  ;;  %v653_v20 = vsel %vm9013_vm4, %v4410_v9, %v4415_v3  ;;  %v4433_v21 = vpop.permute.xlu1 %4432  ;;  %v4319_v25 = vpack.c.bf16 %v655_v18, %v654_v17  ;;  %v625_v29 = vsel %vm9011_vm1, %v4419_v56, %v4424_v63 }
  0x92   : > { %v4430_v23 = vunpack.i.h.bf16 %v4428_v16  ;;  %v4429_v24 = vunpack.i.l.bf16 %v4428_v16  ;;  %v747_v26 = vpack.c.bf16 %v653_v20, %v652_v19  ;;  %v4435_v27 = vunpack.i.h.bf16 %v4433_v21 }
  0x93   : > { %v4434_v28 = vunpack.i.l.bf16 %v4433_v21  ;;  %2411 = vperm.xlu0 %4526, %v4232_v15   ;;  %v626_v30 = vsel %vm9011_vm1, %v4420_v55, %v4425_v62  ;;  %4320 = vmatprep.subr.msk.bf16.mxu0 %vm4318_vm7, %v4319_v25  ;;  %v4322_v31 = vpack.c.bf16 %v628_v13, %v627_v12  ;;  %vm5087_vm7 = vmpackc.low %vm9012_vm13, %vm9012_vm13  ;;  %v9212_v17 = vmov 0 }
  0x94   : > { %2406 = vperm.xlu1 %4527, %v4231_v22   ;;  %777 = vmatpush1.bf16.msra.mxu0 %v747_v26  ;;  %v601_v33 = vsel %vm9005_vm5, %v4430_v23, %v4435_v27  ;;  %v603_v35 = vsel %vm9005_vm5, %v4435_v27, %v4430_v23  ;;  %v4325_v44 = vpack.c.bf16 %v626_v30, %v625_v29  ;;  %v9215_v27 = vmov 0 }
  0x95   : > { %v600_v32 = vsel %vm9005_vm5, %v4429_v24, %v4434_v28  ;;  %v602_v34 = vsel %vm9005_vm5, %v4434_v28, %v4429_v24  ;;  %v4438_v36 = vpop.permute.xlu0 %4437  ;;  %v4443_v37 = vpop.permute.xlu1 %4442  ;;  %4323 = vmatprep.subr.msk.bf16.mxu0 %vm4321_vm10, %v4322_v31  ;;  %vm9007_vm10 = vcmp.lt.s32.totalorder %v4956_v41, 16  ;;  %vm5116_vm5 = vcmp.ge.s32.totalorder %v465_v54, 16 }
  0x96   : > { %v4440_v38 = vunpack.i.h.bf16 %v4438_v36  ;;  %v4439_v39 = vunpack.i.l.bf16 %v4438_v36  ;;  %v4445_v42 = vunpack.i.h.bf16 %v4443_v37  ;;  %v4444_v43 = vunpack.i.l.bf16 %v4443_v37  ;;  %vm5132_vm3 = vmand %vm5116_vm5, %vm9012_vm13 }
  0x97   : > { %v4328_v46 = vpack.c.bf16 %v603_v35, %v602_v34  ;;  %v4331_v50 = vpack.c.bf16 %v601_v33, %v600_v32  ;;  %v9213_v17 = vsel %vm5116_vm5, 4294967295, %v9212_v17  ;;  %v9216_v27 = vsel %vm5132_vm3, 4294967295, %v9215_v27 }
  0x98   : > { %4326 = vmatpush1.bf16.msk.msra.mxu0 %vm5061_vm12, %v4325_v44  ;;  %v571_v48 = vsel %vm9004_vm9, %v4439_v39, %v4444_v43  ;;  %v572_v49 = vsel %vm9004_vm9, %v4440_v38, %v4445_v42  ;;  %v573_v61 = vsel %vm9004_vm9, %v4444_v43, %v4439_v39  ;;  %v574_v4 = vsel %vm9004_vm9, %v4445_v42, %v4440_v38 }
  0x99   : > { %v4448_v47 = vpop.permute.xlu0 %4447  ;;  %v4453_v51 = vpop.permute.xlu1 %4452  ;;  %4329 = vmatprep.subr.msk.bf16.mxu0 %vm5069_vm14, %v4328_v46  ;;  %v4334_v9 = vpack.c.bf16 %v572_v49, %v571_v48  ;;  %vm9008_vm9 = vcmp.lt.s32.totalorder %v4956_v41, 17  ;;  %v4337_v16 = vpack.c.bf16 %v574_v4, %v573_v61  ;;  %9214 = vst [vmem:[#allocation9_spill] sm:$0xff] %v9213_v17  ;;  %9217 = vst [vmem:[#allocation10_spill] sm:$0xff] %v9216_v27  ;;  %v5624_v27 = vld [vmem:[%s8985_s5 + $0x1e0] sm:$0xff]  ;;  %v5630_v17 = vld [vmem:[%s8984_s4 + $0x38] sm:$0xff] }
  0x9a   : > { %v4450_v55 = vunpack.i.h.bf16 %v4448_v47  ;;  %v4449_v56 = vunpack.i.l.bf16 %v4448_v47  ;;  %v4455_v58 = vunpack.i.h.bf16 %v4453_v51  ;;  %v4454_v59 = vunpack.i.l.bf16 %v4453_v51  ;;  %9247 = vst [vmem:[#allocation22_spill] sm:$0xff] %v5624_v27 }
  0x9c   : > { %4332 = vmatpush1.bf16.msk.msra.mxu0 %vm5087_vm7, %v4331_v50  ;;  %v544_v63 = vsel %vm9009_vm15, %v4449_v56, %v4454_v59  ;;  %v545_v3 = vsel %vm9009_vm15, %v4450_v55, %v4455_v58  ;;  %v546_v15 = vsel %vm9009_vm15, %v4454_v59, %v4449_v56  ;;  %v547_v18 = vsel %vm9009_vm15, %v4455_v58, %v4450_v55 }
  0x9d   : > { %v4458_v62 = vpop.permute.xlu0 %4457  ;;  %v4463_v5 = vpop.permute.xlu1 %4462  ;;  %782 = vmatprep.subr.bf16.mxu0 %v742_v53  ;;  %v4340_v21 = vpack.c.bf16 %v545_v3, %v544_v63  ;;  %v4343_v29 = vpack.c.bf16 %v547_v18, %v546_v15  ;;  %v9218_v55 = vmov 0  ;;  %v9221_v56 = vmov 0 }
  0x9e   : > { %v4460_v10 = vunpack.i.h.bf16 %v4458_v62  ;;  %v4459_v12 = vunpack.i.l.bf16 %v4458_v62  ;;  %v4465_v13 = vunpack.i.h.bf16 %v4463_v5  ;;  %v4464_v0 = vunpack.i.l.bf16 %v4463_v5 }
  0x9f   : > { %vm952_vm15 = vcmask 1043456  }
  0xa0   : > { %783 = vmatpush1.bf16.msra.mxu0 %v741_v2  ;;  %v519_v22 = vsel %vm9007_vm10, %v4459_v12, %v4464_v0  ;;  %v520_v23 = vsel %vm9007_vm10, %v4460_v10, %v4465_v13  ;;  %v521_v28 = vsel %vm9007_vm10, %v4464_v0, %v4459_v12  ;;  %v522_v30 = vsel %vm9007_vm10, %v4465_v13, %v4460_v10  ;;  %vm4342_vm10 = vmpackc.low %vm5132_vm3, %vm5132_vm3 }
  0xa1   : > { %v4468_v19 = vpop.permute.xlu0 %4467  ;;  %v4473_v20 = vpop.permute.xlu1 %4472  ;;  %4335 = vmatprep.subr.msk.bf16.mxu0 %vm5107_vm0, %v4334_v9  ;;  %v736_v35 = vpack.c.bf16 %v520_v23, %v519_v22  ;;  %v4346_v46 = vpack.c.bf16 %v522_v30, %v521_v28 }
  0xa2   : > { %v4470_v24 = vunpack.i.h.bf16 %v4468_v19  ;;  %v4469_v25 = vunpack.i.l.bf16 %v4468_v19  ;;  %v4475_v54 = vunpack.i.h.bf16 %v4473_v20  ;;  %v4474_v26 = vunpack.i.l.bf16 %v4473_v20 }
  0xa4   : > { %4338 = vmatpush1.bf16.msk.msra.mxu0 %vm5061_vm12, %v4337_v16  ;;  %v492_v32 = vsel %vm9008_vm9, %v4469_v25, %v4474_v26  ;;  %v493_v33 = vsel %vm9008_vm9, %v4470_v24, %v4475_v54  ;;  %vm9010_vm12 = vcmp.lt.s32.totalorder %v4956_v41, 111  ;;  %v494_v40 = vsel %vm9008_vm9, %v4474_v26, %v4469_v25 }
  0xa5   : > { %v4478_v31 = vpop.permute.xlu0 %4477  ;;  %v4483_v34 = vpop.permute.xlu1 %4482  ;;  %4341 = vmatprep.subr.msk.bf16.mxu0 %vm5069_vm14, %v4340_v21  ;;  %v495_v42 = vsel %vm9008_vm9, %v4475_v54, %v4470_v24  ;;  %vm4345_vm14 = vmpackc.low %vm5116_vm5, %vm5116_vm5  ;;  %v4349_v48 = vpack.c.bf16 %v493_v33, %v492_v32 }
  0xa6   : > { %v4480_v36 = vunpack.i.h.bf16 %v4478_v31  ;;  %v4479_v37 = vunpack.i.l.bf16 %v4478_v31  ;;  %v4485_v38 = vunpack.i.h.bf16 %v4483_v34  ;;  %v4484_v39 = vunpack.i.l.bf16 %v4483_v34  ;;  %vm5175_vm9 = vmand %vm5116_vm5, %vm9014_vm8  ;;  %v5232_v34 = vld [vmem:[%s8985_s5 + $0xf8] sm:$0xff] }
  0xa7   : > { %v9222_v56 = vsel %vm5175_vm9, 4294967295, %v9221_v56  ;;  %v4352_v58 = vpack.c.bf16 %v495_v42, %v494_v40 }
  0xa8   : > { %4344 = vmatpush1.bf16.msk.msra.mxu0 %vm4342_vm10, %v4343_v29  ;;  %v679_v44 = vsel %vm9010_vm12, %v4484_v39, %v4479_v37  ;;  %v680_v45 = vsel %vm9010_vm12, %v4485_v38, %v4480_v36  ;;  %vm5167_vm10 = vmand %vm4987_vm2, %vm476_vm11  ;;  %9223 = vst [vmem:[#allocation12_spill] sm:$0xff] %v9222_v56  ;;  %v677_v59 = vsel %vm9010_vm12, %v4479_v37, %v4484_v39  ;;  %v5636_v56 = vld [vmem:[%s8985_s5 + $0x1d8] sm:$0xff] }
  0xa9   : > { %v4488_v43 = vpop.permute.xlu0 %4487  ;;  %v4493_v47 = vpop.permute.xlu1 %4492  ;;  %788 = vmatprep.subr.bf16.mxu0 %v736_v35  ;;  %v9219_v55 = vsel %vm5167_vm10, 4294967295, %v9218_v55  ;;  %v678_v61 = vsel %vm9010_vm12, %v4480_v36, %v4485_v38  ;;  %v4355_v10 = vpack.c.bf16 %v680_v45, %v679_v44  ;;  %v4528_v35 = vld [vmem:[%s9192_s0] ss:$8 sps:$4 sm:$0xff]   ;;  %v5255_v45 = vld [vmem:[%s8985_s5 + $0xf0] sm:$0xff]  ;;  %9248 = vst [vmem:[#allocation23_spill] sm:$0xff] %v5636_v56 }
  0xaa   : > { %v4490_v49 = vunpack.i.h.bf16 %v4488_v43  ;;  %v4489_v50 = vunpack.i.l.bf16 %v4488_v43  ;;  %v4495_v51 = vunpack.i.h.bf16 %v4493_v47  ;;  %v4494_v53 = vunpack.i.l.bf16 %v4493_v47  ;;  %9220 = vst [vmem:[#allocation11_spill] sm:$0xff] %v9219_v55  ;;  %v5264_v47 = vld [vmem:[%s8985_s5 + $0xe8] sm:$0xff]  ;;  %v5600_v55 = vld [vmem:[%s8985_s5 + $0x1f0] sm:$0xff] }
  0xab   : > { %v4358_v22 = vpack.c.bf16 %v678_v61, %v677_v59  ;;  %9245 = vst [vmem:[#allocation20_spill] sm:$0xff] %v5600_v55 }
  0xac   : > { %v896_v2 = vsel %vm9010_vm12, %v4490_v49, %v4489_v50  ;;  %v895_v4 = vsel %vm9010_vm12, %v4489_v50, %v4490_v49  ;;  %4347 = vmatpush1.bf16.msk.msra.mxu0 %vm4345_vm14, %v4346_v46  ;;  %v876_v62 = vsel %vm9011_vm1, %v4495_v51, %v4494_v53  ;;  %vm4351_vm14 = vmpackc.low %vm5175_vm9, %vm5175_vm9  ;;  %v875_v16 = vsel %vm9011_vm1, %v4494_v53, %v4495_v51  ;;  %v5273_v50 = vld [vmem:[%s8985_s5 + $0xe0] sm:$0xff]  ;;  %v5279_v53 = vld [vmem:[%s8985_s5 + $0xd8] sm:$0xff] }
  0xad   : > { %v4498_v63 = vpop.permute.xlu0 %4497  ;;  %v898_v3 = vsel %vm5167_vm10, %v896_v2, 0.0  ;;  %v897_v5 = vsel %vm9012_vm13, %v895_v4, 0.0  ;;  %v4503_v9 = vpop.permute.xlu1 %4502  ;;  %4350 = vmatprep.subr.msk.bf16.mxu0 %vm5107_vm0, %v4349_v48  ;;  %vm4354_vm12 = vmpackc.low %vm5167_vm10, %vm5167_vm10  ;;  %vm9224_vm1 = vcmp.lt.s32.totalorder %v4956_v41, 127  ;;  %v5293_v2 = vld [vmem:[%s8985_s5 + $0xd0] sm:$0xff]  ;;  %v5302_v4 = vld [vmem:[%s8985_s5 + $0xc8] sm:$0xff] }
  0xae   : > { %v4500_v12 = vunpack.i.h.bf16 %v4498_v63  ;;  %v4499_v13 = vunpack.i.l.bf16 %v4498_v63  ;;  %v930_v0 = vpack.c.bf16 %v898_v3, %v898_v3  ;;  %v929_v15 = vpack.c.bf16 %v897_v5, %v897_v5  ;;  %vm4360_vm0 = vmpackc.low %vm4987_vm2, %vm5009_vm6  ;;  %v5314_v3 = vld [vmem:[%s8985_s5 + $0xb8] sm:$0xff]  ;;  %v5324_v5 = vld [vmem:[%s8985_s5 + $0xb0] sm:$0xff] }
  0xaf   : > { %v4505_v18 = vunpack.i.h.bf16 %v4503_v9  ;;  %v4504_v19 = vunpack.i.l.bf16 %v4503_v9  ;;  %vm9225_vm13 = vmmov %vm9224_vm1  ;;  %v5329_v9 = vld [vmem:[%s8984_s4 + $0xf8] sm:$0xff] }
  0xb0   : > { %v885_v20 = vsel %vm9013_vm4, %v4499_v13, %v4500_v12  ;;  %v886_v1 = vsel %vm9013_vm4, %v4500_v12, %v4499_v13  ;;  %4181 = vmatprep.subr.msk.bf16.mxu1 %vm952_vm15, %v930_v0  ;;  %v954_v21 = vsel %vm952_vm15, %v929_v15, 0  ;;  %4353 = vmatpush1.bf16.msk.msra.mxu0 %vm4351_vm14, %v4352_v58  ;;  %vm4723_vm4 = vmmov 1   ;;  %v4531_v12 = vld [vmem:[%s9237_s2] sm:$0xff]   ;;  %v5350_v0 = vld [vmem:[%s8985_s5 + $0x98] sm:$0xff]  ;;  %v5356_v15 = vld [vmem:[%s8984_s4 + $0xf0] sm:$0xff] }
  0xb1   : > { %966 = vmatpush1.bf16.msra.mxu1 %v954_v21  ;;  %v865_v23 = vsel %vm9224_vm1, %v4504_v19, %v4505_v18  ;;  %v866_v24 = vsel %vm9225_vm13, %v4505_v18, %v4504_v19  ;;  %v4361_v25 = vpack.c.bf16 %v886_v1, %v876_v62  ;;  %v4513_v54 = vpop.permute.xlu1 %4512  ;;  %v4508_v26 = vpop.permute.xlu0 %4507  ;;  %4356 = vmatprep.subr.msk.bf16.mxu0 %vm4354_vm12, %v4355_v10  ;;  %vm4363_vm15 = vmpackc.low %vm4723_vm4, %vm9014_vm8  ;;  %vm9226_vm13 = vcmp.lt.s32.totalorder %v4956_v41, 1  ;;  %v5308_v62 = vld [vmem:[%s8985_s5 + $0xc0] sm:$0xff]  ;;  %v5335_v10 = vld [vmem:[%s8985_s5 + $0xa8] sm:$0xff] }
  0xb2   : > { %v4364_v28 = vpack.c.bf16 %v885_v20, %v875_v16  ;;  %v4515_v29 = vunpack.i.h.bf16 %v4513_v54  ;;  %v4514_v30 = vunpack.i.l.bf16 %v4513_v54  ;;  %v4510_v31 = vunpack.i.h.bf16 %v4508_v26  ;;  %vm4366_vm1 = vmpackc.low %vm476_vm11, %vm4723_vm4  ;;  %v5344_v13 = vld [vmem:[%s8985_s5 + $0xa0] sm:$0xff]  ;;  %v5362_v16 = vld [vmem:[%s8985_s5 + $0x90] sm:$0xff] }
  0xb3   : > { %4362 = vmatprep.subr.msk.bf16.mxu1 %vm4360_vm0, %v4361_v25  ;;  %v4509_v32 = vunpack.i.l.bf16 %v4508_v26  ;;  %v4367_v33 = vpack.c.bf16 %v866_v24, %v4848_v7  ;;  %v4370_v37 = vpack.c.bf16 %v865_v23, %v4846_v6  ;;  %vm9227_vm12 = vmmov %vm9226_vm13  ;;  %vm9228_vm14 = vcmp.lt.s32.totalorder %v4956_v41, 15  ;;  %v5367_v18 = vld [vmem:[%s8984_s4 + $0xe8] sm:$0xff]  ;;  %v5378_v20 = vld [vmem:[%s8984_s4 + $0xe0] sm:$0xff] }
  0xb4   : > { %v853_v36 = vsel %vm9226_vm13, %v4514_v30, %v4515_v29  ;;  %4359 = vmatpush2.bf16.msk.msra.mxu0 %vm5087_vm7, %v4358_v22  ;;  %v854_v7 = vsel %vm9227_vm12, %v4515_v29, %v4514_v30  ;;  %vm9229_vm0 = vmmov %vm9228_vm14  ;;  %vm9230_vm13 = vcmp.le.s32.totalorder %v4998_v11, 14  ;;  %vm9231_vm7 = vcmp.ge.s32.totalorder %v4977_v52, 1  ;;  %v5373_v19 = vld [vmem:[%s8985_s5 + $0x88] sm:$0xff]  ;;  %v5384_v1 = vld [vmem:[%s8985_s5 + $0x80] sm:$0xff] }
  0xb5   : > { %4365 = vmatpush1.bf16.msk.msra.mxu1 %vm4363_vm15, %v4364_v28  ;;  %v843_v38 = vsel %vm9228_vm14, %v4509_v32, %v4510_v31  ;;  %v844_v39 = vsel %vm9229_vm0, %v4510_v31, %v4509_v32  ;;  %v4523_v40 = vpop.permute.xlu1 %4522  ;;  %v4518_v42 = vpop.permute.xlu0 %4517  ;;  %vm4369_vm8 = vmpackc.low %vm9230_vm13, %vm4723_vm4  ;;  %1207 = vmatprep.subr.mxu0 %v5232_v34  ;;  %vm9233_vm12 = vcmp.lt.s32.totalorder %v4956_v41, 17  ;;  %vm9236_vm13 = vcmp.ge.s32.totalorder %v4998_v11, 1  ;;  %v5390_v21 = vld [vmem:[%s8984_s4 + $0xd8] sm:$0xff]  ;;  %v5402_v23 = vld [vmem:[%s8984_s4 + $0xd0] sm:$0xff] }
  0xb6   : > { %4368 = vmatprep.subr.msk.bf16.mxu1 %vm4366_vm1, %v4367_v33  ;;  %v4525_v6 = vunpack.i.h.bf16 %v4523_v40  ;;  %v4524_v57 = vunpack.i.l.bf16 %v4523_v40  ;;  %v4520_v43 = vunpack.i.h.bf16 %v4518_v42  ;;  %v4519_v44 = vunpack.i.l.bf16 %v4518_v42  ;;  %vm4372_vm15 = vmpackc.low %vm9231_vm7, %vm476_vm11  ;;  %v5396_v22 = vld [vmem:[%s8985_s5 + $0x78] sm:$0xff]  ;;  %v5408_v24 = vld [vmem:[%s8985_s5 + $0x70] sm:$0xff] }
  0xb7   : > { %v4373_v46 = vpack.c.bf16 %v853_v36, %v843_v38  ;;  %809 = vmatmul.mubr.bf16.vlgmr.msra.gmra.mxu0 %v4528_v35  ;;  %vm9232_vm1 = vcmp.lt.s32.totalorder %v4956_v41, 16  ;;  %v4376_v51 = vpack.c.bf16 %v854_v7, %v844_v39  ;;  %vm9235_vm0 = vmmov %vm9233_vm12  ;;  %v5414_v25 = vld [vmem:[%s8984_s4 + $0xc8] sm:$0xff]  ;;  %v5426_v26 = vld [vmem:[%s8984_s4 + $0xc0] sm:$0xff] }
  0xb8   : > { %v833_v48 = vsel %vm9232_vm1, %v4524_v57, %v4525_v6  ;;  %v823_v49 = vsel %vm9233_vm12, %v4519_v44, %v4520_v43  ;;  %1208 = vmatpush1.msra.mxu0 %v5255_v45  ;;  %vm9234_vm14 = vmmov %vm9232_vm1  ;;  %v824_v59 = vsel %vm9235_vm0, %v4520_v43, %v4519_v44  ;;  %v5420_v54 = vld [vmem:[%s8985_s5 + $0x68] sm:$0xff]  ;;  %v5432_v28 = vld [vmem:[%s8985_s5 + $0x60] sm:$0xff]  ;;  %vm1465_vm12 = vcmask 261120  }
  0xb9   : > { %4371 = vmatpush1.bf16.msk.msra.mxu1 %vm4369_vm8, %v4370_v37  ;;  %v834_v58 = vsel %vm9234_vm14, %v4525_v6, %v4524_v57  ;;  %vm4375_vm8 = vmpackc.low %vm9236_vm13, %vm5132_vm3  ;;  %v4379_v61 = vpack.c.bf16 %v833_v48, %v823_v49  ;;  %1209 = vmatprep.subr.mxu0 %v5264_v47  ;;  %v5438_v29 = vld [vmem:[%s8984_s4 + $0xb8] sm:$0xff]  ;;  %v5450_v31 = vld [vmem:[%s8984_s4 + $0xb0] sm:$0xff] }
  0xba   : > { %4374 = vmatprep.subr.msk.bf16.mxu1 %vm4372_vm15, %v4373_v46  ;;  %vm4378_vm1 = vmpackc.low %vm4723_vm4, %vm9231_vm7  ;;  %1210 = vmatpush1.msra.mxu0 %v5273_v50  ;;  %v4382_v63 = vpack.c.bf16 %v834_v58, %v824_v59  ;;  %vm948_vm15 = vcmask 588800   ;;  %v5444_v30 = vld [vmem:[%s8985_s5 + $0x58] sm:$0xff]  ;;  %v5456_v32 = vld [vmem:[%s8985_s5 + $0x50] sm:$0xff] }
  0xbb   : > { %1211 = vmatprep.subr.mxu0 %v5279_v53  ;;  %vm4381_vm4 = vmpackc.low %vm5116_vm5, %vm5175_vm9  ;;  %v5462_v33 = vld [vmem:[%s8984_s4 + $0xa8] sm:$0xff]  ;;  %v5474_v36 = vld [vmem:[%s8984_s4 + $0xa0] sm:$0xff] }
  0xbc   : > { %1212 = vmatpush1.msra.mxu0 %v5293_v2  ;;  %v5468_v35 = vld [vmem:[%s8985_s5 + $0x48] sm:$0xff]  ;;  %v5480_v37 = vld [vmem:[%s8985_s5 + $0x40] sm:$0xff]  ;;  %v5486_v7 = vld [vmem:[%s8984_s4 + $0x98] sm:$0xff] }
  0xbd   : > { %4377 = vmatpush1.bf16.msk.msra.mxu1 %vm4375_vm8, %v4376_v51  ;;  %1213 = vmatprep.subr.mxu0 %v5302_v4  ;;  %v5492_v38 = vld [vmem:[%s8985_s5 + $0x38] sm:$0xff]  ;;  %v5498_v39 = vld [vmem:[%s8984_s4 + $0x90] sm:$0xff]  ;;  %v5510_v42 = vld [vmem:[%s8984_s4 + $0x88] sm:$0xff] }
  0xbe   : > { %4380 = vmatprep.subr.msk.bf16.mxu1 %vm4378_vm1, %v4379_v61  ;;  %1214 = vmatpush1.msra.mxu0 %v5308_v62  ;;  %v5504_v40 = vld [vmem:[%s8985_s5 + $0x30] sm:$0xff]  ;;  %v5516_v6 = vld [vmem:[%s8985_s5 + $0x28] sm:$0xff]  ;;  %v5522_v57 = vld [vmem:[%s8984_s4 + $0x80] sm:$0xff] }
  0xbf   : > { %1215 = vmatprep.subr.mxu0 %v5314_v3  ;;  %9238 = vst [vmem:[#allocation13_spill] sm:$0xff] %v5516_v6  ;;  %v5528_v43 = vld [vmem:[%s8985_s5 + $0x20] sm:$0xff]  ;;  %v5534_v44 = vld [vmem:[%s8984_s4 + $0x78] sm:$0xff]  ;;  %v5546_v48 = vld [vmem:[%s8984_s4 + $0x70] sm:$0xff] }
  0xc0   : > { %1216 = vmatpush1.msra.mxu0 %v5324_v5  ;;  %9239 = vst [vmem:[#allocation14_spill] sm:$0xff] %v5528_v43  ;;  %v5540_v46 = vld [vmem:[%s8985_s5 + $0x18] sm:$0xff]  ;;  %v5552_v49 = vld [vmem:[%s8985_s5 + $0x10] sm:$0xff]  ;;  %v5558_v51 = vld [vmem:[%s8984_s4 + $0x68] sm:$0xff] }
  0xc1   : > { %4383 = vmatpush1.bf16.msk.msra.mxu1 %vm4381_vm4, %v4382_v63  ;;  %1217 = vmatprep.subr.mxu0 %v5335_v10  ;;  %9240 = vst [vmem:[#allocation15_spill] sm:$0xff] %v5540_v46  ;;  %9241 = vst [vmem:[#allocation16_spill] sm:$0xff] %v5552_v49  ;;  %v5564_v58 = vld [vmem:[%s8985_s5 + $0x8] sm:$0xff]  ;;  %v5570_v59 = vld [vmem:[%s8984_s4 + $0x60] sm:$0xff] }
  0xc2   : > { %1130 = vmatprep.subr.mxu1 %v5329_v9  ;;  %1218 = vmatpush1.msra.mxu0 %v5344_v13  ;;  %9242 = vst [vmem:[#allocation17_spill] sm:$0xff] %v5564_v58  ;;  %v5576_v61 = vld [vmem:[%s8985_s5] sm:$0xff]  ;;  %v5582_v63 = vld [vmem:[%s8984_s4 + $0x58] sm:$0xff]  ;;  %v5642_v52 = vld [vmem:[%s8984_s4 + $0x30] sm:$0xff] }
  0xc3   : > { %1219 = vmatprep.subr.mxu0 %v5350_v0  ;;  %9243 = vst [vmem:[#allocation18_spill] sm:$0xff] %v5576_v61  ;;  %v5618_v11 = vld [vmem:[%s8984_s4 + $0x40] sm:$0xff]  ;;  %v5648_v41 = vld [vmem:[%s8985_s5 + $0x1d0] sm:$0xff]  ;;  %vm9427_vm14 = vmmov %vm9235_vm0 }
  0xc4   : > { %4182 = vmatmul.mubr.msk.bf16.vlgmr.msra.gmra.mxu1 %vm948_vm15, %v4531_v12  ;;  %1220 = vmatpush1.msra.mxu0 %v5362_v16  ;;  %v5588_v12 = vld [vmem:[%s8985_s5 + $0x1f8] sm:$0xff]  ;;  %9249 = vst [vmem:[#allocation24_spill] sm:$0xff] %v5648_v41  ;;  %vm9429_vm13 = vmmov %vm9231_vm7 }
  0xc5   : > { %1131 = vmatpush1.msra.mxu1 %v5356_v15  ;;  %1221 = vmatprep.subr.mxu0 %v5373_v19  ;;  %9244 = vst [vmem:[#allocation19_spill] sm:$0xff] %v5588_v12  ;;  %vm9434_vm1 = vmmov %vm9235_vm0 }
  0xc6   : > { %1132 = vmatprep.subr.mxu1 %v5367_v18  ;;  %1222 = vmatpush1.msra.mxu0 %v5384_v1  ;;  %vm9435_vm4 = vmmov %vm9235_vm0 }
  0xc7   : > { %1133 = vmatpush1.msra.mxu1 %v5378_v20  ;;  %1223 = vmatprep.subr.mxu0 %v5396_v22  ;;  %vm9436_vm15 = vmmov %vm9429_vm13 }
  0xc8   : > { %1134 = vmatprep.subr.mxu1 %v5390_v21  ;;  %1224 = vmatpush1.msra.mxu0 %v5408_v24 }
  0xc9   : > { %1135 = vmatpush1.msra.mxu1 %v5402_v23  ;;  %1225 = vmatprep.subr.mxu0 %v5420_v54 }
  0xca   : > { %1136 = vmatprep.subr.mxu1 %v5414_v25  ;;  %1226 = vmatpush1.msra.mxu0 %v5432_v28 }
  0xcb   : > { %1137 = vmatpush1.msra.mxu1 %v5426_v26  ;;  %1227 = vmatprep.subr.mxu0 %v5444_v30 }
  0xcc   : > { %1138 = vmatprep.subr.mxu1 %v5438_v29  ;;  %1228 = vmatpush1.msra.mxu0 %v5456_v32 }
  0xcd   : > { %1139 = vmatpush1.msra.mxu1 %v5450_v31  ;;  %1229 = vmatprep.subr.mxu0 %v5468_v35 }
  0xce   : > { %1140 = vmatprep.subr.mxu1 %v5462_v33  ;;  %1230 = vmatpush1.msra.mxu0 %v5480_v37 }
  0xcf   : > { %1141 = vmatpush1.msra.mxu1 %v5474_v36  ;;  %1231 = vmatprep.subr.mxu0 %v5492_v38 }
  0xd0   : > { %1142 = vmatprep.subr.mxu1 %v5486_v7  ;;  %1232 = vmatpush1.msra.mxu0 %v5504_v40 }
  0xd1   : > { %1143 = vmatpush1.msra.mxu1 %v5498_v39  ;;  %1233 = vmatprep.subr.mxu0 %v5516_v6 }
  0xd2   : > { %1144 = vmatprep.subr.mxu1 %v5510_v42  ;;  %1234 = vmatpush1.msra.mxu0 %v5528_v43  ;;  %v5720_v43 = vld [vmem:[%s8985_s5 + $0x1a0] sm:$0xff] }
  0xd3   : > { %1145 = vmatpush1.msra.mxu1 %v5522_v57  ;;  %1235 = vmatprep.subr.mxu0 %v5540_v46  ;;  %v5708_v46 = vld [vmem:[%s8985_s5 + $0x1a8] sm:$0xff]  ;;  %9260 = vst [vmem:[#allocation35_spill] sm:$0xff] %v5720_v43 }
  0xd4   : > { %1146 = vmatprep.subr.mxu1 %v5534_v44  ;;  %1236 = vmatpush1.msra.mxu0 %v5552_v49  ;;  %v5696_v49 = vld [vmem:[%s8985_s5 + $0x1b0] sm:$0xff]  ;;  %9258 = vst [vmem:[#allocation33_spill] sm:$0xff] %v5708_v46 }
  0xd5   : > { %1147 = vmatpush1.msra.mxu1 %v5546_v48  ;;  %1237 = vmatprep.subr.mxu0 %v5564_v58  ;;  %v5684_v58 = vld [vmem:[%s8985_s5 + $0x1b8] sm:$0xff]  ;;  %9256 = vst [vmem:[#allocation31_spill] sm:$0xff] %v5696_v49 }
  0xd6   : > { %1148 = vmatprep.subr.mxu1 %v5558_v51  ;;  %1238 = vmatpush1.msra.mxu0 %v5576_v61  ;;  %v5672_v61 = vld [vmem:[%s8985_s5 + $0x1c0] sm:$0xff]  ;;  %9254 = vst [vmem:[#allocation29_spill] sm:$0xff] %v5684_v58 }
  0xd7   : > { %1149 = vmatpush1.msra.mxu1 %v5570_v59  ;;  %1239 = vmatprep.subr.mxu0 %v5588_v12  ;;  %v5660_v12 = vld [vmem:[%s8985_s5 + $0x1c8] sm:$0xff]  ;;  %9252 = vst [vmem:[#allocation27_spill] sm:$0xff] %v5672_v61 }
  0xd8   : > { %1150 = vmatprep.subr.mxu1 %v5582_v63  ;;  %1240 = vmatpush2.msra.mxu0 %v5600_v55  ;;  %v5654_v55 = vld [vmem:[%s8984_s4 + $0x28] sm:$0xff]  ;;  %9250 = vst [vmem:[#allocation25_spill] sm:$0xff] %v5660_v12 }
  0xd9   : > { %1151 = vmatpush1.msra.mxu1 %v5594_v8  ;;  %1241 = vmatprep.subr.mxu0 %v5612_v14  ;;  %v5666_v14 = vld [vmem:[%s8984_s4 + $0x20] sm:$0xff] }
  0xda   : > { %1152 = vmatprep.subr.mxu1 %v5606_v60  ;;  %1242 = vmatpush2.msra.mxu0 %v5624_v27  ;;  %9251 = vst [vmem:[#allocation26_spill] sm:$0xff] %v5666_v14  ;;  %v5678_v27 = vld [vmem:[%s8984_s4 + $0x18] sm:$0xff] }
  0xdb   : > { %1153 = vmatpush1.msra.mxu1 %v5618_v11  ;;  %1243 = vmatprep.subr.mxu0 %v5636_v56  ;;  %9253 = vst [vmem:[#allocation28_spill] sm:$0xff] %v5678_v27  ;;  %v5690_v56 = vld [vmem:[%s8984_s4 + $0x10] sm:$0xff] }
  0xdc   : > { %1154 = vmatprep.subr.mxu1 %v5630_v17  ;;  %1244 = vmatpush2.msra.mxu0 %v5648_v41  ;;  %9255 = vst [vmem:[#allocation30_spill] sm:$0xff] %v5690_v56  ;;  %v5702_v41 = vld [vmem:[%s8984_s4 + $0x8] sm:$0xff] }
  0xdd   : > { %1155 = vmatpush1.msra.mxu1 %v5642_v52  ;;  %1245 = vmatprep.subr.mxu0 %v5660_v12  ;;  %9257 = vst [vmem:[#allocation32_spill] sm:$0xff] %v5702_v41  ;;  %v5714_v12 = vld [vmem:[%s8984_s4] sm:$0xff] }
  0xde   : > { %1156 = vmatprep.subr.mxu1 %v5654_v55  ;;  %1246 = vmatpush2.msra.mxu0 %v5672_v61  ;;  %9259 = vst [vmem:[#allocation34_spill] sm:$0xff] %v5714_v12  ;;  %v5726_v61 = vld [vmem:[%s8984_s4 + $0x1f8] sm:$0xff] }
  0xdf   : > { %1157 = vmatpush1.msra.mxu1 %v5666_v14  ;;  %1247 = vmatprep.subr.mxu0 %v5684_v58  ;;  %9261 = vst [vmem:[#allocation36_spill] sm:$0xff] %v5726_v61  ;;  %v5738_v58 = vld [vmem:[%s8984_s4 + $0x1f0] sm:$0xff] }
  0xe0   : > { %1158 = vmatprep.subr.mxu1 %v5678_v27  ;;  %1248 = vmatpush2.msra.mxu0 %v5696_v49  ;;  %v5732_v27 = vld [vmem:[%s8985_s5 + $0x198] sm:$0xff]  ;;  %9263 = vst [vmem:[#allocation38_spill] sm:$0xff] %v5738_v58  ;;  %v5750_v49 = vld [vmem:[%s8984_s4 + $0x1e8] sm:$0xff] }
  0xe1   : > { %1159 = vmatpush1.msra.mxu1 %v5690_v56  ;;  %9262 = vst [vmem:[#allocation37_spill] sm:$0xff] %v5732_v27  ;;  %1249 = vmatprep.subr.mxu0 %v5708_v46  ;;  %v5744_v56 = vld [vmem:[%s8985_s5 + $0x190] sm:$0xff]  ;;  %9265 = vst [vmem:[#allocation40_spill] sm:$0xff] %v5750_v49  ;;  %v5762_v46 = vld [vmem:[%s8984_s4 + $0x1e0] sm:$0xff] }
  0xe2   : > { %1160 = vmatprep.subr.mxu1 %v5702_v41  ;;  %9264 = vst [vmem:[#allocation39_spill] sm:$0xff] %v5744_v56  ;;  %1250 = vmatpush2.msra.mxu0 %v5720_v43  ;;  %v5756_v41 = vld [vmem:[%s8985_s5 + $0x188] sm:$0xff]  ;;  %9267 = vst [vmem:[#allocation42_spill] sm:$0xff] %v5762_v46  ;;  %v5774_v43 = vld [vmem:[%s8984_s4 + $0x1d8] sm:$0xff] }
  0xe3   : > { %1161 = vmatpush1.msra.mxu1 %v5714_v12  ;;  %9266 = vst [vmem:[#allocation41_spill] sm:$0xff] %v5756_v41  ;;  %1251 = vmatprep.subr.mxu0 %v5732_v27  ;;  %v5768_v12 = vld [vmem:[%s8985_s5 + $0x180] sm:$0xff]  ;;  %9269 = vst [vmem:[#allocation44_spill] sm:$0xff] %v5774_v43  ;;  %v5786_v27 = vld [vmem:[%s8984_s4 + $0x1d0] sm:$0xff] }
  0xe4   : > { %1162 = vmatprep.subr.mxu1 %v5726_v61  ;;  %9268 = vst [vmem:[#allocation43_spill] sm:$0xff] %v5768_v12  ;;  %1252 = vmatpush2.msra.mxu0 %v5744_v56  ;;  %v5780_v61 = vld [vmem:[%s8985_s5 + $0x178] sm:$0xff]  ;;  %9271 = vst [vmem:[#allocation46_spill] sm:$0xff] %v5786_v27  ;;  %v5798_v56 = vld [vmem:[%s8984_s4 + $0x1c8] sm:$0xff] }
  0xe5   : > { %1163 = vmatpush2.msra.mxu1 %v5738_v58  ;;  %9270 = vst [vmem:[#allocation45_spill] sm:$0xff] %v5780_v61  ;;  %1253 = vmatprep.subr.mxu0 %v5756_v41  ;;  %v5792_v58 = vld [vmem:[%s8985_s5 + $0x170] sm:$0xff]  ;;  %9273 = vst [vmem:[#allocation48_spill] sm:$0xff] %v5798_v56  ;;  %v5810_v41 = vld [vmem:[%s8984_s4 + $0x1c0] sm:$0xff] }
  0xe6   : > { %1164 = vmatprep.subr.mxu1 %v5750_v49  ;;  %9272 = vst [vmem:[#allocation47_spill] sm:$0xff] %v5792_v58  ;;  %1254 = vmatpush2.msra.mxu0 %v5768_v12  ;;  %v5804_v49 = vld [vmem:[%s8985_s5 + $0x168] sm:$0xff]  ;;  %9275 = vst [vmem:[#allocation50_spill] sm:$0xff] %v5810_v41  ;;  %v5822_v12 = vld [vmem:[%s8984_s4 + $0x1b8] sm:$0xff] }
  0xe7   : > { %1165 = vmatpush2.msra.mxu1 %v5762_v46  ;;  %9274 = vst [vmem:[#allocation49_spill] sm:$0xff] %v5804_v49  ;;  %1255 = vmatprep.subr.mxu0 %v5780_v61  ;;  %v5816_v46 = vld [vmem:[%s8985_s5 + $0x160] sm:$0xff]  ;;  %9277 = vst [vmem:[#allocation52_spill] sm:$0xff] %v5822_v12  ;;  %v5834_v61 = vld [vmem:[%s8984_s4 + $0x1b0] sm:$0xff] }
  0xe8   : > { %1166 = vmatprep.subr.mxu1 %v5774_v43  ;;  %9276 = vst [vmem:[#allocation51_spill] sm:$0xff] %v5816_v46  ;;  %1256 = vmatpush2.msra.mxu0 %v5792_v58  ;;  %v5828_v43 = vld [vmem:[%s8985_s5 + $0x158] sm:$0xff]  ;;  %9279 = vst [vmem:[#allocation54_spill] sm:$0xff] %v5834_v61  ;;  %v5846_v58 = vld [vmem:[%s8984_s4 + $0x1a8] sm:$0xff] }
  0xe9   : > { %1167 = vmatpush2.msra.mxu1 %v5786_v27  ;;  %9278 = vst [vmem:[#allocation53_spill] sm:$0xff] %v5828_v43  ;;  %1257 = vmatprep.subr.mxu0 %v5804_v49  ;;  %v5840_v27 = vld [vmem:[%s8985_s5 + $0x150] sm:$0xff]  ;;  %9281 = vst [vmem:[#allocation56_spill] sm:$0xff] %v5846_v58  ;;  %v5858_v49 = vld [vmem:[%s8984_s4 + $0x1a0] sm:$0xff] }
  0xea   : > { %1168 = vmatprep.subr.mxu1 %v5798_v56  ;;  %9280 = vst [vmem:[#allocation55_spill] sm:$0xff] %v5840_v27  ;;  %1258 = vmatpush2.msra.mxu0 %v5816_v46  ;;  %v5852_v56 = vld [vmem:[%s8985_s5 + $0x148] sm:$0xff]  ;;  %9283 = vst [vmem:[#allocation58_spill] sm:$0xff] %v5858_v49  ;;  %v5870_v46 = vld [vmem:[%s8984_s4 + $0x198] sm:$0xff] }
  0xeb   : > { %1169 = vmatpush2.msra.mxu1 %v5810_v41  ;;  %9282 = vst [vmem:[#allocation57_spill] sm:$0xff] %v5852_v56  ;;  %1259 = vmatprep.subr.mxu0 %v5828_v43  ;;  %v5864_v41 = vld [vmem:[%s8985_s5 + $0x140] sm:$0xff]  ;;  %9285 = vst [vmem:[#allocation60_spill] sm:$0xff] %v5870_v46  ;;  %v5882_v43 = vld [vmem:[%s8984_s4 + $0x190] sm:$0xff] }
  0xec   : > { %1170 = vmatprep.subr.mxu1 %v5822_v12  ;;  %9284 = vst [vmem:[#allocation59_spill] sm:$0xff] %v5864_v41  ;;  %1260 = vmatpush2.msra.mxu0 %v5840_v27  ;;  %v5876_v12 = vld [vmem:[%s8985_s5 + $0x138] sm:$0xff]  ;;  %9287 = vst [vmem:[#allocation62_spill] sm:$0xff] %v5882_v43  ;;  %v5894_v27 = vld [vmem:[%s8984_s4 + $0x188] sm:$0xff] }
  0xed   : > { %1171 = vmatpush2.msra.mxu1 %v5834_v61  ;;  %9286 = vst [vmem:[#allocation61_spill] sm:$0xff] %v5876_v12  ;;  %1261 = vmatprep.subr.mxu0 %v5852_v56  ;;  %v5888_v61 = vld [vmem:[%s8985_s5 + $0x130] sm:$0xff]  ;;  %9289 = vst [vmem:[#allocation64_spill] sm:$0xff] %v5894_v27  ;;  %v5906_v56 = vld [vmem:[%s8984_s4 + $0x180] sm:$0xff] }
  0xee   : > { %1172 = vmatprep.subr.mxu1 %v5846_v58  ;;  %9288 = vst [vmem:[#allocation63_spill] sm:$0xff] %v5888_v61  ;;  %1262 = vmatpush2.msra.mxu0 %v5864_v41  ;;  %v5900_v58 = vld [vmem:[%s8985_s5 + $0x128] sm:$0xff]  ;;  %9291 = vst [vmem:[#allocation66_spill] sm:$0xff] %v5906_v56  ;;  %v5913_v41 = vld [vmem:[%s8984_s4 + $0x178] sm:$0xff] }
  0xef   : > { %1173 = vmatpush2.msra.mxu1 %v5858_v49  ;;  %9290 = vst [vmem:[#allocation65_spill] sm:$0xff] %v5900_v58  ;;  %1263 = vmatprep.subr.mxu0 %v5876_v12  ;;  %9292 = vst [vmem:[#allocation67_spill] sm:$0xff] %v5913_v41  ;;  %v5927_v12 = vld [vmem:[%s8984_s4 + $0x168] sm:$0xff] }
  0xf0   : > { %1174 = vmatprep.subr.mxu1 %v5870_v46  ;;  %1264 = vmatpush2.msra.mxu0 %v5888_v61  ;;  %v5920_v46 = vld [vmem:[%s8984_s4 + $0x170] sm:$0xff]  ;;  %9294 = vst [vmem:[#allocation69_spill] sm:$0xff] %v5927_v12  ;;  %v5933_v61 = vld [vmem:[%s8984_s4 + $0x160] sm:$0xff] }
  0xf1   : > { %1175 = vmatpush2.msra.mxu1 %v5882_v43  ;;  %9293 = vst [vmem:[#allocation68_spill] sm:$0xff] %v5920_v46  ;;  %1265 = vmatprep.subr.mxu0 %v5900_v58  ;;  %9295 = vst [vmem:[#allocation70_spill] sm:$0xff] %v5933_v61  ;;  %v5939_v58 = vld [vmem:[%s8984_s4 + $0x158] sm:$0xff] }
  0xf2   : > { %1176 = vmatprep.subr.mxu1 %v5894_v27  ;;  %9296 = vst [vmem:[#allocation71_spill] sm:$0xff] %v5939_v58  ;;  %v5980_v27 = vld [vmem:[%s8984_s4 + $0x130] sm:$0xff] }
  0xf3   : > { %1177 = vmatpush2.msra.mxu1 %v5906_v56  ;;  %v5945_v56 = vld [vmem:[%s8984_s4 + $0x150] sm:$0xff]  ;;  %9303 = vst [vmem:[#allocation78_spill] sm:$0xff] %v5980_v27 }
  0xf4   : > { %1178 = vmatprep.subr.mxu1 %v5913_v41  ;;  %9297 = vst [vmem:[#allocation72_spill] sm:$0xff] %v5945_v56  ;;  %v5951_v41 = vld [vmem:[%s8984_s4 + $0x148] sm:$0xff] }
  0xf5   : > { %1179 = vmatpush2.msra.mxu1 %v5920_v46  ;;  %9298 = vst [vmem:[#allocation73_spill] sm:$0xff] %v5951_v41  ;;  %v5957_v46 = vld [vmem:[%s8984_s4 + $0x140] sm:$0xff] }
  0xf6   : > { %1180 = vmatprep.subr.mxu1 %v5927_v12  ;;  %9299 = vst [vmem:[#allocation74_spill] sm:$0xff] %v5957_v46  ;;  %v5962_v12 = vld [vmem:[%s8985_s5 + $0x120] sm:$0xff] }
  0xf7   : > { %1181 = vmatpush2.msra.mxu1 %v5933_v61  ;;  %9300 = vst [vmem:[#allocation75_spill] sm:$0xff] %v5962_v12  ;;  %v5968_v61 = vld [vmem:[%s8984_s4 + $0x138] sm:$0xff]  ;;  %1266 = vmatpush2.msra.mxu0 %v5962_v12  ;;  %v5992_v12 = vld [vmem:[%s8984_s4 + $0x128] sm:$0xff] }
  0xf8   : > { %1182 = vmatprep.subr.mxu1 %v5939_v58  ;;  %9301 = vst [vmem:[#allocation76_spill] sm:$0xff] %v5968_v61  ;;  %v5974_v58 = vld [vmem:[%s8985_s5 + $0x118] sm:$0xff]  ;;  %9305 = vst [vmem:[#allocation80_spill] sm:$0xff] %v5992_v12 }
  0xf9   : > { %1183 = vmatpush2.msra.mxu1 %v5945_v56  ;;  %9302 = vst [vmem:[#allocation77_spill] sm:$0xff] %v5974_v58  ;;  %1267 = vmatprep.subr.mxu0 %v5974_v58  ;;  %v5986_v56 = vld [vmem:[%s8985_s5 + $0x110] sm:$0xff]  ;;  %v6004_v58 = vld [vmem:[%s8984_s4 + $0x120] sm:$0xff] }
  0xfa   : > { %1184 = vmatprep.subr.mxu1 %v5951_v41  ;;  %9304 = vst [vmem:[#allocation79_spill] sm:$0xff] %v5986_v56  ;;  %1268 = vmatpush2.msra.mxu0 %v5986_v56  ;;  %v5998_v41 = vld [vmem:[%s8985_s5 + $0x108] sm:$0xff]  ;;  %9307 = vst [vmem:[#allocation82_spill] sm:$0xff] %v6004_v58  ;;  %v6016_v56 = vld [vmem:[%s8984_s4 + $0x118] sm:$0xff] }
  0xfb   : > { %1185 = vmatpush2.msra.mxu1 %v5957_v46  ;;  %9306 = vst [vmem:[#allocation81_spill] sm:$0xff] %v5998_v41  ;;  %1269 = vmatprep.subr.mxu0 %v5998_v41  ;;  %v6010_v46 = vld [vmem:[%s8985_s5 + $0x100] sm:$0xff]  ;;  %9309 = vst [vmem:[#allocation84_spill] sm:$0xff] %v6016_v56  ;;  %v6023_v41 = vld [vmem:[%s8984_s4 + $0x110] sm:$0xff] }
  0xfc   : > { %1186 = vmatprep.subr.mxu1 %v5968_v61  ;;  %9308 = vst [vmem:[#allocation83_spill] sm:$0xff] %v6010_v46  ;;  %1270 = vmatpush2.msra.mxu0 %v6010_v46  ;;  %v6036_v46 = vld [vmem:[%s8984_s4 + $0x100] sm:$0xff] }
  0xfd   : > { %1187 = vmatpush2.msra.mxu1 %v5980_v27  ;;  %1361 = vmatprep.subr.mxu0 %v5232_v34  ;;  %v6030_v27 = vld [vmem:[%s8984_s4 + $0x108] sm:$0xff] }
  0xfe   : > { %1188 = vmatprep.subr.mxu1 %v5992_v12 }
  0xff   : > { %1189 = vmatpush2.msra.mxu1 %v6004_v58  ;;  %v756_v58 = vpop.permute.xlu0 %755 }
 0x100   : > { %1190 = vmatprep.subr.mxu1 %v6016_v56  ;;  %v761_v56 = vpop.permute.xlu1 %760 }
 0x101   : > { %1191 = vmatpush2.msra.mxu1 %v6023_v41 }
 0x102   : > { %1192 = vmatprep.subr.mxu1 %v6030_v27 }
 0x103   : > { %1193 = vmatpush2.msra.mxu1 %v6036_v46 }
 0x104   : > { %1284 = vmatprep.subr.mxu1 %v5329_v9 }
 0x177   : > { %v810_v34 = vpop.f32.mrf.mxu0 }
 0x178   : > { %v811_v43 = vadd.f32 %v810_v34, %v756_v58  ;;  %v9366_v34 = vld [vmem:[#allocation57_spill] sm:$0xff] }
 0x179   : > { %v812_v12 = vpop.f32.mrf.mxu0 }
 0x17a   : > { %v813_v61 = vadd.f32 %v812_v12, %v756_v58  ;;  %v9365_v12 = vld [vmem:[#allocation73_spill] sm:$0xff] }
 0x17b   : > { %v814_v49 = vpop.f32.mrf.mxu0 }
 0x17c   : > { %1194 = vmatprep.mubr.f32.mxu1 %v813_v61  ;;  %1271 = vmatprep.mubr.f32.mxu0 %v813_v61  ;;  %v815_v9 = vadd.f32 %v814_v49, %v761_v56  ;;  %v9361_v49 = vld [vmem:[#allocation71_spill] sm:$0xff] }
 0x17d   : > { %v816_v14 = vpop.f32.mrf.mxu0  ;;  %1195 = vmatmul.mubr.f32.vlgmr.msra.gmra.mxu1 %v811_v43  ;;  %1272 = vmatmul.mubr.f32.vlgmr.msra.gmra.mxu0 %v811_v43  ;;  %v9358_v43 = vld [vmem:[#allocation49_spill] sm:$0xff]  ;;  %v9364_v61 = vld [vmem:[#allocation55_spill] sm:$0xff] }
 0x17e   : > { %v817_v6 = vadd.f32 %v816_v14, %v761_v56  ;;  %1285 = vmatpush1.msra.mxu1 %v5356_v15  ;;  %1362 = vmatpush1.msra.mxu0 %v5255_v45  ;;  %v9311_v14 = vld [vmem:[#allocation26_spill] sm:$0xff]  ;;  %v9313_v56 = vld [vmem:[#allocation28_spill] sm:$0xff]  ;;  %v9330_v15 = vld [vmem:[#allocation23_spill] sm:$0xff] }
 0x17f   : > { %1286 = vmatprep.subr.mxu1 %v5367_v18  ;;  %1363 = vmatprep.subr.mxu0 %v5264_v47  ;;  %v9315_v45 = vld [vmem:[#allocation30_spill] sm:$0xff]  ;;  %v9317_v47 = vld [vmem:[#allocation32_spill] sm:$0xff] }
 0x180   : > { %1287 = vmatpush1.msra.mxu1 %v5378_v20  ;;  %1364 = vmatpush1.msra.mxu0 %v5273_v50  ;;  %v9319_v50 = vld [vmem:[#allocation34_spill] sm:$0xff]  ;;  %v9332_v18 = vld [vmem:[#allocation24_spill] sm:$0xff]  ;;  %v9334_v20 = vld [vmem:[#allocation25_spill] sm:$0xff] }
 0x181   : > { %1200 = vmatprep.mubr.f32.mxu1 %v817_v6  ;;  %1277 = vmatprep.mubr.f32.mxu0 %v817_v6  ;;  %v9356_v6 = vld [vmem:[#allocation47_spill] sm:$0xff] }
 0x182   : > { %1288 = vmatprep.subr.mxu1 %v5390_v21  ;;  %1365 = vmatprep.subr.mxu0 %v5279_v53  ;;  %v9321_v53 = vld [vmem:[#allocation36_spill] sm:$0xff]  ;;  %v9336_v21 = vld [vmem:[#allocation27_spill] sm:$0xff] }
 0x183   : > { %1201 = vmatmul.mubr.f32.gmra.mxu1 %v815_v9  ;;  %1278 = vmatmul.mubr.f32.gmra.mxu0 %v815_v9 }
 0x184   : > { %1289 = vmatpush1.msra.mxu1 %v5402_v23  ;;  %1366 = vmatpush1.msra.mxu0 %v5293_v2  ;;  %v9322_v2 = vld [vmem:[#allocation19_spill] sm:$0xff]  ;;  %v9338_v23 = vld [vmem:[#allocation29_spill] sm:$0xff] }
 0x185   : > { %1290 = vmatprep.subr.mxu1 %v5414_v25  ;;  %1367 = vmatprep.subr.mxu0 %v5302_v4  ;;  %v9323_v4 = vld [vmem:[#allocation38_spill] sm:$0xff]  ;;  %v9340_v25 = vld [vmem:[#allocation31_spill] sm:$0xff] }
 0x186   : > { %1291 = vmatpush1.msra.mxu1 %v5426_v26  ;;  %1368 = vmatpush1.msra.mxu0 %v5308_v62  ;;  %v9324_v62 = vld [vmem:[#allocation20_spill] sm:$0xff]  ;;  %v9342_v26 = vld [vmem:[#allocation33_spill] sm:$0xff] }
 0x187   : > { %1292 = vmatprep.subr.mxu1 %v5438_v29  ;;  %1369 = vmatprep.subr.mxu0 %v5314_v3  ;;  %v9325_v3 = vld [vmem:[#allocation40_spill] sm:$0xff]  ;;  %v9344_v29 = vld [vmem:[#allocation35_spill] sm:$0xff] }
 0x188   : > { %1293 = vmatpush1.msra.mxu1 %v5450_v31  ;;  %1370 = vmatpush1.msra.mxu0 %v5324_v5  ;;  %v9326_v5 = vld [vmem:[#allocation21_spill] sm:$0xff] }
 0x189   : > { %1294 = vmatprep.subr.mxu1 %v5462_v33  ;;  %1371 = vmatprep.subr.mxu0 %v5335_v10  ;;  %v9327_v10 = vld [vmem:[#allocation42_spill] sm:$0xff]  ;;  %v9346_v31 = vld [vmem:[#allocation37_spill] sm:$0xff]  ;;  %v9348_v33 = vld [vmem:[#allocation39_spill] sm:$0xff] }
 0x18a   : > { %1295 = vmatpush1.msra.mxu1 %v5474_v36  ;;  %1372 = vmatpush1.msra.mxu0 %v5344_v13  ;;  %v9328_v13 = vld [vmem:[#allocation22_spill] sm:$0xff]  ;;  %v9350_v36 = vld [vmem:[#allocation41_spill] sm:$0xff] }
 0x18b   : > { %1296 = vmatprep.subr.mxu1 %v5486_v7  ;;  %1373 = vmatprep.subr.mxu0 %v5350_v0  ;;  %v9329_v0 = vld [vmem:[#allocation44_spill] sm:$0xff]  ;;  %v9352_v7 = vld [vmem:[#allocation43_spill] sm:$0xff] }
 0x18c   : > { %1297 = vmatpush1.msra.mxu1 %v5498_v39  ;;  %1374 = vmatpush1.msra.mxu0 %v5362_v16  ;;  %v9331_v16 = vld [vmem:[#allocation46_spill] sm:$0xff]  ;;  %v9354_v39 = vld [vmem:[#allocation45_spill] sm:$0xff] }
 0x18d   : > { %1298 = vmatprep.subr.mxu1 %v5510_v42  ;;  %1375 = vmatprep.subr.mxu0 %v5373_v19  ;;  %v9333_v19 = vld [vmem:[#allocation48_spill] sm:$0xff] }
 0x18e   : > { %1299 = vmatpush1.msra.mxu1 %v5522_v57  ;;  %1376 = vmatpush1.msra.mxu0 %v5384_v1  ;;  %v9335_v1 = vld [vmem:[#allocation50_spill] sm:$0xff]  ;;  %v9355_v42 = vld [vmem:[#allocation68_spill] sm:$0xff]  ;;  %v9357_v57 = vld [vmem:[#allocation69_spill] sm:$0xff] }
 0x18f   : > { %1300 = vmatprep.subr.mxu1 %v5534_v44  ;;  %1377 = vmatprep.subr.mxu0 %v5396_v22  ;;  %v9337_v22 = vld [vmem:[#allocation52_spill] sm:$0xff]  ;;  %v9359_v44 = vld [vmem:[#allocation70_spill] sm:$0xff] }
 0x190   : > { %1301 = vmatpush1.msra.mxu1 %v5546_v48  ;;  %1378 = vmatpush1.msra.mxu0 %v5408_v24  ;;  %v9339_v24 = vld [vmem:[#allocation54_spill] sm:$0xff]  ;;  %v9360_v48 = vld [vmem:[#allocation51_spill] sm:$0xff] }
 0x191   : > { %1302 = vmatprep.subr.mxu1 %v5558_v51  ;;  %1379 = vmatprep.subr.mxu0 %v5420_v54  ;;  %v9341_v54 = vld [vmem:[#allocation56_spill] sm:$0xff]  ;;  %v9362_v51 = vld [vmem:[#allocation53_spill] sm:$0xff] }
 0x192   : > { %1303 = vmatpush1.msra.mxu1 %v5570_v59  ;;  %1380 = vmatpush1.msra.mxu0 %v5432_v28  ;;  %v9343_v28 = vld [vmem:[#allocation58_spill] sm:$0xff]  ;;  %v9363_v59 = vld [vmem:[#allocation72_spill] sm:$0xff] }
 0x193   : > { %1304 = vmatprep.subr.mxu1 %v5582_v63  ;;  %1381 = vmatprep.subr.mxu0 %v5444_v30  ;;  %v9345_v30 = vld [vmem:[#allocation60_spill] sm:$0xff]  ;;  %v936_v63 = vpop.permute.xlu1 %935 }
 0x194   : > { %1305 = vmatpush1.msra.mxu1 %v5594_v8  ;;  %1382 = vmatpush1.msra.mxu0 %v5456_v32  ;;  %v9310_v8 = vld [vmem:[#allocation13_spill] sm:$0xff]  ;;  %v9347_v32 = vld [vmem:[#allocation62_spill] sm:$0xff] }
 0x195   : > { %1306 = vmatprep.subr.mxu1 %v5606_v60  ;;  %1383 = vmatprep.subr.mxu0 %v5468_v35  ;;  %v9312_v60 = vld [vmem:[#allocation14_spill] sm:$0xff]  ;;  %v9349_v35 = vld [vmem:[#allocation64_spill] sm:$0xff] }
 0x196   : > { %1307 = vmatpush1.msra.mxu1 %v5618_v11  ;;  %1384 = vmatpush1.msra.mxu0 %v5480_v37  ;;  %v9314_v11 = vld [vmem:[#allocation15_spill] sm:$0xff]  ;;  %v9351_v37 = vld [vmem:[#allocation66_spill] sm:$0xff] }
 0x197   : > { %1308 = vmatprep.subr.mxu1 %v5630_v17  ;;  %1385 = vmatprep.subr.mxu0 %v5492_v38  ;;  %v9316_v17 = vld [vmem:[#allocation16_spill] sm:$0xff]  ;;  %v9353_v38 = vld [vmem:[#allocation67_spill] sm:$0xff] }
 0x198   : > { %1309 = vmatpush1.msra.mxu1 %v5642_v52  ;;  %1386 = vmatpush1.msra.mxu0 %v5504_v40  ;;  %v9318_v52 = vld [vmem:[#allocation17_spill] sm:$0xff]  ;;  %v993_v40 = vpop.f32.mrf.mxu1 }
 0x199   : > { %1310 = vmatprep.subr.mxu1 %v5654_v55  ;;  %1387 = vmatprep.subr.mxu0 %v9310_v8  ;;  %v9320_v55 = vld [vmem:[#allocation18_spill] sm:$0xff] }
 0x19a   : > { %1311 = vmatpush1.msra.mxu1 %v9311_v14  ;;  %1388 = vmatpush1.msra.mxu0 %v9312_v60  ;;  %v995_v58 = vpop.f32.mrf.mxu1  ;;  %v9367_v8 = vld [vmem:[#allocation74_spill] sm:$0xff]  ;;  %v9368_v14 = vld [vmem:[#allocation59_spill] sm:$0xff]  ;;  %v9369_v60 = vld [vmem:[#allocation76_spill] sm:$0xff] }
 0x19b   : > { %1312 = vmatprep.subr.mxu1 %v9313_v56  ;;  %1389 = vmatprep.subr.mxu0 %v9314_v11  ;;  %v996_v9 = vadd.f32 %v995_v58, %v936_v63  ;;  %v9370_v56 = vld [vmem:[#allocation61_spill] sm:$0xff] }
 0x19c   : > { %1313 = vmatpush1.msra.mxu1 %v9315_v45  ;;  %1390 = vmatpush1.msra.mxu0 %v9316_v17  ;;  %v997_v11 = vpop.f32.mrf.mxu1  ;;  %v9371_v45 = vld [vmem:[#allocation78_spill] sm:$0xff]  ;;  %v9372_v17 = vld [vmem:[#allocation63_spill] sm:$0xff] }
 0x19d   : > { %1314 = vmatprep.subr.mxu1 %v9317_v47  ;;  %1391 = vmatprep.subr.mxu0 %v9318_v52  ;;  %v9373_v47 = vld [vmem:[#allocation80_spill] sm:$0xff]  ;;  %v9374_v52 = vld [vmem:[#allocation65_spill] sm:$0xff] }
 0x19e   : > { %1315 = vmatpush1.msra.mxu1 %v9319_v50  ;;  %1392 = vmatpush1.msra.mxu0 %v9320_v55  ;;  %v9375_v50 = vld [vmem:[#allocation82_spill] sm:$0xff]  ;;  %v9376_v55 = vld [vmem:[#allocation75_spill] sm:$0xff] }
 0x19f   : > { %1316 = vmatprep.subr.mxu1 %v9321_v53  ;;  %1393 = vmatprep.subr.mxu0 %v9322_v2  ;;  %v999_v53 = vpop.f32.mrf.mxu1  ;;  %v9377_v2 = vld [vmem:[#allocation84_spill] sm:$0xff] }
 0x1a0   : > { %1317 = vmatpush2.msra.mxu1 %v9323_v4  ;;  %1394 = vmatpush2.msra.mxu0 %v9324_v62  ;;  %v9378_v4 = vld [vmem:[#allocation77_spill] sm:$0xff]  ;;  %v9379_v62 = vld [vmem:[#allocation79_spill] sm:$0xff] }
 0x1a1   : > { %1318 = vmatprep.subr.mxu1 %v9325_v3  ;;  %1395 = vmatprep.subr.mxu0 %v9326_v5  ;;  %v941_v3 = vpop.permute.xlu0 %940  ;;  %v994_v5 = vadd.f32 %v993_v40, %v936_v63  ;;  %v6224_v40 = vpop.permute.xlu1 %1557 }
 0x1a2   : > { %1319 = vmatpush2.msra.mxu1 %v9327_v10  ;;  %1396 = vmatpush2.msra.mxu0 %v9328_v13  ;;  %v9380_v10 = vld [vmem:[#allocation81_spill] sm:$0xff]  ;;  %v1000_v13 = vadd.f32 %v999_v53, %v941_v3 }
 0x1a3   : > { %1320 = vmatprep.subr.mxu1 %v9329_v0  ;;  %1397 = vmatprep.subr.mxu0 %v9330_v15  ;;  %v9381_v0 = vld [vmem:[#allocation83_spill] sm:$0xff]  ;;  %v998_v15 = vadd.f32 %v997_v11, %v941_v3 }
 0x1a4   : > { %1321 = vmatpush2.msra.mxu1 %v9331_v16  ;;  %1398 = vmatpush2.msra.mxu0 %v9332_v18 }
 0x1a5   : > { %1322 = vmatprep.subr.mxu1 %v9333_v19  ;;  %1399 = vmatprep.subr.mxu0 %v9334_v20 }
 0x1a6   : > { %1323 = vmatpush2.msra.mxu1 %v9335_v1  ;;  %1400 = vmatpush2.msra.mxu0 %v9336_v21 }
 0x1a7   : > { %1324 = vmatprep.subr.mxu1 %v9337_v22  ;;  %1401 = vmatprep.subr.mxu0 %v9338_v23 }
 0x1a8   : > { %1325 = vmatpush2.msra.mxu1 %v9339_v24  ;;  %1402 = vmatpush2.msra.mxu0 %v9340_v25 }
 0x1a9   : > { %1326 = vmatprep.subr.mxu1 %v9341_v54  ;;  %1403 = vmatprep.subr.mxu0 %v9342_v26 }
 0x1aa   : > { %1327 = vmatpush2.msra.mxu1 %v9343_v28  ;;  %1404 = vmatpush2.msra.mxu0 %v9344_v29 }
 0x1ab   : > { %1328 = vmatprep.subr.mxu1 %v9345_v30  ;;  %1405 = vmatprep.subr.mxu0 %v9346_v31 }
 0x1ac   : > { %1329 = vmatpush2.msra.mxu1 %v9347_v32  ;;  %1406 = vmatpush2.msra.mxu0 %v9348_v33 }
 0x1ad   : > { %1330 = vmatprep.subr.mxu1 %v9349_v35  ;;  %1407 = vmatprep.subr.mxu0 %v9350_v36  ;;  %v4532_v35 = vld [vmem:[%s8986_s6] sm:$0xff]   ;;  %v4533_v36 = vld [vmem:[%s8986_s6 + $0x8] sm:$0xff]  }
 0x1ae   : > { %1331 = vmatpush2.msra.mxu1 %v9351_v37  ;;  %1408 = vmatpush2.msra.mxu0 %v9352_v7  ;;  %v4534_v37 = vld [vmem:[%s8986_s6 + $0x10] sm:$0xff]  }
 0x1af   : > { %1332 = vmatprep.subr.mxu1 %v9353_v38  ;;  %1409 = vmatprep.subr.mxu0 %v9354_v39 }
 0x1b0   : > { %1333 = vmatpush2.msra.mxu1 %v9355_v42  ;;  %1410 = vmatpush2.msra.mxu0 %v9356_v6 }
 0x1b1   : > { %1334 = vmatprep.subr.mxu1 %v9357_v57  ;;  %1411 = vmatprep.subr.mxu0 %v9358_v43  ;;  %v6234_v57 = vpop.permute.xlu0 %1562  ;;  %v6240_v43 = vpop.permute.xlu1 %1653 }
 0x1b2   : > { %1335 = vmatpush2.msra.mxu1 %v9359_v44  ;;  %1412 = vmatpush2.msra.mxu0 %v9360_v48 }
 0x1b3   : > { %1336 = vmatprep.subr.mxu1 %v9361_v49  ;;  %1413 = vmatprep.subr.mxu0 %v9362_v51 }
 0x1b4   : > { %1337 = vmatpush2.msra.mxu1 %v9363_v59  ;;  %1414 = vmatpush2.msra.mxu0 %v9364_v61 }
 0x1b5   : > { %1338 = vmatprep.subr.mxu1 %v9365_v12  ;;  %1415 = vmatprep.subr.mxu0 %v9366_v34  ;;  %v6248_v48 = vpop.permute.xlu0 %1658  ;;  %v6252_v51 = vpop.permute.xlu1 %1762 }
 0x1b6   : > { %1339 = vmatpush2.msra.mxu1 %v9367_v8  ;;  %1416 = vmatpush2.msra.mxu0 %v9368_v14 }
 0x1b7   : > { %1340 = vmatprep.subr.mxu1 %v9369_v60  ;;  %1417 = vmatprep.subr.mxu0 %v9370_v56 }
 0x1b8   : > { %1341 = vmatpush2.msra.mxu1 %v9371_v45  ;;  %1418 = vmatpush2.msra.mxu0 %v9372_v17 }
 0x1b9   : > { %1342 = vmatprep.subr.mxu1 %v9373_v47  ;;  %1419 = vmatprep.subr.mxu0 %v9374_v52  ;;  %v6258_v58 = vpop.permute.xlu0 %1767  ;;  %v6264_v59 = vpop.permute.xlu1 %1871 }
 0x1ba   : > { %1343 = vmatpush2.msra.mxu1 %v9375_v50  ;;  %1348 = vmatprep.mubr.f32.mxu1 %v996_v9 }
 0x1bb   : > { %1420 = vmatpush2.msra.mxu0 %v9376_v55  ;;  %1425 = vmatprep.mubr.f32.mxu0 %v996_v9 }
 0x1bc   : > { %1344 = vmatprep.subr.mxu1 %v9377_v2  ;;  %1421 = vmatprep.subr.mxu0 %v9378_v4 }
 0x1bd   : > { %1345 = vmatpush2.msra.mxu1 %v6023_v41  ;;  %1422 = vmatpush2.msra.mxu0 %v9379_v62  ;;  %v9382_v41 = vmov 0   ;;  %v6270_v61 = vpop.permute.xlu0 %1876  ;;  %v6272_v63 = vpop.permute.xlu1 %1980 }
 0x1be   : > { %1346 = vmatprep.subr.mxu1 %v6030_v27  ;;  %1423 = vmatprep.subr.mxu0 %v9380_v10 }
 0x1bf   : > { %1347 = vmatpush2.msra.mxu1 %v6036_v46  ;;  %1424 = vmatpush2.msra.mxu0 %v9381_v0 }
 0x1c0   : > { %1349 = vmatmul.mubr.f32.vlgmr.msra.gmra.mxu1 %v994_v5  ;;  %1426 = vmatmul.mubr.f32.vlgmr.msra.gmra.mxu0 %v994_v5 }
 0x1c1   : > { %1354 = vmatprep.mubr.f32.mxu1 %v1000_v13  ;;  %1431 = vmatprep.mubr.f32.mxu0 %v1000_v13  ;;  %v6278_v12 = vpop.permute.xlu0 %1985  ;;  %v6284_v34 = vpop.permute.xlu1 %1547 }
 0x1c4   : > { %1355 = vmatmul.mubr.f32.gmra.mxu1 %v998_v15  ;;  %1432 = vmatmul.mubr.f32.gmra.mxu0 %v998_v15 }
 0x1c5   : > { %1507 = vmatprep.mubr.bf16.mxu0 %v9382_v41  ;;  %1517 = vmatprep.mubr.bf16.mxu1 %v9382_v41  ;;  %v6290_v9 = vpop.permute.xlu0 %1552  ;;  %v6292_v8 = vpop.permute.xlu1 %1643 }
 0x1c9   : > { %v6298_v14 = vpop.permute.xlu0 %1648  ;;  %v6304_v60 = vpop.permute.xlu1 %2089 }
 0x1cd   : > { %v6310_v56 = vpop.permute.xlu0 %2094  ;;  %v6312_v11 = vpop.permute.xlu1 %1752 }
 0x1d1   : > { %v6318_v45 = vpop.permute.xlu0 %1757  ;;  %v6324_v17 = vpop.permute.xlu1 %2198 }
 0x1d5   : > { %v6330_v47 = vpop.permute.xlu0 %2203  ;;  %v6334_v50 = vpop.permute.xlu1 %1861 }
 0x1d9   : > { %v6340_v55 = vpop.permute.xlu0 %1866  ;;  %v6346_v53 = vpop.permute.xlu1 %2307 }
 0x1da   : > { %9399 = vst [vmem:[#allocation19_spill] sm:$0xff] %v6340_v55 }
 0x1dd   : > { %v6352_v2 = vpop.permute.xlu0 %2312  ;;  %v6354_v4 = vpop.permute.xlu1 %1970 }
 0x1de   : > { %9400 = vst [vmem:[#allocation38_spill] sm:$0xff] %v6352_v2  ;;  %9401 = vst [vmem:[#allocation20_spill] sm:$0xff] %v6354_v4 }
 0x1e1   : > { %v6362_v3 = vpop.permute.xlu0 %1975  ;;  %v6368_v5 = vpop.permute.xlu1 %2416 }
 0x1e2   : > { %9402 = vst [vmem:[#allocation40_spill] sm:$0xff] %v6362_v3  ;;  %9403 = vst [vmem:[#allocation21_spill] sm:$0xff] %v6368_v5 }
 0x1e5   : > { %v6374_v10 = vpop.permute.xlu0 %2421  ;;  %v6376_v13 = vpop.permute.xlu1 %2079 }
 0x1e6   : > { %9404 = vst [vmem:[#allocation42_spill] sm:$0xff] %v6374_v10  ;;  %9405 = vst [vmem:[#allocation22_spill] sm:$0xff] %v6376_v13 }
 0x1e9   : > { %v6382_v0 = vpop.permute.xlu0 %2084  ;;  %v6388_v15 = vpop.permute.xlu1 %2188 }
 0x1ea   : > { %9406 = vst [vmem:[#allocation44_spill] sm:$0xff] %v6382_v0  ;;  %9407 = vst [vmem:[#allocation23_spill] sm:$0xff] %v6388_v15 }
 0x23d   : > { %v6170_v16 = vpop.f32.mrf.mxu1  ;;  %v6172_v27 = vpop.f32.mrf.mxu0 }
 0x23e   : > { %9383 = vst [vmem:[#allocation13_spill] sm:$0xff] %v6170_v16  ;;  %9384 = vst [vmem:[#allocation26_spill] sm:$0xff] %v6172_v27 }
 0x23f   : > { %v6174_v18 = vpop.f32.mrf.mxu1  ;;  %v6176_v46 = vpop.f32.mrf.mxu0 }
 0x240   : > { %9385 = vst [vmem:[#allocation14_spill] sm:$0xff] %v6174_v18  ;;  %9386 = vst [vmem:[#allocation28_spill] sm:$0xff] %v6176_v46 }
 0x243   : > { %v6178_v19 = vpop.f32.mrf.mxu1  ;;  %v6180_v20 = vpop.f32.mrf.mxu0 }
 0x244   : > { %9387 = vst [vmem:[#allocation15_spill] sm:$0xff] %v6178_v19  ;;  %9388 = vst [vmem:[#allocation30_spill] sm:$0xff] %v6180_v20  ;;  %v1440_v33 = vpack.c.bf16 %v6178_v19, %v6170_v16 }
 0x245   : > { %v6182_v1 = vpop.f32.mrf.mxu1  ;;  %v6184_v21 = vpop.f32.mrf.mxu0 }
 0x246   : > { %9389 = vst [vmem:[#allocation16_spill] sm:$0xff] %v6182_v1  ;;  %9390 = vst [vmem:[#allocation32_spill] sm:$0xff] %v6184_v21  ;;  %v1441_v32 = vpack.c.bf16 %v6182_v1, %v6174_v18 }
 0x280   : > { %v1350_v22 = vpop.f32.mrf.mxu1  ;;  %v6186_v23 = vpop.f32.mrf.mxu0 }
 0x281   : > { %9391 = vst [vmem:[#allocation17_spill] sm:$0xff] %v6186_v23 }
 0x282   : > { %v1352_v24 = vpop.f32.mrf.mxu1  ;;  %v6188_v25 = vpop.f32.mrf.mxu0 }
 0x283   : > { %9392 = vst [vmem:[#allocation34_spill] sm:$0xff] %v6188_v25 }
 0x284   : > { %v1356_v54 = vpop.f32.mrf.mxu1  ;;  %v6190_v26 = vpop.f32.mrf.mxu0 }
 0x285   : > { %9393 = vst [vmem:[#allocation18_spill] sm:$0xff] %v6190_v26  ;;  %v1442_v31 = vpack.c.bf16 %v1356_v54, %v1350_v22  ;;  %v6394_v22 = vpop.permute.xlu0 %2193 }
 0x286   : > { %v1358_v29 = vpop.f32.mrf.mxu1  ;;  %v6230_v42 = vpop.f32.mrf.mxu0  ;;  %9408 = vst [vmem:[#allocation46_spill] sm:$0xff] %v6394_v22 }
 0x287   : > { %v1443_v30 = vpack.c.bf16 %v1358_v29, %v1352_v24  ;;  %9394 = vst [vmem:[#allocation36_spill] sm:$0xff] %v6230_v42  ;;  %v6396_v24 = vpop.permute.xlu1 %2297 }
 0x288   : > { %9409 = vst [vmem:[#allocation24_spill] sm:$0xff] %v6396_v24 }
 0x289   : > { %1487 = vmatprep.subr.bf16.mxu0 %v1443_v30  ;;  %4384 = vmatprep.subr.bf16.mxu1 %v1443_v30  ;;  %v6402_v54 = vpop.permute.xlu0 %2302 }
 0x28a   : > { %1488 = vmatpush1.bf16.msra.mxu0 %v1442_v31  ;;  %4386 = vmatpush1.bf16.msra.mxu1 %v1442_v31  ;;  %9410 = vst [vmem:[#allocation48_spill] sm:$0xff] %v6402_v54 }
 0x28b   : > { %1489 = vmatprep.subr.bf16.mxu0 %v1441_v32  ;;  %4385 = vmatprep.subr.bf16.mxu1 %v1441_v32  ;;  %v6408_v29 = vpop.permute.xlu1 %2406 }
 0x28c   : > { %9411 = vst [vmem:[#allocation25_spill] sm:$0xff] %v6408_v29 }
 0x28d   : > { %v6414_v30 = vpop.permute.xlu0 %2411 }
 0x28e   : > { %1490 = vmatpush1.bf16.msra.mxu0 %v1440_v33  ;;  %4387 = vmatpush1.bf16.msra.mxu1 %v1440_v33  ;;  %9412 = vst [vmem:[#allocation50_spill] sm:$0xff] %v6414_v30 }
 0x291   : > { %4186 = vmatmul.mubr.msk.bf16.vlgmr.msra.gmra.mxu0 %vm1465_vm12, %v4532_v35  ;;  %4187 = vmatmul.mubr.msk.bf16.vlgmr.msra.gmra.mxu1 %vm1465_vm12, %v4533_v36 }
 0x292   : > { %1527 = vmatprep.mubr.bf16.mxu1 %v9382_v41 }
 0x299   : > { %4188 = vmatmul.mubr.msk.bf16.gmra.mxu1 %vm1465_vm12, %v4534_v37 }
 0x29a   : > { %2670 = vmatprep.mubr.bf16.mxu1 %v9382_v41 }
 0x351   : > { %v6212_v7 = vpop.f32.mrf.mxu1  ;;  %v6232_v6 = vpop.f32.mrf.mxu0 }
 0x352   : > { %1597 = vrot.lane.b32.xlu1 %v6212_v7, %s9151_s24 }
 0x353   : > { %v6216_v38 = vpop.f32.mrf.mxu1  ;;  %v6242_v44 = vpop.f32.mrf.mxu0 }
 0x355   : > { %v6218_v39 = vpop.f32.mrf.mxu1  ;;  %v6250_v49 = vpop.f32.mrf.mxu0 }
 0x356   : > { %1706 = vrot.lane.b32.xlu1 %v6212_v7, %s9149_s20  ;;  %1599 = vrot.lane.b32.xlu0 %v6218_v39, %s9151_s24 }
 0x357   : > { %v6332_v52 = vpop.f32.mrf.mxu1  ;;  %v6360_v62 = vpop.f32.mrf.mxu0 }
 0x35a   : > { %1815 = vrot.lane.b32.xlu1 %v6212_v7, %s9147_s18  ;;  %1708 = vrot.lane.b32.xlu0 %v6218_v39, %s9149_s20 }
 0x35e   : > { %1924 = vrot.lane.b32.xlu1 %v6212_v7, %s9145_s17  ;;  %1817 = vrot.lane.b32.xlu0 %v6218_v39, %s9147_s18 }
 0x362   : > { %1926 = vrot.lane.b32.xlu0 %v6218_v39, %s9145_s17  ;;  %1593 = vrot.lane.b32.xlu1 %v6232_v6, %s9151_s24 }
 0x366   : > { %2033 = vrot.lane.b32.xlu1 %v6212_v7, %s9395_s15  ;;  %1595 = vrot.lane.b32.xlu0 %v6250_v49, %s9151_s24 }
 0x36a   : > { %1702 = vrot.lane.b32.xlu1 %v6232_v6, %s9149_s20  ;;  %2035 = vrot.lane.b32.xlu0 %v6218_v39, %s9395_s15 }
 0x36e   : > { %2142 = vrot.lane.b32.xlu1 %v6212_v7, %s9396_s28  ;;  %1704 = vrot.lane.b32.xlu0 %v6250_v49, %s9149_s20 }
 0x372   : > { %1811 = vrot.lane.b32.xlu1 %v6232_v6, %s9147_s18  ;;  %2144 = vrot.lane.b32.xlu0 %v6218_v39, %s9396_s28 }
 0x376   : > { %2251 = vrot.lane.b32.xlu1 %v6212_v7, %s9397_s14  ;;  %1813 = vrot.lane.b32.xlu0 %v6250_v49, %s9147_s18 }
 0x37a   : > { %1920 = vrot.lane.b32.xlu1 %v6232_v6, %s9145_s17  ;;  %2253 = vrot.lane.b32.xlu0 %v6218_v39, %s9397_s14 }
 0x37e   : > { %2360 = vrot.lane.b32.xlu1 %v6212_v7, %s9398_s16  ;;  %1922 = vrot.lane.b32.xlu0 %v6250_v49, %s9145_s17 }
 0x382   : > { %2029 = vrot.lane.b32.xlu1 %v6232_v6, %s9395_s15  ;;  %2362 = vrot.lane.b32.xlu0 %v6218_v39, %s9398_s16 }
 0x386   : > { %2138 = vrot.lane.b32.xlu1 %v6232_v6, %s9396_s28  ;;  %2031 = vrot.lane.b32.xlu0 %v6250_v49, %s9395_s15 }
 0x38a   : > { %2247 = vrot.lane.b32.xlu1 %v6232_v6, %s9397_s14  ;;  %2140 = vrot.lane.b32.xlu0 %v6250_v49, %s9396_s28 }
 0x38e   : > { %2356 = vrot.lane.b32.xlu1 %v6232_v6, %s9398_s16  ;;  %2249 = vrot.lane.b32.xlu0 %v6250_v49, %s9397_s14 }
 0x392   : > { %1609 = vrot.lane.b32.xlu1 %v6216_v38, %s9151_s24  ;;  %2358 = vrot.lane.b32.xlu0 %v6250_v49, %s9398_s16 }
 0x396   : > { %1718 = vrot.lane.b32.xlu1 %v6216_v38, %s9149_s20  ;;  %1611 = vrot.lane.b32.xlu0 %v6332_v52, %s9151_s24 }
 0x39a   : > { %1827 = vrot.lane.b32.xlu1 %v6216_v38, %s9147_s18  ;;  %1720 = vrot.lane.b32.xlu0 %v6332_v52, %s9149_s20 }
 0x39e   : > { %1936 = vrot.lane.b32.xlu1 %v6216_v38, %s9145_s17  ;;  %1829 = vrot.lane.b32.xlu0 %v6332_v52, %s9147_s18 }
 0x3a2   : > { %1605 = vrot.lane.b32.xlu1 %v6242_v44, %s9151_s24  ;;  %1938 = vrot.lane.b32.xlu0 %v6332_v52, %s9145_s17 }
 0x3a6   : > { %2045 = vrot.lane.b32.xlu1 %v6216_v38, %s9395_s15  ;;  %1607 = vrot.lane.b32.xlu0 %v6360_v62, %s9151_s24  ;;  %s9542_s24 = smov 15  }
 0x3aa   : > { %1714 = vrot.lane.b32.xlu1 %v6242_v44, %s9149_s20  ;;  %2047 = vrot.lane.b32.xlu0 %v6332_v52, %s9395_s15 }
 0x3ae   : > { %2154 = vrot.lane.b32.xlu1 %v6216_v38, %s9396_s28  ;;  %1716 = vrot.lane.b32.xlu0 %v6360_v62, %s9149_s20  ;;  %s9540_s20 = smov 17  }
 0x3b2   : > { %1823 = vrot.lane.b32.xlu1 %v6242_v44, %s9147_s18  ;;  %2156 = vrot.lane.b32.xlu0 %v6332_v52, %s9396_s28 }
 0x3b6   : > { %2263 = vrot.lane.b32.xlu1 %v6216_v38, %s9397_s14  ;;  %1825 = vrot.lane.b32.xlu0 %v6360_v62, %s9147_s18 }
 0x3ba   : > { %1932 = vrot.lane.b32.xlu1 %v6242_v44, %s9145_s17  ;;  %2265 = vrot.lane.b32.xlu0 %v6332_v52, %s9397_s14 }
 0x3be   : > { %2372 = vrot.lane.b32.xlu1 %v6216_v38, %s9398_s16  ;;  %1934 = vrot.lane.b32.xlu0 %v6360_v62, %s9145_s17 }
 0x3c2   : > { %2041 = vrot.lane.b32.xlu1 %v6242_v44, %s9395_s15  ;;  %2374 = vrot.lane.b32.xlu0 %v6332_v52, %s9398_s16 }
 0x3c4   : > { %v1598_v31 = vpop.permute.xlu1 %1597 }
 0x3c6   : > { %2150 = vrot.lane.b32.xlu1 %v6242_v44, %s9396_s28  ;;  %2043 = vrot.lane.b32.xlu0 %v6360_v62, %s9395_s15 }
 0x3c8   : > { %v1707_v32 = vpop.permute.xlu1 %1706  ;;  %v1600_v33 = vpop.permute.xlu0 %1599 }
 0x3ca   : > { %2259 = vrot.lane.b32.xlu1 %v6242_v44, %s9397_s14  ;;  %2152 = vrot.lane.b32.xlu0 %v6360_v62, %s9396_s28 }
 0x3cc   : > { %v1816_v35 = vpop.permute.xlu1 %1815  ;;  %v6424_v36 = vpop.permute.xlu0 %1708 }
 0x3ce   : > { %2368 = vrot.lane.b32.xlu1 %v6242_v44, %s9398_s16  ;;  %2261 = vrot.lane.b32.xlu0 %v6360_v62, %s9397_s14 }
 0x3d0   : > { %v6430_v37 = vpop.permute.xlu1 %1924  ;;  %v6432_v28 = vpop.permute.xlu0 %1817 }
 0x3d2   : > { %2370 = vrot.lane.b32.xlu0 %v6360_v62, %s9398_s16 }
 0x3d4   : > { %v6436_v19 = vpop.permute.xlu0 %1926  ;;  %v6438_v1 = vpop.permute.xlu1 %1593 }
 0x3d8   : > { %v6440_v16 = vpop.permute.xlu1 %2033  ;;  %v6442_v18 = vpop.permute.xlu0 %1595 }
 0x3dc   : > { %v6444_v20 = vpop.permute.xlu1 %1702  ;;  %v6446_v27 = vpop.permute.xlu0 %2035 }
 0x3e0   : > { %v6448_v23 = vpop.permute.xlu1 %2142  ;;  %v6450_v26 = vpop.permute.xlu0 %1704 }
 0x3e4   : > { %v6452_v21 = vpop.permute.xlu1 %1811  ;;  %v6454_v46 = vpop.permute.xlu0 %2144 }
 0x3e8   : > { %v6456_v42 = vpop.permute.xlu1 %2251  ;;  %v6458_v25 = vpop.permute.xlu0 %1813 }
 0x3ec   : > { %v6460_v41 = vpop.permute.xlu1 %1920  ;;  %v6462_v30 = vpop.permute.xlu0 %2253 }
 0x3ed   : > { %9413 = vst [vmem:[#allocation27_spill] sm:$0xff] %v6460_v41  ;;  %9414 = vst [vmem:[#allocation52_spill] sm:$0xff] %v6462_v30 }
 0x3f0   : > { %v6464_v54 = vpop.permute.xlu1 %2360  ;;  %v6466_v29 = vpop.permute.xlu0 %1922 }
 0x3f1   : > { %9415 = vst [vmem:[#allocation29_spill] sm:$0xff] %v6464_v54  ;;  %9416 = vst [vmem:[#allocation54_spill] sm:$0xff] %v6466_v29  ;;  %v9426_v29 = vld [vmem:[#allocation4_spill] sm:$0xff] }
 0x3f2   : > { %vm9431_vm8 = vcmp.lt.s32.totalorder %v9426_v29, 16 }
 0x3f3   : > { %vm9432_vm7 = vmmov %vm9431_vm8 }
 0x3f4   : > { %v6468_v22 = vpop.permute.xlu1 %2029  ;;  %v6470_v24 = vpop.permute.xlu0 %2362 }
 0x3f5   : > { %9417 = vst [vmem:[#allocation31_spill] sm:$0xff] %v6468_v22  ;;  %9418 = vst [vmem:[#allocation56_spill] sm:$0xff] %v6470_v24 }
 0x3f8   : > { %v6472_v0 = vpop.permute.xlu1 %2138  ;;  %v6474_v15 = vpop.permute.xlu0 %2031 }
 0x3f9   : > { %9419 = vst [vmem:[#allocation33_spill] sm:$0xff] %v6472_v0  ;;  %9420 = vst [vmem:[#allocation58_spill] sm:$0xff] %v6474_v15  ;;  %v9428_v0 = vld [vmem:[#allocation5_spill] sm:$0xff] }
 0x3fc   : > { %v6476_v10 = vpop.permute.xlu1 %2247  ;;  %v6478_v13 = vpop.permute.xlu0 %2140 }
 0x3fd   : > { %9421 = vst [vmem:[#allocation35_spill] sm:$0xff] %v6476_v10  ;;  %9422 = vst [vmem:[#allocation60_spill] sm:$0xff] %v6478_v13 }
 0x400   : > { %v6480_v3 = vpop.permute.xlu1 %2356  ;;  %v6482_v5 = vpop.permute.xlu0 %2249 }
 0x401   : > { %9423 = vst [vmem:[#allocation37_spill] sm:$0xff] %v6480_v3  ;;  %9424 = vst [vmem:[#allocation62_spill] sm:$0xff] %v6482_v5  ;;  %v1580_v5 = vmul.f32 %v6224_v40, %v6216_v38  ;;  %v1579_v38 = vmul.f32 %v6224_v40, %v6212_v7 }
 0x404   : > { %v1610_v2 = vpop.permute.xlu1 %1609  ;;  %v6484_v54 = vpop.permute.xlu0 %2358 }
 0x405   : > { %9425 = vst [vmem:[#allocation39_spill] sm:$0xff] %v6484_v54  ;;  %v1619_v22 = vsel %vm9427_vm14, %v1598_v31, %v1610_v2  ;;  %v1625_v24 = vsel %vm9235_vm0, %v1610_v2, %v1598_v31  ;;  %vm9437_vm14 = vcmp.lt.s32.totalorder %v9426_v29, 15 }
 0x406   : > { %v1634_v15 = vsel %vm9429_vm13, %v1619_v22, 0.0  ;;  %v1633_v10 = vsel %vm5175_vm9, %v1625_v24, 0.0  ;;  %vm9438_vm0 = vmmov %vm9437_vm14 }
 0x407   : > { %v1676_v13 = vmul.f32 %v6240_v43, %v1634_v15  ;;  %v1675_v2 = vmul.f32 %v6240_v43, %v1633_v10  ;;  %v6518_v43 = vmul.f32 %v6284_v34, %v6242_v44  ;;  %vm9440_vm13 = vmmov %vm9432_vm7 }
 0x408   : > { %v1719_v3 = vpop.permute.xlu1 %1718  ;;  %v1612_v30 = vpop.permute.xlu0 %1611 }
 0x409   : > { %v1728_v54 = vsel %vm9431_vm8, %v1707_v32, %v1719_v3  ;;  %v1734_v41 = vsel %vm9432_vm7, %v1719_v3, %v1707_v32  ;;  %v1620_v24 = vsel %vm9434_vm1, %v1600_v33, %v1612_v30  ;;  %v1626_v15 = vsel %vm9435_vm4, %v1612_v30, %v1600_v33  ;;  %vm9441_vm8 = vmmov %vm9432_vm7 }
 0x40a   : > { %v1742_v22 = vsel %vm5116_vm5, %v1734_v41, 0.0  ;;  %v1636_v55 = vsel %vm9436_vm15, %v1620_v24, 0.0  ;;  %v6514_v3 = vmul.f32 %v6284_v34, %v6232_v6  ;;  %v1688_v41 = vadd.f32 %v1676_v13, %v1580_v5  ;;  %vm9444_vm4 = vmmov %vm9438_vm0 }
 0x40b   : > { %v1784_v10 = vmul.f32 %v6252_v51, %v1742_v22  ;;  %v1785_v32 = vmul.f32 %v6252_v51, %v1728_v54  ;;  %v1635_v30 = vsel %vm5175_vm9, %v1626_v15, 0.0  ;;  %v1581_v33 = vmul.f32 %v6234_v57, %v6218_v39  ;;  %vm9445_vm15 = vmmov %vm9438_vm0 }
 0x40c   : > { %v1828_v7 = vpop.permute.xlu1 %1827  ;;  %v1721_v40 = vpop.permute.xlu0 %1720  ;;  %v1678_v6 = vmul.f32 %v6248_v48, %v1636_v55  ;;  %v1687_v34 = vadd.f32 %v1675_v2, %v1579_v38  ;;  %v1582_v39 = vmul.f32 %v6234_v57, %v6332_v52  ;;  %v1677_v55 = vmul.f32 %v6248_v48, %v1635_v30 }
 0x40d   : > { %v1837_v24 = vsel %vm9437_vm14, %v1816_v35, %v1828_v7  ;;  %v1843_v44 = vsel %vm9438_vm0, %v1828_v7, %v1816_v35  ;;  %v1729_v54 = vsel %vm9440_vm13, %v6424_v36, %v1721_v40  ;;  %v1735_v35 = vsel %vm9441_vm8, %v1721_v40, %v6424_v36 }
 0x40e   : > { %v1851_v51 = vsel %vm5132_vm3, %v1843_v44, 0.0  ;;  %v1852_v13 = vsel %vm476_vm11, %v1837_v24, 0.0  ;;  %v6546_v2 = vmul.f32 %v6290_v9, %v6250_v49  ;;  %v1796_v22 = vadd.f32 %v1784_v10, %v1687_v34  ;;  %v9446_v10 = vld [vmem:[#allocation7_spill] sm:$0xff] }
 0x40f   : > { %v1797_v15 = vadd.f32 %v1785_v32, %v1688_v41  ;;  %v1893_v38 = vmul.f32 %v6264_v59, %v1851_v51  ;;  %v6551_v44 = vmul.f32 %v6290_v9, %v6360_v62  ;;  %v1690_v57 = vadd.f32 %v1678_v6, %v1582_v39 }
 0x410   : > { %v1937_v7 = vpop.permute.xlu1 %1936  ;;  %v1830_v24 = vpop.permute.xlu0 %1829  ;;  %v1894_v48 = vmul.f32 %v6264_v59, %v1852_v13  ;;  %v1744_v52 = vsel %vm5116_vm5, %v1735_v35, 0.0  ;;  %v1787_v36 = vmul.f32 %v6258_v58, %v1729_v54  ;;  %vm9442_vm7 = vcmp.lt.s32.totalorder %v9426_v29, 1 }
 0x411   : > { %v1946_v49 = vsel %vm9442_vm7, %v6430_v37, %v1937_v7  ;;  %vm9443_vm1 = vmmov %vm9442_vm7  ;;  %v1838_v9 = vsel %vm9444_vm4, %v6432_v28, %v1830_v24  ;;  %v1844_v59 = vsel %vm9445_vm15, %v1830_v24, %v6432_v28  ;;  %v1689_v62 = vadd.f32 %v1677_v55, %v1581_v33 }
 0x412   : > { %v1952_v41 = vsel %vm9443_vm1, %v1937_v7, %v6430_v37  ;;  %vm9447_vm14 = vcmp.ge.s32.totalorder %v9446_v10, 1  ;;  %vm9448_vm0 = vcmp.ge.s32.totalorder %v9428_v0, 1  ;;  %v1853_v40 = vsel %vm5132_vm3, %v1844_v59, 0.0  ;;  %vm9451_vm7 = vmmov %vm9443_vm1 }
 0x413   : > { %v1960_v32 = vsel %vm9447_vm14, %v1952_v41, 0.0  ;;  %v1961_v30 = vsel %vm9448_vm0, %v1946_v49, 0.0  ;;  %v1905_v6 = vadd.f32 %v1893_v38, %v1796_v22  ;;  %v1786_v37 = vmul.f32 %v6258_v58, %v1744_v52  ;;  %vm9452_vm1 = vmmov %vm9448_vm0 }
 0x414   : > { %v2002_v34 = vmul.f32 %v6272_v63, %v1960_v32  ;;  %v1854_v51 = vsel %vm476_vm11, %v1838_v9, 0.0  ;;  %v1606_v13 = vpop.permute.xlu1 %1605  ;;  %v1939_v28 = vpop.permute.xlu0 %1938  ;;  %v2003_v33 = vmul.f32 %v6272_v63, %v1961_v30  ;;  %vm9449_vm13 = vcmp.lt.s32.totalorder %v9426_v29, 17  ;;  %vm9453_vm4 = vmmov %vm9451_vm7 }
 0x415   : > { %v1617_v54 = vsel %vm9449_vm13, %v6438_v1, %v1606_v13  ;;  %vm9450_vm8 = vmmov %vm9449_vm13  ;;  %v1947_v58 = vsel %vm9451_vm7, %v6436_v19, %v1939_v28  ;;  %v1906_v55 = vadd.f32 %v1894_v48, %v1797_v15  ;;  %v1799_v35 = vadd.f32 %v1787_v36, %v1690_v57 }
 0x416   : > { %v1623_v39 = vsel %vm9450_vm8, %v1606_v13, %v6438_v1  ;;  %v1895_v22 = vmul.f32 %v6270_v61, %v1853_v40  ;;  %v1896_v63 = vmul.f32 %v6270_v61, %v1854_v51  ;;  %v1630_v7 = vsel %vm9452_vm1, %v1617_v54, 0.0  ;;  %vm9454_vm15 = vmmov %vm9447_vm14 }
 0x417   : > { %v1629_v38 = vsel %vm5175_vm9, %v1623_v39, 0.0  ;;  %v1953_v1 = vsel %vm9453_vm4, %v1939_v28, %v6436_v19  ;;  %v1798_v52 = vadd.f32 %v1786_v37, %v1689_v62  ;;  %v2014_v49 = vadd.f32 %v2002_v34, %v1905_v6  ;;  %vm9455_vm14 = vmmov %vm9448_vm0 }
 0x418   : > { %v1671_v24 = vmul.f32 %v6292_v8, %v1629_v38  ;;  %v1962_v15 = vsel %vm9454_vm15, %v1953_v1, 0.0  ;;  %v1963_v57 = vsel %vm9455_vm14, %v1947_v58, 0.0  ;;  %v2046_v48 = vpop.permute.xlu1 %2045  ;;  %v1608_v36 = vpop.permute.xlu0 %1607  ;;  %v2015_v61 = vadd.f32 %v2003_v33, %v1906_v55  ;;  %vm9461_vm4 = vmmov %vm9455_vm14 }
 0x419   : > { %v1672_v41 = vmul.f32 %v6292_v8, %v1630_v7  ;;  %v2004_v9 = vmul.f32 %v6278_v12, %v1962_v15  ;;  %vm9456_vm0 = vcmp.lt.s32.totalorder %v9426_v29, 127  ;;  %v2005_v19 = vmul.f32 %v6278_v12, %v1963_v57 }
 0x41a   : > { %v2055_v59 = vsel %vm9456_vm0, %v6440_v16, %v2046_v48  ;;  %vm9457_vm13 = vmmov %vm9456_vm0  ;;  %vm9458_vm8 = vcmp.le.s32.totalorder %v9446_v10, 14  ;;  %vm9459_vm7 = vcmp.lt.s32.totalorder %v9426_v29, 17  ;;  %v1907_v8 = vadd.f32 %v1895_v22, %v1798_v52 }
 0x41b   : > { %v2061_v62 = vsel %vm9457_vm13, %v2046_v48, %v6440_v16  ;;  %v2069_v32 = vsel %vm9458_vm8, %v2055_v59, 0.0  ;;  %v1618_v30 = vsel %vm9459_vm7, %v6442_v18, %v1608_v36  ;;  %v1908_v40 = vadd.f32 %v1896_v63, %v1799_v35  ;;  %vm9460_vm1 = vmmov %vm9459_vm7 }
 0x41c   : > { %v1683_v6 = vadd.f32 %v1671_v24, %v6514_v3  ;;  %v2070_v37 = vsel %vm476_vm11, %v2061_v62, 0.0  ;;  %v2111_v12 = vmul.f32 %v6304_v60, %v2069_v32  ;;  %v1624_v16 = vsel %vm9460_vm1, %v1608_v36, %v6442_v18  ;;  %v1715_v13 = vpop.permute.xlu1 %1714  ;;  %v2048_v28 = vpop.permute.xlu0 %2047  ;;  %vm9464_vm13 = vmmov %vm9456_vm0 }
 0x41d   : > { %v2112_v34 = vmul.f32 %v6304_v60, %v2070_v37  ;;  %v1632_v51 = vsel %vm9461_vm4, %v1618_v30, 0.0  ;;  %v1684_v33 = vadd.f32 %v1672_v41, %v6518_v43  ;;  %v2016_v54 = vadd.f32 %v2004_v9, %v1907_v8 }
 0x41e   : > { %v1631_v3 = vsel %vm5175_vm9, %v1624_v16, 0.0  ;;  %vm9462_vm15 = vcmp.lt.s32.totalorder %v9426_v29, 16  ;;  %v2017_v60 = vadd.f32 %v2005_v19, %v1908_v40  ;;  %v1674_v18 = vmul.f32 %v6298_v14, %v1632_v51 }
 0x41f   : > { %v1726_v39 = vsel %vm9462_vm15, %v6444_v20, %v1715_v13  ;;  %v1673_v58 = vmul.f32 %v6298_v14, %v1631_v3  ;;  %vm9463_vm14 = vmmov %vm9462_vm15  ;;  %v2056_v22 = vsel %vm9456_vm0, %v6446_v27, %v2048_v28  ;;  %v2062_v38 = vsel %vm9464_vm13, %v2048_v28, %v6446_v27 }
 0x420   : > { %v1732_v55 = vsel %vm9463_vm14, %v1715_v13, %v6444_v20  ;;  %v1781_v35 = vmul.f32 %v6312_v11, %v1726_v39  ;;  %v2123_v63 = vadd.f32 %v2111_v12, %v2014_v49  ;;  %v2124_v7 = vadd.f32 %v2112_v34, %v2015_v61  ;;  %v2155_v24 = vpop.permute.xlu1 %2154  ;;  %v1717_v1 = vpop.permute.xlu0 %1716  ;;  %vm9469_vm15 = vmmov %vm9463_vm14 }
 0x421   : > { %v1738_v43 = vsel %vm5116_vm5, %v1732_v55, 0.0  ;;  %v2071_v20 = vsel %vm9458_vm8, %v2056_v22, 0.0  ;;  %v2072_v52 = vsel %vm476_vm11, %v2062_v38, 0.0  ;;  %vm9465_vm7 = vcmp.lt.s32.totalorder %v9426_v29, 113 }
 0x422   : > { %v1780_v14 = vmul.f32 %v6312_v11, %v1738_v43  ;;  %v2113_v15 = vmul.f32 %v6310_v56, %v2071_v20  ;;  %v2164_v57 = vsel %vm9465_vm7, %v6448_v23, %v2155_v24  ;;  %vm9466_vm1 = vmmov %vm9465_vm7  ;;  %v1686_v11 = vadd.f32 %v1674_v18, %v6551_v44 }
 0x423   : > { %v2170_v27 = vsel %vm9466_vm1, %v2155_v24, %v6448_v23  ;;  %v2114_v49 = vmul.f32 %v6310_v56, %v2072_v52  ;;  %vm9467_vm4 = vcmp.ge.s32.totalorder %v9446_v10, 1  ;;  %v1685_v41 = vadd.f32 %v1673_v58, %v6546_v2  ;;  %vm9472_vm8 = vmmov %vm9466_vm1  ;;  %v9479_v52 = vld [vmem:[#allocation19_spill] sm:$0xff] }
 0x424   : > { %v2178_v48 = vsel %vm9467_vm4, %v2164_v57, 0.0  ;;  %v2179_v61 = vsel %vm5009_vm6, %v2170_v27, 0.0  ;;  %v1793_v9 = vadd.f32 %v1781_v35, %v1684_v33  ;;  %v1727_v19 = vsel %vm9469_vm15, %v6450_v26, %v1717_v1  ;;  %v1824_v32 = vpop.permute.xlu1 %1823  ;;  %v2157_v30 = vpop.permute.xlu0 %2156  ;;  %vm9473_vm7 = vmmov %vm9466_vm1  ;;  %v9480_v27 = vld [vmem:[#allocation27_spill] sm:$0xff] }
 0x425   : > { %v2220_v59 = vmul.f32 %v6324_v17, %v2178_v48  ;;  %v1792_v23 = vadd.f32 %v1780_v14, %v1683_v6  ;;  %v2125_v62 = vadd.f32 %v2113_v15, %v2016_v54  ;;  %v2221_v44 = vmul.f32 %v6324_v17, %v2179_v61  ;;  %vm9474_vm1 = vmmov %vm9467_vm4  ;;  %v9485_v61 = vld [vmem:[#allocation52_spill] sm:$0xff] }
 0x426   : > { %v1733_v56 = vsel %vm9463_vm14, %v1717_v1, %v6450_v26  ;;  %v2126_v8 = vadd.f32 %v2114_v49, %v2017_v60  ;;  %v1783_v40 = vmul.f32 %v6318_v45, %v1727_v19  ;;  %vm9470_vm0 = vcmp.lt.s32.totalorder %v9426_v29, 15  ;;  %v9486_v19 = vld [vmem:[#allocation20_spill] sm:$0xff] }
 0x427   : > { %v1740_v2 = vsel %vm5116_vm5, %v1733_v56, 0.0  ;;  %v1835_v37 = vsel %vm9470_vm0, %v6452_v21, %v1824_v32  ;;  %v2232_v6 = vadd.f32 %v2220_v59, %v2123_v63  ;;  %vm9471_vm13 = vmmov %vm9470_vm0  ;;  %v2165_v51 = vsel %vm9472_vm8, %v6454_v46, %v2157_v30 }
 0x428   : > { %v1782_v12 = vmul.f32 %v6318_v45, %v1740_v2  ;;  %v1841_v17 = vsel %vm9471_vm13, %v1824_v32, %v6452_v21  ;;  %v1848_v26 = vsel %vm476_vm11, %v1835_v37, 0.0  ;;  %v2171_v45 = vsel %vm9473_vm7, %v2157_v30, %v6454_v46  ;;  %v2264_v54 = vpop.permute.xlu1 %2263  ;;  %v1826_v3 = vpop.permute.xlu0 %1825  ;;  %vm9477_vm14 = vmmov %vm9470_vm0  ;;  %v9488_v30 = vld [vmem:[#allocation38_spill] sm:$0xff] }
 0x429   : > { %v1847_v34 = vsel %vm5132_vm3, %v1841_v17, 0.0  ;;  %v1890_v16 = vmul.f32 %v6334_v50, %v1848_v26  ;;  %v2233_v13 = vadd.f32 %v2221_v44, %v2124_v7  ;;  %v2180_v21 = vsel %vm9474_vm1, %v2165_v51, 0.0  ;;  %vm9483_vm7 = vmmov %vm9474_vm1  ;;  %v9489_v17 = vld [vmem:[#allocation29_spill] sm:$0xff] }
 0x42a   : > { %v1889_v28 = vmul.f32 %v6334_v50, %v1847_v34  ;;  %v2181_v33 = vsel %vm5009_vm6, %v2171_v45, 0.0  ;;  %v1794_v39 = vadd.f32 %v1782_v12, %v1685_v41  ;;  %v1795_v60 = vadd.f32 %v1783_v40, %v1686_v11 }
 0x42b   : > { %v2222_v58 = vmul.f32 %v6330_v47, %v2180_v21  ;;  %vm9475_vm4 = vcmp.lt.s32.totalorder %v9426_v29, 112  ;;  %v1902_v46 = vadd.f32 %v1890_v16, %v1793_v9  ;;  %v2223_v55 = vmul.f32 %v6330_v47, %v2181_v33  ;;  %v9494_v21 = vld [vmem:[#allocation21_spill] sm:$0xff] }
 0x42c   : > { %v2273_v18 = vsel %vm9475_vm4, %v6456_v42, %v2264_v54  ;;  %vm9476_vm15 = vmmov %vm9475_vm4  ;;  %v1836_v43 = vsel %vm9477_vm14, %v6458_v25, %v1826_v3  ;;  %v1901_v35 = vadd.f32 %v1889_v28, %v1792_v23  ;;  %v1842_v7 = vsel %vm9470_vm0, %v1826_v3, %v6458_v25  ;;  %v1933_v24 = vpop.permute.xlu1 %1932  ;;  %v2266_v1 = vpop.permute.xlu0 %2265 }
 0x42d   : > { %v2279_v50 = vsel %vm9476_vm15, %v2264_v54, %v6456_v42  ;;  %v2329_v63 = vmul.f32 %v6346_v53, %v2273_v18  ;;  %v2234_v14 = vadd.f32 %v2222_v58, %v2125_v62  ;;  %v1849_v42 = vsel %vm5132_vm3, %v1842_v7, 0.0  ;;  %vm9487_vm15 = vmmov %vm9475_vm4  ;;  %v9495_v54 = vld [vmem:[#allocation54_spill] sm:$0xff]  ;;  %v9500_v7 = vld [vmem:[#allocation31_spill] sm:$0xff] }
 0x42e   : > { %v2288_v38 = vsel %vm4987_vm2, %v2279_v50, 0.0  ;;  %v1850_v20 = vsel %vm476_vm11, %v1836_v43, 0.0  ;;  %v1891_v15 = vmul.f32 %v9479_v52, %v1849_v42  ;;  %vm9481_vm13 = vcmp.lt.s32.totalorder %v9426_v29, 1 }
 0x42f   : > { %v2330_v47 = vmul.f32 %v6346_v53, %v2288_v38  ;;  %v1892_v57 = vmul.f32 %v9479_v52, %v1850_v20  ;;  %v1944_v11 = vsel %vm9481_vm13, %v9480_v27, %v1933_v24  ;;  %vm9482_vm8 = vmmov %vm9481_vm13  ;;  %v2235_v53 = vadd.f32 %v2223_v55, %v2126_v8 }
 0x430   : > { %v1950_v25 = vsel %vm9482_vm8, %v1933_v24, %v9480_v27  ;;  %vm9484_vm1 = vcmp.ge.s32.totalorder %v9428_v0, 1  ;;  %v2274_v41 = vsel %vm9475_vm4, %v9485_v61, %v2266_v1  ;;  %v2341_v9 = vadd.f32 %v2329_v63, %v2232_v6  ;;  %v2373_v2 = vpop.permute.xlu1 %2372  ;;  %v1935_v40 = vpop.permute.xlu0 %1934  ;;  %v9504_v24 = vld [vmem:[#allocation56_spill] sm:$0xff]  ;;  %v9506_v27 = vld [vmem:[#allocation22_spill] sm:$0xff] }
 0x431   : > { %v1956_v49 = vsel %vm9483_vm7, %v1950_v25, 0.0  ;;  %v1957_v48 = vsel %vm9484_vm1, %v1944_v11, 0.0  ;;  %v2342_v59 = vadd.f32 %v2330_v47, %v2233_v13  ;;  %v1903_v44 = vadd.f32 %v1891_v15, %v1794_v39  ;;  %vm9496_vm7 = vmmov %vm9482_vm8 }
 0x432   : > { %v1998_v23 = vmul.f32 %v9486_v19, %v1956_v49  ;;  %v1999_v62 = vmul.f32 %v9486_v19, %v1957_v48  ;;  %v1904_v56 = vadd.f32 %v1892_v57, %v1795_v60  ;;  %v2280_v32 = vsel %vm9487_vm15, %v2266_v1, %v9485_v61  ;;  %v9509_v19 = vld [vmem:[#allocation42_spill] sm:$0xff] }
 0x433   : > { %v2331_v8 = vmul.f32 %v9488_v30, %v2274_v41  ;;  %v2290_v6 = vsel %vm4987_vm2, %v2280_v32, 0.0  ;;  %vm9490_vm14 = vcmp.lt.s32.totalorder %v9426_v29, 111  ;;  %vm9492_vm13 = vcmp.le.s32.totalorder %v9446_v10, 14 }
 0x434   : > { %v2010_v37 = vadd.f32 %v1998_v23, %v1901_v35  ;;  %v2011_v12 = vadd.f32 %v1999_v62, %v1902_v46  ;;  %v2382_v26 = vsel %vm9490_vm14, %v9489_v17, %v2373_v2  ;;  %v2332_v34 = vmul.f32 %v9488_v30, %v2290_v6  ;;  %vm9491_vm0 = vmmov %vm9490_vm14  ;;  %v2042_v55 = vpop.permute.xlu1 %2041  ;;  %v2375_v50 = vpop.permute.xlu0 %2374  ;;  %v9499_v35 = vld [vmem:[#allocation40_spill] sm:$0xff]  ;;  %v9510_v62 = vld [vmem:[#allocation33_spill] sm:$0xff] }
 0x435   : > { %v2343_v16 = vadd.f32 %v2331_v8, %v2234_v14  ;;  %v2388_v51 = vsel %vm9491_vm0, %v2373_v2, %v9489_v17  ;;  %v2396_v45 = vsel %vm9492_vm13, %v2382_v26, 0.0  ;;  %v1945_v3 = vsel %vm9482_vm8, %v9495_v54, %v1935_v40  ;;  %vm9503_vm0 = vmmov %vm9492_vm13  ;;  %v9515_v17 = vld [vmem:[#allocation58_spill] sm:$0xff] }
 0x436   : > { %v2397_v28 = vsel %vm5167_vm10, %v2388_v51, 0.0  ;;  %v2438_v33 = vmul.f32 %v9494_v21, %v2396_v45  ;;  %v1951_v39 = vsel %vm9496_vm7, %v1935_v40, %v9495_v54  ;;  %v2344_v60 = vadd.f32 %v2332_v34, %v2235_v53  ;;  %vm9508_vm7 = vmmov %vm9503_vm0  ;;  %v9518_v54 = vld [vmem:[#allocation44_spill] sm:$0xff] }
 0x437   : > { %v2439_v58 = vmul.f32 %v9494_v21, %v2397_v28  ;;  %vm9497_vm1 = vcmp.ge.s32.totalorder %v9446_v10, 1  ;;  %vm9498_vm4 = vcmp.ge.s32.totalorder %v9428_v0, 1  ;;  %vm9501_vm15 = vcmp.lt.s32.totalorder %v9426_v29, 127 }
 0x438   : > { %v1958_v18 = vsel %vm9497_vm1, %v1951_v39, 0.0  ;;  %v1959_v46 = vsel %vm9498_vm4, %v1945_v3, 0.0  ;;  %v6768_v43 = vadd.f32 %v2438_v33, %v2341_v9  ;;  %v2053_v14 = vsel %vm9501_vm15, %v9500_v7, %v2042_v55  ;;  %vm9502_vm14 = vmmov %vm9501_vm15  ;;  %v2151_v48 = vpop.permute.xlu1 %2150  ;;  %v2044_v61 = vpop.permute.xlu0 %2043 }
 0x439   : > { %v2000_v38 = vmul.f32 %v9499_v35, %v1958_v18  ;;  %v2001_v63 = vmul.f32 %v9499_v35, %v1959_v46  ;;  %v6775_v47 = vadd.f32 %v2439_v58, %v2342_v59  ;;  %v2059_v42 = vsel %vm9502_vm14, %v2042_v55, %v9500_v7  ;;  %v9519_v18 = vld [vmem:[#allocation35_spill] sm:$0xff] }
 0x43a   : > { %v2065_v20 = vsel %vm9503_vm0, %v2053_v14, 0.0  ;;  %vm9505_vm13 = vcmp.lt.s32.totalorder %v9426_v29, 111  ;;  %v2066_v57 = vsel %vm476_vm11, %v2059_v42, 0.0  ;;  %v2476_v41 = vmul.f32 %v6768_v43, %v6768_v43  ;;  %vm9516_vm0 = vmmov %vm9502_vm14 }
 0x43b   : > { %v2383_v1 = vsel %vm9505_vm13, %v9504_v24, %v2375_v50  ;;  %v2012_v52 = vadd.f32 %v2000_v38, %v1903_v44  ;;  %v2013_v15 = vadd.f32 %v2001_v63, %v1904_v56  ;;  %v2107_v11 = vmul.f32 %v9506_v27, %v2065_v20  ;;  %vm9507_vm8 = vmmov %vm9505_vm13  ;;  %v9522_v63 = vld [vmem:[#allocation24_spill] sm:$0xff] }
 0x43c   : > { %v2108_v25 = vmul.f32 %v9506_v27, %v2066_v57  ;;  %v2389_v53 = vsel %vm9507_vm8, %v2375_v50, %v9504_v24  ;;  %v2398_v49 = vsel %vm9508_vm7, %v2383_v1, 0.0  ;;  %vm9511_vm1 = vcmp.lt.s32.totalorder %v9426_v29, 113  ;;  %vm9517_vm13 = vmmov %vm9508_vm7  ;;  %v2260_v45 = vpop.permute.xlu1 %2259  ;;  %v2153_v28 = vpop.permute.xlu0 %2152  ;;  %v9523_v20 = vld [vmem:[#allocation60_spill] sm:$0xff] }
 0x43d   : > { %v2119_v9 = vadd.f32 %v2107_v11, %v2010_v37  ;;  %v2399_v59 = vsel %vm5167_vm10, %v2389_v53, 0.0  ;;  %v2440_v23 = vmul.f32 %v9509_v19, %v2398_v49  ;;  %v2162_v44 = vsel %vm9511_vm1, %v9510_v62, %v2151_v48  ;;  %vm9512_vm4 = vmmov %vm9511_vm1  ;;  %v9514_v37 = vld [vmem:[#allocation23_spill] sm:$0xff]  ;;  %v9525_v49 = vld [vmem:[#allocation46_spill] sm:$0xff] }
 0x43e   : > { %v2120_v56 = vadd.f32 %v2108_v25, %v2011_v12  ;;  %v2441_v32 = vmul.f32 %v9509_v19, %v2399_v59  ;;  %v2168_v30 = vsel %vm9512_vm4, %v2151_v48, %v9510_v62  ;;  %vm9513_vm15 = vcmp.ge.s32.totalorder %v9446_v10, 1  ;;  %vm9524_vm4 = vmmov %vm9511_vm1 }
 0x43f   : > { %v2174_v8 = vsel %vm9513_vm15, %v2162_v44, 0.0  ;;  %v6808_v2 = vadd.f32 %v2440_v23, %v2343_v16  ;;  %v2175_v40 = vsel %vm5009_vm6, %v2168_v30, 0.0  ;;  %v2054_v12 = vsel %vm9502_vm14, %v9515_v17, %v2044_v61  ;;  %v9529_v23 = vld [vmem:[#allocation62_spill] sm:$0xff] }
 0x440   : > { %v2216_v6 = vmul.f32 %v9514_v37, %v2174_v8  ;;  %v6816_v26 = vadd.f32 %v2441_v32, %v2344_v60  ;;  %v2217_v34 = vmul.f32 %v9514_v37, %v2175_v40  ;;  %v2060_v51 = vsel %vm9516_vm0, %v2044_v61, %v9515_v17  ;;  %v2369_v57 = vpop.permute.xlu1 %2368  ;;  %v2262_v27 = vpop.permute.xlu0 %2261 }
 0x441   : > { %v2067_v16 = vsel %vm9517_vm13, %v2054_v12, 0.0  ;;  %v2068_v33 = vsel %vm476_vm11, %v2060_v51, 0.0  ;;  %v2477_v39 = vmul.f32 %v6775_v47, %v6775_v47  ;;  %vm9520_vm8 = vcmp.lt.s32.totalorder %v9426_v29, 112 }
 0x442   : > { %v2228_v21 = vadd.f32 %v2216_v6, %v2119_v9  ;;  %v2109_v3 = vmul.f32 %v9518_v54, %v2067_v16  ;;  %v2229_v60 = vadd.f32 %v2217_v34, %v2120_v56  ;;  %v2110_v58 = vmul.f32 %v9518_v54, %v2068_v33  ;;  %vm9521_vm7 = vmmov %vm9520_vm8  ;;  %v9526_v9 = vld [vmem:[#allocation37_spill] sm:$0xff]  ;;  %v9534_v34 = vld [vmem:[#allocation48_spill] sm:$0xff] }
 0x443   : > { %v2271_v46 = vsel %vm9520_vm8, %v9519_v18, %v2260_v45  ;;  %v2277_v55 = vsel %vm9521_vm7, %v2260_v45, %v9519_v18  ;;  %v2480_v35 = vadd.f32 %v2477_v39, %v2476_v41  ;;  %v2163_v24 = vsel %vm9511_vm1, %v9523_v20, %v2153_v28  ;;  %vm9530_vm13 = vmmov %vm9521_vm7  ;;  %v9533_v6 = vld [vmem:[#allocation25_spill] sm:$0xff] }
 0x444   : > { %v2121_v50 = vadd.f32 %v2109_v3, %v2012_v52  ;;  %v2284_v38 = vsel %vm4987_vm2, %v2277_v55, 0.0  ;;  %v2325_v7 = vmul.f32 %v9522_v63, %v2271_v46  ;;  %v2122_v14 = vadd.f32 %v2110_v58, %v2013_v15  ;;  %vm9531_vm8 = vmmov %vm9521_vm7  ;;  %v2371_v40 = vpop.permute.xlu0 %2370  ;;  %v9539_v46 = vld [vmem:[#allocation50_spill] sm:$0xff] }
 0x445   : > { %v2326_v42 = vmul.f32 %v9522_v63, %v2284_v38  ;;  %v2169_v1 = vsel %vm9524_vm4, %v2153_v28, %v9523_v20  ;;  %2481 = vadd.xlane.f32.xlu1 %v2480_v35  ;;  %v2176_v11 = vsel %vm9513_vm15, %v2163_v24, 0.0  ;;  %v2478_v25 = vmul.f32 %v6808_v2, %v6808_v2  ;;  %v9535_v28 = vld [vmem:[#allocation39_spill] sm:$0xff] }
 0x446   : > { %v2337_v52 = vadd.f32 %v2325_v7, %v2228_v21  ;;  %v2177_v15 = vsel %vm5009_vm6, %v2169_v1, 0.0  ;;  %v2218_v48 = vmul.f32 %v9525_v49, %v2176_v11  ;;  %v2479_v41 = vmul.f32 %v6816_v26, %v6816_v26  ;;  %v2540_v1 = vld [vmem:[%s8989_s9 + $0x8] sm:$0xff]  ;;  %v1591_v11 = vld [vmem:[%s8987_s7 + $0x20] sm:$0xff] }
 0x447   : > { %v2338_v53 = vadd.f32 %v2326_v42, %v2229_v60  ;;  %v2219_v61 = vmul.f32 %v9525_v49, %v2177_v15  ;;  %vm9527_vm14 = vcmp.lt.s32.totalorder %v9426_v29, 111  ;;  %v2272_v62 = vsel %vm9530_vm13, %v9529_v23, %v2262_v27  ;;  %v1592_v15 = vld [vmem:[%s8987_s7 + $0x28] sm:$0xff]  ;;  %v4200_v49 = vld [vmem:[%s8987_s7 + $0x58] sm:$0xff] }
 0x448   : > { %v2380_v59 = vsel %vm9527_vm14, %v9526_v9, %v2369_v57  ;;  %vm9528_vm0 = vmmov %vm9527_vm14  ;;  %v2278_v44 = vsel %vm9531_vm8, %v2262_v27, %v9529_v23  ;;  %v2230_v56 = vadd.f32 %v2218_v48, %v2121_v50  ;;  %v2483_v30 = vadd.f32 %v2479_v41, %v2478_v25  ;;  %v4194_v27 = vld [vmem:[%s8987_s7 + $0xe8] sm:$0xff]  ;;  %v6924_v25 = vpop.f32.mrf.mxu1  ;;  %v4212_v23 = vld [vmem:[%s8987_s7 + $0xb8] sm:$0xff] }
 0x449   : > { %v2386_v19 = vsel %vm9528_vm0, %v2369_v57, %v9526_v9  ;;  %v2231_v32 = vadd.f32 %v2219_v61, %v2122_v14  ;;  %vm9532_vm7 = vcmp.le.s32.totalorder %v9446_v10, 14  ;;  %v2286_v12 = vsel %vm4987_vm2, %v2278_v44, 0.0  ;;  %vm9536_vm1 = vmmov %vm9528_vm0  ;;  %v2539_v57 = vld [vmem:[%s8989_s9] sm:$0xff]  ;;  %v4218_v44 = vld [vmem:[%s8987_s7 + $0x118] sm:$0xff] }
 0x44a   : > { %v2392_v8 = vsel %vm9532_vm7, %v2380_v59, 0.0  ;;  %v2393_v37 = vsel %vm5167_vm10, %v2386_v19, 0.0  ;;  %v2327_v51 = vmul.f32 %v9534_v34, %v2272_v62  ;;  %2484 = vadd.xlane.f32.xlu0 %v2483_v30  ;;  %v2328_v45 = vmul.f32 %v9534_v34, %v2286_v12  ;;  %vm9537_vm4 = vmmov %vm9528_vm0  ;;  %v6932_v48 = vpop.f32.mrf.mxu1  ;;  %v4205_v9 = vld [vmem:[%s8987_s7 + $0x80] sm:$0xff]  ;;  %v4206_v59 = vld [vmem:[%s8987_s7 + $0x88] sm:$0xff] }
 0x44b   : > { %v2434_v17 = vmul.f32 %v9533_v6, %v2392_v8  ;;  %v2435_v16 = vmul.f32 %v9533_v6, %v2393_v37  ;;  %v2381_v21 = vsel %vm9536_vm1, %v9535_v28, %v2371_v40  ;;  %v2387_v33 = vsel %vm9537_vm4, %v2371_v40, %v9535_v28  ;;  %vm9538_vm15 = vmmov %vm9532_vm7  ;;  %v4211_v19 = vld [vmem:[%s8987_s7 + $0xb0] sm:$0xff] }
 0x44c   : > { %v2339_v3 = vadd.f32 %v2327_v51, %v2230_v56  ;;  %v2394_v39 = vsel %vm9538_vm15, %v2381_v21, 0.0  ;;  %v2395_v60 = vsel %vm5167_vm10, %v2387_v33, 0.0  ;;  %v2340_v18 = vadd.f32 %v2328_v45, %v2231_v32  ;;  %v6934_v61 = vpop.f32.mrf.mxu1  ;;  %v4217_v62 = vld [vmem:[%s8987_s7 + $0x110] sm:$0xff]  ;;  %v4223_v56 = vld [vmem:[%s8987_s7 + $0x140] sm:$0xff]  ;;  %v4224_v32 = vld [vmem:[%s8987_s7 + $0x148] sm:$0xff] }
 0x44d   : > { %v6884_v54 = vadd.f32 %v2434_v17, %v2337_v52  ;;  %v6890_v58 = vadd.f32 %v2435_v16, %v2338_v53  ;;  %v2436_v55 = vmul.f32 %v9539_v46, %v2394_v39  ;;  %v2437_v50 = vmul.f32 %v9539_v46, %v2395_v60  ;;  %v4193_v52 = vld [vmem:[%s8987_s7 + $0xe0] sm:$0xff]  ;;  %v4199_v53 = vld [vmem:[%s8987_s7 + $0x50] sm:$0xff] }
 0x44e   : > { %v6940_v41 = vpop.f32.mrf.mxu1  ;;  %v4229_v30 = vld [vmem:[%s8987_s7 + $0x170] sm:$0xff]  ;;  %vm9545_vm14 = vcmask 130048   ;;  %vm9549_vm7 = vcmp.lt.s32.totalorder %v9426_v29, 17 }
 0x44f   : > { %v2458_v35 = vmul.f32 %v6884_v54, %v6884_v54  ;;  %v6896_v38 = vadd.f32 %v2436_v55, %v2339_v3  ;;  %v6898_v63 = vadd.f32 %v2437_v50, %v2340_v18  ;;  %v2459_v7 = vmul.f32 %v6890_v58, %v6890_v58  ;;  %vm9546_vm0 = vmmov %vm9545_vm14 }
 0x450   : > { %vm9547_vm13 = vmmov %vm9546_vm0 }
 0x451   : > { %v2462_v14 = vadd.f32 %v2459_v7, %v2458_v35  ;;  %v2460_v42 = vmul.f32 %v6896_v38, %v6896_v38  ;;  %v2461_v20 = vmul.f32 %v6898_v63, %v6898_v63  ;;  %vm9548_vm8 = vmmov %vm9546_vm0 }
 0x452   : > { %vm9550_vm1 = vmmov %vm9549_vm7 }
 0x453   : > { %2463 = vadd.xlane.f32.xlu0 %v2462_v14  ;;  %v2465_v24 = vadd.f32 %v2461_v20, %v2460_v42  ;;  %v1438_v14 = vld [vmem:[%s8990_s10] sm:$0xff]  ;;  %vm9551_vm4 = vmmov %vm9550_vm1 }
 0x454   : > { %vm9552_vm15 = vmmov %vm9550_vm1 }
 0x455   : > { %2466 = vadd.xlane.f32.xlu1 %v2465_v24 }
 0x466   : > { %2548 = vperm.xlu1 %4527, %v2540_v1  }
 0x469   : > { %2543 = vperm.xlu0 %4526, %v2539_v57  }
 0x46a   : > { %1572 = vperm.xlu1 %4527, %v4194_v27  }
 0x46d   : > { %1567 = vperm.xlu0 %4526, %v4193_v52  }
 0x46e   : > { %1663 = vperm.xlu1 %4527, %v1591_v11  }
 0x471   : > { %1668 = vperm.xlu0 %4526, %v1592_v15   ;;  %v4235_v15 = vld [vmem:[%s8987_s7 + $0x1a0] sm:$0xff] }
 0x472   : > { %1772 = vperm.xlu1 %4527, %v4199_v53   ;;  %v4230_v53 = vld [vmem:[%s8987_s7 + $0x178] sm:$0xff] }
 0x475   : > { %1777 = vperm.xlu0 %4526, %v4200_v49  }
 0x476   : > { %1601 = vrot.lane.b32.xlu1 %v6924_v25, %s9540_s20 }
 0x479   : > { %1603 = vrot.lane.b32.xlu0 %v6934_v61, %s9540_s20 }
 0x47a   : > { %1613 = vrot.lane.b32.xlu1 %v6932_v48, %s9540_s20 }
 0x47d   : > { %1615 = vrot.lane.b32.xlu0 %v6940_v41, %s9540_s20 }
 0x47e   : > { %1881 = vperm.xlu1 %4527, %v4205_v9   ;;  %v4236_v9 = vld [vmem:[%s8987_s7 + $0x1a8] sm:$0xff] }
 0x481   : > { %1886 = vperm.xlu0 %4526, %v4206_v59  }
 0x482   : > { %1710 = vrot.lane.b32.xlu1 %v6924_v25, %s9541_s22 }
 0x485   : > { %1712 = vrot.lane.b32.xlu0 %v6934_v61, %s9541_s22 }
 0x486   : > { %1722 = vrot.lane.b32.xlu1 %v6932_v48, %s9541_s22 }
 0x489   : > { %1724 = vrot.lane.b32.xlu0 %v6940_v41, %s9541_s22 }
 0x48a   : > { %1990 = vperm.xlu1 %4527, %v4211_v19  }
 0x48d   : > { %1995 = vperm.xlu0 %4526, %v4212_v23  }
 0x48e   : > { %1819 = vrot.lane.b32.xlu1 %v6924_v25, %s9542_s24 }
 0x491   : > { %1821 = vrot.lane.b32.xlu0 %v6934_v61, %s9542_s24 }
 0x492   : > { %1831 = vrot.lane.b32.xlu1 %v6932_v48, %s9542_s24 }
 0x495   : > { %1833 = vrot.lane.b32.xlu0 %v6940_v41, %s9542_s24 }
 0x496   : > { %2099 = vperm.xlu1 %4527, %v4217_v62  }
 0x499   : > { %2104 = vperm.xlu0 %4526, %v4218_v44  }
 0x49a   : > { %1928 = vrot.lane.b32.xlu1 %v6924_v25, %s9543_s29 }
 0x49d   : > { %1930 = vrot.lane.b32.xlu0 %v6934_v61, %s9543_s29 }
 0x49e   : > { %1940 = vrot.lane.b32.xlu1 %v6932_v48, %s9543_s29 }
 0x4a1   : > { %1942 = vrot.lane.b32.xlu0 %v6940_v41, %s9543_s29 }
 0x4a2   : > { %2208 = vperm.xlu1 %4527, %v4223_v56  }
 0x4a5   : > { %2213 = vperm.xlu0 %4526, %v4224_v32  }
 0x4a6   : > { %2037 = vrot.lane.b32.xlu1 %v6924_v25, %s9395_s15 }
 0x4a9   : > { %2039 = vrot.lane.b32.xlu0 %v6934_v61, %s9395_s15 }
 0x4aa   : > { %2049 = vrot.lane.b32.xlu1 %v6932_v48, %s9395_s15 }
 0x4ad   : > { %2051 = vrot.lane.b32.xlu0 %v6940_v41, %s9395_s15 }
 0x4ae   : > { %2317 = vperm.xlu1 %4527, %v4229_v30  }
 0x4ce   : > { %v2482_v8 = vpop.xlane.xlu1 %2481 }
 0x4cf   : > { %v2486_v40 = vmax.f32 %v2482_v8, 1e-24 }
 0x4d1   : > { %4540 = vrsqrt.f32 %v2486_v40 }
 0x4d3   : > { %v2485_v37 = vpop.xlane.xlu0 %2484 }
 0x4d4   : > { %v2487_v6 = vmax.f32 %v2485_v37, 1e-24 }
 0x4d6   : > { %4542 = vrsqrt.f32 %v2487_v6 }
 0x4dc   : > { %v2464_v17 = vpop.xlane.xlu0 %2463 }
 0x4dd   : > { %v2468_v12 = vmax.f32 %v2464_v17, 1e-24 }
 0x4de   : > { %v2467_v34 = vpop.xlane.xlu1 %2466  ;;  %v4541_v16 = vpop.eup %4540 }
 0x4df   : > { %4544 = vrsqrt.f32 %v2468_v12  ;;  %v2469_v51 = vmax.f32 %v2467_v34, 1e-24  ;;  %v2491_v28 = vmul.f32 %v4541_v16, %v6775_v47  ;;  %v2490_v33 = vmul.f32 %v4541_v16, %v6768_v43 }
 0x4e0   : > { %v9544_v43 = vmov 0  }
 0x4e1   : > { %4546 = vrsqrt.f32 %v2469_v51 }
 0x4e3   : > { %v4543_v45 = vpop.eup %4542 }
 0x4e4   : > { %v2493_v21 = vmul.f32 %v4543_v45, %v6816_v26  ;;  %v2492_v3 = vmul.f32 %v4543_v45, %v6808_v2  ;;  %v2544_v2 = vpop.permute.xlu0 %2543 }
 0x4e6   : > { %v2497_v39 = vpack.c.bf16 %v2493_v21, %v2491_v28  ;;  %v2496_v60 = vpack.c.bf16 %v2492_v3, %v2490_v33 }
 0x4e8   : > { %2512 = vmatprep.subr.bf16.mxu0 %v2497_v39  ;;  %v7052_v19 = vpop.permute.xlu0 %1567 }
 0x4e9   : > { %2513 = vmatpush1.bf16.xpose.msra.mxu0 %v2496_v60  ;;  %v1584_v4 = vmul.f32 %v7052_v19, %v6932_v48 }
 0x4ec   : > { %v4545_v18 = vpop.eup %4544  ;;  %v7060_v62 = vpop.permute.xlu0 %1668 }
 0x4ed   : > { %v2473_v55 = vmul.f32 %v4545_v18, %v6890_v58  ;;  %v2472_v35 = vmul.f32 %v4545_v18, %v6884_v54  ;;  %v1439_v54 = vld [vmem:[%s8990_s10 + $0x8] sm:$0xff] }
 0x4ee   : > { %v4547_v46 = vpop.eup %4546 }
 0x4ef   : > { %v2475_v50 = vmul.f32 %v4547_v46, %v6898_v63  ;;  %v2474_v47 = vmul.f32 %v4547_v46, %v6896_v38  ;;  %v2549_v63 = vpop.permute.xlu1 %2548 }
 0x4f0   : > { %v7066_v56 = vpop.permute.xlu0 %1777 }
 0x4f1   : > { %v2495_v7 = vpack.c.bf16 %v2475_v50, %v2473_v55  ;;  %v2494_v26 = vpack.c.bf16 %v2474_v47, %v2472_v35 }
 0x4f3   : > { %2530 = vmatprep.mubr.bf16.mxu0 %v2495_v7  ;;  %v7039_v49 = vpop.permute.xlu1 %1572 }
 0x4f4   : > { %2531 = vmatmul.mubr.bf16.vlgmr.msra.gmra.mxu0 %v2494_v26  ;;  %v7070_v30 = vpop.permute.xlu0 %1603 }
 0x4f5   : > { %2615 = vmatprep.mubr.bf16.mxu0 %v9544_v43 }
 0x4f7   : > { %v7048_v59 = vpop.permute.xlu1 %1663 }
 0x4f8   : > { %v7074_v40 = vpop.permute.xlu0 %1615 }
 0x4fb   : > { %v7056_v23 = vpop.permute.xlu1 %1772 }
 0x4fc   : > { %v7078_v6 = vpop.permute.xlu0 %1886 }
 0x4ff   : > { %v7062_v44 = vpop.permute.xlu1 %1601 }
 0x500   : > { %v7082_v12 = vpop.permute.xlu0 %1712 }
 0x503   : > { %v7068_v32 = vpop.permute.xlu1 %1613 }
 0x504   : > { %v7086_v51 = vpop.permute.xlu0 %1724 }
 0x507   : > { %v7072_v8 = vpop.permute.xlu1 %1881 }
 0x508   : > { %v7090_v45 = vpop.permute.xlu0 %1995 }
 0x50b   : > { %v7076_v37 = vpop.permute.xlu1 %1710 }
 0x50c   : > { %v7094_v21 = vpop.permute.xlu0 %1821 }
 0x50f   : > { %v7080_v17 = vpop.permute.xlu1 %1722 }
 0x510   : > { %v7098_v3 = vpop.permute.xlu0 %1833 }
 0x513   : > { %v7084_v34 = vpop.permute.xlu1 %1990 }
 0x514   : > { %v7102_v60 = vpop.permute.xlu0 %2104 }
 0x517   : > { %v7088_v16 = vpop.permute.xlu1 %1819 }
 0x518   : > { %v7106_v46 = vpop.permute.xlu0 %1930 }
 0x51b   : > { %v7092_v28 = vpop.permute.xlu1 %1831 }
 0x51c   : > { %v7110_v50 = vpop.permute.xlu0 %1942 }
 0x51f   : > { %v7096_v33 = vpop.permute.xlu1 %2099 }
 0x520   : > { %v7114_v47 = vpop.permute.xlu0 %2213 }
 0x523   : > { %v7100_v39 = vpop.permute.xlu1 %1928 }
 0x524   : > { %v7118_v26 = vpop.permute.xlu0 %2039 }
 0x527   : > { %v7104_v18 = vpop.permute.xlu1 %1940 }
 0x52b   : > { %v7108_v55 = vpop.permute.xlu1 %2208 }
 0x52f   : > { %v7112_v35 = vpop.permute.xlu1 %2037 }
 0x533   : > { %v7116_v7 = vpop.permute.xlu1 %2049 }
 0x5b4   : > { %v2532_v42 = vpop.f32.mrf.mxu0 }
 0x5b5   : > { %v2551_v20 = vmul.f32 %v2544_v2, %v2532_v42  ;;  %v7120_v2 = vpop.permute.xlu1 %2317 }
 0x5b6   : > { %v2534_v58 = vpop.f32.mrf.mxu0 }
 0x5b7   : > { %v7017_v24 = vadd.f32 %v2551_v20, %v1438_v14  ;;  %v7122_v14 = vpop.permute.xlu0 %2051 }
 0x5b8   : > { %v2535_v38 = vpop.f32.mrf.mxu0 }
 0x5b9   : > { %v2552_v1 = vmul.f32 %v2549_v63, %v2535_v38  ;;  %v2555_v57 = vsel %vm9545_vm14, %v7017_v24, -inf  ;;  %vm9553_vm14 = vcmp.ge.s32.totalorder %v9428_v0, 1 }
 0x5ba   : > { %2556 = vmax.xlane.f32.xlu1 %v2555_v57  ;;  %v2537_v27 = vpop.f32.mrf.mxu0 }
 0x5bb   : > { %v2554_v52 = vadd.f32 %v2552_v1, %v1439_v54 }
 0x5bd   : > { %v2558_v11 = vsel %vm9546_vm0, %v2554_v52, -inf  ;;  %vm9554_vm0 = vmmov %vm9553_vm14 }
 0x5be   : > { %2559 = vmax.xlane.f32.xlu0 %v2558_v11 }
 0x5cb   : > { %2146 = vrot.lane.b32.xlu1 %v6924_v25, %s9396_s28 }
 0x5cf   : > { %2158 = vrot.lane.b32.xlu1 %v6932_v48, %s9396_s28 }
 0x5d3   : > { %2426 = vperm.xlu1 %4527, %v4235_v15   ;;  %v4260_v15 = vld [vmem:[%s8987_s7 + $0x1c0] sm:$0xff] }
 0x5d4   : > { %2322 = vperm.xlu0 %4526, %v4230_v53   ;;  %v4261_v53 = vld [vmem:[%s8987_s7 + $0x1c8] sm:$0xff] }
 0x5d7   : > { %2255 = vrot.lane.b32.xlu1 %v6924_v25, %s9397_s14 }
 0x5d8   : > { %2148 = vrot.lane.b32.xlu0 %v6934_v61, %s9396_s28 }
 0x5db   : > { %2267 = vrot.lane.b32.xlu1 %v6932_v48, %s9397_s14 }
 0x5dc   : > { %2160 = vrot.lane.b32.xlu0 %v6940_v41, %s9396_s28 }
 0x5df   : > { %2364 = vrot.lane.b32.xlu1 %v6924_v25, %s9398_s16 }
 0x5e0   : > { %2431 = vperm.xlu0 %4526, %v4236_v9   ;;  %v4266_v9 = vld [vmem:[%s8987_s7 + $0x1f0] sm:$0xff] }
 0x5e4   : > { %2257 = vrot.lane.b32.xlu0 %v6934_v61, %s9397_s14 }
 0x5e8   : > { %2269 = vrot.lane.b32.xlu0 %v6940_v41, %s9397_s14 }
 0x5ec   : > { %2366 = vrot.lane.b32.xlu0 %v6934_v61, %s9398_s16 }
 0x643   : > { %v2557_v42 = vpop.xlane.xlu1 %2556 }
 0x644   : > { %v2561_v20 = vsub.f32 %v7017_v24, %v2557_v42  ;;  %v4254_v24 = vld [vmem:[%s8987_s7 + $0x280] sm:$0xff]  ;;  %v4267_v42 = vld [vmem:[%s8987_s7 + $0x1f8] sm:$0xff] }
 0x646   : > { %v2563_v58 = vmul.f32 1.442695, %v2561_v20  ;;  %v4272_v20 = vld [vmem:[%s8987_s7 + $0x220] sm:$0xff] }
 0x647   : > { %v2560_v63 = vpop.xlane.xlu0 %2559 }
 0x648   : > { %4548 = vpow2.f32 %v2563_v58  ;;  %v2562_v54 = vsub.f32 %v2554_v52, %v2560_v63  ;;  %v4255_v52 = vld [vmem:[%s8987_s7 + $0x288] sm:$0xff]  ;;  %v4278_v63 = vld [vmem:[%s8987_s7 + $0x250] sm:$0xff] }
 0x649   : > { %v4273_v58 = vld [vmem:[%s8987_s7 + $0x228] sm:$0xff] }
 0x64a   : > { %v2565_v38 = vmul.f32 1.442695, %v2562_v54  ;;  %v4279_v54 = vld [vmem:[%s8987_s7 + $0x258] sm:$0xff] }
 0x64c   : > { %4550 = vpow2.f32 %v2565_v38  ;;  %v4252_v38 = vld [vmem:[%s8987_s7 + $0x270] sm:$0xff] }
 0x655   : > { %v7125_v1 = vpop.eup %4548 }
 0x656   : > { %v2567_v57 = vsel %vm9547_vm13, %v7125_v1, 0.0  ;;  %vm9555_vm13 = vcmp.lt.s32.totalorder %v9426_v29, 16 }
 0x657   : > { %2568 = vadd.xlane.f32.xlu0 %v2567_v57  ;;  %v4253_v57 = vld [vmem:[%s8987_s7 + $0x278] sm:$0xff] }
 0x659   : > { %v7129_v27 = vpop.eup %4550 }
 0x65a   : > { %v2570_v11 = vsel %vm9548_vm8, %v7129_v27, 0.0  ;;  %vm9556_vm8 = vmmov %vm9555_vm13 }
 0x65b   : > { %2571 = vadd.xlane.f32.xlu1 %v2570_v11  ;;  %v4258_v11 = vld [vmem:[%s8987_s7 + $0x1b0] sm:$0xff] }
 0x66c   : > { %2376 = vrot.lane.b32.xlu1 %v6932_v48, %s9398_s16 }
 0x66d   : > { %2378 = vrot.lane.b32.xlu0 %v6940_v41, %s9398_s16 }
 0x670   : > { %2802 = vperm.xlu1 %4527, %v4254_v24   ;;  %v4259_v24 = vld [vmem:[%s8987_s7 + $0x1b8] sm:$0xff] }
 0x671   : > { %2807 = vperm.xlu0 %4526, %v4255_v52   ;;  %v4284_v52 = vld [vmem:[%s8987_s7 + $0x2b0] sm:$0xff] }
 0x674   : > { %2899 = vperm.xlu1 %4527, %v4260_v15   ;;  %v4285_v15 = vld [vmem:[%s8987_s7 + $0x2b8] sm:$0xff] }
 0x675   : > { %2904 = vperm.xlu0 %4526, %v4261_v53   ;;  %v4264_v53 = vld [vmem:[%s8987_s7 + $0x1e0] sm:$0xff] }
 0x678   : > { %3008 = vperm.xlu1 %4527, %v4266_v9   ;;  %v4265_v9 = vld [vmem:[%s8987_s7 + $0x1e8] sm:$0xff] }
 0x679   : > { %3013 = vperm.xlu0 %4526, %v4267_v42   ;;  %v4290_v42 = vld [vmem:[%s8987_s7 + $0x2e0] sm:$0xff] }
 0x67c   : > { %3117 = vperm.xlu1 %4527, %v4272_v20   ;;  %v4291_v20 = vld [vmem:[%s8987_s7 + $0x2e8] sm:$0xff] }
 0x67d   : > { %3122 = vperm.xlu0 %4526, %v4273_v58   ;;  %v4270_v58 = vld [vmem:[%s8987_s7 + $0x210] sm:$0xff] }
 0x680   : > { %3226 = vperm.xlu1 %4527, %v4278_v63   ;;  %v4271_v63 = vld [vmem:[%s8987_s7 + $0x218] sm:$0xff] }
 0x681   : > { %3231 = vperm.xlu0 %4526, %v4279_v54   ;;  %v4296_v54 = vld [vmem:[%s8987_s7 + $0x310] sm:$0xff] }
 0x684   : > { %2792 = vperm.xlu1 %4527, %v4252_v38   ;;  %v4297_v38 = vld [vmem:[%s8987_s7 + $0x318] sm:$0xff] }
 0x685   : > { %2797 = vperm.xlu0 %4526, %v4253_v57   ;;  %v4276_v57 = vld [vmem:[%s8987_s7 + $0x240] sm:$0xff] }
 0x688   : > { %2889 = vperm.xlu1 %4527, %v4258_v11   ;;  %v4277_v11 = vld [vmem:[%s8987_s7 + $0x248] sm:$0xff] }
 0x689   : > { %2894 = vperm.xlu0 %4526, %v4259_v24   ;;  %v4302_v24 = vld [vmem:[%s8987_s7 + $0x340] sm:$0xff] }
 0x68c   : > { %3335 = vperm.xlu1 %4527, %v4284_v52   ;;  %v4303_v52 = vld [vmem:[%s8987_s7 + $0x348] sm:$0xff] }
 0x68d   : > { %3340 = vperm.xlu0 %4526, %v4285_v15   ;;  %v4282_v15 = vld [vmem:[%s8987_s7 + $0x2a0] sm:$0xff] }
 0x690   : > { %2998 = vperm.xlu1 %4527, %v4264_v53   ;;  %v4283_v53 = vld [vmem:[%s8987_s7 + $0x2a8] sm:$0xff] }
 0x691   : > { %3003 = vperm.xlu0 %4526, %v4265_v9   ;;  %v4288_v9 = vld [vmem:[%s8987_s7 + $0x2d0] sm:$0xff] }
 0x694   : > { %3444 = vperm.xlu1 %4527, %v4290_v42   ;;  %v4289_v42 = vld [vmem:[%s8987_s7 + $0x2d8] sm:$0xff] }
 0x695   : > { %3449 = vperm.xlu0 %4526, %v4291_v20   ;;  %v4294_v20 = vld [vmem:[%s8987_s7 + $0x300] sm:$0xff] }
 0x698   : > { %3107 = vperm.xlu1 %4527, %v4270_v58   ;;  %v4295_v58 = vld [vmem:[%s8987_s7 + $0x308] sm:$0xff] }
 0x699   : > { %3112 = vperm.xlu0 %4526, %v4271_v63   ;;  %v4300_v63 = vld [vmem:[%s8987_s7 + $0x330] sm:$0xff] }
 0x69c   : > { %3553 = vperm.xlu1 %4527, %v4296_v54   ;;  %v4301_v54 = vld [vmem:[%s8987_s7 + $0x338] sm:$0xff] }
 0x69d   : > { %3558 = vperm.xlu0 %4526, %v4297_v38   ;;  %v7245_v38 = vpop.permute.xlu0 %2322 }
 0x6a0   : > { %3216 = vperm.xlu1 %4527, %v4276_v57  }
 0x6a1   : > { %3221 = vperm.xlu0 %4526, %v4277_v11   ;;  %v7247_v57 = vpop.permute.xlu0 %2148  ;;  %v7249_v11 = vpop.permute.xlu1 %2146 }
 0x6a4   : > { %3662 = vperm.xlu1 %4527, %v4302_v24  }
 0x6a5   : > { %3667 = vperm.xlu0 %4526, %v4303_v52   ;;  %v7251_v24 = vpop.permute.xlu0 %2160  ;;  %v1621_v52 = vsel %vm9549_vm7, %v7062_v44, %v7068_v32  ;;  %vm9557_vm7 = vmmov %vm9556_vm8 }
 0x6a8   : > { %3325 = vperm.xlu1 %4527, %v4282_v15   ;;  %v1627_v15 = vsel %vm9550_vm1, %v7068_v32, %v7062_v44  ;;  %v1638_v44 = vsel %vm9553_vm14, %v1621_v52, 0.0  ;;  %vm9558_vm1 = vcmp.lt.s32.totalorder %v9426_v29, 15 }
 0x6a9   : > { %3330 = vperm.xlu0 %4526, %v4283_v53   ;;  %v7261_v53 = vpop.permute.xlu1 %2158  ;;  %vm9561_vm14 = vmmov %vm9558_vm1 }
 0x6ac   : > { %3434 = vperm.xlu1 %4527, %v4288_v9   ;;  %v1622_v9 = vsel %vm9551_vm4, %v7070_v30, %v7074_v40  ;;  %vm9559_vm4 = vmmov %vm9557_vm7 }
 0x6ad   : > { %3439 = vperm.xlu0 %4526, %v4289_v42   ;;  %v1628_v42 = vsel %vm9552_vm15, %v7074_v40, %v7070_v30  ;;  %v1736_v30 = vsel %vm9556_vm8, %v7080_v17, %v7076_v37  ;;  %v1583_v40 = vmul.f32 %v7052_v19, %v6924_v25  ;;  %v1845_v25 = vsel %vm9558_vm1, %v7092_v28, %v7088_v16  ;;  %vm9560_vm15 = vmmov %vm9558_vm1 }
 0x6ae   : > { %v1639_v32 = vsel %vm5175_vm9, %v1628_v42, 0.0  ;;  %v7297_v42 = vpop.permute.xlu1 %2426  ;;  %v1839_v48 = vsel %vm9560_vm15, %v7088_v16, %v7092_v28  ;;  %v1855_v16 = vsel %vm5132_vm3, %v1845_v25, 0.0 }
 0x6af   : > { %v1681_v43 = vmul.f32 %v7060_v62, %v1639_v32 }
 0x6b0   : > { %3543 = vperm.xlu1 %4527, %v4294_v20   ;;  %v7271_v20 = vpop.permute.xlu0 %2431 }
 0x6b1   : > { %3548 = vperm.xlu0 %4526, %v4295_v58   ;;  %v1637_v58 = vsel %vm5175_vm9, %v1627_v15, 0.0  ;;  %v1680_v15 = vmul.f32 %v7048_v59, %v1638_v44  ;;  %v1586_v44 = vmul.f32 %v7039_v49, %v6940_v41 }
 0x6b2   : > { %v1679_v52 = vmul.f32 %v7048_v59, %v1637_v58  ;;  %v1731_v59 = vsel %vm9559_vm4, %v7082_v12, %v7086_v51  ;;  %vm9567_vm4 = vcmp.lt.s32.totalorder %v9426_v29, 127 }
 0x6b3   : > { %v1692_v32 = vadd.f32 %v1680_v15, %v1584_v4  ;;  %v1791_v28 = vmul.f32 %v7066_v56, %v1731_v59  ;;  %v1856_v4 = vsel %vm476_vm11, %v1839_v48, 0.0  ;;  %vm9568_vm15 = vmmov %vm9567_vm4 }
 0x6b4   : > { %3652 = vperm.xlu1 %4527, %v4300_v63   ;;  %v1640_v63 = vsel %vm9554_vm0, %v1622_v9, 0.0  ;;  %v1737_v9 = vsel %vm9557_vm7, %v7086_v51, %v7082_v12  ;;  %v7318_v19 = vpop.permute.xlu0 %2257  ;;  %v1691_v51 = vadd.f32 %v1679_v52, %v1583_v40  ;;  %vm9562_vm0 = vmmov %vm9558_vm1  ;;  %v7341_v52 = vpop.permute.xlu1 %2255 }
 0x6b5   : > { %3657 = vperm.xlu0 %4526, %v4301_v54   ;;  %v1730_v54 = vsel %vm9555_vm13, %v7076_v37, %v7080_v17  ;;  %v1682_v37 = vmul.f32 %v7060_v62, %v1640_v63  ;;  %v1746_v17 = vsel %vm5116_vm5, %v1736_v30, 0.0  ;;  %v1585_v62 = vmul.f32 %v7039_v49, %v6934_v61 }
 0x6b6   : > { %v1789_v58 = vmul.f32 %v7056_v23, %v1730_v54  ;;  %v1748_v12 = vsel %vm5116_vm5, %v1737_v9, 0.0  ;;  %v1846_v63 = vsel %vm9561_vm14, %v7098_v3, %v7094_v21  ;;  %v1788_v61 = vmul.f32 %v7056_v23, %v1746_v17 }
 0x6b7   : > { %v1840_v41 = vsel %vm9562_vm0, %v7094_v21, %v7098_v3  ;;  %v1693_v49 = vadd.f32 %v1681_v43, %v1585_v62  ;;  %v1694_v54 = vadd.f32 %v1682_v37, %v1586_v44  ;;  %v1790_v30 = vmul.f32 %v7066_v56, %v1748_v12 }
 0x6b8   : > { %v1801_v40 = vadd.f32 %v1789_v58, %v1692_v32  ;;  %v1857_v15 = vsel %vm5132_vm3, %v1846_v63, 0.0  ;;  %v1897_v23 = vmul.f32 %v7072_v8, %v1855_v16  ;;  %vm9563_vm13 = vcmp.lt.s32.totalorder %v9426_v29, 1  ;;  %v2270_v25 = vpop.permute.xlu0 %2269  ;;  %v2268_v63 = vpop.permute.xlu1 %2267 }
 0x6b9   : > { %v1948_v21 = vsel %vm9563_vm13, %v7100_v39, %v7104_v18  ;;  %vm9564_vm8 = vmmov %vm9563_vm13  ;;  %v1858_v56 = vsel %vm476_vm11, %v1840_v41, 0.0  ;;  %v1898_v3 = vmul.f32 %v7072_v8, %v1856_v4  ;;  %v1803_v59 = vadd.f32 %v1791_v28, %v1694_v54 }
 0x6ba   : > { %v1954_v43 = vsel %vm9564_vm8, %v7104_v18, %v7100_v39  ;;  %vm9565_vm7 = vmmov %vm9564_vm8  ;;  %v1800_v17 = vadd.f32 %v1788_v61, %v1691_v51  ;;  %v2057_v39 = vsel %vm9567_vm4, %v7112_v35, %v7116_v7  ;;  %v2063_v8 = vsel %vm9568_vm15, %v7116_v7, %v7112_v35 }
 0x6bb   : > { %v1949_v9 = vsel %vm9565_vm7, %v7106_v46, %v7110_v50  ;;  %vm9566_vm1 = vmmov %vm9565_vm7  ;;  %v1899_v18 = vmul.f32 %v7078_v6, %v1857_v15  ;;  %vm9569_vm14 = vcmp.ge.s32.totalorder %v9446_v10, 1  ;;  %vm9570_vm0 = vcmp.ge.s32.totalorder %v9428_v0, 1 }
 0x6bc   : > { %v1955_v37 = vsel %vm9566_vm1, %v7110_v50, %v7106_v46  ;;  %v1964_v58 = vsel %vm9569_vm14, %v1954_v43, 0.0  ;;  %v1965_v46 = vsel %vm9570_vm0, %v1948_v21, 0.0  ;;  %vm9571_vm13 = vmmov %vm9567_vm4  ;;  %v1802_v48 = vadd.f32 %v1790_v30, %v1693_v49  ;;  %v2367_v30 = vpop.permute.xlu0 %2366 }
 0x6bd   : > { %v2058_v50 = vsel %vm9571_vm13, %v7118_v26, %v7122_v14  ;;  %v1900_v62 = vmul.f32 %v7078_v6, %v1858_v56  ;;  %vm9572_vm8 = vmmov %vm9569_vm14  ;;  %v1909_v7 = vadd.f32 %v1897_v23, %v1800_v17  ;;  %v1910_v12 = vadd.f32 %v1898_v3, %v1801_v40 }
 0x6be   : > { %v1966_v44 = vsel %vm9572_vm8, %v1955_v37, 0.0  ;;  %vm9573_vm7 = vmmov %vm9570_vm0  ;;  %vm9574_vm1 = vcmp.le.s32.totalorder %v9446_v10, 14  ;;  %v2074_v32 = vsel %vm476_vm11, %v2063_v8, 0.0  ;;  %v2006_v16 = vmul.f32 %v7084_v34, %v1964_v58  ;;  %v2365_v37 = vpop.permute.xlu1 %2364 }
 0x6bf   : > { %v1967_v35 = vsel %vm9573_vm7, %v1949_v9, 0.0  ;;  %v2073_v51 = vsel %vm9574_vm1, %v2057_v39, 0.0  ;;  %v2007_v28 = vmul.f32 %v7084_v34, %v1965_v46  ;;  %v2064_v6 = vsel %vm9567_vm4, %v7122_v14, %v7118_v26  ;;  %vm9575_vm15 = vmmov %vm9574_vm1 }
 0x6c0   : > { %v2075_v61 = vsel %vm9575_vm15, %v2058_v50, 0.0  ;;  %v1911_v41 = vadd.f32 %v1899_v18, %v1802_v48  ;;  %v2008_v4 = vmul.f32 %v7090_v45, %v1966_v44  ;;  %v2009_v49 = vmul.f32 %v7090_v45, %v1967_v35 }
 0x6c1   : > { %vm9576_vm14 = vcmp.lt.s32.totalorder %v9426_v29, 113  ;;  %v1912_v34 = vadd.f32 %v1900_v62, %v1803_v59  ;;  %v2115_v40 = vmul.f32 %v7096_v33, %v2073_v51  ;;  %v2116_v15 = vmul.f32 %v7096_v33, %v2074_v32 }
 0x6c2   : > { %v2166_v54 = vsel %vm9576_vm14, %v7249_v11, %v7261_v53  ;;  %vm9577_vm0 = vmmov %vm9576_vm14  ;;  %v2076_v14 = vsel %vm476_vm11, %v2064_v6, 0.0  ;;  %v2117_v45 = vmul.f32 %v7102_v60, %v2075_v61  ;;  %v2018_v21 = vadd.f32 %v2006_v16, %v1909_v7 }
 0x6c3   : > { %v2172_v26 = vsel %vm9577_vm0, %v7261_v53, %v7249_v11  ;;  %vm9578_vm13 = vmmov %vm9577_vm0  ;;  %v2019_v43 = vadd.f32 %v2007_v28, %v1910_v12  ;;  %vm9580_vm7 = vcmp.ge.s32.totalorder %v9446_v10, 1  ;;  %v2020_v53 = vadd.f32 %v2008_v4, %v1911_v41 }
 0x6c4   : > { %v2167_v23 = vsel %vm9578_vm13, %v7247_v57, %v7251_v24  ;;  %vm9579_vm8 = vmmov %vm9577_vm0  ;;  %v2182_v11 = vsel %vm9580_vm7, %v2166_v54, 0.0  ;;  %v2021_v56 = vadd.f32 %v2009_v49, %v1912_v34  ;;  %v2183_v3 = vsel %vm5009_vm6, %v2172_v26, 0.0 }
 0x6c5   : > { %v2173_v33 = vsel %vm9579_vm8, %v7251_v24, %v7247_v57  ;;  %vm9581_vm1 = vcmp.lt.s32.totalorder %v9426_v29, 112  ;;  %v2118_v17 = vmul.f32 %v7102_v60, %v2076_v14  ;;  %vm9582_vm4 = vmmov %vm9580_vm7  ;;  %v2129_v8 = vadd.f32 %v2117_v45, %v2020_v53 }
 0x6c6   : > { %v2281_v9 = vsel %vm9581_vm1, %v2268_v63, %v7341_v52  ;;  %v2184_v57 = vsel %vm9582_vm4, %v2167_v23, 0.0  ;;  %v2185_v24 = vsel %vm5009_vm6, %v2173_v33, 0.0  ;;  %vm9583_vm15 = vmmov %vm9581_vm1  ;;  %v2127_v18 = vadd.f32 %v2115_v40, %v2018_v21 }
 0x6c7   : > { %v2282_v39 = vsel %vm9583_vm15, %v2270_v25, %v7318_v19  ;;  %v2128_v58 = vadd.f32 %v2116_v15, %v2019_v43  ;;  %v2224_v46 = vmul.f32 %v7108_v55, %v2182_v11  ;;  %v2225_v50 = vmul.f32 %v7108_v55, %v2183_v3  ;;  %vm9584_vm14 = vmmov %vm9581_vm1 }
 0x6c8   : > { %v2275_v60 = vsel %vm9584_vm14, %v7341_v52, %v2268_v63  ;;  %v2292_v48 = vsel %vm4987_vm2, %v2281_v9, 0.0  ;;  %v2226_v62 = vmul.f32 %v7114_v47, %v2184_v57  ;;  %v2227_v44 = vmul.f32 %v7114_v47, %v2185_v24  ;;  %vm9585_vm0 = vmmov %vm9581_vm1  ;;  %v9592_v9 = vld [vmem:[#allocation34_spill] sm:$0xff] }
 0x6c9   : > { %v2276_v35 = vsel %vm9585_vm0, %v7318_v19, %v2270_v25  ;;  %v2294_v7 = vsel %vm4987_vm2, %v2282_v39, 0.0  ;;  %v2130_v51 = vadd.f32 %v2118_v17, %v2021_v56  ;;  %vm9586_vm13 = vcmp.lt.s32.totalorder %v9426_v29, 111 }
 0x6ca   : > { %vm9587_vm8 = vmmov %vm9586_vm13  ;;  %v2333_v63 = vmul.f32 %v7120_v2, %v2275_v60  ;;  %v2334_v47 = vmul.f32 %v7120_v2, %v2292_v48  ;;  %vm9588_vm7 = vcmp.le.s32.totalorder %v9446_v10, 14  ;;  %v2335_v16 = vmul.f32 %v7245_v38, %v2276_v35  ;;  %v9601_v48 = vld [vmem:[#allocation26_spill] sm:$0xff] }
 0x6cb   : > { %v2336_v28 = vmul.f32 %v7245_v38, %v2294_v7  ;;  %v2236_v6 = vadd.f32 %v2224_v46, %v2127_v18  ;;  %v2237_v61 = vadd.f32 %v2225_v50, %v2128_v58  ;;  %v2238_v41 = vadd.f32 %v2226_v62, %v2129_v8  ;;  %vm9589_vm1 = vmmov %vm9587_vm8  ;;  %v9595_v8 = vld [vmem:[#allocation32_spill] sm:$0xff]  ;;  %v9597_v58 = vld [vmem:[#allocation18_spill] sm:$0xff] }
 0x6cc   : > { %v2239_v4 = vadd.f32 %v2227_v44, %v2130_v51  ;;  %vm9590_vm4 = vmmov %vm9589_vm1  ;;  %vm9596_vm14 = vcmask 130048   ;;  %v9598_v46 = vld [vmem:[#allocation17_spill] sm:$0xff]  ;;  %v9600_v60 = vmov 0   ;;  %v9602_v62 = vld [vmem:[#allocation30_spill] sm:$0xff]  ;;  %vm9631_vm0 = vcmp.lt.s32.totalorder %v9426_v29, 17 }
 0x6cd   : > { %v2345_v40 = vadd.f32 %v2333_v63, %v2236_v6  ;;  %v2346_v15 = vadd.f32 %v2334_v47, %v2237_v61  ;;  %vm9591_vm15 = vmmov %vm9588_vm7  ;;  %v2347_v14 = vadd.f32 %v2335_v16, %v2238_v41  ;;  %v9599_v50 = vpack.c.bf16 %v9597_v58, %v9598_v46  ;;  %v4573_v35 = vld [vmem:[%s8985_s5 + $0xf0] sm:$0xff]  ;;  %v4574_v7 = vld [vmem:[%s8985_s5 + $0xe8] sm:$0xff] }
 0x6ce   : > { %v2348_v45 = vadd.f32 %v2336_v28, %v2239_v4  ;;  %v2685_v44 = vpack.c.bf16 %v9602_v62, %v9601_v48  ;;  %v4576_v51 = vld [vmem:[%s8985_s5 + $0xd8] sm:$0xff]  ;;  %v4579_v63 = vld [vmem:[%s8985_s5 + $0xc0] sm:$0xff]  ;;  %v4585_v6 = vld [vmem:[%s8985_s5 + $0x90] sm:$0xff] }
 0x6cf   : > { %v4580_v47 = vld [vmem:[%s8985_s5 + $0xb8] sm:$0xff]  ;;  %v4583_v16 = vld [vmem:[%s8985_s5 + $0xa0] sm:$0xff]  ;;  %v4586_v61 = vld [vmem:[%s8985_s5 + $0x88] sm:$0xff] }
 0x6d0   : > { %v4584_v28 = vld [vmem:[%s8985_s5 + $0x98] sm:$0xff]  ;;  %v4587_v41 = vld [vmem:[%s8985_s5 + $0x80] sm:$0xff]  ;;  %v4617_v58 = vld [vmem:[%s8985_s5 + $0x190] sm:$0xff] }
 0x6d1   : > { %v4588_v4 = vld [vmem:[%s8985_s5 + $0x78] sm:$0xff]  ;;  %v4618_v46 = vld [vmem:[%s8985_s5 + $0x188] sm:$0xff] }
 0x6e0   : > { %v2569_v59 = vpop.xlane.xlu0 %2568 }
 0x6e1   : > { %4552 = vrcp.f32 %v2569_v59 }
 0x6e4   : > { %v2379_v55 = vpop.permute.xlu0 %2378  ;;  %v2572_v12 = vpop.xlane.xlu1 %2571 }
 0x6e5   : > { %v2385_v52 = vsel %vm9586_vm13, %v2367_v30, %v2379_v55  ;;  %v2391_v32 = vsel %vm9587_vm8, %v2379_v55, %v2367_v30  ;;  %4554 = vrcp.f32 %v2572_v12  ;;  %v4575_v55 = vld [vmem:[%s8985_s5 + $0xe0] sm:$0xff]  ;;  %vm9632_vm13 = vmmov %vm9631_vm0 }
 0x6e6   : > { %v2402_v19 = vsel %vm9588_vm7, %v2385_v52, 0.0  ;;  %v2403_v25 = vsel %vm5167_vm10, %v2391_v32, 0.0  ;;  %v4536_v12 = vld [vmem:[%s8986_s6 + $0x20] sm:$0xff]   ;;  %v4577_v52 = vld [vmem:[%s8985_s5 + $0xd0] sm:$0xff]  ;;  %v4578_v32 = vld [vmem:[%s8985_s5 + $0xc8] sm:$0xff]  ;;  %vm9636_vm7 = vcmp.ge.s32.totalorder %v9428_v0, 1 }
 0x6e7   : > { %v2444_v54 = vmul.f32 %v7271_v20, %v2402_v19  ;;  %v2445_v30 = vmul.f32 %v7271_v20, %v2403_v25  ;;  %v4581_v19 = vld [vmem:[%s8985_s5 + $0xb0] sm:$0xff]  ;;  %v4582_v25 = vld [vmem:[%s8985_s5 + $0xa8] sm:$0xff]  ;;  %vm9635_vm8 = vmmov %vm9631_vm0 }
 0x6e8   : > { %v2377_v49 = vpop.permute.xlu1 %2376 }
 0x6e9   : > { %v2384_v2 = vsel %vm9589_vm1, %v2365_v37, %v2377_v49  ;;  %v2390_v34 = vsel %vm9590_vm4, %v2377_v49, %v2365_v37  ;;  %v2456_v33 = vadd.f32 %v2444_v54, %v2347_v14  ;;  %v2457_v11 = vadd.f32 %v2445_v30, %v2348_v45  ;;  %v9593_v37 = vld [vmem:[#allocation36_spill] sm:$0xff]  ;;  %v4589_v49 = vld [vmem:[%s8985_s5 + $0x70] sm:$0xff]  ;;  %v4590_v54 = vld [vmem:[%s8985_s5 + $0x68] sm:$0xff] }
 0x6ea   : > { %v2400_v38 = vsel %vm9591_vm15, %v2384_v2, 0.0  ;;  %v2401_v26 = vsel %vm5167_vm10, %v2390_v34, 0.0  ;;  %v2688_v59 = vpack.c.bf16 %v9593_v37, %v9592_v9  ;;  %v4591_v30 = vld [vmem:[%s8985_s5 + $0x60] sm:$0xff]  ;;  %v4592_v2 = vld [vmem:[%s8985_s5 + $0x58] sm:$0xff]  ;;  %v4593_v34 = vld [vmem:[%s8985_s5 + $0x50] sm:$0xff]  ;;  %vm9639_vm4 = vcmp.lt.s32.totalorder %v9426_v29, 16 }
 0x6eb   : > { %v2442_v23 = vmul.f32 %v7297_v42, %v2400_v38  ;;  %v2443_v20 = vmul.f32 %v7297_v42, %v2401_v26  ;;  %v9594_v42 = vld [vmem:[#allocation28_spill] sm:$0xff]  ;;  %v4596_v38 = vld [vmem:[%s8985_s5 + $0x38] sm:$0xff]  ;;  %v4597_v26 = vld [vmem:[%s8985_s5 + $0x30] sm:$0xff] }
 0x6ec   : > { %v2686_v18 = vpack.c.bf16 %v9595_v8, %v9594_v42  ;;  %v4598_v14 = vld [vmem:[%s8985_s5 + $0x28] sm:$0xff]  ;;  %v4599_v45 = vld [vmem:[%s8985_s5 + $0x20] sm:$0xff]  ;;  %v4609_v9 = vld [vmem:[%s8985_s5 + $0x1d0] sm:$0xff] }
 0x6ed   : > { %v2454_v21 = vadd.f32 %v2442_v23, %v2345_v40  ;;  %v2455_v43 = vadd.f32 %v2443_v20, %v2346_v15  ;;  %v4594_v40 = vld [vmem:[%s8985_s5 + $0x48] sm:$0xff]  ;;  %v4595_v15 = vld [vmem:[%s8985_s5 + $0x40] sm:$0xff]  ;;  %v4600_v23 = vld [vmem:[%s8985_s5 + $0x18] sm:$0xff] }
 0x6ee   : > { %v4553_v3 = vpop.eup %4552  ;;  %v4601_v20 = vld [vmem:[%s8985_s5 + $0x10] sm:$0xff]  ;;  %v4610_v37 = vld [vmem:[%s8985_s5 + $0x1c8] sm:$0xff]  ;;  %vm9637_vm1 = vmmov %vm9631_vm0 }
 0x6ef   : > { %v2579_v53 = vpack.c.bf16 %v2457_v11, %v2455_v43  ;;  %v2578_v56 = vpack.c.bf16 %v2456_v33, %v2454_v21  ;;  %v2575_v57 = vmul.f32 %v4553_v3, %v7125_v1  ;;  %v4535_v1 = vld [vmem:[%s8986_s6 + $0x18] sm:$0xff]   ;;  %v4602_v33 = vld [vmem:[%s8985_s5 + $0x8] sm:$0xff]  ;;  %v4603_v21 = vld [vmem:[%s8985_s5] sm:$0xff] }
 0x6f0   : > { %v4604_v43 = vld [vmem:[%s8985_s5 + $0x1f8] sm:$0xff]  ;;  %v4605_v11 = vld [vmem:[%s8985_s5 + $0x1f0] sm:$0xff]  ;;  %vm9642_vm15 = vmmov %vm9636_vm7 }
 0x6f1   : > { %2597 = vmatprep.subr.bf16.mxu0 %v2579_v53  ;;  %v4606_v53 = vld [vmem:[%s8985_s5 + $0x1e8] sm:$0xff]  ;;  %v4608_v3 = vld [vmem:[%s8985_s5 + $0x1d8] sm:$0xff] }
 0x6f2   : > { %v4555_v17 = vpop.eup %4554  ;;  %2598 = vmatpush1.bf16.msra.mxu0 %v2578_v56  ;;  %v4607_v56 = vld [vmem:[%s8985_s5 + $0x1e0] sm:$0xff] }
 0x6f3   : > { %2732 = vmatprep.subr.bf16.mxu0 %v2688_v59  ;;  %v2576_v24 = vmul.f32 %v4555_v17, %v7129_v27  ;;  %v4572_v27 = vld [vmem:[%s8985_s5 + $0xf8] sm:$0xff]  ;;  %v4611_v59 = vld [vmem:[%s8985_s5 + $0x1c0] sm:$0xff] }
 0x6f4   : > { %v4612_v17 = vld [vmem:[%s8985_s5 + $0x1b8] sm:$0xff] }
 0x6f5   : > { %v2577_v39 = vpack.c.bf16 %v2576_v24, %v2575_v57  ;;  %v4613_v57 = vld [vmem:[%s8985_s5 + $0x1b0] sm:$0xff]  ;;  %v4614_v24 = vld [vmem:[%s8985_s5 + $0x1a8] sm:$0xff] }
 0x6f7   : > { %4237 = vmatmul.mubr.msk.bf16.vlgmr.msra.gmra.mxu0 %vm9596_vm14, %v2577_v39  ;;  %v4615_v39 = vld [vmem:[%s8985_s5 + $0x1a0] sm:$0xff] }
 0x6f8   : > { %2733 = vmatpush1.bf16.msra.mxu0 %v9599_v50  ;;  %2752 = vmatprep.mubr.bf16.mxu0 %v9600_v60  ;;  %v4619_v50 = vld [vmem:[%s8985_s5 + $0x180] sm:$0xff] }
 0x6f9   : > { %2734 = vmatprep.subr.bf16.mxu0 %v2686_v18  ;;  %v4616_v18 = vld [vmem:[%s8985_s5 + $0x198] sm:$0xff] }
 0x6fc   : > { %2735 = vmatpush1.bf16.msra.mxu0 %v2685_v44  ;;  %v4620_v44 = vld [vmem:[%s8985_s5 + $0x178] sm:$0xff] }
 0x6fd   : > { %3933 = vmatprep.subr.mxu0 %v4572_v27  ;;  %v4622_v27 = vld [vmem:[%s8985_s5 + $0x168] sm:$0xff] }
 0x6ff   : > { %4249 = vmatmul.mubr.msk.bf16.vlgmr.msra.gmra.mxu0 %vm1465_vm12, %v4535_v1  ;;  %v4621_v1 = vld [vmem:[%s8985_s5 + $0x170] sm:$0xff] }
 0x700   : > { %2762 = vmatprep.mubr.bf16.mxu0 %v9600_v60  ;;  %3934 = vmatpush1.msra.mxu0 %v4573_v35  ;;  %v4623_v35 = vld [vmem:[%s8985_s5 + $0x160] sm:$0xff] }
 0x701   : > { %3935 = vmatprep.subr.mxu0 %v4574_v7  ;;  %v4624_v7 = vld [vmem:[%s8985_s5 + $0x158] sm:$0xff] }
 0x702   : > { %3936 = vmatpush1.msra.mxu0 %v4575_v55  ;;  %v4625_v55 = vld [vmem:[%s8985_s5 + $0x150] sm:$0xff] }
 0x703   : > { %3937 = vmatprep.subr.mxu0 %v4576_v51  ;;  %v4627_v51 = vld [vmem:[%s8985_s5 + $0x140] sm:$0xff] }
 0x704   : > { %3938 = vmatpush1.msra.mxu0 %v4577_v52  ;;  %v4628_v52 = vld [vmem:[%s8985_s5 + $0x138] sm:$0xff] }
 0x705   : > { %3939 = vmatprep.subr.mxu0 %v4578_v32  ;;  %v4629_v32 = vld [vmem:[%s8985_s5 + $0x130] sm:$0xff] }
 0x706   : > { %3940 = vmatpush1.msra.mxu0 %v4579_v63  ;;  %v4630_v63 = vld [vmem:[%s8985_s5 + $0x128] sm:$0xff] }
 0x707   : > { %4250 = vmatmul.mubr.msk.bf16.gmra.mxu0 %vm1465_vm12, %v4536_v12  ;;  %3941 = vmatprep.subr.mxu0 %v4580_v47  ;;  %v4626_v12 = vld [vmem:[%s8985_s5 + $0x148] sm:$0xff]  ;;  %v4631_v47 = vld [vmem:[%s8985_s5 + $0x120] sm:$0xff] }
 0x708   : > { %2772 = vmatprep.mubr.bf16.mxu0 %v9600_v60  ;;  %3942 = vmatpush1.msra.mxu0 %v4581_v19  ;;  %v4632_v19 = vld [vmem:[%s8985_s5 + $0x118] sm:$0xff] }
 0x709   : > { %3943 = vmatprep.subr.mxu0 %v4582_v25  ;;  %v4633_v25 = vld [vmem:[%s8985_s5 + $0x110] sm:$0xff] }
 0x70a   : > { %3944 = vmatpush1.msra.mxu0 %v4583_v16  ;;  %v4634_v16 = vld [vmem:[%s8985_s5 + $0x108] sm:$0xff] }
 0x70b   : > { %3945 = vmatprep.subr.mxu0 %v4584_v28  ;;  %v4635_v28 = vld [vmem:[%s8985_s5 + $0x100] sm:$0xff] }
 0x70c   : > { %3946 = vmatpush1.msra.mxu0 %v4585_v6  ;;  %v4538_v6 = vld [vmem:[%s8986_s6 + $0x28] sm:$0xff]  }
 0x70d   : > { %3947 = vmatprep.subr.mxu0 %v4586_v61 }
 0x70e   : > { %3948 = vmatpush1.msra.mxu0 %v4587_v41 }
 0x70f   : > { %3949 = vmatprep.subr.mxu0 %v4588_v4  ;;  %4251 = vmatmul.mubr.msk.bf16.gmra.mxu0 %vm1465_vm12, %v4538_v6  ;;  %vm9603_vm12 = vmmov %vm9596_vm14 }
 0x710   : > { %3950 = vmatpush1.msra.mxu0 %v4589_v49  ;;  %vm9643_vm14 = vmmov %vm9639_vm4 }
 0x711   : > { %3951 = vmatprep.subr.mxu0 %v4590_v54 }
 0x712   : > { %3952 = vmatpush1.msra.mxu0 %v4591_v30 }
 0x713   : > { %3953 = vmatprep.subr.mxu0 %v4592_v2 }
 0x714   : > { %3954 = vmatpush1.msra.mxu0 %v4593_v34 }
 0x715   : > { %3955 = vmatprep.subr.mxu0 %v4594_v40  ;;  %v4537_v40 = vld [vmem:[%s8988_s8] sm:$0xff]  }
 0x716   : > { %3956 = vmatpush1.msra.mxu0 %v4595_v15 }
 0x717   : > { %3957 = vmatprep.subr.mxu0 %v4596_v38  ;;  %v7710_v38 = vpop.permute.xlu1 %2802 }
 0x718   : > { %3958 = vmatpush1.msra.mxu0 %v4597_v26  ;;  %v7716_v26 = vpop.permute.xlu0 %2807 }
 0x719   : > { %3959 = vmatprep.subr.mxu0 %v4598_v14 }
 0x71a   : > { %3960 = vmatpush1.msra.mxu0 %v4599_v45 }
 0x71b   : > { %3961 = vmatprep.subr.mxu0 %v4600_v23  ;;  %v7722_v14 = vpop.permute.xlu1 %2899 }
 0x71c   : > { %3962 = vmatpush1.msra.mxu0 %v4601_v20  ;;  %9604 = vst [vmem:[#allocation64_spill] sm:$0xff] %v7722_v14  ;;  %v7728_v45 = vpop.permute.xlu0 %2904 }
 0x71d   : > { %3963 = vmatprep.subr.mxu0 %v4602_v33  ;;  %9605 = vst [vmem:[#allocation41_spill] sm:$0xff] %v7728_v45 }
 0x71e   : > { %3964 = vmatpush1.msra.mxu0 %v4603_v21 }
 0x71f   : > { %3965 = vmatprep.subr.mxu0 %v4604_v43  ;;  %v7730_v23 = vpop.permute.xlu1 %3008 }
 0x720   : > { %3966 = vmatpush2.msra.mxu0 %v4605_v11  ;;  %9606 = vst [vmem:[#allocation66_spill] sm:$0xff] %v7730_v23  ;;  %v7736_v20 = vpop.permute.xlu0 %3013 }
 0x721   : > { %3967 = vmatprep.subr.mxu0 %v4606_v53  ;;  %9607 = vst [vmem:[#allocation43_spill] sm:$0xff] %v7736_v20 }
 0x722   : > { %3968 = vmatpush2.msra.mxu0 %v4607_v56 }
 0x723   : > { %3969 = vmatprep.subr.mxu0 %v4608_v3  ;;  %v7742_v33 = vpop.permute.xlu1 %3117 }
 0x724   : > { %3970 = vmatpush2.msra.mxu0 %v4609_v9  ;;  %9608 = vst [vmem:[#allocation67_spill] sm:$0xff] %v7742_v33  ;;  %v7748_v21 = vpop.permute.xlu0 %3122 }
 0x725   : > { %3971 = vmatprep.subr.mxu0 %v4610_v37  ;;  %9609 = vst [vmem:[#allocation45_spill] sm:$0xff] %v7748_v21 }
 0x726   : > { %3972 = vmatpush2.msra.mxu0 %v4611_v59 }
 0x727   : > { %3973 = vmatprep.subr.mxu0 %v4612_v17  ;;  %v7752_v11 = vpop.permute.xlu1 %3226 }
 0x728   : > { %3974 = vmatpush2.msra.mxu0 %v4613_v57  ;;  %9610 = vst [vmem:[#allocation68_spill] sm:$0xff] %v7752_v11  ;;  %v7758_v53 = vpop.permute.xlu0 %3231 }
 0x729   : > { %3975 = vmatprep.subr.mxu0 %v4614_v24  ;;  %9611 = vst [vmem:[#allocation47_spill] sm:$0xff] %v7758_v53 }
 0x72a   : > { %3976 = vmatpush2.msra.mxu0 %v4615_v39 }
 0x72b   : > { %3977 = vmatprep.subr.mxu0 %v4616_v18  ;;  %v7764_v56 = vpop.permute.xlu1 %2792 }
 0x72c   : > { %3978 = vmatpush2.msra.mxu0 %v4617_v58  ;;  %v7770_v3 = vpop.permute.xlu0 %2797 }
 0x72d   : > { %3979 = vmatprep.subr.mxu0 %v4618_v46 }
 0x72e   : > { %3980 = vmatpush2.msra.mxu0 %v4619_v50 }
 0x72f   : > { %3981 = vmatprep.subr.mxu0 %v4620_v44  ;;  %v7772_v9 = vpop.permute.xlu1 %2889 }
 0x730   : > { %3982 = vmatpush2.msra.mxu0 %v4621_v1  ;;  %v7778_v37 = vpop.permute.xlu0 %2894 }
 0x731   : > { %3983 = vmatprep.subr.mxu0 %v4622_v27 }
 0x732   : > { %3984 = vmatpush2.msra.mxu0 %v4623_v35 }
 0x733   : > { %3985 = vmatprep.subr.mxu0 %v4624_v7  ;;  %v7784_v59 = vpop.permute.xlu1 %3335 }
 0x734   : > { %3986 = vmatpush2.msra.mxu0 %v4625_v55  ;;  %9612 = vst [vmem:[#allocation69_spill] sm:$0xff] %v7784_v59  ;;  %v7792_v57 = vpop.permute.xlu0 %3340 }
 0x735   : > { %3987 = vmatprep.subr.mxu0 %v4626_v12  ;;  %9613 = vst [vmem:[#allocation49_spill] sm:$0xff] %v7792_v57 }
 0x736   : > { %3988 = vmatpush2.msra.mxu0 %v4627_v51 }
 0x737   : > { %3989 = vmatprep.subr.mxu0 %v4628_v52  ;;  %v7796_v39 = vpop.permute.xlu1 %2998 }
 0x738   : > { %3990 = vmatpush2.msra.mxu0 %v4629_v32  ;;  %v7804_v58 = vpop.permute.xlu0 %3003 }
 0x739   : > { %3991 = vmatprep.subr.mxu0 %v4630_v63 }
 0x73a   : > { %3992 = vmatpush2.msra.mxu0 %v4631_v47 }
 0x73b   : > { %3993 = vmatprep.subr.mxu0 %v4632_v19  ;;  %v7810_v46 = vpop.permute.xlu1 %3444 }
 0x73c   : > { %3994 = vmatpush2.msra.mxu0 %v4633_v25  ;;  %9614 = vst [vmem:[#allocation70_spill] sm:$0xff] %v7810_v46  ;;  %v7816_v50 = vpop.permute.xlu0 %3449 }
 0x73d   : > { %3995 = vmatprep.subr.mxu0 %v4634_v16  ;;  %9615 = vst [vmem:[#allocation51_spill] sm:$0xff] %v7816_v50 }
 0x73e   : > { %3996 = vmatpush2.msra.mxu0 %v4635_v28 }
 0x73f   : > { %v7818_v44 = vpop.permute.xlu1 %3107 }
 0x740   : > { %v7824_v1 = vpop.permute.xlu0 %3112 }
 0x743   : > { %v7830_v27 = vpop.permute.xlu1 %3553 }
 0x744   : > { %9616 = vst [vmem:[#allocation71_spill] sm:$0xff] %v7830_v27  ;;  %v7836_v35 = vpop.permute.xlu0 %3558 }
 0x745   : > { %9617 = vst [vmem:[#allocation53_spill] sm:$0xff] %v7836_v35 }
 0x747   : > { %v7838_v7 = vpop.permute.xlu1 %3216 }
 0x748   : > { %v7844_v55 = vpop.permute.xlu0 %3221 }
 0x74b   : > { %v7850_v12 = vpop.permute.xlu1 %3662 }
 0x74c   : > { %9618 = vst [vmem:[#allocation72_spill] sm:$0xff] %v7850_v12  ;;  %v7856_v51 = vpop.permute.xlu0 %3667 }
 0x74d   : > { %9619 = vst [vmem:[#allocation55_spill] sm:$0xff] %v7856_v51 }
 0x74f   : > { %v7860_v32 = vpop.permute.xlu1 %3325 }
 0x750   : > { %v7866_v63 = vpop.permute.xlu0 %3330 }
 0x753   : > { %v7872_v47 = vpop.permute.xlu1 %3434 }
 0x754   : > { %v7878_v19 = vpop.permute.xlu0 %3439 }
 0x755   : > { %9620 = vst [vmem:[#allocation73_spill] sm:$0xff] %v7878_v19 }
 0x757   : > { %v7880_v25 = vpop.permute.xlu1 %3543 }
 0x758   : > { %9621 = vst [vmem:[#allocation57_spill] sm:$0xff] %v7880_v25  ;;  %v7886_v16 = vpop.permute.xlu0 %3548 }
 0x759   : > { %9622 = vst [vmem:[#allocation74_spill] sm:$0xff] %v7886_v16 }
 0x75b   : > { %v7892_v28 = vpop.permute.xlu1 %3652 }
 0x75c   : > { %9623 = vst [vmem:[#allocation59_spill] sm:$0xff] %v7892_v28  ;;  %v7898_v6 = vpop.permute.xlu0 %3657 }
 0x75d   : > { %9624 = vst [vmem:[#allocation76_spill] sm:$0xff] %v7898_v6 }
 0x7b7   : > { %v2617_v61 = vpop.f32.mrf.mxu0 }
 0x7b9   : > { %v2619_v41 = vpop.f32.mrf.mxu0 }
 0x7bb   : > { %v2621_v4 = vpop.f32.mrf.mxu0 }
 0x7bc   : > { %v2628_v30 = vpack.c.bf16 %v2621_v4, %v2617_v61 }
 0x7bd   : > { %v2623_v49 = vpop.f32.mrf.mxu0 }
 0x7be   : > { %v2629_v54 = vpack.c.bf16 %v2623_v49, %v2619_v41 }
 0x7bf   : > { %v7694_v2 = vpop.f32.mrf.mxu0 }
 0x7c0   : > { %2839 = vrot.lane.b32.xlu1 %v7694_v2, %s9540_s20  ;;  %2652 = vmatprep.subr.bf16.mxu1 %v2629_v54 }
 0x7c1   : > { %2653 = vmatpush1.bf16.msra.mxu1 %v2628_v30  ;;  %v7698_v34 = vpop.f32.mrf.mxu0 }
 0x7c3   : > { %v7703_v15 = vpop.f32.mrf.mxu0 }
 0x7c4   : > { %2948 = vrot.lane.b32.xlu1 %v7694_v2, %s9541_s22  ;;  %2841 = vrot.lane.b32.xlu0 %v7703_v15, %s9540_s20 }
 0x7c5   : > { %4239 = vmatmul.mubr.msk.bf16.vlgmr.msra.gmra.mxu1 %vm9603_vm12, %v4537_v40  ;;  %v7750_v43 = vpop.f32.mrf.mxu0  ;;  %vm9644_vm12 = vmmov %vm9639_vm4 }
 0x7c7   : > { %v7786_v17 = vpop.f32.mrf.mxu0 }
 0x7c8   : > { %3057 = vrot.lane.b32.xlu1 %v7694_v2, %s9542_s24  ;;  %2950 = vrot.lane.b32.xlu0 %v7703_v15, %s9541_s22 }
 0x7c9   : > { %v7794_v24 = vpop.f32.mrf.mxu0 }
 0x7cb   : > { %v7802_v18 = vpop.f32.mrf.mxu0 }
 0x7cc   : > { %3166 = vrot.lane.b32.xlu1 %v7694_v2, %s9543_s29  ;;  %3059 = vrot.lane.b32.xlu0 %v7703_v15, %s9542_s24 }
 0x7cd   : > { %v7858_v52 = vpop.f32.mrf.mxu0 }
 0x7d0   : > { %3275 = vrot.lane.b32.xlu1 %v7694_v2, %s9395_s15  ;;  %3168 = vrot.lane.b32.xlu0 %v7703_v15, %s9543_s29 }
 0x7d4   : > { %3384 = vrot.lane.b32.xlu1 %v7694_v2, %s9396_s28  ;;  %3277 = vrot.lane.b32.xlu0 %v7703_v15, %s9395_s15 }
 0x7d8   : > { %3493 = vrot.lane.b32.xlu1 %v7694_v2, %s9397_s14  ;;  %3386 = vrot.lane.b32.xlu0 %v7703_v15, %s9396_s28 }
 0x7dc   : > { %2851 = vrot.lane.b32.xlu1 %v7698_v34, %s9540_s20  ;;  %3495 = vrot.lane.b32.xlu0 %v7703_v15, %s9397_s14 }
 0x7e0   : > { %2960 = vrot.lane.b32.xlu1 %v7698_v34, %s9541_s22  ;;  %2853 = vrot.lane.b32.xlu0 %v7750_v43, %s9540_s20 }
 0x7e4   : > { %3069 = vrot.lane.b32.xlu1 %v7698_v34, %s9542_s24  ;;  %2962 = vrot.lane.b32.xlu0 %v7750_v43, %s9541_s22 }
 0x7e8   : > { %3178 = vrot.lane.b32.xlu1 %v7698_v34, %s9543_s29  ;;  %3071 = vrot.lane.b32.xlu0 %v7750_v43, %s9542_s24 }
 0x7ec   : > { %3287 = vrot.lane.b32.xlu1 %v7698_v34, %s9395_s15  ;;  %3180 = vrot.lane.b32.xlu0 %v7750_v43, %s9543_s29 }
 0x7f0   : > { %3396 = vrot.lane.b32.xlu1 %v7698_v34, %s9396_s28  ;;  %3289 = vrot.lane.b32.xlu0 %v7750_v43, %s9395_s15 }
 0x7f4   : > { %3505 = vrot.lane.b32.xlu1 %v7698_v34, %s9397_s14  ;;  %3398 = vrot.lane.b32.xlu0 %v7750_v43, %s9396_s28 }
 0x7f8   : > { %3507 = vrot.lane.b32.xlu0 %v7750_v43, %s9397_s14  ;;  %2843 = vrot.lane.b32.xlu1 %v7786_v17, %s9540_s20 }
 0x7fc   : > { %2952 = vrot.lane.b32.xlu1 %v7786_v17, %s9541_s22  ;;  %2845 = vrot.lane.b32.xlu0 %v7802_v18, %s9540_s20 }
 0x800   : > { %3061 = vrot.lane.b32.xlu1 %v7786_v17, %s9542_s24  ;;  %2954 = vrot.lane.b32.xlu0 %v7802_v18, %s9541_s22 }
 0x804   : > { %3170 = vrot.lane.b32.xlu1 %v7786_v17, %s9543_s29  ;;  %3063 = vrot.lane.b32.xlu0 %v7802_v18, %s9542_s24 }
 0x808   : > { %3279 = vrot.lane.b32.xlu1 %v7786_v17, %s9395_s15  ;;  %3172 = vrot.lane.b32.xlu0 %v7802_v18, %s9543_s29 }
 0x80c   : > { %3388 = vrot.lane.b32.xlu1 %v7786_v17, %s9396_s28  ;;  %3281 = vrot.lane.b32.xlu0 %v7802_v18, %s9395_s15 }
 0x810   : > { %3497 = vrot.lane.b32.xlu1 %v7786_v17, %s9397_s14  ;;  %3390 = vrot.lane.b32.xlu0 %v7802_v18, %s9396_s28 }
 0x814   : > { %3606 = vrot.lane.b32.xlu1 %v7786_v17, %s9398_s16  ;;  %3499 = vrot.lane.b32.xlu0 %v7802_v18, %s9397_s14 }
 0x818   : > { %2855 = vrot.lane.b32.xlu1 %v7794_v24, %s9540_s20  ;;  %3608 = vrot.lane.b32.xlu0 %v7802_v18, %s9398_s16 }
 0x81c   : > { %2964 = vrot.lane.b32.xlu1 %v7794_v24, %s9541_s22  ;;  %2857 = vrot.lane.b32.xlu0 %v7858_v52, %s9540_s20 }
 0x820   : > { %3073 = vrot.lane.b32.xlu1 %v7794_v24, %s9542_s24  ;;  %2966 = vrot.lane.b32.xlu0 %v7858_v52, %s9541_s22 }
 0x824   : > { %3182 = vrot.lane.b32.xlu1 %v7794_v24, %s9543_s29  ;;  %3075 = vrot.lane.b32.xlu0 %v7858_v52, %s9542_s24 }
 0x828   : > { %3291 = vrot.lane.b32.xlu1 %v7794_v24, %s9395_s15  ;;  %3184 = vrot.lane.b32.xlu0 %v7858_v52, %s9543_s29 }
 0x82c   : > { %3400 = vrot.lane.b32.xlu1 %v7794_v24, %s9396_s28  ;;  %3293 = vrot.lane.b32.xlu0 %v7858_v52, %s9395_s15 }
 0x830   : > { %3509 = vrot.lane.b32.xlu1 %v7794_v24, %s9397_s14  ;;  %3402 = vrot.lane.b32.xlu0 %v7858_v52, %s9396_s28 }
 0x832   : > { %v2840_v61 = vpop.permute.xlu1 %2839 }
 0x834   : > { %3618 = vrot.lane.b32.xlu1 %v7794_v24, %s9398_s16  ;;  %3511 = vrot.lane.b32.xlu0 %v7858_v52, %s9397_s14 }
 0x836   : > { %v2842_v41 = vpop.permute.xlu0 %2841  ;;  %v2949_v4 = vpop.permute.xlu1 %2948 }
 0x838   : > { %3602 = vrot.lane.b32.xlu1 %v7694_v2, %s9398_s16  ;;  %3620 = vrot.lane.b32.xlu0 %v7858_v52, %s9398_s16 }
 0x83a   : > { %v7908_v49 = vpop.permute.xlu0 %2950  ;;  %v3058_v54 = vpop.permute.xlu1 %3057 }
 0x83c   : > { %3604 = vrot.lane.b32.xlu0 %v7703_v15, %s9398_s16  ;;  %3614 = vrot.lane.b32.xlu1 %v7698_v34, %s9398_s16 }
 0x83e   : > { %v7914_v30 = vpop.permute.xlu0 %3059  ;;  %v7916_v40 = vpop.permute.xlu1 %3166 }
 0x840   : > { %3616 = vrot.lane.b32.xlu0 %v7750_v43, %s9398_s16 }
 0x842   : > { %v7920_v62 = vpop.permute.xlu0 %3168  ;;  %v7922_v8 = vpop.permute.xlu1 %3275 }
 0x846   : > { %v7924_v48 = vpop.permute.xlu0 %3277  ;;  %v7926_v42 = vpop.permute.xlu1 %3384 }
 0x84a   : > { %v7928_v60 = vpop.permute.xlu0 %3386  ;;  %v7930_v6 = vpop.permute.xlu1 %3493 }
 0x84b   : > { %9625 = vst [vmem:[#allocation61_spill] sm:$0xff] %v7930_v6 }
 0x84e   : > { %v7932_v28 = vpop.permute.xlu0 %3495  ;;  %v2852_v16 = vpop.permute.xlu1 %2851 }
 0x84f   : > { %9626 = vst [vmem:[#allocation78_spill] sm:$0xff] %v7932_v28  ;;  %v2863_v28 = vsel %vm9631_vm0, %v2840_v61, %v2852_v16  ;;  %v2869_v25 = vsel %vm9632_vm13, %v2852_v16, %v2840_v61  ;;  %vm9645_vm0 = vcmp.lt.s32.totalorder %v9426_v29, 15 }
 0x850   : > { %vm9646_vm13 = vmmov %vm9645_vm0 }
 0x852   : > { %v2854_v51 = vpop.permute.xlu0 %2853  ;;  %v2961_v12 = vpop.permute.xlu1 %2960 }
 0x853   : > { %v2870_v19 = vsel %vm9635_vm8, %v2854_v51, %v2842_v41  ;;  %v2978_v16 = vsel %vm9639_vm4, %v2961_v12, %v2949_v4  ;;  %vm9647_vm8 = vmmov %vm9645_vm0 }
 0x854   : > { %v2877_v6 = vsel %vm5175_vm9, %v2870_v19, 0.0 }
 0x856   : > { %v2963_v13 = vpop.permute.xlu0 %2962  ;;  %v3070_v35 = vpop.permute.xlu1 %3069 }
 0x85a   : > { %v3072_v27 = vpop.permute.xlu0 %3071  ;;  %v3179_v50 = vpop.permute.xlu1 %3178 }
 0x85e   : > { %v7934_v46 = vpop.permute.xlu0 %3180  ;;  %v7936_v57 = vpop.permute.xlu1 %3287 }
 0x862   : > { %v7938_v59 = vpop.permute.xlu0 %3289  ;;  %v7940_v53 = vpop.permute.xlu1 %3396 }
 0x866   : > { %v7942_v11 = vpop.permute.xlu0 %3398  ;;  %v7944_v21 = vpop.permute.xlu1 %3505 }
 0x867   : > { %9627 = vst [vmem:[#allocation63_spill] sm:$0xff] %v7944_v21  ;;  %v2875_v21 = vsel %vm5175_vm9, %v2869_v25, 0.0 }
 0x868   : > { %v2917_v19 = vmul.f32 %v7772_v9, %v2875_v21  ;;  %v3081_v21 = vsel %vm9645_vm0, %v3058_v54, %v3070_v35 }
 0x86a   : > { %v7946_v33 = vpop.permute.xlu0 %3507  ;;  %v7948_v20 = vpop.permute.xlu1 %2843 }
 0x86b   : > { %9628 = vst [vmem:[#allocation80_spill] sm:$0xff] %v7946_v33  ;;  %v2876_v33 = vsel %vm9636_vm7, %v2863_v28, 0.0  ;;  %v2821_v28 = vmul.f32 %v7764_v56, %v7698_v34  ;;  %v2972_v34 = vsel %vm9643_vm14, %v2949_v4, %v2961_v12  ;;  %v3087_v12 = vsel %vm9646_vm13, %v3070_v35, %v3058_v54  ;;  %vm9648_vm7 = vmmov %vm9639_vm4 }
 0x86c   : > { %vm9650_vm4 = vcmp.lt.s32.totalorder %v9426_v29, 1  ;;  %vm9655_vm13 = vcmp.ge.s32.totalorder %v9428_v0, 1 }
 0x86d   : > { %vm9652_vm14 = vmmov %vm9650_vm4 }
 0x86e   : > { %v7950_v23 = vpop.permute.xlu0 %2845  ;;  %v7952_v45 = vpop.permute.xlu1 %2952 }
 0x86f   : > { %9629 = vst [vmem:[#allocation65_spill] sm:$0xff] %v7950_v23  ;;  %9630 = vst [vmem:[#allocation82_spill] sm:$0xff] %v7952_v45  ;;  %v2864_v23 = vsel %vm9637_vm1, %v2842_v41, %v2854_v51  ;;  %v2918_v51 = vmul.f32 %v7772_v9, %v2876_v33  ;;  %v2822_v41 = vmul.f32 %v7770_v3, %v7703_v15 }
 0x870   : > { %v2878_v25 = vsel %vm9642_vm15, %v2864_v23, 0.0  ;;  %v2984_v23 = vsel %vm5116_vm5, %v2978_v16, 0.0  ;;  %v2979_v33 = vsel %vm9644_vm12, %v2963_v13, %v7908_v49  ;;  %v8015_v9 = vmul.f32 %v7716_v26, %v7802_v18  ;;  %vm9649_vm1 = vmmov %vm9645_vm0 }
 0x871   : > { %v2920_v15 = vmul.f32 %v7778_v37, %v2878_v25  ;;  %v3026_v4 = vmul.f32 %v7796_v39, %v2984_v23  ;;  %v2986_v18 = vsel %vm5116_vm5, %v2979_v33, 0.0  ;;  %v3094_v16 = vsel %vm476_vm11, %v3081_v21, 0.0  ;;  %vm9651_vm15 = vmmov %vm9650_vm4 }
 0x872   : > { %v7958_v22 = vpop.permute.xlu0 %2954  ;;  %v7960_v14 = vpop.permute.xlu1 %3061  ;;  %vm9653_vm12 = vcmp.ge.s32.totalorder %v9446_v10, 1  ;;  %vm9654_vm0 = vmmov %vm9650_vm4 }
 0x873   : > { %9633 = vst [vmem:[#allocation75_spill] sm:$0xff] %v7958_v22  ;;  %9634 = vst [vmem:[#allocation84_spill] sm:$0xff] %v7960_v14  ;;  %v2820_v22 = vmul.f32 %v7764_v56, %v7694_v2  ;;  %v2919_v2 = vmul.f32 %v7778_v37, %v2877_v6  ;;  %v3088_v37 = vsel %vm9647_vm8, %v3072_v27, %v7914_v30 }
 0x874   : > { %v8024_v6 = vmul.f32 %v7716_v26, %v7858_v52  ;;  %v3082_v26 = vsel %vm9649_vm1, %v7914_v30, %v3072_v27  ;;  %v3190_v27 = vsel %vm9651_vm15, %v7916_v40, %v3179_v50  ;;  %v3197_v30 = vsel %vm9652_vm14, %v7934_v46, %v7920_v62  ;;  %vm9656_vm8 = vmmov %vm9653_vm12 }
 0x875   : > { %v2929_v35 = vadd.f32 %v2917_v19, %v2820_v22  ;;  %v2931_v54 = vadd.f32 %v2919_v2, %v2822_v41  ;;  %v3136_v41 = vmul.f32 %v7818_v44, %v3094_v16  ;;  %v3096_v2 = vsel %vm476_vm11, %v3082_v26, 0.0  ;;  %vm9660_vm15 = vmmov %vm9655_vm13 }
 0x876   : > { %v7974_v61 = vpop.permute.xlu0 %3063  ;;  %v7976_v14 = vpop.permute.xlu1 %3170  ;;  %v3204_v33 = vsel %vm9656_vm8, %v3197_v30, 0.0 }
 0x877   : > { %9640 = vst [vmem:[#allocation77_spill] sm:$0xff] %v7974_v61  ;;  %9641 = vst [vmem:[#allocation79_spill] sm:$0xff] %v7976_v14  ;;  %v2823_v61 = vmul.f32 %v7770_v3, %v7750_v43  ;;  %v7992_v14 = vmul.f32 %v7710_v38, %v7786_v17  ;;  %v8011_v3 = vmul.f32 %v7710_v38, %v7794_v24 }
 0x878   : > { %v2930_v17 = vadd.f32 %v2918_v51, %v2821_v28  ;;  %v3027_v38 = vmul.f32 %v7796_v39, %v2972_v34  ;;  %v2973_v24 = vsel %vm9648_vm7, %v7908_v49, %v2963_v13  ;;  %v3093_v39 = vsel %vm5132_vm3, %v3087_v12, 0.0 }
 0x879   : > { %v2932_v52 = vadd.f32 %v2920_v15, %v2823_v61  ;;  %v3095_v28 = vsel %vm5132_vm3, %v3088_v37, 0.0  ;;  %v3196_v13 = vsel %vm9650_vm4, %v3179_v50, %v7916_v40  ;;  %v3028_v51 = vmul.f32 %v7804_v58, %v2986_v18 }
 0x87a   : > { %v8005_v43 = vpop.permute.xlu0 %3172  ;;  %v8007_v56 = vpop.permute.xlu1 %3279  ;;  %v3029_v25 = vmul.f32 %v7804_v58, %v2973_v24  ;;  %v3038_v61 = vadd.f32 %v3026_v4, %v2929_v35  ;;  %v3039_v19 = vadd.f32 %v3027_v38, %v2930_v17  ;;  %v3135_v34 = vmul.f32 %v7818_v44, %v3093_v39 }
 0x87b   : > { %v3137_v58 = vmul.f32 %v7824_v1, %v3095_v28  ;;  %v3202_v23 = vsel %vm9653_vm12, %v3196_v13, 0.0  ;;  %v3191_v50 = vsel %vm9654_vm0, %v7920_v62, %v7934_v46  ;;  %v3203_v40 = vsel %vm9655_vm13, %v3190_v27, 0.0 }
 0x87c   : > { %vm9657_vm7 = vcmp.lt.s32.totalorder %v9426_v29, 127  ;;  %v3040_v62 = vadd.f32 %v3028_v51, %v2931_v54  ;;  %v3041_v46 = vadd.f32 %v3029_v25, %v2932_v52  ;;  %v3138_v12 = vmul.f32 %v7824_v1, %v3096_v2 }
 0x87d   : > { %v3299_v44 = vsel %vm9657_vm7, %v7922_v8, %v7936_v57  ;;  %vm9658_vm1 = vmmov %vm9657_vm7  ;;  %v3244_v4 = vmul.f32 %v7838_v7, %v3202_v23  ;;  %v3205_v38 = vsel %vm9660_vm15, %v3191_v50, 0.0  ;;  %vm9662_vm12 = vcmp.lt.s32.totalorder %v9426_v29, 113 }
 0x87e   : > { %v8045_v22 = vpop.permute.xlu0 %3281  ;;  %v8047_v49 = vpop.permute.xlu1 %3388  ;;  %v3305_v15 = vsel %vm9658_vm1, %v7936_v57, %v7922_v8  ;;  %vm9659_vm4 = vmmov %vm9658_vm1  ;;  %v3414_v57 = vsel %vm9662_vm12, %v7940_v53, %v7926_v42  ;;  %v3245_v1 = vmul.f32 %v7838_v7, %v3203_v40  ;;  %v3246_v24 = vmul.f32 %v7844_v55, %v3204_v33 }
 0x87f   : > { %v3300_v37 = vsel %vm9659_vm4, %v7924_v48, %v7938_v59  ;;  %vm9661_vm14 = vmmov %vm9658_vm1  ;;  %vm9663_vm0 = vcmp.le.s32.totalorder %v9446_v10, 14  ;;  %v3312_v35 = vsel %vm476_vm11, %v3305_v15, 0.0  ;;  %v3147_v54 = vadd.f32 %v3135_v34, %v3038_v61 }
 0x880   : > { %v3306_v8 = vsel %vm9661_vm14, %v7938_v59, %v7924_v48  ;;  %v3311_v18 = vsel %vm9663_vm0, %v3299_v44, 0.0  ;;  %v3148_v16 = vadd.f32 %v3136_v41, %v3039_v19  ;;  %v3149_v26 = vadd.f32 %v3137_v58, %v3040_v62  ;;  %vm9664_vm13 = vmmov %vm9663_vm0 }
 0x881   : > { %v3313_v48 = vsel %vm9664_vm13, %v3300_v37, 0.0  ;;  %v3247_v7 = vmul.f32 %v7844_v55, %v3205_v38  ;;  %v3314_v39 = vsel %vm476_vm11, %v3306_v8, 0.0  ;;  %vm9665_vm8 = vmmov %vm9662_vm12  ;;  %v3421_v13 = vsel %vm5009_vm6, %v3414_v57, 0.0  ;;  %v9674_v37 = vld [vmem:[#allocation63_spill] sm:$0xff]  ;;  %v9676_v8 = vld [vmem:[#allocation73_spill] sm:$0xff] }
 0x882   : > { %v8081_v21 = vpop.permute.xlu0 %3390  ;;  %v8083_v17 = vpop.permute.xlu1 %3497  ;;  %v3408_v28 = vsel %vm9665_vm8, %v7926_v42, %v7940_v53  ;;  %v3150_v51 = vadd.f32 %v3138_v12, %v3041_v46  ;;  %v3353_v25 = vmul.f32 %v7860_v32, %v3311_v18  ;;  %v3354_v27 = vmul.f32 %v7860_v32, %v3312_v35  ;;  %vm9666_vm7 = vmmov %vm9665_vm8  ;;  %v9673_v12 = vld [vmem:[#allocation61_spill] sm:$0xff]  ;;  %v9678_v18 = vld [vmem:[#allocation64_spill] sm:$0xff] }
 0x883   : > { %v3409_v55 = vsel %vm9666_vm7, %v7928_v60, %v7942_v11  ;;  %v3256_v30 = vadd.f32 %v3244_v4, %v3147_v54  ;;  %v3257_v61 = vadd.f32 %v3245_v1, %v3148_v16  ;;  %v3258_v19 = vadd.f32 %v3246_v24, %v3149_v26  ;;  %vm9668_vm4 = vmmov %vm9666_vm7  ;;  %v9679_v16 = vld [vmem:[#allocation65_spill] sm:$0xff] }
 0x884   : > { %v3355_v41 = vmul.f32 %v7866_v63, %v3313_v48  ;;  %v3356_v42 = vmul.f32 %v7866_v63, %v3314_v39  ;;  %vm9667_vm1 = vcmp.ge.s32.totalorder %v9446_v10, 1  ;;  %v3463_v2 = vmul.f32 %v7872_v47, %v3421_v13 }
 0x885   : > { %v3420_v53 = vsel %vm9667_vm1, %v3408_v28, 0.0  ;;  %v3415_v32 = vsel %vm9668_vm4, %v7942_v11, %v7928_v60  ;;  %v3259_v23 = vadd.f32 %v3247_v7, %v3150_v51  ;;  %vm9669_vm15 = vmmov %vm9667_vm1  ;;  %vm9670_vm14 = vcmp.lt.s32.totalorder %v9426_v29, 17  ;;  %v9684_v51 = vld [vmem:[#allocation82_spill] sm:$0xff] }
 0x886   : > { %v8109_v59 = vpop.permute.xlu0 %3499  ;;  %v8111_v52 = vpop.permute.xlu1 %3606  ;;  %v3422_v50 = vsel %vm9669_vm15, %v3409_v55, 0.0  ;;  %vm9671_vm12 = vmmov %vm9670_vm14  ;;  %v3365_v33 = vadd.f32 %v3353_v25, %v3256_v30  ;;  %v3366_v44 = vadd.f32 %v3354_v27, %v3257_v61  ;;  %vm9672_vm0 = vcmp.ge.s32.totalorder %v9428_v0, 1  ;;  %v9686_v55 = vld [vmem:[#allocation57_spill] sm:$0xff] }
 0x887   : > { %v3367_v15 = vadd.f32 %v3355_v41, %v3258_v19  ;;  %v3462_v62 = vmul.f32 %v7872_v47, %v3420_v53  ;;  %v3423_v46 = vsel %vm5009_vm6, %v3415_v32, 0.0  ;;  %vm9675_vm13 = vcmp.lt.s32.totalorder %v9426_v29, 112  ;;  %vm9680_vm7 = vmmov %vm9671_vm12  ;;  %v9688_v41 = vld [vmem:[#allocation80_spill] sm:$0xff]  ;;  %v9692_v32 = vld [vmem:[#allocation41_spill] sm:$0xff] }
 0x888   : > { %v3523_v4 = vsel %vm9675_vm13, %v9674_v37, %v9673_v12  ;;  %v8160_v38 = vadd.f32 %v3463_v2, %v3366_v44  ;;  %v3464_v57 = vmul.f32 %v9676_v8, %v3422_v50  ;;  %vm9677_vm8 = vmmov %vm9675_vm13  ;;  %v8176_v7 = vmul.f32 %v9676_v8, %v3423_v46  ;;  %v9695_v46 = vld [vmem:[#allocation66_spill] sm:$0xff] }
 0x889   : > { %v3517_v1 = vsel %vm9677_vm8, %v9673_v12, %v9674_v37  ;;  %vm9681_vm1 = vmmov %vm9680_vm7  ;;  %v3530_v28 = vsel %vm4987_vm2, %v3523_v4, 0.0  ;;  %vm9685_vm15 = vcmp.lt.s32.totalorder %v9426_v29, 16  ;;  %v8185_v27 = vadd.f32 %v3462_v62, %v3365_v33  ;;  %v9697_v4 = vld [vmem:[#allocation84_spill] sm:$0xff] }
 0x88a   : > { %v8137_v34 = vpop.permute.xlu0 %3608  ;;  %v2856_v58 = vpop.permute.xlu1 %2855  ;;  %vm9683_vm4 = vmmov %vm9672_vm0  ;;  %v8188_v30 = vmul.f32 %v9686_v55, %v3517_v1 }
 0x88b   : > { %v2865_v63 = vsel %vm9670_vm14, %v7948_v20, %v2856_v58  ;;  %v2871_v40 = vsel %vm9671_vm12, %v2856_v58, %v7948_v20  ;;  %v8158_v20 = vadd.f32 %v3356_v42, %v3259_v23  ;;  %vm9687_vm14 = vmmov %vm9685_vm15  ;;  %v9689_v42 = vld [vmem:[#allocation78_spill] sm:$0xff] }
 0x88c   : > { %v2879_v60 = vsel %vm5175_vm9, %v2871_v40, 0.0  ;;  %v2880_v11 = vsel %vm9672_vm0, %v2865_v63, 0.0  ;;  %vm9690_vm12 = vmmov %vm9677_vm8  ;;  %v8211_v40 = vmul.f32 %v9686_v55, %v3530_v28  ;;  %v9701_v28 = vld [vmem:[#allocation67_spill] sm:$0xff] }
 0x88d   : > { %v2921_v35 = vmul.f32 %v9678_v18, %v2879_v60  ;;  %v2922_v54 = vmul.f32 %v9678_v18, %v2880_v11  ;;  %v8199_v53 = vsel %vm9690_vm12, %v9689_v42, %v9688_v41  ;;  %vm9691_vm0 = vmmov %vm9677_vm8  ;;  %v9693_v60 = vld [vmem:[#allocation75_spill] sm:$0xff] }
 0x88e   : > { %v2858_v47 = vpop.permute.xlu0 %2857  ;;  %v2965_v24 = vpop.permute.xlu1 %2964  ;;  %v8205_v2 = vsel %vm9691_vm0, %v9688_v41, %v9689_v42  ;;  %vm9694_vm13 = vmmov %vm9687_vm14  ;;  %v9700_v18 = vld [vmem:[#allocation43_spill] sm:$0xff]  ;;  %vm9708_vm0 = vcmp.ge.s32.totalorder %v9446_v10, 1 }
 0x88f   : > { %v2866_v26 = vsel %vm9680_vm7, %v9679_v16, %v2858_v47  ;;  %v2872_v48 = vsel %vm9681_vm1, %v2858_v47, %v9679_v16  ;;  %v2980_v25 = vsel %vm9685_vm15, %v2965_v24, %v9684_v51  ;;  %v2974_v19 = vsel %vm9687_vm14, %v9684_v51, %v2965_v24  ;;  %vm9696_vm8 = vmmov %vm9694_vm13  ;;  %v9702_v51 = vld [vmem:[#allocation77_spill] sm:$0xff] }
 0x890   : > { %v2882_v13 = vsel %vm9683_vm4, %v2866_v26, 0.0  ;;  %v2881_v61 = vsel %vm5175_vm9, %v2872_v48, 0.0  ;;  %v2988_v23 = vsel %vm5116_vm5, %v2980_v25, 0.0  ;;  %v2933_v33 = vadd.f32 %v2921_v35, %v7992_v14 }
 0x891   : > { %v2924_v58 = vmul.f32 %v9692_v32, %v2882_v13  ;;  %v2934_v44 = vadd.f32 %v2922_v54, %v8011_v3  ;;  %v2923_v62 = vmul.f32 %v9692_v32, %v2881_v61  ;;  %v3031_v12 = vmul.f32 %v9695_v46, %v2974_v19 }
 0x892   : > { %v2967_v50 = vpop.permute.xlu0 %2966  ;;  %v3074_v63 = vpop.permute.xlu1 %3073  ;;  %vm9698_vm7 = vcmp.lt.s32.totalorder %v9426_v29, 15  ;;  %v3030_v14 = vmul.f32 %v9695_v46, %v2988_v23  ;;  %vm9706_vm14 = vcmp.lt.s32.totalorder %v9426_v29, 1  ;;  %v8249_v19 = vadd.f32 %v3464_v57, %v3367_v15 }
 0x893   : > { %v2975_v11 = vsel %vm9694_vm13, %v9693_v60, %v2967_v50  ;;  %v2981_v37 = vsel %vm9696_vm8, %v2967_v50, %v9693_v60  ;;  %v3083_v8 = vsel %vm9698_vm7, %v9697_v4, %v3074_v63  ;;  %vm9699_vm1 = vmmov %vm9698_vm7  ;;  %v2936_v24 = vadd.f32 %v2924_v58, %v8024_v6  ;;  %v9705_v6 = vld [vmem:[#allocation79_spill] sm:$0xff] }
 0x894   : > { %v2990_v3 = vsel %vm5116_vm5, %v2981_v37, 0.0  ;;  %v3089_v1 = vsel %vm9699_vm1, %v3074_v63, %v9697_v4  ;;  %v3098_v47 = vsel %vm476_vm11, %v3083_v8, 0.0  ;;  %v3033_v54 = vmul.f32 %v9700_v18, %v2975_v11  ;;  %vm9703_vm4 = vmmov %vm9699_vm1 }
 0x895   : > { %v3032_v35 = vmul.f32 %v9700_v18, %v2990_v3  ;;  %v3097_v16 = vsel %vm5132_vm3, %v3089_v1, 0.0  ;;  %v3140_v13 = vmul.f32 %v9701_v28, %v3098_v47  ;;  %vm9704_vm15 = vmmov %vm9699_vm1  ;;  %v3532_v41 = vsel %vm4987_vm2, %v8205_v2, 0.0  ;;  %v9715_v1 = vld [vmem:[#allocation68_spill] sm:$0xff] }
 0x896   : > { %v3076_v26 = vpop.permute.xlu0 %3075  ;;  %v3183_v48 = vpop.permute.xlu1 %3182  ;;  %v2935_v58 = vadd.f32 %v2923_v62, %v8015_v9  ;;  %v3042_v23 = vadd.f32 %v3030_v14, %v2933_v33  ;;  %v3043_v50 = vadd.f32 %v3031_v12, %v2934_v44  ;;  %vm9707_vm12 = vmmov %vm9706_vm14  ;;  %v3045_v15 = vadd.f32 %v3033_v54, %v2936_v24  ;;  %v9710_v9 = vld [vmem:[#allocation45_spill] sm:$0xff]  ;;  %v9718_v54 = vld [vmem:[#allocation47_spill] sm:$0xff] }
 0x897   : > { %v3084_v25 = vsel %vm9703_vm4, %v9702_v51, %v3076_v26  ;;  %v3090_v55 = vsel %vm9704_vm15, %v3076_v26, %v9702_v51  ;;  %v3192_v61 = vsel %vm9706_vm14, %v9705_v6, %v3183_v48  ;;  %v3198_v63 = vsel %vm9707_vm12, %v3183_v48, %v9705_v6  ;;  %vm9711_vm8 = vmmov %vm9707_vm12  ;;  %v9720_v51 = vld [vmem:[#allocation69_spill] sm:$0xff] }
 0x898   : > { %v3099_v42 = vsel %vm5132_vm3, %v3090_v55, 0.0  ;;  %v3100_v32 = vsel %vm476_vm11, %v3084_v25, 0.0  ;;  %v3139_v57 = vmul.f32 %v9701_v28, %v3097_v16  ;;  %v3206_v60 = vsel %vm9708_vm0, %v3198_v63, 0.0  ;;  %vm9712_vm7 = vmmov %vm9711_vm8 }
 0x899   : > { %vm9709_vm13 = vcmp.ge.s32.totalorder %v9428_v0, 1  ;;  %v3044_v4 = vadd.f32 %v3032_v35, %v2935_v58  ;;  %v3152_v8 = vadd.f32 %v3140_v13, %v3043_v50  ;;  %v3141_v33 = vmul.f32 %v9710_v9, %v3099_v42  ;;  %vm9716_vm15 = vmmov %vm9708_vm0 }
 0x89a   : > { %v3207_v11 = vsel %vm9709_vm13, %v3192_v61, 0.0  ;;  %v3185_v46 = vpop.permute.xlu0 %3184  ;;  %v3292_v37 = vpop.permute.xlu1 %3291  ;;  %v3142_v44 = vmul.f32 %v9710_v9, %v3100_v32  ;;  %vm9713_vm1 = vcmp.lt.s32.totalorder %v9426_v29, 127  ;;  %v3248_v47 = vmul.f32 %v9715_v1, %v3206_v60  ;;  %vm9717_vm14 = vmmov %vm9709_vm13 }
 0x89b   : > { %v3193_v62 = vsel %vm9711_vm8, %v8005_v43, %v3185_v46  ;;  %v3199_v12 = vsel %vm9712_vm7, %v3185_v46, %v8005_v43  ;;  %v3301_v14 = vsel %vm9713_vm1, %v8007_v56, %v3292_v37  ;;  %vm9714_vm4 = vmmov %vm9713_vm1  ;;  %v3249_v24 = vmul.f32 %v9715_v1, %v3207_v11 }
 0x89c   : > { %v3307_v3 = vsel %vm9714_vm4, %v3292_v37, %v8007_v56  ;;  %v3208_v18 = vsel %vm9716_vm15, %v3199_v12, 0.0  ;;  %v3209_v35 = vsel %vm9717_vm14, %v3193_v62, 0.0  ;;  %vm9719_vm12 = vcmp.le.s32.totalorder %v9446_v10, 14  ;;  %vm9721_vm0 = vmmov %vm9713_vm1  ;;  %v9728_v12 = vld [vmem:[#allocation70_spill] sm:$0xff] }
 0x89d   : > { %v3250_v43 = vmul.f32 %v9718_v54, %v3208_v18  ;;  %v3251_v16 = vmul.f32 %v9718_v54, %v3209_v35  ;;  %v3315_v26 = vsel %vm9719_vm12, %v3301_v14, 0.0  ;;  %v3316_v56 = vsel %vm476_vm11, %v3307_v3, 0.0  ;;  %vm9722_vm13 = vmmov %vm9721_vm0 }
 0x89e   : > { %v3294_v48 = vpop.permute.xlu0 %3293  ;;  %v3401_v28 = vpop.permute.xlu1 %3400  ;;  %v3151_v13 = vadd.f32 %v3139_v57, %v3042_v23  ;;  %v3357_v25 = vmul.f32 %v9720_v51, %v3315_v26  ;;  %v3153_v61 = vadd.f32 %v3141_v33, %v3044_v4  ;;  %v3154_v42 = vadd.f32 %v3142_v44, %v3045_v15  ;;  %vm9723_vm8 = vmmov %vm9719_vm12  ;;  %v9724_v57 = vld [vmem:[#allocation49_spill] sm:$0xff] }
 0x89f   : > { %v3302_v55 = vsel %vm9721_vm0, %v8045_v22, %v3294_v48  ;;  %v3308_v6 = vsel %vm9722_vm13, %v3294_v48, %v8045_v22  ;;  %v3261_v23 = vadd.f32 %v3249_v24, %v3152_v8  ;;  %v3358_v63 = vmul.f32 %v9720_v51, %v3316_v56  ;;  %vm9727_vm4 = vmmov %vm9716_vm15 }
 0x8a0   : > { %v3317_v32 = vsel %vm9723_vm8, %v3302_v55, 0.0  ;;  %v3318_v58 = vsel %vm476_vm11, %v3308_v6, 0.0  ;;  %v3260_v50 = vadd.f32 %v3248_v47, %v3151_v13  ;;  %v3262_v11 = vadd.f32 %v3250_v43, %v3153_v61  ;;  %vm9731_vm12 = vmmov %vm9727_vm4  ;;  %v9734_v43 = vld [vmem:[#allocation51_spill] sm:$0xff] }
 0x8a1   : > { %v3359_v60 = vmul.f32 %v9724_v57, %v3317_v32  ;;  %v3263_v46 = vadd.f32 %v3251_v16, %v3154_v42  ;;  %vm9725_vm7 = vcmp.lt.s32.totalorder %v9426_v29, 113  ;;  %v3360_v33 = vmul.f32 %v9724_v57, %v3318_v58  ;;  %v9738_v58 = vld [vmem:[#allocation53_spill] sm:$0xff] }
 0x8a2   : > { %v3410_v22 = vsel %vm9725_vm7, %v8047_v49, %v3401_v28  ;;  %vm9726_vm1 = vmmov %vm9725_vm7  ;;  %v3403_v37 = vpop.permute.xlu0 %3402  ;;  %v3510_v4 = vpop.permute.xlu1 %3509  ;;  %v3369_v9 = vadd.f32 %v3357_v25, %v3260_v50  ;;  %vm9732_vm0 = vcmp.lt.s32.totalorder %v9426_v29, 112  ;;  %v3583_v25 = vadd.f32 %v8188_v30, %v8185_v27 }
 0x8a3   : > { %v3416_v15 = vsel %vm9726_vm1, %v3401_v28, %v8047_v49  ;;  %v3424_v8 = vsel %vm9727_vm4, %v3410_v22, 0.0  ;;  %v3371_v62 = vadd.f32 %v3359_v60, %v3262_v11  ;;  %vm9729_vm15 = vmmov %vm9726_vm1  ;;  %v3519_v24 = vsel %vm9732_vm0, %v8083_v17, %v3510_v4  ;;  %v9735_v28 = vld [vmem:[#allocation71_spill] sm:$0xff] }
 0x8a4   : > { %v3425_v44 = vsel %vm5009_vm6, %v3416_v15, 0.0  ;;  %v3466_v14 = vmul.f32 %v9728_v12, %v3424_v8  ;;  %v3411_v3 = vsel %vm9729_vm15, %v8081_v21, %v3403_v37  ;;  %vm9730_vm14 = vmmov %vm9726_vm1  ;;  %v3575_v13 = vmul.f32 %v9735_v28, %v3519_v24 }
 0x8a5   : > { %v3417_v49 = vsel %vm9730_vm14, %v3403_v37, %v8081_v21  ;;  %v3426_v1 = vsel %vm9731_vm12, %v3411_v3, 0.0  ;;  %vm9733_vm13 = vmmov %vm9732_vm0  ;;  %v3467_v35 = vmul.f32 %v9728_v12, %v3425_v44  ;;  %v3370_v55 = vadd.f32 %v3358_v63, %v3261_v23  ;;  %v9743_v37 = vld [vmem:[#allocation72_spill] sm:$0xff] }
 0x8a6   : > { %v3427_v47 = vsel %vm5009_vm6, %v3417_v49, 0.0  ;;  %v3525_v18 = vsel %vm9733_vm13, %v3510_v4, %v8083_v17  ;;  %v3478_v54 = vadd.f32 %v3466_v14, %v3369_v9  ;;  %v3468_v16 = vmul.f32 %v9734_v43, %v3426_v1  ;;  %v3512_v26 = vpop.permute.xlu0 %3511  ;;  %v3619_v56 = vpop.permute.xlu1 %3618  ;;  %vm9736_vm8 = vmmov %vm9732_vm0  ;;  %v9747_v1 = vld [vmem:[#allocation55_spill] sm:$0xff] }
 0x8a7   : > { %v3469_v21 = vmul.f32 %v9734_v43, %v3427_v47  ;;  %v3534_v48 = vsel %vm4987_vm2, %v3525_v18, 0.0  ;;  %v3520_v51 = vsel %vm9736_vm8, %v8109_v59, %v3512_v26  ;;  %vm9737_vm7 = vmmov %vm9732_vm0  ;;  %v3372_v42 = vadd.f32 %v3360_v33, %v3263_v46 }
 0x8a8   : > { %v3526_v17 = vsel %vm9737_vm7, %v3512_v26, %v8109_v59  ;;  %v3576_v6 = vmul.f32 %v9735_v28, %v3534_v48  ;;  %v3480_v32 = vadd.f32 %v3468_v16, %v3371_v62  ;;  %v3577_v50 = vmul.f32 %v9738_v58, %v3520_v51 }
 0x8a9   : > { %v3536_v61 = vsel %vm4987_vm2, %v3526_v17, 0.0  ;;  %vm9739_vm1 = vcmp.lt.s32.totalorder %v9426_v29, 111  ;;  %v3479_v60 = vadd.f32 %v3467_v35, %v3370_v55  ;;  %vm9741_vm15 = vcmp.le.s32.totalorder %v9446_v10, 14 }
 0x8aa   : > { %v3628_v57 = vsel %vm9739_vm1, %v8111_v52, %v3619_v56  ;;  %v3578_v59 = vmul.f32 %v9738_v58, %v3536_v61  ;;  %vm9740_vm4 = vmmov %vm9739_vm1  ;;  %v3621_v23 = vpop.permute.xlu0 %3620  ;;  %v3603_v63 = vpop.permute.xlu1 %3602  ;;  %v3481_v11 = vadd.f32 %v3469_v21, %v3372_v42  ;;  %v3587_v46 = vadd.f32 %v3575_v13, %v3478_v54  ;;  %v9752_v13 = vld [vmem:[#allocation59_spill] sm:$0xff] }
 0x8ab   : > { %v3634_v27 = vsel %vm9740_vm4, %v3619_v56, %v8111_v52  ;;  %v3642_v30 = vsel %vm9741_vm15, %v3628_v57, 0.0  ;;  %v3588_v9 = vadd.f32 %v3576_v6, %v3479_v60  ;;  %vm9744_vm14 = vmmov %vm9739_vm1  ;;  %v3589_v44 = vadd.f32 %v3577_v50, %v3480_v32  ;;  %v9755_v60 = vld [vmem:[#allocation76_spill] sm:$0xff] }
 0x8ac   : > { %v3643_v15 = vsel %vm5167_vm10, %v3634_v27, 0.0  ;;  %v3684_v4 = vmul.f32 %v9743_v37, %v3642_v30  ;;  %v3629_v8 = vsel %vm9744_vm14, %v8137_v34, %v3621_v23  ;;  %vm9745_vm12 = vmmov %vm9739_vm1  ;;  %v3590_v3 = vadd.f32 %v3578_v59, %v3481_v11 }
 0x8ad   : > { %v3685_v33 = vmul.f32 %v9743_v37, %v3643_v15  ;;  %v3635_v52 = vsel %vm9745_vm12, %v3621_v23, %v8137_v34  ;;  %vm9746_vm0 = vmmov %vm9741_vm15  ;;  %v9748_v34 = vld [vmem:[#allocation74_spill] sm:$0xff]  ;;  %v3477_v6 = vadd.f32 %v8176_v7, %v8158_v20  ;;  %vm9757_vm14 = vcmp.lt.s32.totalorder %v9426_v29, 17 }
 0x8ae   : > { %v8371_v62 = vadd.f32 %v3684_v4, %v3587_v46  ;;  %v3644_v12 = vsel %vm9746_vm0, %v3629_v8, 0.0  ;;  %v3645_v14 = vsel %vm5167_vm10, %v3635_v52, 0.0  ;;  %v3605_v18 = vpop.permute.xlu0 %3604  ;;  %v3615_v35 = vpop.permute.xlu1 %3614  ;;  %v3573_v54 = vmul.f32 %v9748_v34, %v8199_v53  ;;  %vm9749_vm13 = vmmov %vm9739_vm1  ;;  %v4257_v8 = vld [vmem:[%s8987_s7 + $0x298] sm:$0xff]  ;;  %v4256_v52 = vld [vmem:[%s8987_s7 + $0x290] sm:$0xff] }
 0x8af   : > { %v8377_v49 = vadd.f32 %v3685_v33, %v3588_v9  ;;  %v3686_v47 = vmul.f32 %v9747_v1, %v3644_v12  ;;  %v3687_v24 = vmul.f32 %v9747_v1, %v3645_v14  ;;  %v3626_v43 = vsel %vm9749_vm13, %v3603_v63, %v3615_v35  ;;  %vm9750_vm8 = vmmov %vm9739_vm1  ;;  %v4307_v9 = vld [vmem:[%s8989_s9 + $0x18] sm:$0xff]  ;;  %v4306_v33 = vld [vmem:[%s8989_s9 + $0x10] sm:$0xff]  ;;  %v8459_v14 = vpop.f32.mrf.mxu0 }
 0x8b0   : > { %v3632_v16 = vsel %vm9750_vm8, %v3615_v35, %v3603_v63  ;;  %v3722_v21 = vmul.f32 %v8371_v62, %v8371_v62  ;;  %vm9751_vm7 = vmmov %vm9746_vm0  ;;  %v3584_v53 = vadd.f32 %v8211_v40, %v8160_v38  ;;  %v3574_v61 = vmul.f32 %v9748_v34, %v3532_v41  ;;  %v4263_v12 = vld [vmem:[%s8987_s7 + $0x1d8] sm:$0xff]  ;;  %v4269_v1 = vld [vmem:[%s8987_s7 + $0x208] sm:$0xff] }
 0x8b1   : > { %v8389_v26 = vadd.f32 %v3686_v47, %v3589_v44  ;;  %v8391_v56 = vadd.f32 %v3687_v24, %v3590_v3  ;;  %v3638_v48 = vsel %vm9751_vm7, %v3626_v43, 0.0  ;;  %v3639_v28 = vsel %vm5167_vm10, %v3632_v16, 0.0  ;;  %vm9753_vm4 = vmmov %vm9739_vm1  ;;  %v4262_v44 = vld [vmem:[%s8987_s7 + $0x1d0] sm:$0xff]  ;;  %v4268_v3 = vld [vmem:[%s8987_s7 + $0x200] sm:$0xff]  ;;  %v8467_v47 = vpop.f32.mrf.mxu0 }
 0x8b2   : > { %v3680_v51 = vmul.f32 %v9752_v13, %v3638_v48  ;;  %v3681_v17 = vmul.f32 %v9752_v13, %v3639_v28  ;;  %v3723_v55 = vmul.f32 %v8377_v49, %v8377_v49  ;;  %v3617_v42 = vpop.permute.xlu0 %3616  ;;  %v3585_v7 = vadd.f32 %v3573_v54, %v8249_v19  ;;  %vm9754_vm15 = vmmov %vm9746_vm0  ;;  %v4274_v35 = vld [vmem:[%s8987_s7 + $0x230] sm:$0xff]  ;;  %v4275_v34 = vld [vmem:[%s8987_s7 + $0x238] sm:$0xff] }
 0x8b3   : > { %v3724_v38 = vmul.f32 %v8389_v26, %v8389_v26  ;;  %v3725_v40 = vmul.f32 %v8391_v56, %v8391_v56  ;;  %v3627_v20 = vsel %vm9739_vm1, %v3605_v18, %v3617_v42  ;;  %v3633_v2 = vsel %vm9753_vm4, %v3617_v42, %v3605_v18  ;;  %v8469_v24 = vpop.f32.mrf.mxu0  ;;  %v4280_v54 = vld [vmem:[%s8987_s7 + $0x260] sm:$0xff]  ;;  %v4281_v43 = vld [vmem:[%s8987_s7 + $0x268] sm:$0xff]  ;;  %v4292_v48 = vld [vmem:[%s8987_s7 + $0x2f0] sm:$0xff] }
 0x8b4   : > { %v8414_v32 = vadd.f32 %v3680_v51, %v3583_v25  ;;  %v8416_v58 = vadd.f32 %v3681_v17, %v3584_v53  ;;  %v3726_v50 = vadd.f32 %v3723_v55, %v3722_v21  ;;  %v3640_v41 = vsel %vm9754_vm15, %v3627_v20, 0.0  ;;  %v4286_v16 = vld [vmem:[%s8987_s7 + $0x2c0] sm:$0xff]  ;;  %v4287_v21 = vld [vmem:[%s8987_s7 + $0x2c8] sm:$0xff]  ;;  %v4293_v28 = vld [vmem:[%s8987_s7 + $0x2f8] sm:$0xff] }
 0x8b5   : > { %v3729_v57 = vadd.f32 %v3725_v40, %v3724_v38  ;;  %v3641_v25 = vsel %vm5167_vm10, %v3633_v2, 0.0  ;;  %v3682_v59 = vmul.f32 %v9755_v60, %v3640_v41  ;;  %v3586_v19 = vadd.f32 %v3574_v61, %v3477_v6  ;;  %v8475_v18 = vpop.f32.mrf.mxu0  ;;  %v4298_v53 = vld [vmem:[%s8987_s7 + $0x320] sm:$0xff]  ;;  %v4299_v13 = vld [vmem:[%s8987_s7 + $0x328] sm:$0xff]  ;;  %vm9758_vm12 = vmmov %vm9757_vm14 }
 0x8b6   : > { %3727 = vadd.xlane.f32.xlu1 %v3726_v50  ;;  %v3704_v27 = vmul.f32 %v8414_v32, %v8414_v32  ;;  %v3705_v30 = vmul.f32 %v8416_v58, %v8416_v58  ;;  %v3683_v23 = vmul.f32 %v9755_v60, %v3641_v25  ;;  %vm9759_vm0 = vmmov %vm9758_vm12  ;;  %vm9761_vm8 = vcmp.ge.s32.totalorder %v9428_v0, 1 }
 0x8b7   : > { %3730 = vadd.xlane.f32.xlu0 %v3729_v57  ;;  %v8433_v63 = vadd.f32 %v3682_v59, %v3585_v7  ;;  %vm9760_vm13 = vmmov %vm9759_vm0  ;;  %vm9763_vm1 = vcmp.lt.s32.totalorder %v9426_v29, 16 }
 0x8b8   : > { %v3708_v11 = vadd.f32 %v3705_v30, %v3704_v27  ;;  %v8435_v46 = vadd.f32 %v3683_v23, %v3586_v19  ;;  %vm9762_vm7 = vmmov %vm9761_vm8 }
 0x8b9   : > { %v3706_v15 = vmul.f32 %v8433_v63, %v8433_v63  ;;  %vm9765_vm4 = vmmov %vm9763_vm1 }
 0x8ba   : > { %v3707_v37 = vmul.f32 %v8435_v46, %v8435_v46  ;;  %vm9766_vm15 = vmmov %vm9763_vm1 }
 0x8bb   : > { %3709 = vadd.xlane.f32.xlu0 %v3708_v11 }
 0x8bc   : > { %v3711_v4 = vadd.f32 %v3707_v37, %v3706_v15 }
 0x8be   : > { %3712 = vadd.xlane.f32.xlu1 %v3711_v4 }
 0x8cf   : > { %3795 = vperm.xlu1 %4527, %v4307_v9  }
 0x8d1   : > { %3790 = vperm.xlu0 %4526, %v4306_v33  }
 0x8d3   : > { %2817 = vperm.xlu1 %4527, %v4257_v8  }
 0x8d5   : > { %2812 = vperm.xlu0 %4526, %v4256_v52  }
 0x8d7   : > { %2909 = vperm.xlu1 %4527, %v4262_v44  }
 0x8d9   : > { %2914 = vperm.xlu0 %4526, %v4263_v12   ;;  %v9756_v12 = vmov 0  }
 0x8db   : > { %3018 = vperm.xlu1 %4527, %v4268_v3  }
 0x8dd   : > { %3023 = vperm.xlu0 %4526, %v4269_v1  }
 0x8df   : > { %2847 = vrot.lane.b32.xlu1 %v8459_v14, %s9540_s20 }
 0x8e1   : > { %2849 = vrot.lane.b32.xlu0 %v8469_v24, %s9540_s20 }
 0x8e3   : > { %2859 = vrot.lane.b32.xlu1 %v8467_v47, %s9540_s20 }
 0x8e5   : > { %2861 = vrot.lane.b32.xlu0 %v8475_v18, %s9540_s20 }
 0x8e7   : > { %3127 = vperm.xlu1 %4527, %v4274_v35  }
 0x8e9   : > { %3132 = vperm.xlu0 %4526, %v4275_v34  }
 0x8eb   : > { %2956 = vrot.lane.b32.xlu1 %v8459_v14, %s9541_s22 }
 0x8ed   : > { %2958 = vrot.lane.b32.xlu0 %v8469_v24, %s9541_s22 }
 0x8ef   : > { %2968 = vrot.lane.b32.xlu1 %v8467_v47, %s9541_s22 }
 0x8f1   : > { %2970 = vrot.lane.b32.xlu0 %v8475_v18, %s9541_s22 }
 0x8f3   : > { %3236 = vperm.xlu1 %4527, %v4280_v54  }
 0x8f5   : > { %3241 = vperm.xlu0 %4526, %v4281_v43  }
 0x8f7   : > { %3065 = vrot.lane.b32.xlu1 %v8459_v14, %s9542_s24 }
 0x8f9   : > { %3067 = vrot.lane.b32.xlu0 %v8469_v24, %s9542_s24 }
 0x8fb   : > { %3077 = vrot.lane.b32.xlu1 %v8467_v47, %s9542_s24 }
 0x8fd   : > { %3079 = vrot.lane.b32.xlu0 %v8475_v18, %s9542_s24 }
 0x8ff   : > { %3345 = vperm.xlu1 %4527, %v4286_v16  }
 0x901   : > { %3350 = vperm.xlu0 %4526, %v4287_v21  }
 0x903   : > { %3174 = vrot.lane.b32.xlu1 %v8459_v14, %s9543_s29 }
 0x905   : > { %3176 = vrot.lane.b32.xlu0 %v8469_v24, %s9543_s29 }
 0x907   : > { %3186 = vrot.lane.b32.xlu1 %v8467_v47, %s9543_s29 }
 0x909   : > { %3188 = vrot.lane.b32.xlu0 %v8475_v18, %s9543_s29 }
 0x90b   : > { %3454 = vperm.xlu1 %4527, %v4292_v48  }
 0x90d   : > { %3459 = vperm.xlu0 %4526, %v4293_v28  }
 0x90f   : > { %3283 = vrot.lane.b32.xlu1 %v8459_v14, %s9395_s15 }
 0x911   : > { %3285 = vrot.lane.b32.xlu0 %v8469_v24, %s9395_s15 }
 0x913   : > { %3295 = vrot.lane.b32.xlu1 %v8467_v47, %s9395_s15 }
 0x915   : > { %3297 = vrot.lane.b32.xlu0 %v8475_v18, %s9395_s15 }
 0x917   : > { %3563 = vperm.xlu1 %4527, %v4298_v53  }
 0x919   : > { %3568 = vperm.xlu0 %4526, %v4299_v13  }
 0x93f   : > { %v3728_v51 = vpop.xlane.xlu1 %3727 }
 0x940   : > { %v3732_v17 = vmax.f32 %v3728_v51, 1e-24  ;;  %v3731_v55 = vpop.xlane.xlu0 %3730 }
 0x941   : > { %v3733_v6 = vmax.f32 %v3731_v55, 1e-24 }
 0x942   : > { %4556 = vrsqrt.f32 %v3732_v17 }
 0x943   : > { %4558 = vrsqrt.f32 %v3733_v6 }
 0x944   : > { %v3710_v61 = vpop.xlane.xlu0 %3709 }
 0x945   : > { %v3714_v42 = vmax.f32 %v3710_v61, 1e-24 }
 0x947   : > { %v3713_v38 = vpop.xlane.xlu1 %3712  ;;  %4560 = vrsqrt.f32 %v3714_v42 }
 0x948   : > { %v3715_v40 = vmax.f32 %v3713_v38, 1e-24 }
 0x94a   : > { %4562 = vrsqrt.f32 %v3715_v40 }
 0x94b   : > { %v8545_v20 = vpop.permute.xlu1 %3795 }
 0x94c   : > { %v8543_v50 = vpop.permute.xlu0 %3790 }
 0x94f   : > { %v4557_v7 = vpop.eup %4556  ;;  %v2818_v57 = vpop.permute.xlu1 %2817 }
 0x950   : > { %v4559_v2 = vpop.eup %4558  ;;  %v2813_v41 = vpop.permute.xlu0 %2812  ;;  %v3737_v25 = vmul.f32 %v4557_v7, %v8377_v49  ;;  %v3736_v59 = vmul.f32 %v4557_v7, %v8371_v62 }
 0x951   : > { %v3739_v60 = vmul.f32 %v4559_v2, %v8391_v56  ;;  %v3738_v27 = vmul.f32 %v4559_v2, %v8389_v26  ;;  %v2828_v3 = vmul.f32 %v2813_v41, %v8459_v14  ;;  %v2829_v1 = vmul.f32 %v2813_v41, %v8467_v47 }
 0x953   : > { %v2910_v19 = vpop.permute.xlu1 %2909  ;;  %v3743_v23 = vpack.c.bf16 %v3739_v60, %v3737_v25  ;;  %v3742_v11 = vpack.c.bf16 %v3738_v27, %v3736_v59 }
 0x954   : > { %v2915_v30 = vpop.permute.xlu0 %2914  ;;  %v4561_v15 = vpop.eup %4560 }
 0x955   : > { %3758 = vmatprep.subr.bf16.mxu1 %v3743_v23  ;;  %v3719_v33 = vmul.f32 %v4561_v15, %v8416_v58  ;;  %v3718_v56 = vmul.f32 %v4561_v15, %v8414_v32  ;;  %v2830_v58 = vmul.f32 %v2818_v57, %v8469_v24 }
 0x956   : > { %3759 = vmatpush1.bf16.xpose.msra.mxu1 %v3742_v11 }
 0x957   : > { %v4563_v37 = vpop.eup %4562  ;;  %v3019_v9 = vpop.permute.xlu1 %3018 }
 0x958   : > { %v3024_v4 = vpop.permute.xlu0 %3023  ;;  %v3721_v49 = vmul.f32 %v4563_v37, %v8435_v46  ;;  %v3720_v62 = vmul.f32 %v4563_v37, %v8433_v63  ;;  %v2831_v46 = vmul.f32 %v2818_v57, %v8475_v18 }
 0x95a   : > { %v3741_v8 = vpack.c.bf16 %v3721_v49, %v3719_v33  ;;  %v3740_v26 = vpack.c.bf16 %v3720_v62, %v3718_v56 }
 0x95b   : > { %v2848_v44 = vpop.permute.xlu1 %2847 }
 0x95c   : > { %v2850_v52 = vpop.permute.xlu0 %2849  ;;  %3776 = vmatprep.mubr.bf16.mxu1 %v3741_v8 }
 0x95d   : > { %3777 = vmatmul.mubr.bf16.vlgmr.msra.gmra.mxu1 %v3740_v26 }
 0x95e   : > { %3862 = vmatprep.mubr.bf16.mxu1 %v9756_v12 }
 0x95f   : > { %v2860_v32 = vpop.permute.xlu1 %2859 }
 0x960   : > { %v2862_v35 = vpop.permute.xlu0 %2861  ;;  %v2867_v54 = vsel %vm9759_vm0, %v2848_v44, %v2860_v32  ;;  %v2873_v43 = vsel %vm9760_vm13, %v2860_v32, %v2848_v44  ;;  %vm9771_vm13 = vcmp.lt.s32.totalorder %v9426_v29, 1 }
 0x961   : > { %v2868_v63 = vsel %vm9757_vm14, %v2850_v52, %v2862_v35  ;;  %v2874_v34 = vsel %vm9758_vm12, %v2862_v35, %v2850_v52  ;;  %v2883_v48 = vsel %vm5175_vm9, %v2873_v43, 0.0  ;;  %v2884_v28 = vsel %vm9762_vm7, %v2867_v54, 0.0 }
 0x962   : > { %v2885_v16 = vsel %vm5175_vm9, %v2874_v34, 0.0  ;;  %v2886_v21 = vsel %vm9761_vm8, %v2868_v63, 0.0  ;;  %v2925_v51 = vmul.f32 %v2910_v19, %v2883_v48  ;;  %v2926_v17 = vmul.f32 %v2910_v19, %v2884_v28  ;;  %vm9764_vm9 = vmmov %vm9763_vm1 }
 0x963   : > { %v2927_v53 = vmul.f32 %v2915_v30, %v2885_v16  ;;  %v2928_v13 = vmul.f32 %v2915_v30, %v2886_v21  ;;  %v3128_v6 = vpop.permute.xlu1 %3127  ;;  %vm9767_vm14 = vcmp.lt.s32.totalorder %v9426_v29, 15 }
 0x964   : > { %v3133_v55 = vpop.permute.xlu0 %3132  ;;  %v2937_v38 = vadd.f32 %v2925_v51, %v2828_v3  ;;  %v2938_v40 = vadd.f32 %v2926_v17, %v2829_v1  ;;  %vm9768_vm12 = vmmov %vm9767_vm14 }
 0x965   : > { %v2939_v61 = vadd.f32 %v2927_v53, %v2830_v58  ;;  %v2940_v42 = vadd.f32 %v2928_v13, %v2831_v46 }
 0x967   : > { %v2957_v2 = vpop.permute.xlu1 %2956 }
 0x968   : > { %v2959_v7 = vpop.permute.xlu0 %2958 }
 0x96b   : > { %v2969_v57 = vpop.permute.xlu1 %2968 }
 0x96c   : > { %v2971_v41 = vpop.permute.xlu0 %2970  ;;  %v2976_v60 = vsel %vm9765_vm4, %v2957_v2, %v2969_v57  ;;  %v2982_v59 = vsel %vm9766_vm15, %v2969_v57, %v2957_v2 }
 0x96d   : > { %v2977_v45 = vsel %vm9763_vm1, %v2959_v7, %v2971_v41  ;;  %v2983_v25 = vsel %vm9764_vm9, %v2971_v41, %v2959_v7  ;;  %v2992_v19 = vsel %vm5116_vm5, %v2982_v59, 0.0  ;;  %v3035_v23 = vmul.f32 %v3019_v9, %v2976_v60 }
 0x96e   : > { %v2994_v27 = vsel %vm5116_vm5, %v2983_v25, 0.0  ;;  %v3037_v30 = vmul.f32 %v3024_v4, %v2977_v45  ;;  %v3034_v15 = vmul.f32 %v3019_v9, %v2992_v19  ;;  %vm9769_vm5 = vmmov %vm9768_vm12  ;;  %vm9775_vm1 = vcmp.ge.s32.totalorder %v9446_v10, 1 }
 0x96f   : > { %v3036_v11 = vmul.f32 %v3024_v4, %v2994_v27  ;;  %v3047_v33 = vadd.f32 %v3035_v23, %v2938_v40  ;;  %v3237_v56 = vpop.permute.xlu1 %3236  ;;  %vm9770_vm0 = vmmov %vm9769_vm5  ;;  %vm9776_vm9 = vcmp.ge.s32.totalorder %v9428_v0, 1 }
 0x970   : > { %v3049_v37 = vadd.f32 %v3037_v30, %v2940_v42  ;;  %v3242_v49 = vpop.permute.xlu0 %3241  ;;  %v3046_v8 = vadd.f32 %v3034_v15, %v2937_v38  ;;  %vm9777_vm4 = vmmov %vm9775_vm1 }
 0x971   : > { %v3048_v62 = vadd.f32 %v3036_v11, %v2939_v61  ;;  %vm9778_vm15 = vmmov %vm9776_vm9 }
 0x973   : > { %v3066_v52 = vpop.permute.xlu1 %3065 }
 0x974   : > { %v3068_v26 = vpop.permute.xlu0 %3067 }
 0x977   : > { %v3078_v3 = vpop.permute.xlu1 %3077 }
 0x978   : > { %v3080_v44 = vpop.permute.xlu0 %3079  ;;  %v3085_v4 = vsel %vm9769_vm5, %v3066_v52, %v3078_v3  ;;  %v3091_v9 = vsel %vm9770_vm0, %v3078_v3, %v3066_v52 }
 0x979   : > { %v3086_v1 = vsel %vm9767_vm14, %v3068_v26, %v3080_v44  ;;  %v3092_v31 = vsel %vm9768_vm12, %v3080_v44, %v3068_v26  ;;  %v3101_v35 = vsel %vm5132_vm3, %v3091_v9, 0.0  ;;  %v3102_v32 = vsel %vm476_vm11, %v3085_v4, 0.0 }
 0x97a   : > { %v3103_v58 = vsel %vm5132_vm3, %v3092_v31, 0.0  ;;  %v3104_v46 = vsel %vm476_vm11, %v3086_v1, 0.0  ;;  %v3143_v54 = vmul.f32 %v3128_v6, %v3101_v35  ;;  %v3144_v43 = vmul.f32 %v3128_v6, %v3102_v32  ;;  %vm9772_vm3 = vmmov %vm9771_vm13 }
 0x97b   : > { %v3145_v63 = vmul.f32 %v3133_v55, %v3103_v58  ;;  %v3146_v34 = vmul.f32 %v3133_v55, %v3104_v46  ;;  %v3346_v21 = vpop.permute.xlu1 %3345  ;;  %vm9773_vm8 = vmmov %vm9772_vm3  ;;  %vm9779_vm14 = vcmp.lt.s32.totalorder %v9426_v29, 127 }
 0x97c   : > { %v3351_v16 = vpop.permute.xlu0 %3350  ;;  %v3155_v53 = vadd.f32 %v3143_v54, %v3046_v8  ;;  %v3156_v13 = vadd.f32 %v3144_v43, %v3047_v33  ;;  %vm9774_vm7 = vmmov %vm9772_vm3 }
 0x97d   : > { %v3157_v48 = vadd.f32 %v3145_v63, %v3048_v62  ;;  %v3158_v28 = vadd.f32 %v3146_v34, %v3049_v37  ;;  %vm9780_vm12 = vmmov %vm9779_vm14  ;;  %v8648_v34 = vpop.f32.mrf.mxu1 }
 0x97e   : > { %vm9781_vm5 = vmmov %vm9780_vm12 }
 0x97f   : > { %v3175_v17 = vpop.permute.xlu1 %3174  ;;  %vm9782_vm0 = vmmov %vm9781_vm5  ;;  %v8650_v54 = vpop.f32.mrf.mxu1 }
 0x980   : > { %v3177_v51 = vpop.permute.xlu0 %3176 }
 0x981   : > { %v8652_v43 = vpop.f32.mrf.mxu1 }
 0x983   : > { %v3187_v42 = vpop.permute.xlu1 %3186  ;;  %v8654_v0 = vpop.f32.mrf.mxu1 }
 0x984   : > { %v3189_v61 = vpop.permute.xlu0 %3188  ;;  %v3194_v55 = vsel %vm9773_vm8, %v3175_v17, %v3187_v42  ;;  %v3200_v6 = vsel %vm9774_vm7, %v3187_v42, %v3175_v17  ;;  %v4637_v42 = vld [vmem:[%s8990_s10 + $0x8] sm:$0xff]  ;;  %vm9787_vm7 = vcmp.lt.s32.totalorder %v9426_v29, 113 }
 0x985   : > { %v3195_v5 = vsel %vm9771_vm13, %v3177_v51, %v3189_v61  ;;  %v3201_v38 = vsel %vm9772_vm3, %v3189_v61, %v3177_v51  ;;  %v3210_v2 = vsel %vm9777_vm4, %v3200_v6, 0.0  ;;  %v3211_v41 = vsel %vm9778_vm15, %v3194_v55, 0.0 }
 0x986   : > { %v3212_v40 = vsel %vm9775_vm1, %v3201_v38, 0.0  ;;  %v3213_v7 = vsel %vm9776_vm9, %v3195_v5, 0.0  ;;  %v3252_v25 = vmul.f32 %v3237_v56, %v3210_v2  ;;  %v3253_v60 = vmul.f32 %v3237_v56, %v3211_v41  ;;  %v4305_v38 = vld [vmem:[%s8987_s7 + $0x358] sm:$0xff]  ;;  %vm9788_vm1 = vmmov %vm9787_vm7 }
 0x987   : > { %v3254_v57 = vmul.f32 %v3242_v49, %v3212_v40  ;;  %v3255_v45 = vmul.f32 %v3242_v49, %v3213_v7  ;;  %v8622_v27 = vpop.permute.xlu1 %3454  ;;  %vm9783_vm13 = vcmp.le.s32.totalorder %v9446_v10, 14  ;;  %vm9789_vm9 = vmmov %vm9777_vm4 }
 0x988   : > { %v8620_v59 = vpop.permute.xlu0 %3459  ;;  %v3264_v23 = vadd.f32 %v3252_v25, %v3155_v53  ;;  %v3265_v11 = vadd.f32 %v3253_v60, %v3156_v13  ;;  %vm9784_vm3 = vmmov %vm9783_vm13 }
 0x989   : > { %v3266_v30 = vadd.f32 %v3254_v57, %v3157_v48  ;;  %v3267_v19 = vadd.f32 %v3255_v45, %v3158_v28  ;;  %v4636_v28 = vld [vmem:[%s8990_s10] sm:$0xff]  ;;  %vm9791_vm15 = vmmov %vm9788_vm1 }
 0x98b   : > { %v3284_v37 = vpop.permute.xlu1 %3283 }
 0x98c   : > { %v3286_v15 = vpop.permute.xlu0 %3285 }
 0x98f   : > { %v3296_v62 = vpop.permute.xlu1 %3295 }
 0x990   : > { %v3298_v33 = vpop.permute.xlu0 %3297  ;;  %v3303_v56 = vsel %vm9781_vm5, %v3284_v37, %v3296_v62  ;;  %v3309_v26 = vsel %vm9782_vm0, %v3296_v62, %v3284_v37  ;;  %vm9795_vm0 = vmmov %vm9789_vm9 }
 0x991   : > { %v3304_v8 = vsel %vm9779_vm14, %v3286_v15, %v3298_v33  ;;  %v3310_v49 = vsel %vm9780_vm12, %v3298_v33, %v3286_v15  ;;  %v3319_v3 = vsel %vm9784_vm3, %v3303_v56, 0.0  ;;  %v3320_v1 = vsel %vm476_vm11, %v3309_v26, 0.0  ;;  %vm9792_vm14 = vmmov %vm9788_vm1 }
 0x992   : > { %v3321_v52 = vsel %vm9783_vm13, %v3304_v8, 0.0  ;;  %v3322_v44 = vsel %vm476_vm11, %v3310_v49, 0.0  ;;  %v3361_v9 = vmul.f32 %v3346_v21, %v3319_v3  ;;  %v3362_v58 = vmul.f32 %v3346_v21, %v3320_v1 }
 0x993   : > { %v3363_v31 = vmul.f32 %v3351_v16, %v3321_v52  ;;  %v3364_v4 = vmul.f32 %v3351_v16, %v3322_v44  ;;  %vm9785_vm11 = vcmask 130048   ;;  %v3564_v55 = vpop.permute.xlu1 %3563  ;;  %vm9793_vm12 = vcmp.lt.s32.totalorder %v9426_v29, 112 }
 0x994   : > { %v8644_v32 = vadd.f32 %v3361_v9, %v3264_v23  ;;  %v8646_v63 = vadd.f32 %v3362_v58, %v3265_v11  ;;  %vm9786_vm8 = vmmov %vm9785_vm11  ;;  %v3569_v6 = vpop.permute.xlu0 %3568 }
 0x995   : > { %v8640_v46 = vadd.f32 %v3363_v31, %v3266_v30  ;;  %v8642_v35 = vadd.f32 %v3364_v4, %v3267_v19  ;;  %vm9790_vm4 = vmmov %vm9786_vm8 }
 0x996   : > { %vm9794_vm5 = vmmov %vm9793_vm12 }
 0x997   : > { %vm9796_vm13 = vmmov %vm9790_vm4 }
 0x998   : > { %vm9797_vm3 = vmmov %vm9794_vm5 }
 0xa1d   : > { %v3778_v48 = vpop.f32.mrf.mxu1 }
 0xa1e   : > { %v3798_v16 = vmul.f32 %v8543_v50, %v3778_v48 }
 0xa1f   : > { %v3780_v21 = vpop.f32.mrf.mxu1 }
 0xa20   : > { %v3800_v53 = vadd.f32 %v4636_v28, %v3798_v16 }
 0xa21   : > { %v3781_v13 = vpop.f32.mrf.mxu1 }
 0xa22   : > { %v3799_v51 = vmul.f32 %v8545_v20, %v3781_v13  ;;  %v3802_v17 = vsel %vm9785_vm11, %v3800_v53, -inf  ;;  %v4304_v20 = vld [vmem:[%s8987_s7 + $0x350] sm:$0xff]  ;;  %vm9798_vm11 = vmmov %vm9797_vm3 }
 0xa23   : > { %3803 = vmax.xlane.f32.xlu1 %v3802_v17  ;;  %v3783_v61 = vpop.f32.mrf.mxu1 }
 0xa24   : > { %v3801_v5 = vadd.f32 %v4637_v42, %v3799_v51 }
 0xa26   : > { %v3805_v50 = vsel %vm9786_vm8, %v3801_v5, -inf  ;;  %vm9801_vm8 = vcmp.le.s32.totalorder %v9446_v10, 14 }
 0xa27   : > { %3806 = vmax.xlane.f32.xlu0 %v3805_v50 }
 0xa34   : > { %3392 = vrot.lane.b32.xlu1 %v8459_v14, %s9396_s28 }
 0xa38   : > { %3404 = vrot.lane.b32.xlu1 %v8467_v47, %s9396_s28 }
 0xa3c   : > { %3672 = vperm.xlu1 %4527, %v4304_v20  }
 0xa3d   : > { %3394 = vrot.lane.b32.xlu0 %v8469_v24, %s9396_s28 }
 0xa40   : > { %3501 = vrot.lane.b32.xlu1 %v8459_v14, %s9397_s14 }
 0xa41   : > { %3406 = vrot.lane.b32.xlu0 %v8475_v18, %s9396_s28 }
 0xa44   : > { %3513 = vrot.lane.b32.xlu1 %v8467_v47, %s9397_s14 }
 0xa45   : > { %3677 = vperm.xlu0 %4526, %v4305_v38  }
 0xa48   : > { %3610 = vrot.lane.b32.xlu1 %v8459_v14, %s9398_s16 }
 0xa49   : > { %3503 = vrot.lane.b32.xlu0 %v8469_v24, %s9397_s14 }
 0xa4d   : > { %3515 = vrot.lane.b32.xlu0 %v8475_v18, %s9397_s14 }
 0xa51   : > { %3612 = vrot.lane.b32.xlu0 %v8469_v24, %s9398_s16 }
 0xaac   : > { %v3804_v40 = vpop.xlane.xlu1 %3803 }
 0xaad   : > { %v3808_v7 = vsub.f32 %v3800_v53, %v3804_v40 }
 0xaaf   : > { %v3810_v2 = vmul.f32 1.442695, %v3808_v7 }
 0xab0   : > { %v3807_v41 = vpop.xlane.xlu0 %3806  ;;  %v3393_v57 = vpop.permute.xlu1 %3392 }
 0xab1   : > { %4564 = vpow2.f32 %v3810_v2  ;;  %v3809_v45 = vsub.f32 %v3801_v5, %v3807_v41 }
 0xab3   : > { %v3812_v25 = vmul.f32 1.442695, %v3809_v45 }
 0xab4   : > { %v3405_v14 = vpop.permute.xlu1 %3404  ;;  %v3395_v60 = vpop.permute.xlu0 %3394 }
 0xab5   : > { %4566 = vpow2.f32 %v3812_v25  ;;  %v3412_v30 = vsel %vm9787_vm7, %v3393_v57, %v3405_v14  ;;  %v3418_v24 = vsel %vm9788_vm1, %v3405_v14, %v3393_v57 }
 0xab6   : > { %v3428_v23 = vsel %vm9789_vm9, %v3412_v30, 0.0  ;;  %v3429_v11 = vsel %vm5009_vm6, %v3418_v24, 0.0  ;;  %vm9804_vm9 = vmmov %vm9801_vm8 }
 0xab7   : > { %v3470_v62 = vmul.f32 %v8622_v27, %v3428_v23  ;;  %v3471_v8 = vmul.f32 %v8622_v27, %v3429_v11 }
 0xab8   : > { %v8694_v19 = vpop.permute.xlu1 %3672  ;;  %v3407_v15 = vpop.permute.xlu0 %3406 }
 0xab9   : > { %v3413_v56 = vsel %vm9791_vm15, %v3395_v60, %v3407_v15  ;;  %v3419_v44 = vsel %vm9792_vm14, %v3407_v15, %v3395_v60  ;;  %v3482_v27 = vadd.f32 %v3470_v62, %v8644_v32  ;;  %v3483_v58 = vadd.f32 %v3471_v8, %v8646_v63 }
 0xaba   : > { %v3430_v48 = vsel %vm9795_vm0, %v3413_v56, 0.0  ;;  %v3431_v28 = vsel %vm5009_vm6, %v3419_v44, 0.0 }
 0xabb   : > { %v3472_v32 = vmul.f32 %v8620_v59, %v3430_v48  ;;  %v3473_v17 = vmul.f32 %v8620_v59, %v3431_v28  ;;  %v4641_v48 = vld [vmem:[%s8984_s4 + $0xe0] sm:$0xff] }
 0xabc   : > { %v3502_v37 = vpop.permute.xlu1 %3501  ;;  %v4645_v28 = vld [vmem:[%s8984_s4 + $0xc0] sm:$0xff] }
 0xabd   : > { %v3484_v5 = vadd.f32 %v3472_v32, %v8640_v46  ;;  %v3485_v20 = vadd.f32 %v3473_v17, %v8642_v35  ;;  %v4649_v32 = vld [vmem:[%s8984_s4 + $0xa0] sm:$0xff]  ;;  %v4650_v17 = vld [vmem:[%s8984_s4 + $0x98] sm:$0xff] }
 0xabe   : > { %v8702_v33 = vpop.eup %4564 }
 0xabf   : > { %v3814_v49 = vsel %vm9790_vm4, %v8702_v33, 0.0 }
 0xac0   : > { %v3678_v26 = vpop.permute.xlu0 %3677  ;;  %3815 = vadd.xlane.f32.xlu0 %v3814_v49  ;;  %v3514_v52 = vpop.permute.xlu1 %3513 }
 0xac1   : > { %v3521_v3 = vsel %vm9793_vm12, %v3502_v37, %v3514_v52  ;;  %v3527_v1 = vsel %vm9794_vm5, %v3514_v52, %v3502_v37 }
 0xac2   : > { %v4567_v31 = vpop.eup %4566  ;;  %v3538_v4 = vsel %vm4987_vm2, %v3527_v1, 0.0  ;;  %v3579_v9 = vmul.f32 %v3564_v55, %v3521_v3 }
 0xac3   : > { %v3580_v16 = vmul.f32 %v3564_v55, %v3538_v4  ;;  %v3817_v21 = vsel %vm9796_vm13, %v4567_v31, 0.0  ;;  %v4539_v4 = vld [vmem:[%s8988_s8 + $0x8] sm:$0xff]  }
 0xac4   : > { %v3591_v53 = vadd.f32 %v3579_v9, %v3482_v27  ;;  %3818 = vadd.xlane.f32.xlu1 %v3817_v21  ;;  %v3504_v13 = vpop.permute.xlu0 %3503  ;;  %v3611_v7 = vpop.permute.xlu1 %3610  ;;  %v4639_v9 = vld [vmem:[%s8984_s4 + $0xf0] sm:$0xff]  ;;  %v4644_v21 = vld [vmem:[%s8984_s4 + $0xc8] sm:$0xff] }
 0xac5   : > { %v3592_v51 = vadd.f32 %v3580_v16, %v3483_v58  ;;  %v4640_v58 = vld [vmem:[%s8984_s4 + $0xe8] sm:$0xff]  ;;  %v4643_v16 = vld [vmem:[%s8984_s4 + $0xd0] sm:$0xff] }
 0xac8   : > { %v3516_v61 = vpop.permute.xlu0 %3515 }
 0xac9   : > { %v3522_v63 = vsel %vm9797_vm3, %v3504_v13, %v3516_v61  ;;  %v3528_v42 = vsel %vm9798_vm11, %v3516_v61, %v3504_v13  ;;  %v4647_v13 = vld [vmem:[%s8984_s4 + $0xb0] sm:$0xff] }
 0xaca   : > { %v3540_v36 = vsel %vm4987_vm2, %v3528_v42, 0.0  ;;  %v3581_v50 = vmul.f32 %v3569_v6, %v3522_v63  ;;  %vm9799_vm2 = vcmp.lt.s32.totalorder %v9426_v29, 111  ;;  %v4651_v61 = vld [vmem:[%s8984_s4 + $0x90] sm:$0xff]  ;;  %v4652_v63 = vld [vmem:[%s8984_s4 + $0x88] sm:$0xff]  ;;  %v4653_v42 = vld [vmem:[%s8984_s4 + $0x80] sm:$0xff] }
 0xacb   : > { %v3582_v38 = vmul.f32 %v3569_v6, %v3540_v36  ;;  %vm9800_vm6 = vmmov %vm9799_vm2  ;;  %v4655_v36 = vld [vmem:[%s8984_s4 + $0x70] sm:$0xff] }
 0xacc   : > { %v3593_v55 = vadd.f32 %v3581_v50, %v3484_v5  ;;  %v3613_v59 = vpop.permute.xlu0 %3612  ;;  %vm9802_vm7 = vmmov %vm9799_vm2  ;;  %v4654_v5 = vld [vmem:[%s8984_s4 + $0x78] sm:$0xff]  ;;  %v4656_v50 = vld [vmem:[%s8984_s4 + $0x68] sm:$0xff] }
 0xacd   : > { %v3594_v40 = vadd.f32 %v3582_v38, %v3485_v20  ;;  %vm9803_vm1 = vmmov %vm9799_vm2  ;;  %v4657_v20 = vld [vmem:[%s8984_s4 + $0x60] sm:$0xff]  ;;  %v4658_v38 = vld [vmem:[%s8984_s4 + $0x58] sm:$0xff] }
 0xad5   : > { %3622 = vrot.lane.b32.xlu1 %v8467_v47, %s9398_s16 }
 0xad6   : > { %3624 = vrot.lane.b32.xlu0 %v8475_v18, %s9398_s16 }
 0xb49   : > { %v3816_v2 = vpop.xlane.xlu0 %3815 }
 0xb4a   : > { %4568 = vrcp.f32 %v3816_v2  ;;  %v4663_v2 = vld [vmem:[%s8984_s4 + $0x30] sm:$0xff] }
 0xb4d   : > { %v3625_v46 = vpop.permute.xlu0 %3624  ;;  %v3819_v41 = vpop.xlane.xlu1 %3818 }
 0xb4e   : > { %v3631_v39 = vsel %vm9799_vm2, %v3613_v59, %v3625_v46  ;;  %v3637_v35 = vsel %vm9800_vm6, %v3625_v46, %v3613_v59  ;;  %4570 = vrcp.f32 %v3819_v41  ;;  %v4661_v59 = vld [vmem:[%s8984_s4 + $0x40] sm:$0xff]  ;;  %v4664_v46 = vld [vmem:[%s8984_s4 + $0x28] sm:$0xff] }
 0xb4f   : > { %v3648_v6 = vsel %vm9801_vm8, %v3631_v39, 0.0  ;;  %v3649_v47 = vsel %vm5167_vm10, %v3637_v35, 0.0  ;;  %v4665_v41 = vld [vmem:[%s8984_s4 + $0x20] sm:$0xff]  ;;  %v4666_v39 = vld [vmem:[%s8984_s4 + $0x18] sm:$0xff]  ;;  %v4667_v35 = vld [vmem:[%s8984_s4 + $0x10] sm:$0xff] }
 0xb50   : > { %v3690_v57 = vmul.f32 %v3678_v26, %v3648_v6  ;;  %v3691_v45 = vmul.f32 %v3678_v26, %v3649_v47  ;;  %v4668_v6 = vld [vmem:[%s8984_s4 + $0x8] sm:$0xff]  ;;  %v4669_v47 = vld [vmem:[%s8984_s4] sm:$0xff] }
 0xb51   : > { %v3623_v18 = vpop.permute.xlu1 %3622 }
 0xb52   : > { %v3630_v25 = vsel %vm9802_vm7, %v3611_v7, %v3623_v18  ;;  %v3636_v14 = vsel %vm9803_vm1, %v3623_v18, %v3611_v7  ;;  %v3702_v11 = vadd.f32 %v3690_v57, %v3593_v55  ;;  %v3703_v15 = vadd.f32 %v3691_v45, %v3594_v40  ;;  %v4659_v55 = vld [vmem:[%s8984_s4 + $0x50] sm:$0xff]  ;;  %v4660_v40 = vld [vmem:[%s8984_s4 + $0x48] sm:$0xff]  ;;  %v4662_v7 = vld [vmem:[%s8984_s4 + $0x38] sm:$0xff] }
 0xb53   : > { %v3646_v60 = vsel %vm9804_vm9, %v3630_v25, 0.0  ;;  %v3647_v30 = vsel %vm5167_vm10, %v3636_v14, 0.0  ;;  %vm9806_vm10 = vmmov %vm9790_vm4  ;;  %v4670_v18 = vld [vmem:[%s8984_s4 + $0x1f8] sm:$0xff]  ;;  %v4671_v57 = vld [vmem:[%s8984_s4 + $0x1f0] sm:$0xff] }
 0xb54   : > { %v3688_v24 = vmul.f32 %v8694_v19, %v3646_v60  ;;  %v3689_v23 = vmul.f32 %v8694_v19, %v3647_v30  ;;  %v4672_v45 = vld [vmem:[%s8984_s4 + $0x1e8] sm:$0xff]  ;;  %v4673_v25 = vld [vmem:[%s8984_s4 + $0x1e0] sm:$0xff]  ;;  %v4674_v14 = vld [vmem:[%s8984_s4 + $0x1d8] sm:$0xff] }
 0xb55   : > { %v4675_v60 = vld [vmem:[%s8984_s4 + $0x1d0] sm:$0xff]  ;;  %v4676_v30 = vld [vmem:[%s8984_s4 + $0x1c8] sm:$0xff] }
 0xb56   : > { %v3700_v37 = vadd.f32 %v3688_v24, %v3591_v53  ;;  %v3701_v62 = vadd.f32 %v3689_v23, %v3592_v51  ;;  %v4646_v53 = vld [vmem:[%s8984_s4 + $0xb8] sm:$0xff]  ;;  %v4648_v51 = vld [vmem:[%s8984_s4 + $0xa8] sm:$0xff]  ;;  %v4677_v24 = vld [vmem:[%s8984_s4 + $0x1c0] sm:$0xff] }
 0xb57   : > { %v4569_v56 = vpop.eup %4568  ;;  %v4678_v23 = vld [vmem:[%s8984_s4 + $0x1b8] sm:$0xff] }
 0xb58   : > { %v3826_v8 = vpack.c.bf16 %v3703_v15, %v3701_v62  ;;  %v3825_v49 = vpack.c.bf16 %v3702_v11, %v3700_v37  ;;  %v3822_v10 = vmul.f32 %v4569_v56, %v8702_v33  ;;  %v4638_v33 = vld [vmem:[%s8984_s4 + $0xf8] sm:$0xff]  ;;  %v4679_v11 = vld [vmem:[%s8984_s4 + $0x1b0] sm:$0xff]  ;;  %v4680_v15 = vld [vmem:[%s8984_s4 + $0x1a8] sm:$0xff] }
 0xb59   : > { %v4681_v37 = vld [vmem:[%s8984_s4 + $0x1a0] sm:$0xff]  ;;  %v4682_v62 = vld [vmem:[%s8984_s4 + $0x198] sm:$0xff] }
 0xb5a   : > { %3844 = vmatprep.subr.bf16.mxu1 %v3826_v8  ;;  %v4683_v8 = vld [vmem:[%s8984_s4 + $0x190] sm:$0xff]  ;;  %v4685_v56 = vld [vmem:[%s8984_s4 + $0x180] sm:$0xff] }
 0xb5b   : > { %v4571_v29 = vpop.eup %4570  ;;  %3845 = vmatpush1.bf16.msra.mxu1 %v3825_v49  ;;  %v4684_v49 = vld [vmem:[%s8984_s4 + $0x188] sm:$0xff] }
 0xb5c   : > { %v3823_v26 = vmul.f32 %v4571_v29, %v4567_v31  ;;  %v9805_v31 = vld [vmem:[#allocation14_spill] sm:$0xff]  ;;  %v4686_v29 = vld [vmem:[%s8984_s4 + $0x178] sm:$0xff] }
 0xb5e   : > { %v3824_v52 = vpack.c.bf16 %v3823_v26, %v3822_v10  ;;  %v4687_v10 = vld [vmem:[%s8984_s4 + $0x170] sm:$0xff]  ;;  %v4688_v26 = vld [vmem:[%s8984_s4 + $0x168] sm:$0xff] }
 0xb60   : > { %4308 = vmatmul.mubr.msk.bf16.vlgmr.msra.gmra.mxu1 %vm9790_vm4, %v3824_v52  ;;  %v4689_v52 = vld [vmem:[%s8984_s4 + $0x160] sm:$0xff] }
 0xb61   : > { %3918 = vmatprep.mubr.bf16.mxu1 %v9756_v12  ;;  %v2682_v12 = vadd.f32 %v8650_v54, %v9805_v31  ;;  %v4642_v54 = vld [vmem:[%s8984_s4 + $0xd8] sm:$0xff] }
 0xb62   : > { %v4698_v31 = vld [vmem:[%s8984_s4 + $0x118] sm:$0xff] }
 0xc20   : > { %v3864_v22 = vpop.f32.mrf.mxu1 }
 0xc22   : > { %v3866_v19 = vpop.f32.mrf.mxu1 }
 0xc24   : > { %v3868_v44 = vpop.f32.mrf.mxu1 }
 0xc25   : > { %v3876_v27 = vpack.c.bf16 %v3868_v44, %v3864_v22  ;;  %v4690_v22 = vld [vmem:[%s8984_s4 + $0x158] sm:$0xff]  ;;  %v4692_v44 = vld [vmem:[%s8984_s4 + $0x148] sm:$0xff] }
 0xc26   : > { %v3870_v3 = vpop.f32.mrf.mxu1 }
 0xc27   : > { %v3877_v1 = vpack.c.bf16 %v3870_v3, %v3866_v19  ;;  %v4691_v19 = vld [vmem:[%s8984_s4 + $0x150] sm:$0xff]  ;;  %v4693_v3 = vld [vmem:[%s8984_s4 + $0x140] sm:$0xff] }
 0xc29   : > { %3900 = vmatprep.subr.bf16.mxu1 %v3877_v1  ;;  %v4694_v1 = vld [vmem:[%s8984_s4 + $0x138] sm:$0xff] }
 0xc2a   : > { %3901 = vmatpush1.bf16.msra.mxu1 %v3876_v27  ;;  %v4695_v27 = vld [vmem:[%s8984_s4 + $0x130] sm:$0xff] }
 0xc2b   : > { %4010 = vmatprep.subr.mxu1 %v4638_v33  ;;  %v4697_v33 = vld [vmem:[%s8984_s4 + $0x120] sm:$0xff] }
 0xc2d   : > { %4312 = vmatmul.mubr.msk.bf16.vlgmr.msra.gmra.mxu1 %vm9806_vm10, %v4539_v4  ;;  %v4696_v4 = vld [vmem:[%s8984_s4 + $0x128] sm:$0xff] }
 0xc2e   : > { %4011 = vmatpush1.msra.mxu1 %v4639_v9  ;;  %4074 = vmatprep.mubr.f32.mxu1 %v2682_v12  ;;  %v4699_v12 = vld [vmem:[%s8984_s4 + $0x110] sm:$0xff]  ;;  %v9807_v9 = vld [vmem:[#allocation13_spill] sm:$0xff] }
 0xc2f   : > { %4012 = vmatprep.subr.mxu1 %v4640_v58  ;;  %v2681_v58 = vadd.f32 %v8648_v34, %v9807_v9 }
 0xc30   : > { %4013 = vmatpush1.msra.mxu1 %v4641_v48  ;;  %v4700_v48 = vld [vmem:[%s8984_s4 + $0x108] sm:$0xff] }
 0xc31   : > { %4014 = vmatprep.subr.mxu1 %v4642_v54  ;;  %v9808_v54 = vld [vmem:[#allocation16_spill] sm:$0xff] }
 0xc32   : > { %4015 = vmatpush1.msra.mxu1 %v4643_v16  ;;  %v2684_v16 = vadd.f32 %v8654_v0, %v9808_v54 }
 0xc33   : > { %4016 = vmatprep.subr.mxu1 %v4644_v21  ;;  %v4701_v21 = vld [vmem:[%s8984_s4 + $0x100] sm:$0xff] }
 0xc34   : > { %4017 = vmatpush1.msra.mxu1 %v4645_v28  ;;  %v9809_v28 = vld [vmem:[#allocation15_spill] sm:$0xff] }
 0xc35   : > { %4018 = vmatprep.subr.mxu1 %v4646_v53  ;;  %v2683_v53 = vadd.f32 %v8652_v43, %v9809_v28 }
 0xc36   : > { %4019 = vmatpush1.msra.mxu1 %v4647_v13 }
 0xc37   : > { %4020 = vmatprep.subr.mxu1 %v4648_v51  ;;  %v9810_v51 = vld [vmem:[#allocation28_spill] sm:$0xff] }
 0xc38   : > { %4021 = vmatpush1.msra.mxu1 %v4649_v32 }
 0xc39   : > { %4022 = vmatprep.subr.mxu1 %v4650_v17  ;;  %v9811_v17 = vld [vmem:[#allocation26_spill] sm:$0xff] }
 0xc3a   : > { %4023 = vmatpush1.msra.mxu1 %v4651_v61 }
 0xc3b   : > { %4024 = vmatprep.subr.mxu1 %v4652_v63 }
 0xc3c   : > { %4025 = vmatpush1.msra.mxu1 %v4653_v42  ;;  %v9812_v42 = vld [vmem:[#allocation32_spill] sm:$0xff] }
 0xc3d   : > { %4026 = vmatprep.subr.mxu1 %v4654_v5 }
 0xc3e   : > { %4027 = vmatpush1.msra.mxu1 %v4655_v36  ;;  %v9813_v36 = vld [vmem:[#allocation30_spill] sm:$0xff] }
 0xc3f   : > { %4028 = vmatprep.subr.mxu1 %v4656_v50 }
 0xc40   : > { %4029 = vmatpush1.msra.mxu1 %v4657_v20 }
 0xc41   : > { %4030 = vmatprep.subr.mxu1 %v4658_v38 }
 0xc42   : > { %4031 = vmatpush1.msra.mxu1 %v4659_v55 }
 0xc43   : > { %4032 = vmatprep.subr.mxu1 %v4660_v40 }
 0xc44   : > { %4033 = vmatpush1.msra.mxu1 %v4661_v59 }
 0xc45   : > { %4034 = vmatprep.subr.mxu1 %v4662_v7 }
 0xc46   : > { %4035 = vmatpush1.msra.mxu1 %v4663_v2 }
 0xc47   : > { %4036 = vmatprep.subr.mxu1 %v4664_v46 }
 0xc48   : > { %4037 = vmatpush1.msra.mxu1 %v4665_v41  ;;  %v4702_v41 = vld [vmem:[%s4810_s30] sm:$0xff] }
 0xc49   : > { %4038 = vmatprep.subr.mxu1 %v4666_v39 }
 0xc4a   : > { %4039 = vmatpush1.msra.mxu1 %v4667_v35 }
 0xc4b   : > { %4040 = vmatprep.subr.mxu1 %v4668_v6 }
 0xc4c   : > { %4041 = vmatpush1.msra.mxu1 %v4669_v47 }
 0xc4d   : > { %4042 = vmatprep.subr.mxu1 %v4670_v18 }
 0xc4e   : > { %4043 = vmatpush2.msra.mxu1 %v4671_v57  ;;  %v4703_v57 = vld [vmem:[%s4810_s30 + $0x8] sm:$0xff] }
 0xc4f   : > { %4044 = vmatprep.subr.mxu1 %v4672_v45 }
 0xc50   : > { %4045 = vmatpush2.msra.mxu1 %v4673_v25 }
 0xc51   : > { %4046 = vmatprep.subr.mxu1 %v4674_v14 }
 0xc52   : > { %4047 = vmatpush2.msra.mxu1 %v4675_v60  ;;  %v4704_v60 = vld [vmem:[%s4810_s30 + $0x10] sm:$0xff] }
 0xc53   : > { %4048 = vmatprep.subr.mxu1 %v4676_v30 }
 0xc54   : > { %4049 = vmatpush2.msra.mxu1 %v4677_v24 }
 0xc55   : > { %4050 = vmatprep.subr.mxu1 %v4678_v23  ;;  %v4705_v23 = vld [vmem:[%s4810_s30 + $0x18] sm:$0xff] }
 0xc56   : > { %4051 = vmatpush2.msra.mxu1 %v4679_v11 }
 0xc57   : > { %4052 = vmatprep.subr.mxu1 %v4680_v15 }
 0xc58   : > { %4053 = vmatpush2.msra.mxu1 %v4681_v37 }
 0xc59   : > { %4054 = vmatprep.subr.mxu1 %v4682_v62 }
 0xc5a   : > { %4055 = vmatpush2.msra.mxu1 %v4683_v8 }
 0xc5b   : > { %4056 = vmatprep.subr.mxu1 %v4684_v49 }
 0xc5c   : > { %4057 = vmatpush2.msra.mxu1 %v4685_v56 }
 0xc5d   : > { %4058 = vmatprep.subr.mxu1 %v4686_v29 }
 0xc5e   : > { %4059 = vmatpush2.msra.mxu1 %v4687_v10 }
 0xc5f   : > { %4060 = vmatprep.subr.mxu1 %v4688_v26 }
 0xc60   : > { %4061 = vmatpush2.msra.mxu1 %v4689_v52 }
 0xc61   : > { %4062 = vmatprep.subr.mxu1 %v4690_v22 }
 0xc62   : > { %4063 = vmatpush2.msra.mxu1 %v4691_v19 }
 0xc63   : > { %4064 = vmatprep.subr.mxu1 %v4692_v44 }
 0xc64   : > { %4065 = vmatpush2.msra.mxu1 %v4693_v3 }
 0xc65   : > { %4066 = vmatprep.subr.mxu1 %v4694_v1 }
 0xc66   : > { %4067 = vmatpush2.msra.mxu1 %v4695_v27 }
 0xc67   : > { %4068 = vmatprep.subr.mxu1 %v4696_v4 }
 0xc68   : > { %4069 = vmatpush2.msra.mxu1 %v4697_v33 }
 0xc69   : > { %4070 = vmatprep.subr.mxu1 %v4698_v31 }
 0xc6a   : > { %4071 = vmatpush2.msra.mxu1 %v4699_v12 }
 0xc6b   : > { %4072 = vmatprep.subr.mxu1 %v4700_v48 }
 0xc6c   : > { %4073 = vmatpush2.msra.mxu1 %v4701_v21 }
 0xc6d   : > { %4075 = vmatmul.mubr.f32.vlgmr.msra.gmra.mxu1 %v2681_v58 }
 0xc6e   : > { %4080 = vmatprep.mubr.f32.mxu1 %v2684_v16 }
 0xc71   : > { %4081 = vmatmul.mubr.f32.gmra.mxu1 %v2683_v53 }
 0xced   : > { %v3920_v34 = vpop.f32.mrf.mxu1 }
 0xcee   : > { %v3929_v61 = vadd.f32 %v3920_v34, %v9811_v17 }
 0xcef   : > { %v3922_v13 = vpop.f32.mrf.mxu1 }
 0xcf0   : > { %v3930_v32 = vadd.f32 %v3922_v13, %v9810_v51 }
 0xcf1   : > { %v3924_v63 = vpop.f32.mrf.mxu1 }
 0xcf2   : > { %3997 = vmatprep.mubr.f32.mxu0 %v3930_v32  ;;  %v3931_v50 = vadd.f32 %v3924_v63, %v9813_v36 }
 0xcf3   : > { %v3926_v0 = vpop.f32.mrf.mxu1  ;;  %3998 = vmatmul.mubr.f32.vlgmr.msra.gmra.mxu0 %v3929_v61 }
 0xcf4   : > { %v3932_v5 = vadd.f32 %v3926_v0, %v9812_v42 }
 0xcf6   : > { %4003 = vmatprep.mubr.f32.mxu0 %v3932_v5 }
 0xcf7   : > { %4004 = vmatmul.mubr.f32.gmra.mxu0 %v3931_v50 }
 0xd2d   : > { %v4076_v43 = vpop.f32.mrf.mxu1 }
 0xd2f   : > { %v4078_v20 = vpop.f32.mrf.mxu1 }
 0xd31   : > { %v4082_v40 = vpop.f32.mrf.mxu1 }
 0xd33   : > { %v4084_v47 = vpop.f32.mrf.mxu1 }
 0xdb3   : > { %v3999_v38 = vpop.f32.mrf.mxu0 }
 0xdb4   : > { %v4077_v55 = vadd.f32 %v4076_v43, %v3999_v38 }
 0xdb5   : > { %v4001_v59 = vpop.f32.mrf.mxu0 }
 0xdb6   : > { %v4087_v7 = vmul.f32 0.00390625, %v4077_v55  ;;  %v4079_v2 = vadd.f32 %v4078_v20, %v4001_v59 }
 0xdb7   : > { %v4005_v46 = vpop.f32.mrf.mxu0 }
 0xdb8   : > { %v4091_v39 = vadd.f32 %v4702_v41, %v4087_v7  ;;  %v4088_v35 = vmul.f32 0.00390625, %v4079_v2  ;;  %v4083_v6 = vadd.f32 %v4082_v40, %v4005_v46 }
 0xdb9   : > { %v4007_v18 = vpop.f32.mrf.mxu0 }
 0xdba   : > { %4095 = vst [vmem:[%s460_s1] sm:$0xff] %v4091_v39  ;;  %v4092_v45 = vadd.f32 %v4703_v57, %v4088_v35  ;;  %v4089_v25 = vmul.f32 0.00390625, %v4083_v6  ;;  %v4085_v14 = vadd.f32 %v4084_v47, %v4007_v18 }
 0xdbc   : > { %4096 = vst [vmem:[%s460_s1 + $0x8] sm:$0xff] %v4092_v45  ;;  %v4093_v30 = vadd.f32 %v4704_v60, %v4089_v25  ;;  %v4090_v24 = vmul.f32 0.00390625, %v4085_v14 }
 0xdbe   : > { %4097 = vst [vmem:[%s460_s1 + $0x10] sm:$0xff] %v4093_v30  ;;  %v4094_v11 = vadd.f32 %v4705_v23, %v4090_v24 }
 0xdc0   : > { %4098 = vst [vmem:[%s460_s1 + $0x18] sm:$0xff] %v4094_v11 }
 0xdc1 PF: > { %s23_s25 = sadd.s32 1, %s4712_s25  }
 0xdc2   : > { %p20_p4 = scmp.ge.s32.totalorder %s23_s25, 4  }
 0xdc4   :  { %22 = sbr.rel (!%p20_p4) target bundleno = 5 (0x5), region = 125 }

</bundles_post_ra>
